<compile_context>
chip_gen: v5e
topology: v5e:2x2
jax: 0.10.0
libtpu: 0.0.40
codegen_flags: <defaults>
</compile_context>

<pallas_src>
import functools

import jax
import jax.numpy as jnp
from jax.experimental import pallas as pl
from jax.experimental.pallas import tpu as pltpu

INPUT_SIZE = 8
HIDDEN = 32
LATENT_DIM = 4
CATEGORICAL_DIM = 8
LATENT_FLAT = LATENT_DIM * CATEGORICAL_DIM      # 32

PACK = 4                                        # logical rows packed per lane-row
X_LANES = PACK * INPUT_SIZE                     # 32
H_LANES = PACK * HIDDEN                         # 128
Z_LANES = PACK * LATENT_FLAT                    # 128
N_GROUPS = PACK * LATENT_DIM                    # 16 categorical groups / packed row

TILE_ROWS_MAX = 1024                            # packed rows per grid step


def _round_up(x, m):
    return ((x + m - 1) // m) * m


# ----------------------------------------------------------------------------
# Kernel
# ----------------------------------------------------------------------------
def vae_gumbel_kernel(x_ref, g_ref, gmask_ref,                         # data
                      w1_ref, b1_ref, w2_ref, b2_ref, w3_ref, b3_ref,  # encoder
                      d1_ref, db1_ref, d2_ref, db2_ref, d3_ref, db3_ref,  # decoder
                      recon_ref, qsoft_ref, z_ref,
                      *, inv_temp, hard):
    tile = x_ref.shape[0]
    gmask = gmask_ref[...]                       # (Z_LANES, Z_LANES) bf16, constant

    def group_softmax(y):
        # Per-8-lane-group softmax on a (tile, Z_LANES) slab.
        # Per-group max for numerical stability; exp / divide stay full-width;
        # group sums (broadcast back across each group) via bf16 MXU matmul.
        m = jnp.max(y.reshape(tile, N_GROUPS, CATEGORICAL_DIM),
                    axis=-1, keepdims=True)
        m = jnp.broadcast_to(m, (tile, N_GROUPS, CATEGORICAL_DIM)
                             ).reshape(tile, Z_LANES)
        e = jnp.exp(y - m)
        s = jnp.dot(e.astype(jnp.bfloat16), gmask,
                    preferred_element_type=jnp.float32)
        return e / s                              # exact division

    # ------------------------------ encoder ------------------------------
    x = x_ref[...]                                # (tile, X_LANES) bf16
    h1 = jnp.maximum(
        jnp.dot(x, w1_ref[...], preferred_element_type=jnp.float32)
        + b1_ref[...], 0.0)
    h2 = jnp.maximum(
        jnp.dot(h1.astype(jnp.bfloat16), w2_ref[...],
                preferred_element_type=jnp.float32) + b2_ref[...], 0.0)
    q = jnp.dot(h2.astype(jnp.bfloat16), w3_ref[...],
                preferred_element_type=jnp.float32) + b3_ref[...]  # (tile, Z_LANES)

    # --------------------- z = gumbel_softmax(q, temp, hard) ---------------
    yg = q + g_ref[...]                           # pre-generated Gumbel noise

    if hard:
        # Straight-through forward value: exact one-hot at the per-group argmax
        # of (logits + gumbel); argmax is invariant to 1/temp scaling.
        # Full-slab compares only (no 8-lane slicing / concatenate).
        lane = jax.lax.broadcasted_iota(jnp.int32, (tile, Z_LANES), 1) % CATEGORICAL_DIM
        gmx = jnp.max(yg.reshape(tile, N_GROUPS, CATEGORICAL_DIM),
                      axis=-1, keepdims=True)
        gmx = jnp.broadcast_to(gmx, (tile, N_GROUPS, CATEGORICAL_DIM)
                               ).reshape(tile, Z_LANES)
        cand = jnp.where(yg >= gmx, lane, CATEGORICAL_DIM)
        first = jnp.min(cand.reshape(tile, N_GROUPS, CATEGORICAL_DIM),
                        axis=-1, keepdims=True)
        first = jnp.broadcast_to(first, (tile, N_GROUPS, CATEGORICAL_DIM)
                                 ).reshape(tile, Z_LANES)
        z = (lane == first).astype(jnp.float32)
    else:
        z = group_softmax(yg * inv_temp)

    z_ref[...] = z                                # lane-dense (tile, 128) store

    # ------------------------- softmax(q_y, dim=-1) ------------------------
    qsoft_ref[...] = group_softmax(q)

    # ------------------------------ decoder -------------------------------
    hd1 = jnp.maximum(
        jnp.dot(z.astype(jnp.bfloat16), d1_ref[...],
                preferred_element_type=jnp.float32) + db1_ref[...], 0.0)
    hd2 = jnp.maximum(
        jnp.dot(hd1.astype(jnp.bfloat16), d2_ref[...],
                preferred_element_type=jnp.float32) + db2_ref[...], 0.0)
    logits = jnp.dot(hd2.astype(jnp.bfloat16), d3_ref[...],
                     preferred_element_type=jnp.float32) + db3_ref[...]
    recon_ref[...] = jax.nn.sigmoid(logits)


# ----------------------------------------------------------------------------
# Parameters + packing helpers
# ----------------------------------------------------------------------------
def init_params(key):
    ks = jax.random.split(key, 6)

    def lin(k, fan_in, fan_out):
        w = jax.random.normal(k, (fan_in, fan_out), jnp.float32) / jnp.sqrt(
            jnp.float32(fan_in))
        b = jnp.zeros((1, fan_out), jnp.float32)
        return w, b

    w1, b1 = lin(ks[0], INPUT_SIZE, HIDDEN)
    w2, b2 = lin(ks[1], HIDDEN, HIDDEN)
    w3, b3 = lin(ks[2], HIDDEN, LATENT_FLAT)
    d1, db1 = lin(ks[3], LATENT_FLAT, HIDDEN)
    d2, db2 = lin(ks[4], HIDDEN, HIDDEN)
    d3, db3 = lin(ks[5], HIDDEN, INPUT_SIZE)
    return (w1, b1, w2, b2, w3, b3, d1, db1, d2, db2, d3, db3)


def _pack_params(params):
    """Block-diagonal bf16 weights (PACK*fin, PACK*fout) + tiled f32 biases."""
    def wpack(w):
        return jax.scipy.linalg.block_diag(*([w] * PACK)).astype(jnp.bfloat16)

    def bpack(b):
        return jnp.tile(b, (1, PACK)).astype(jnp.float32)

    w1, b1, w2, b2, w3, b3, d1, db1, d2, db2, d3, db3 = params
    return (wpack(w1), bpack(b1), wpack(w2), bpack(b2), wpack(w3), bpack(b3),
            wpack(d1), bpack(db1), wpack(d2), bpack(db2), wpack(d3), bpack(db3))


def _group_mask():
    """(Z_LANES, Z_LANES) block-diagonal ones over 8-lane categorical groups."""
    g = jnp.arange(Z_LANES) // CATEGORICAL_DIM
    return (g[:, None] == g[None, :]).astype(jnp.bfloat16)


# ----------------------------------------------------------------------------
# Wrapper
# ----------------------------------------------------------------------------
def vae_gumbel_forward(x, params, g_noise, temp, hard, tile_rows=TILE_ROWS_MAX):
    """Returns (decoder(z), softmax(q_y, -1).reshape(N, L*C), z), like the module.

    g_noise: (N, LATENT_FLAT) f32 standard-Gumbel noise (N = x.size // INPUT_SIZE).
    """
    x_flat = x.reshape(-1, INPUT_SIZE).astype(jnp.float32)   # x.view(-1, 8)
    n = x_flat.shape[0]
    g_flat = g_noise.reshape(n, LATENT_FLAT).astype(jnp.float32)

    # Pack PACK logical rows per lane-row (contiguous reshape, free in HBM).
    n_pack = _round_up(n, PACK)
    if n_pack != n:
        x_flat = jnp.pad(x_flat, ((0, n_pack - n), (0, 0)))
        g_flat = jnp.pad(g_flat, ((0, n_pack - n), (0, 0)))
    rows = n_pack // PACK
    x_packed = x_flat.reshape(rows, X_LANES).astype(jnp.bfloat16)
    g_packed = g_flat.reshape(rows, Z_LANES)

    # Tile choice: VMEM-safe cap and >=2 grid steps when possible (v7x dual-TC).
    tile_rows = max(8, min(tile_rows, _round_up(pl.cdiv(rows, 2), 8)))
    rows_pad = pl.cdiv(rows, tile_rows) * tile_rows
    if rows_pad != rows:
        x_packed = jnp.pad(x_packed, ((0, rows_pad - rows), (0, 0)))
        g_packed = jnp.pad(g_packed, ((0, rows_pad - rows), (0, 0)))
    grid = (rows_pad // tile_rows,)

    packed = _pack_params(params)
    gmask = _group_mask()

    def row_block(feat):
        return pl.BlockSpec((tile_rows, feat), lambda i: (i, 0))

    def full_block(a):      # grid-invariant constant block, resident in VMEM
        return pl.BlockSpec(a.shape, lambda i: (0,) * a.ndim)

    in_specs = ([row_block(X_LANES), row_block(Z_LANES), full_block(gmask)]
                + [full_block(p) for p in packed])
    out_specs = (row_block(X_LANES), row_block(Z_LANES), row_block(Z_LANES))
    out_shape = (jax.ShapeDtypeStruct((rows_pad, X_LANES), jnp.float32),
                 jax.ShapeDtypeStruct((rows_pad, Z_LANES), jnp.float32),
                 jax.ShapeDtypeStruct((rows_pad, Z_LANES), jnp.float32))

    kernel = functools.partial(vae_gumbel_kernel,
                               inv_temp=1.0 / float(temp), hard=bool(hard))

    # Advisory cost estimate (review item): MXU flops, EUP transcendentals, HBM bytes.
    n_group_mm = 1 if hard else 2
    flops = 2 * rows_pad * (2 * X_LANES * H_LANES + 4 * H_LANES * H_LANES
                            + n_group_mm * Z_LANES * Z_LANES)
    transcendentals = rows_pad * (n_group_mm * Z_LANES + X_LANES)
    bytes_accessed = (x_packed.size * 2 + g_packed.size * 4
                      + rows_pad * (X_LANES + 2 * Z_LANES) * 4
                      + sum(int(p.size) * p.dtype.itemsize for p in packed)
                      + gmask.size * 2)

    recon_p, qsoft_p, z_p = pl.pallas_call(
        kernel,
        grid=grid,
        in_specs=in_specs,
        out_specs=out_specs,
        out_shape=out_shape,
        compiler_params=pltpu.CompilerParams(
            dimension_semantics=("parallel",),
            vmem_limit_bytes=32 * 1024 * 1024),
        cost_estimate=pl.CostEstimate(flops=int(flops),
                                      transcendentals=int(transcendentals),
                                      bytes_accessed=int(bytes_accessed)),
    )(x_packed, g_packed, gmask, *packed)

    # Unpack lane-dense slabs back to per-row layout (free contiguous reshapes).
    recon = recon_p[:rows].reshape(n_pack, INPUT_SIZE)[:n]
    qsoft = qsoft_p[:rows].reshape(n_pack, LATENT_FLAT)[:n]
    z = z_p[:rows].reshape(n_pack, LATENT_FLAT)[:n]
    return recon, qsoft, z


# ----------------------------------------------------------------------------
# Pure-JAX reference (mirrors the kernel's bf16-matmul numerics) for self-check
# ----------------------------------------------------------------------------
def reference_forward(x, params, g_noise, temp, hard):
    w1, b1, w2, b2, w3, b3, d1, db1, d2, db2, d3, db3 = params
    bf = lambda a: a.astype(jnp.bfloat16)
    mm = lambda a, w: jnp.dot(bf(a), bf(w), preferred_element_type=jnp.float32)

    x2 = x.reshape(-1, INPUT_SIZE).astype(jnp.float32)
    h1 = jnp.maximum(mm(x2, w1) + b1, 0.0)
    h2 = jnp.maximum(mm(h1, w2) + b2, 0.0)
    q = mm(h2, w3) + b3
    qy = q.reshape(-1, LATENT_DIM, CATEGORICAL_DIM)
    gy = g_noise.reshape(-1, LATENT_DIM, CATEGORICAL_DIM)
    if hard:
        idx = jnp.argmax(qy + gy, axis=-1)
        z = jax.nn.one_hot(idx, CATEGORICAL_DIM, dtype=jnp.float32)
    else:
        z = jax.nn.softmax((qy + gy) / temp, axis=-1)
    z = z.reshape(-1, LATENT_FLAT)
    qsoft = jax.nn.softmax(qy, axis=-1).reshape(-1, LATENT_FLAT)
    hd1 = jnp.maximum(mm(z, d1) + db1, 0.0)
    hd2 = jnp.maximum(mm(hd1, d2) + db2, 0.0)
    recon = jax.nn.sigmoid(mm(hd2, d3) + db3)
    return recon, qsoft, z


# ----------------------------------------------------------------------------
if __name__ == "__main__":
    key = jax.random.PRNGKey(0)
    k_param, k_x, k_g = jax.random.split(key, 3)

    # Small NCHW input; B*C*H*W must be divisible by INPUT_SIZE=8.
    B, C, H, W = 2, 4, 16, 16
    x = jax.random.normal(k_x, (B, C, H, W), jnp.float32)
    params = init_params(k_param)

    n_rows = (B * C * H * W) // INPUT_SIZE
    temp = 1.0
    g_noise = jax.random.gumbel(k_g, (n_rows, LATENT_FLAT), jnp.float32)

    # hard=True path (straight-through one-hot sample)
    recon_h, qsoft_h, z_h = vae_gumbel_forward(x, params, g_noise, temp, hard=True)
    # hard=False path (soft gumbel-softmax sample)
    recon_s, qsoft_s, z_s = vae_gumbel_forward(x, params, g_noise, temp, hard=False)
    jax.block_until_ready((recon_h, qsoft_h, z_h, recon_s, qsoft_s, z_s))

    assert recon_h.shape == (n_rows, INPUT_SIZE)
    assert qsoft_h.shape == (n_rows, LATENT_FLAT)
    assert z_h.shape == (n_rows, LATENT_FLAT)

    # Hard samples are exact one-hots per categorical group.
    zh3 = z_h.reshape(n_rows, LATENT_DIM, CATEGORICAL_DIM)
    assert bool(jnp.all(zh3.sum(-1) == 1.0))
    assert bool(jnp.all((z_h == 0.0) | (z_h == 1.0)))

    # Soft samples / q-softmax sum to ~1 per group (bf16 group-sum matmul).
    zs_sums = z_s.reshape(n_rows, LATENT_DIM, CATEGORICAL_DIM).sum(-1)
    qs_sums = qsoft_s.reshape(n_rows, LATENT_DIM, CATEGORICAL_DIM).sum(-1)
    assert bool(jnp.all(jnp.isfinite(recon_h)) & jnp.all(jnp.isfinite(recon_s)))
    assert bool(jnp.all(jnp.abs(zs_sums - 1.0) < 2e-2))
    assert bool(jnp.all(jnp.abs(qs_sums - 1.0) < 2e-2))
    assert bool(jnp.all((recon_h >= 0.0) & (recon_h <= 1.0)))
    assert bool(jnp.all((recon_s >= 0.0) & (recon_s <= 1.0)))

    # Compare against a pure-JAX reference with matching numerics.
    ref_recon_s, ref_qsoft, ref_z_s = reference_forward(x, params, g_noise, temp, hard=False)
    _, _, ref_z_h = reference_forward(x, params, g_noise, temp, hard=True)

    assert float(jnp.max(jnp.abs(qsoft_h - ref_qsoft))) < 3e-2
    assert float(jnp.max(jnp.abs(z_s - ref_z_s))) < 3e-2
    assert float(jnp.max(jnp.abs(recon_s - ref_recon_s))) < 3e-2
    agree = jnp.mean(jnp.all(z_h == ref_z_h, axis=-1).astype(jnp.float32))
    assert float(agree) > 0.99

    print("KERNEL_OK")
</pallas_src>

<mosaic_0001>
module attributes {stable_mosaic.version = 11 : i64} {
  func.func @vae_gumbel_kernel(%arg0: i32, %arg1: memref<32x32xbf16, #tpu.memory_space<vmem>>, %arg2: memref<32x128xf32, #tpu.memory_space<vmem>>, %arg3: memref<128x128xbf16, #tpu.memory_space<vmem>>, %arg4: memref<32x128xbf16, #tpu.memory_space<vmem>>, %arg5: memref<1x128xf32, #tpu.memory_space<vmem>>, %arg6: memref<128x128xbf16, #tpu.memory_space<vmem>>, %arg7: memref<1x128xf32, #tpu.memory_space<vmem>>, %arg8: memref<128x128xbf16, #tpu.memory_space<vmem>>, %arg9: memref<1x128xf32, #tpu.memory_space<vmem>>, %arg10: memref<128x128xbf16, #tpu.memory_space<vmem>>, %arg11: memref<1x128xf32, #tpu.memory_space<vmem>>, %arg12: memref<128x128xbf16, #tpu.memory_space<vmem>>, %arg13: memref<1x128xf32, #tpu.memory_space<vmem>>, %arg14: memref<128x32xbf16, #tpu.memory_space<vmem>>, %arg15: memref<1x32xf32, #tpu.memory_space<vmem>>, %arg16: memref<32x32xf32, #tpu.memory_space<vmem>>, %arg17: memref<32x128xf32, #tpu.memory_space<vmem>>, %arg18: memref<32x128xf32, #tpu.memory_space<vmem>>) attributes {dimension_semantics = [#tpu.dimension_semantics<parallel>], iteration_bounds = array<i64: 2>, scalar_prefetch = 0 : i64, scratch_operands = 0 : i64, tpu.core_type = #tpu.core_type<tc>, window_params = [{transform_indices = @transform_0, window_bounds = array<i64: 32, 32>}, {transform_indices = @transform_1, window_bounds = array<i64: 32, 128>}, {pipeline_mode = #tpu.pipeline_mode<synchronous>, transform_indices = @transform_2, window_bounds = array<i64: 128, 128>}, {pipeline_mode = #tpu.pipeline_mode<synchronous>, transform_indices = @transform_3, window_bounds = array<i64: 32, 128>}, {pipeline_mode = #tpu.pipeline_mode<synchronous>, transform_indices = @transform_4, window_bounds = array<i64: 1, 128>}, {pipeline_mode = #tpu.pipeline_mode<synchronous>, transform_indices = @transform_5, window_bounds = array<i64: 128, 128>}, {pipeline_mode = #tpu.pipeline_mode<synchronous>, transform_indices = @transform_6, window_bounds = array<i64: 1, 128>}, {pipeline_mode = #tpu.pipeline_mode<synchronous>, transform_indices = @transform_7, window_bounds = array<i64: 128, 128>}, {pipeline_mode = #tpu.pipeline_mode<synchronous>, transform_indices = @transform_8, window_bounds = array<i64: 1, 128>}, {pipeline_mode = #tpu.pipeline_mode<synchronous>, transform_indices = @transform_9, window_bounds = array<i64: 128, 128>}, {pipeline_mode = #tpu.pipeline_mode<synchronous>, transform_indices = @transform_10, window_bounds = array<i64: 1, 128>}, {pipeline_mode = #tpu.pipeline_mode<synchronous>, transform_indices = @transform_11, window_bounds = array<i64: 128, 128>}, {pipeline_mode = #tpu.pipeline_mode<synchronous>, transform_indices = @transform_12, window_bounds = array<i64: 1, 128>}, {pipeline_mode = #tpu.pipeline_mode<synchronous>, transform_indices = @transform_13, window_bounds = array<i64: 128, 32>}, {pipeline_mode = #tpu.pipeline_mode<synchronous>, transform_indices = @transform_14, window_bounds = array<i64: 1, 32>}, {transform_indices = @transform_15, window_bounds = array<i64: 32, 32>}, {transform_indices = @transform_16, window_bounds = array<i64: 32, 128>}, {transform_indices = @transform_17, window_bounds = array<i64: 32, 128>}]} {
    %c0 = arith.constant 0 : index
    %c0_0 = arith.constant 0 : index
    %0 = vector.load %arg3[%c0, %c0_0] : memref<128x128xbf16, #tpu.memory_space<vmem>>, vector<128x128xbf16>
    %c0_1 = arith.constant 0 : index
    %c0_2 = arith.constant 0 : index
    %1 = vector.load %arg1[%c0_1, %c0_2] : memref<32x32xbf16, #tpu.memory_space<vmem>>, vector<32x32xbf16>
    %c0_3 = arith.constant 0 : index
    %c0_4 = arith.constant 0 : index
    %2 = vector.load %arg4[%c0_3, %c0_4] : memref<32x128xbf16, #tpu.memory_space<vmem>>, vector<32x128xbf16>
    %cst = arith.constant dense<0.000000e+00> : vector<32x128xf32>
    %3 = tpu.matmul %1, %2, %cst {dimension_numbers = #tpu.dot_dimension_numbers<[1], [0], [0], [1], [0, 0, 1, 1], [], []>} : vector<32x32xbf16>, vector<32x128xbf16>, vector<32x128xf32> -> vector<32x128xf32>
    %c0_5 = arith.constant 0 : index
    %c0_6 = arith.constant 0 : index
    %4 = vector.load %arg5[%c0_5, %c0_6] : memref<1x128xf32, #tpu.memory_space<vmem>>, vector<1x128xf32>
    %5 = vector.broadcast %4 : vector<1x128xf32> to vector<32x128xf32>
    %6 = arith.addf %3, %5 : vector<32x128xf32>
    %cst_7 = arith.constant 0.000000e+00 : f32
    %7 = vector.broadcast %cst_7 : f32 to vector<32x128xf32>
    %8 = arith.maximumf %6, %7 : vector<32x128xf32>
    %9 = arith.truncf %8 : vector<32x128xf32> to vector<32x128xbf16>
    %c0_8 = arith.constant 0 : index
    %c0_9 = arith.constant 0 : index
    %10 = vector.load %arg6[%c0_8, %c0_9] : memref<128x128xbf16, #tpu.memory_space<vmem>>, vector<128x128xbf16>
    %cst_10 = arith.constant dense<0.000000e+00> : vector<32x128xf32>
    %11 = tpu.matmul %9, %10, %cst_10 {dimension_numbers = #tpu.dot_dimension_numbers<[1], [0], [0], [1], [0, 0, 1, 1], [], []>} : vector<32x128xbf16>, vector<128x128xbf16>, vector<32x128xf32> -> vector<32x128xf32>
    %c0_11 = arith.constant 0 : index
    %c0_12 = arith.constant 0 : index
    %12 = vector.load %arg7[%c0_11, %c0_12] : memref<1x128xf32, #tpu.memory_space<vmem>>, vector<1x128xf32>
    %13 = vector.broadcast %12 : vector<1x128xf32> to vector<32x128xf32>
    %14 = arith.addf %11, %13 : vector<32x128xf32>
    %cst_13 = arith.constant 0.000000e+00 : f32
    %15 = vector.broadcast %cst_13 : f32 to vector<32x128xf32>
    %16 = arith.maximumf %14, %15 : vector<32x128xf32>
    %17 = arith.truncf %16 : vector<32x128xf32> to vector<32x128xbf16>
    %c0_14 = arith.constant 0 : index
    %c0_15 = arith.constant 0 : index
    %18 = vector.load %arg8[%c0_14, %c0_15] : memref<128x128xbf16, #tpu.memory_space<vmem>>, vector<128x128xbf16>
    %cst_16 = arith.constant dense<0.000000e+00> : vector<32x128xf32>
    %19 = tpu.matmul %17, %18, %cst_16 {dimension_numbers = #tpu.dot_dimension_numbers<[1], [0], [0], [1], [0, 0, 1, 1], [], []>} : vector<32x128xbf16>, vector<128x128xbf16>, vector<32x128xf32> -> vector<32x128xf32>
    %c0_17 = arith.constant 0 : index
    %c0_18 = arith.constant 0 : index
    %20 = vector.load %arg9[%c0_17, %c0_18] : memref<1x128xf32, #tpu.memory_space<vmem>>, vector<1x128xf32>
    %21 = vector.broadcast %20 : vector<1x128xf32> to vector<32x128xf32>
    %22 = arith.addf %19, %21 : vector<32x128xf32>
    %c0_19 = arith.constant 0 : index
    %c0_20 = arith.constant 0 : index
    %23 = vector.load %arg2[%c0_19, %c0_20] : memref<32x128xf32, #tpu.memory_space<vmem>>, vector<32x128xf32>
    %24 = arith.addf %22, %23 : vector<32x128xf32>
    %25 = tpu.iota {dimensions = array<i32: 1>} : vector<32x128xi32>
    %c8_i32 = arith.constant 8 : i32
    %c0_i32 = arith.constant 0 : i32
    %26 = arith.cmpi eq, %c8_i32, %c0_i32 : i32
    %c1_i32 = arith.constant 1 : i32
    %27 = arith.select %26, %c1_i32, %c8_i32 : i32
    %28 = vector.broadcast %27 : i32 to vector<32x128xi32>
    %29 = arith.remsi %25, %28 : vector<32x128xi32>
    %c0_i32_21 = arith.constant 0 : i32
    %30 = vector.broadcast %c0_i32_21 : i32 to vector<32x128xi32>
    %31 = arith.cmpi ne, %29, %30 : vector<32x128xi32>
    %c0_i32_22 = arith.constant 0 : i32
    %32 = vector.broadcast %c0_i32_22 : i32 to vector<32x128xi32>
    %33 = arith.cmpi slt, %29, %32 : vector<32x128xi32>
    %c0_i32_23 = arith.constant 0 : i32
    %34 = arith.cmpi slt, %27, %c0_i32_23 : i32
    %35 = vector.broadcast %34 : i1 to vector<32x128xi1>
    %36 = vector.broadcast %35 : vector<32x128xi1> to vector<32x128xi1>
    %37 = arith.xori %33, %36 : vector<32x128xi1>
    %38 = arith.andi %37, %31 : vector<32x128xi1>
    %39 = vector.broadcast %27 : i32 to vector<32x128xi32>
    %40 = arith.addi %29, %39 : vector<32x128xi32>
    %41 = arith.select %38, %40, %29 : vector<32x128xi1>, vector<32x128xi32>
    %42 = vector.shape_cast %24 : vector<32x128xf32> to vector<32x16x8xf32>
    %cst_24 = arith.constant dense<0xFF800000> : vector<32x16xf32>
    %43 = vector.multi_reduction <maximumf>, %42, %cst_24 [2] : vector<32x16x8xf32> to vector<32x16xf32>
    %44 = vector.shape_cast %43 : vector<32x16xf32> to vector<32x16x1xf32>
    %45 = vector.shape_cast %44 : vector<32x16x1xf32> to vector<32x16x1xf32>
    %46 = vector.broadcast %45 : vector<32x16x1xf32> to vector<32x16x8xf32>
    %47 = vector.shape_cast %46 : vector<32x16x8xf32> to vector<32x128xf32>
    %48 = arith.cmpf oge, %24, %47 : vector<32x128xf32>
    %c8_i32_25 = arith.constant 8 : i32
    %49 = vector.broadcast %c8_i32_25 : i32 to vector<32x128xi32>
    %50 = arith.select %48, %41, %49 : vector<32x128xi1>, vector<32x128xi32>
    %51 = vector.shape_cast %50 : vector<32x128xi32> to vector<32x16x8xi32>
    %cst_26 = arith.constant dense<2147483647> : vector<32x16xi32>
    %52 = vector.multi_reduction <minsi>, %51, %cst_26 [2] : vector<32x16x8xi32> to vector<32x16xi32>
    %53 = vector.shape_cast %52 : vector<32x16xi32> to vector<32x16x1xi32>
    %54 = vector.shape_cast %53 : vector<32x16x1xi32> to vector<32x16x1xi32>
    %55 = vector.broadcast %54 : vector<32x16x1xi32> to vector<32x16x8xi32>
    %56 = vector.shape_cast %55 : vector<32x16x8xi32> to vector<32x128xi32>
    %57 = arith.cmpi eq, %41, %56 : vector<32x128xi32>
    %58 = arith.extui %57 : vector<32x128xi1> to vector<32x128xi32>
    %59 = arith.sitofp %58 : vector<32x128xi32> to vector<32x128xf32>
    %c0_27 = arith.constant 0 : index
    %c0_28 = arith.constant 0 : index
    %60 = vector.load %arg18[%c0_27, %c0_28] : memref<32x128xf32, #tpu.memory_space<vmem>>, vector<32x128xf32>
    tpu.vector_store %arg18[%c0_27, %c0_28], %59 {strides = array<i32>} : memref<32x128xf32, #tpu.memory_space<vmem>>, vector<32x128xf32>,
    %61 = vector.shape_cast %22 : vector<32x128xf32> to vector<32x16x8xf32>
    %cst_29 = arith.constant dense<0xFF800000> : vector<32x16xf32>
    %62 = vector.multi_reduction <maximumf>, %61, %cst_29 [2] : vector<32x16x8xf32> to vector<32x16xf32>
    %63 = vector.shape_cast %62 : vector<32x16xf32> to vector<32x16x1xf32>
    %64 = vector.shape_cast %63 : vector<32x16x1xf32> to vector<32x16x1xf32>
    %65 = vector.broadcast %64 : vector<32x16x1xf32> to vector<32x16x8xf32>
    %66 = vector.shape_cast %65 : vector<32x16x8xf32> to vector<32x128xf32>
    %67 = arith.subf %22, %66 : vector<32x128xf32>
    %68 = math.exp %67 : vector<32x128xf32>
    %69 = arith.truncf %68 : vector<32x128xf32> to vector<32x128xbf16>
    %cst_30 = arith.constant dense<0.000000e+00> : vector<32x128xf32>
    %70 = tpu.matmul %69, %0, %cst_30 {dimension_numbers = #tpu.dot_dimension_numbers<[1], [0], [0], [1], [0, 0, 1, 1], [], []>} : vector<32x128xbf16>, vector<128x128xbf16>, vector<32x128xf32> -> vector<32x128xf32>
    %71 = arith.divf %68, %70 : vector<32x128xf32>
    %c0_31 = arith.constant 0 : index
    %c0_32 = arith.constant 0 : index
    %72 = vector.load %arg17[%c0_31, %c0_32] : memref<32x128xf32, #tpu.memory_space<vmem>>, vector<32x128xf32>
    tpu.vector_store %arg17[%c0_31, %c0_32], %71 {strides = array<i32>} : memref<32x128xf32, #tpu.memory_space<vmem>>, vector<32x128xf32>,
    %73 = arith.truncf %59 : vector<32x128xf32> to vector<32x128xbf16>
    %c0_33 = arith.constant 0 : index
    %c0_34 = arith.constant 0 : index
    %74 = vector.load %arg10[%c0_33, %c0_34] : memref<128x128xbf16, #tpu.memory_space<vmem>>, vector<128x128xbf16>
    %cst_35 = arith.constant dense<0.000000e+00> : vector<32x128xf32>
    %75 = tpu.matmul %73, %74, %cst_35 {dimension_numbers = #tpu.dot_dimension_numbers<[1], [0], [0], [1], [0, 0, 1, 1], [], []>} : vector<32x128xbf16>, vector<128x128xbf16>, vector<32x128xf32> -> vector<32x128xf32>
    %c0_36 = arith.constant 0 : index
    %c0_37 = arith.constant 0 : index
    %76 = vector.load %arg11[%c0_36, %c0_37] : memref<1x128xf32, #tpu.memory_space<vmem>>, vector<1x128xf32>
    %77 = vector.broadcast %76 : vector<1x128xf32> to vector<32x128xf32>
    %78 = arith.addf %75, %77 : vector<32x128xf32>
    %cst_38 = arith.constant 0.000000e+00 : f32
    %79 = vector.broadcast %cst_38 : f32 to vector<32x128xf32>
    %80 = arith.maximumf %78, %79 : vector<32x128xf32>
    %81 = arith.truncf %80 : vector<32x128xf32> to vector<32x128xbf16>
    %c0_39 = arith.constant 0 : index
    %c0_40 = arith.constant 0 : index
    %82 = vector.load %arg12[%c0_39, %c0_40] : memref<128x128xbf16, #tpu.memory_space<vmem>>, vector<128x128xbf16>
    %cst_41 = arith.constant dense<0.000000e+00> : vector<32x128xf32>
    %83 = tpu.matmul %81, %82, %cst_41 {dimension_numbers = #tpu.dot_dimension_numbers<[1], [0], [0], [1], [0, 0, 1, 1], [], []>} : vector<32x128xbf16>, vector<128x128xbf16>, vector<32x128xf32> -> vector<32x128xf32>
    %c0_42 = arith.constant 0 : index
    %c0_43 = arith.constant 0 : index
    %84 = vector.load %arg13[%c0_42, %c0_43] : memref<1x128xf32, #tpu.memory_space<vmem>>, vector<1x128xf32>
    %85 = vector.broadcast %84 : vector<1x128xf32> to vector<32x128xf32>
    %86 = arith.addf %83, %85 : vector<32x128xf32>
    %cst_44 = arith.constant 0.000000e+00 : f32
    %87 = vector.broadcast %cst_44 : f32 to vector<32x128xf32>
    %88 = arith.maximumf %86, %87 : vector<32x128xf32>
    %89 = arith.truncf %88 : vector<32x128xf32> to vector<32x128xbf16>
    %c0_45 = arith.constant 0 : index
    %c0_46 = arith.constant 0 : index
    %90 = vector.load %arg14[%c0_45, %c0_46] : memref<128x32xbf16, #tpu.memory_space<vmem>>, vector<128x32xbf16>
    %cst_47 = arith.constant dense<0.000000e+00> : vector<32x32xf32>
    %91 = tpu.matmul %89, %90, %cst_47 {dimension_numbers = #tpu.dot_dimension_numbers<[1], [0], [0], [1], [0, 0, 1, 1], [], []>} : vector<32x128xbf16>, vector<128x32xbf16>, vector<32x32xf32> -> vector<32x32xf32>
    %c0_48 = arith.constant 0 : index
    %c0_49 = arith.constant 0 : index
    %92 = vector.load %arg15[%c0_48, %c0_49] : memref<1x32xf32, #tpu.memory_space<vmem>>, vector<1x32xf32>
    %93 = vector.broadcast %92 : vector<1x32xf32> to vector<32x32xf32>
    %94 = arith.addf %91, %93 : vector<32x32xf32>
    %95 = arith.negf %94 : vector<32x32xf32>
    %96 = math.exp %95 : vector<32x32xf32>
    %cst_50 = arith.constant 1.000000e+00 : f32
    %97 = vector.broadcast %cst_50 : f32 to vector<32x32xf32>
    %98 = arith.addf %97, %96 : vector<32x32xf32>
    %99 = arith.divf %97, %98 : vector<32x32xf32>
    %c0_51 = arith.constant 0 : index
    %c0_52 = arith.constant 0 : index
    %100 = vector.load %arg16[%c0_51, %c0_52] : memref<32x32xf32, #tpu.memory_space<vmem>>, vector<32x32xf32>
    tpu.vector_store %arg16[%c0_51, %c0_52], %99 {strides = array<i32>} : memref<32x32xf32, #tpu.memory_space<vmem>>, vector<32x32xf32>,
    return
  }
  func.func @transform_0(%arg0: i32) -> (i32, i32) {
    %c0_i32 = arith.constant 0 : i32
    %c0_i32_0 = arith.constant 0 : i32
    return %arg0, %c0_i32 : i32, i32
  }
  func.func @transform_1(%arg0: i32) -> (i32, i32) {
    %c0_i32 = arith.constant 0 : i32
    %c0_i32_0 = arith.constant 0 : i32
    return %arg0, %c0_i32 : i32, i32
  }
  func.func @transform_2(%arg0: i32) -> (i32, i32) {
    %c0_i32 = arith.constant 0 : i32
    %c0_i32_0 = arith.constant 0 : i32
    %c0_i32_1 = arith.constant 0 : i32
    return %c0_i32, %c0_i32_0 : i32, i32
  }
  func.func @transform_3(%arg0: i32) -> (i32, i32) {
    %c0_i32 = arith.constant 0 : i32
    %c0_i32_0 = arith.constant 0 : i32
    %c0_i32_1 = arith.constant 0 : i32
    return %c0_i32, %c0_i32_0 : i32, i32
  }
  func.func @transform_4(%arg0: i32) -> (i32, i32) {
    %c0_i32 = arith.constant 0 : i32
    %c0_i32_0 = arith.constant 0 : i32
    %c0_i32_1 = arith.constant 0 : i32
    return %c0_i32, %c0_i32_0 : i32, i32
  }
  func.func @transform_5(%arg0: i32) -> (i32, i32) {
    %c0_i32 = arith.constant 0 : i32
    %c0_i32_0 = arith.constant 0 : i32
    %c0_i32_1 = arith.constant 0 : i32
    return %c0_i32, %c0_i32_0 : i32, i32
  }
  func.func @transform_6(%arg0: i32) -> (i32, i32) {
    %c0_i32 = arith.constant 0 : i32
    %c0_i32_0 = arith.constant 0 : i32
    %c0_i32_1 = arith.constant 0 : i32
    return %c0_i32, %c0_i32_0 : i32, i32
  }
  func.func @transform_7(%arg0: i32) -> (i32, i32) {
    %c0_i32 = arith.constant 0 : i32
    %c0_i32_0 = arith.constant 0 : i32
    %c0_i32_1 = arith.constant 0 : i32
    return %c0_i32, %c0_i32_0 : i32, i32
  }
  func.func @transform_8(%arg0: i32) -> (i32, i32) {
    %c0_i32 = arith.constant 0 : i32
    %c0_i32_0 = arith.constant 0 : i32
    %c0_i32_1 = arith.constant 0 : i32
    return %c0_i32, %c0_i32_0 : i32, i32
  }
  func.func @transform_9(%arg0: i32) -> (i32, i32) {
    %c0_i32 = arith.constant 0 : i32
    %c0_i32_0 = arith.constant 0 : i32
    %c0_i32_1 = arith.constant 0 : i32
    return %c0_i32, %c0_i32_0 : i32, i32
  }
  func.func @transform_10(%arg0: i32) -> (i32, i32) {
    %c0_i32 = arith.constant 0 : i32
    %c0_i32_0 = arith.constant 0 : i32
    %c0_i32_1 = arith.constant 0 : i32
    return %c0_i32, %c0_i32_0 : i32, i32
  }
  func.func @transform_11(%arg0: i32) -> (i32, i32) {
    %c0_i32 = arith.constant 0 : i32
    %c0_i32_0 = arith.constant 0 : i32
    %c0_i32_1 = arith.constant 0 : i32
    return %c0_i32, %c0_i32_0 : i32, i32
  }
  func.func @transform_12(%arg0: i32) -> (i32, i32) {
    %c0_i32 = arith.constant 0 : i32
    %c0_i32_0 = arith.constant 0 : i32
    %c0_i32_1 = arith.constant 0 : i32
    return %c0_i32, %c0_i32_0 : i32, i32
  }
  func.func @transform_13(%arg0: i32) -> (i32, i32) {
    %c0_i32 = arith.constant 0 : i32
    %c0_i32_0 = arith.constant 0 : i32
    %c0_i32_1 = arith.constant 0 : i32
    return %c0_i32, %c0_i32_0 : i32, i32
  }
  func.func @transform_14(%arg0: i32) -> (i32, i32) {
    %c0_i32 = arith.constant 0 : i32
    %c0_i32_0 = arith.constant 0 : i32
    %c0_i32_1 = arith.constant 0 : i32
    return %c0_i32, %c0_i32_0 : i32, i32
  }
  func.func @transform_15(%arg0: i32) -> (i32, i32) {
    %c0_i32 = arith.constant 0 : i32
    %c0_i32_0 = arith.constant 0 : i32
    return %arg0, %c0_i32 : i32, i32
  }
  func.func @transform_16(%arg0: i32) -> (i32, i32) {
    %c0_i32 = arith.constant 0 : i32
    %c0_i32_0 = arith.constant 0 : i32
    return %arg0, %c0_i32 : i32, i32
  }
  func.func @transform_17(%arg0: i32) -> (i32, i32) {
    %c0_i32 = arith.constant 0 : i32
    %c0_i32_0 = arith.constant 0 : i32
    return %arg0, %c0_i32 : i32, i32
  }
}

</mosaic_0001>

<bundles_post_ra>
// kernel: tpu_custom_call.1
= control target key start
LH: loop header
LB: loop body
LE: loop exit
PB: predicated region body
PF: predicated region fallthrough
CT: control target
= control target key end

     0   :  { %s17819_s0 = inlined_call_operand.vmem [shape: bf16[64,32], index: 0, kind: input, shape index: {}]   ;;  %s17820_s1 = inlined_call_operand.vmem [shape: f32[64,128], index: 1, kind: input, shape index: {}]   ;;  %s17821_s2 = inlined_call_operand.vmem [shape: bf16[128,128], index: 2, kind: input, shape index: {}]   ;;  %s17822_s3 = inlined_call_operand.hbm [shape: bf16[32,128], index: 3, kind: input, shape index: {}]   ;;  %s17823_s4 = inlined_call_operand.vmem [shape: f32[1,128], index: 4, kind: input, shape index: {}]   ;;  %s17824_s5 = inlined_call_operand.hbm [shape: bf16[128,128], index: 5, kind: input, shape index: {}]   ;;  %s17825_s6 = inlined_call_operand.vmem [shape: f32[1,128], index: 6, kind: input, shape index: {}]   ;;  %s17826_s7 = inlined_call_operand.hbm [shape: bf16[128,128], index: 7, kind: input, shape index: {}]   ;;  %s17827_s8 = inlined_call_operand.vmem [shape: f32[1,128], index: 8, kind: input, shape index: {}]   ;;  %s17828_s9 = inlined_call_operand.hbm [shape: bf16[128,128], index: 9, kind: input, shape index: {}]   ;;  %s17829_s10 = inlined_call_operand.vmem [shape: f32[1,128], index: 10, kind: input, shape index: {}]   ;;  %s17830_s11 = inlined_call_operand.hbm [shape: bf16[128,128], index: 11, kind: input, shape index: {}]   ;;  %s17831_s12 = inlined_call_operand.vmem [shape: f32[1,128], index: 12, kind: input, shape index: {}]   ;;  %s17832_s13 = inlined_call_operand.vmem [shape: bf16[128,32], index: 13, kind: input, shape index: {}]   ;;  %s17833_s14 = inlined_call_operand.vmem [shape: f32[1,32], index: 14, kind: input, shape index: {}]   ;;  %s17834_s15 = inlined_call_operand.vmem [shape: f32[64,32], index: 15, kind: output, shape index: {0}]   ;;  %s17835_s16 = inlined_call_operand.hbm [shape: f32[64,128], index: 16, kind: output, shape index: {1}]   ;;  %s17836_s17 = inlined_call_operand.hbm [shape: f32[64,128], index: 17, kind: output, shape index: {2}]  }
   0x1   :  { %18012 = sst [smem:[#allocation143_spill]] %s17819_s0 }
   0x2   :  { %18013 = sst [smem:[#allocation144_spill]] %s17820_s1 }
   0x3   :  { %18014 = sst [smem:[#allocation145_spill]] %s17821_s2 }
   0x4   :  { %18015 = sst [smem:[#allocation146_spill]] %s17822_s3 }
   0x5   :  { %18016 = sst [smem:[#allocation147_spill]] %s17823_s4 }
   0x6   :  { %18017 = sst [smem:[#allocation148_spill]] %s17824_s5 }
   0x7   :  { %18018 = sst [smem:[#allocation149_spill]] %s17828_s9 }
   0x8   :  { %18019 = sst [smem:[#allocation150_spill]] %s17835_s16 }
   0x9   :  { %18020 = sst [smem:[#allocation151_spill]] %s17836_s17 }
   0xa   :  { %23 = vsyncpa [#allocation3], 0 }
   0xb   :  { %24 = vsyncpa [#allocation6], 0 }
   0xc   :  { %25 = vsyncpa [#allocation9], 0 }
   0xd   :  { %26 = vsyncpa [#allocation4], 0 }
   0xe   :  { %28 = vsyncpa [#allocation4 + $0x1], 0 }
   0xf   :  { %29 = vsyncpa [#allocation13], 0 }
  0x10   :  { %31 = vsyncpa [#allocation13 + $0x1], 0  ;;  %s10582_s24 = smov 0   ;;  %s10584_s25 = smov 0  }
  0x11   :  { %s10586_s26 = smov 0   ;;  %s10588_s27 = smov 0  }
  0x12 LB: > { %18021 = sst [smem:[#allocation19_spill]] %s10451_s24  ;;  %s10603_s28 = sadd.s32 4294967295, %s10463_s27   ;;  %s10463_s27 = sphi %s10588_s27, %s19123_s27   ;;  %s10459_s26 = sphi %s10586_s26, %s19125_s26   ;;  %s10455_s25 = sphi %s10584_s25, %s19127_s25   ;;  %s10451_s24 = sphi %s10582_s24, %s19126_s24  }
  0x13   : > { %18022 = sst [smem:[#allocation20_spill]] %s10459_s26  ;;  %s9721_s29 = sadd.s32 4294967294, %s10463_s27  }
  0x14   : > { %18023 = sst [smem:[#allocation21_spill]] %s10463_s27  ;;  %s10607_s0 = sadd.s32 1, %s10463_s27  }
  0x15   : > { %18024 = sst [smem:[#allocation22_spill]] %s10607_s0  ;;  %s395_s30 = sadd.s32 1, %s10459_s26 }
  0x16   : > { %s392_s18 = ssub.s32 %s10463_s27, %s10607_s0  ;;  %p405_p0 = scmp.ne.s32.totalorder %s10459_s26, %s10455_s25 }
  0x17   : > { %p393_p1 = scmp.eq.s32.totalorder %s392_s18, 0  ;;  %p406_p2 = scmp.eq.s32.totalorder %s10603_s28, 1 }
  0x18   : > { %p411_p3 = scmp.ne.s32.totalorder %s10455_s25, %s10451_s24  ;;  %p412_p4 = scmp.eq.s32.totalorder %s9721_s29, 1 }
  0x19   : > { %s10618_s19 = scalar_select %p393_p1, %s10459_s26, %s395_s30  }
  0x1a   : > { %p10620_p5 = por %p406_p2, %p405_p0  ;;  %p10624_p6 = por %p412_p4, %p411_p3 }
  0x1b   : > { %18025 = sst [smem:[#allocation23_spill]] %s10618_s19  ;;  %p9722_p7 = scmp.ge.s32.totalorder %s10463_s27, 1 }
  0x1c   : > { %s18026_s1 = scalar_select %p10620_p5, 1, 0 }
  0x1d   : > { %s18028_s20 = scalar_select %p10624_p6, 1, 0 }
  0x1e   : > { %18027 = sst [smem:[#allocation24_spill]] %s18026_s1  ;;  %p445_p8 = scmp.lt.s32.totalorder %s10463_s27, 3 }
  0x1f   : > { %18029 = sst [smem:[#allocation25_spill]] %s18028_s20  ;;  %p10090_p9 = scmp.eq.s32.totalorder %s10603_s28, 0 }
  0x20   : > { %p10631_p10 = pnand %p9722_p7, %p445_p8  ;;  %s18031_s5 = sld [smem:[#allocation148_spill]] }
  0x21   : > { %s18032_s9 = sld [smem:[#allocation149_spill]]  ;;  %s10465_s0 = smov [#allocation5]  }
  0x22   : > { %p10067_p11 = pneg %p10631_p10  ;;  %s478_s20 = sshll.u32 %s10465_s0, 4  ;;  %s479_s20 = int_to_ptr.vmem [resolvable:$true] %s478_s20 }
  0x23   : > { %s10466_s22 = smov 64   ;;  %s10467_s23 = smov 4  }
  0x24   : > { %p10645_p12 = pnand %p10090_p9, %p10067_p11  ;;  %s18034_s3 = sld [smem:[#allocation146_spill]] }
  0x25   : > { %s493_s17 = sshll.u32 %s17826_s7, 4  ;;  %s10469_s16 = smov [#allocation2]   ;;  %s494_s17 = int_to_ptr.hbm [resolvable:$true] %s493_s17 }
  0x26   : > { %s476_s29 = sshll.u32 %s18031_s5, 4  ;;  %s10468_s5 = smov [#allocation8]   ;;  %s477_s29 = int_to_ptr.hbm [resolvable:$true] %s476_s29 }
  0x27   : > { %s510_s19 = sshll.u32 %s18032_s9, 4  ;;  %s512_s30 = sshll.u32 %s10468_s5, 4  ;;  %s511_s19 = int_to_ptr.hbm [resolvable:$true] %s510_s19  ;;  %s513_s30 = int_to_ptr.vmem [resolvable:$true] %s512_s30 }
  0x28   : > { %10073 = dma.hbm_to_vmem [thread:$0]  (!%p10645_p12), %s477_s29, 1024, %s479_s20, [#allocation6], %s10466_s22, %s10466_s22, %s10467_s23  }
  0x29   : > { %10079 = dma.hbm_to_vmem [thread:$0]  (!%p10645_p12), %s511_s19, 1024, %s513_s30, [#allocation9], %s10466_s22, %s10466_s22, %s10467_s23  }
  0x2a   : > { %s459_s24 = sshll.u32 %s18034_s3, 4  ;;  %s461_s1 = sshll.u32 %s10469_s16, 4  ;;  %s460_s24 = int_to_ptr.hbm [resolvable:$true] %s459_s24  ;;  %s462_s1 = int_to_ptr.vmem [resolvable:$true] %s461_s1 }
  0x2b   : > { %10070 = dma.hbm_to_vmem [thread:$0]  (!%p10645_p12), %s460_s24, 256, %s462_s1, [#allocation3], %s10466_s22, %s10466_s22, %s10467_s23  }
  0x2c   : > { %s10470_s5 = smov [#allocation7]   ;;  %s527_s18 = sshll.u32 %s17830_s11, 4  ;;  %s528_s18 = int_to_ptr.hbm [resolvable:$true] %s527_s18 }
  0x2d   : > { %s495_s20 = sshll.u32 %s10470_s5, 4  ;;  %s10471_s19 = smov [#allocation10]   ;;  %s496_s20 = int_to_ptr.vmem [resolvable:$true] %s495_s20 }
  0x2e   : > { %10076 = dma.hbm_to_vmem [thread:$0]  (!%p10645_p12), %s494_s17, 1024, %s496_s20, [#allocation6], %s10466_s22, %s10466_s22, %s10467_s23  }
  0x2f   : > { %s529_s27 = sshll.u32 %s10471_s19, 4  ;;  %572 = sbr.rel (%p10631_p10) target bundleno = 2728 (0xaa8), region = 80  ;;  %s530_s27 = int_to_ptr.vmem [resolvable:$true] %s529_s27 }
  0x30   : > { %10082 = dma.hbm_to_vmem [thread:$0]  (!%p10645_p12), %s528_s18, 1024, %s530_s27, [#allocation9], %s10466_s22, %s10466_s22, %s10467_s23  }
  0x34   : > { %10430 = dma.done.wait (%p10090_p9), [#allocation3], 256  }
  0x35   : > { %10432 = vsyncadd (%p10090_p9), [#allocation3], 4294967040 }
  0x36   : > { %10434 = dma.done.wait (%p10090_p9), [#allocation6], 2048  }
  0x37   : > { %10436 = vsyncadd (%p10090_p9), [#allocation6], 4294965248 }
  0x38   : > { %10438 = dma.done.wait (%p10090_p9), [#allocation9], 2048  }
  0x39   : > { %10440 = vsyncadd (%p10090_p9), [#allocation9], 4294965248  ;;  %s9737_s16 = sshll.u32 %s10603_s28, 2  ;;  %v9984_v0 = vld [vmem:[#allocation2 + $0x8] sm:$0xff]  ;;  %s18035_s1 = sld [smem:[#allocation143_spill]]  ;;  %v9983_v1 = vld [vmem:[#allocation2] sm:$0xff] }
  0x3a   : > { %p661_p13 = scmp.lt.s32.totalorder %s9737_s16, 7  ;;  %744 = vmatpush.bf16.msra.mxu0 %v9984_v0  ;;  %v9992_v2 = vld [vmem:[#allocation5 + $0x38] sm:$0xff]  ;;  %v9991_v4 = vld [vmem:[#allocation5 + $0x30] sm:$0xff]  ;;  %vm731_vm0 = vcmask 261120   ;;  %v9990_v5 = vld [vmem:[#allocation5 + $0x28] sm:$0xff]  ;;  %s18036_s4 = sld [smem:[#allocation147_spill]] }
  0x3b   : > { %831 = vmatpush.bf16.msra.mxu1 %v9992_v2  ;;  %v9989_v6 = vld [vmem:[#allocation5 + $0x20] sm:$0xff]  ;;  %v9988_v8 = vld [vmem:[#allocation5 + $0x18] sm:$0xff]  ;;  %v9987_v9 = vld [vmem:[#allocation5 + $0x10] sm:$0xff]  ;;  %s18037_s9 = sld [smem:[#allocation144_spill]]  ;;  %s17996_s24 = smov 112   ;;  %vm17849_vm1 = vcmask 1047556  }
  0x3c   : > { %s19129_s16 = smov (!%p661_p13, %s9737_s16), 7  ;;  %v9986_v10 = vld [vmem:[#allocation5 + $0x8] sm:$0xff]  ;;  %v9985_v11 = vld [vmem:[#allocation5] sm:$0xff]  ;;  %v10000_v12 = vld [vmem:[#allocation7 + $0x38] sm:$0xff]  ;;  %s17994_s26 = smov 120   ;;  %vm2046_vm2 = vcmask 64512  }
  0x3d   : > { %s9738_s17 = sshll.u32 %s19129_s16, 2  ;;  %924 = vmatpush.bf16.msra.mxu2 %v10000_v12  ;;  %v9999_v14 = vld [vmem:[#allocation7 + $0x30] sm:$0xff]  ;;  %v9998_v16 = vld [vmem:[#allocation7 + $0x28] sm:$0xff]  ;;  %v9997_v20 = vld [vmem:[#allocation7 + $0x20] sm:$0xff]  ;;  %s17847_s5 = sshll.u32 %s19129_s16, 3  ;;  %vm3379_vm3 = vcmask 130048  }
  0x3e   : > { %745 = vmatpush.bf16.msra.mxu0 %v9983_v1  ;;  %v9996_v31 = vld [vmem:[#allocation7 + $0x18] sm:$0xff]  ;;  %v9995_v32 = vld [vmem:[#allocation7 + $0x10] sm:$0xff]  ;;  %v9994_v33 = vld [vmem:[#allocation7 + $0x8] sm:$0xff]  ;;  %s18004_s22 = smov 96   ;;  %s10478_s23 = smov 40   ;;  %vm3384_vm4 = vcmask 195584  }
  0x3f   : > { %s664_s21 = scalar_lea.vmem %s18035_s1, %s9738_s17  ;;  %832 = vmatpush.bf16.msra.mxu1 %v9991_v4  ;;  %v9993_v34 = vld [vmem:[#allocation7] sm:$0xff]  ;;  %v10161_v36 = vld [vmem:[%s17825_s6] ss:$0 sm:$0xff]  ;;  %s18006_s17 = smov 88   ;;  %vm3393_vm5 = vcmask 326656   ;;  %vm3398_vm6 = vcmask 392192  }
  0x40   : > { %v9981_v3 = vld [vmem:[%s664_s21] sm:$0xff]  ;;  %v9982_v7 = vld [vmem:[%s664_s21 + $0x8] sm:$0xff]  ;;  %s10475_s1 = smov 64   ;;  %s18002_s21 = smov 104   ;;  %vm3403_vm7 = vcmask 457728   ;;  %vm18000_vm8 = vcmask 523264  }
  0x41   : > { %9759 = vmatmul.msk.bf16.vlgmr.msra.gmra.mxu0 %vm731_vm0, %v9981_v3  ;;  %v10160_v15 = vld [vmem:[%s18036_s4] ss:$0 sm:$0xff]  ;;  %925 = vmatpush.bf16.msra.mxu2 %v9999_v14  ;;  %s10703_s18 = scalar_lea.vmem %s18037_s9, %s17847_s5  ;;  %s18008_s30 = smov 80   ;;  %vm17999_vm9 = vcmask 588800   ;;  %vm17998_vm10 = vcmask 654336   ;;  %vm17853_vm11 = vcmask 719872  }
  0x42   : > { %v10708_v50 = vld [vmem:[%s17827_s8] ss:$0 sm:$0xff]  ;;  %s10480_s0 = smov 72   ;;  %s10481_s20 = smov 16   ;;  %v944_v57 = vld [vmem:[%s10703_s18 + $0x8] sm:$0xff]  ;;  %v945_v61 = vld [vmem:[%s10703_s18 + $0x10] sm:$0xff] }
  0x43   : > { %833 = vmatpush.bf16.msra.mxu1 %v9990_v5  ;;  %v943_v51 = vld [vmem:[%s10703_s18] sm:$0xff]  ;;  %s10482_s29 = smov 56   ;;  %s10483_s9 = smov 48   ;;  %v946_v2 = vld [vmem:[%s10703_s18 + $0x18] sm:$0xff]  ;;  %vm17852_vm12 = vcmask 785408   ;;  %vm17848_vm13 = vcmask 850944  }
  0x44   : > { %s10484_s19 = smov 32   ;;  %s10485_s27 = smov 24   ;;  %vm17851_vm14 = vcmask 916480   ;;  %vm17850_vm15 = vcmask 982016  }
  0x45   : > { %926 = vmatpush.bf16.msra.mxu2 %v9998_v16  ;;  %s18010_s5 = smov 8   ;;  %s15627_s18 = sand.u32 1, %s10455_s25  }
  0x46   : > { %s19074_s2 = sld [smem:[#allocation145_spill]] }
  0x47   : > { %834 = vmatpush.bf16.msra.mxu1 %v9989_v6 }
  0x49   : > { %927 = vmatpush.bf16.msra.mxu2 %v9997_v20 }
  0x4b   : > { %835 = vmatpush.bf16.msra.mxu1 %v9988_v8 }
  0x4d   : > { %928 = vmatpush.bf16.msra.mxu2 %v9996_v31 }
  0x4f   : > { %836 = vmatpush.bf16.msra.mxu1 %v9987_v9 }
  0x51   : > { %9760 = vmatmul.msk.bf16.gmra.mxu0 %vm731_vm0, %v9982_v7  ;;  %929 = vmatpush.bf16.msra.mxu2 %v9995_v32 }
  0x53   : > { %837 = vmatpush.bf16.msra.mxu1 %v9986_v10 }
  0x55   : > { %930 = vmatpush.bf16.msra.mxu2 %v9994_v33 }
  0x57   : > { %838 = vmatpush.bf16.msra.mxu1 %v9985_v11 }
  0x59   : > { %931 = vmatpush.bf16.msra.mxu2 %v9993_v34 }
  0xbe   : > { %v747_v13 = vpop.f32.mrf.mxu0 }
  0xbf   : > { %v748_v17 = vadd.f32 %v10160_v15, %v747_v13 }
  0xc1   : > { %v757_v21 = vmax.f32 %v748_v17, 0.0 }
  0xc6   : > { %v749_v18 = vpop.f32.mrf.mxu0 }
  0xc7   : > { %v750_v19 = vadd.f32 %v10160_v15, %v749_v18 }
  0xc9   : > { %v758_v22 = vmax.f32 %v750_v19, 0.0 }
  0xcb   : > { %v761_v23 = vpack.c.bf16 %v758_v22, %v757_v21 }
  0xcd   : > { %839 = vmatmul.bf16.vlgmr.msra.gmra.mxu1 %v761_v23 }
  0xce   : > { %v752_v24 = vpop.f32.mrf.mxu0 }
  0xcf   : > { %v753_v25 = vadd.f32 %v10160_v15, %v752_v24 }
  0xd1   : > { %v759_v27 = vmax.f32 %v753_v25, 0.0  ;;  %v10487_v25 = vmov 1983009808  }
  0xd6   : > { %v754_v26 = vpop.f32.mrf.mxu0 }
  0xd7   : > { %v755_v28 = vadd.f32 %v10160_v15, %v754_v26  ;;  %v1155_v26 = vunpack.c.l.s4 %v10487_v25 }
  0xd9   : > { %v760_v29 = vmax.f32 %v755_v28, 0.0 }
  0xdb   : > { %v762_v30 = vpack.c.bf16 %v760_v29, %v759_v27 }
  0xdd   : > { %844 = vmatmul.bf16.gmra.mxu1 %v762_v30  ;;  %v10893_v30 = vunpack.c.0.s8 %v1155_v26 }
  0xdf   : > { %18042 = vst [vmem:[#allocation30_spill] sm:$0xff] %v10893_v30 }
 0x14a   : > { %v840_v35 = vpop.f32.mrf.mxu1 }
 0x14b   : > { %v841_v37 = vadd.f32 %v10161_v36, %v840_v35 }
 0x14d   : > { %v850_v40 = vmax.f32 %v841_v37, 0.0 }
 0x152   : > { %v842_v38 = vpop.f32.mrf.mxu1 }
 0x153   : > { %v843_v39 = vadd.f32 %v10161_v36, %v842_v38 }
 0x155   : > { %v851_v41 = vmax.f32 %v843_v39, 0.0 }
 0x157   : > { %v854_v42 = vpack.c.bf16 %v851_v41, %v850_v40 }
 0x159   : > { %932 = vmatmul.bf16.vlgmr.msra.gmra.mxu2 %v854_v42 }
 0x15a   : > { %v845_v43 = vpop.f32.mrf.mxu1 }
 0x15b   : > { %v846_v44 = vadd.f32 %v10161_v36, %v845_v43 }
 0x15d   : > { %v852_v46 = vmax.f32 %v846_v44, 0.0 }
 0x162   : > { %v847_v45 = vpop.f32.mrf.mxu1 }
 0x163   : > { %v848_v47 = vadd.f32 %v10161_v36, %v847_v45 }
 0x165   : > { %v853_v48 = vmax.f32 %v848_v47, 0.0 }
 0x167   : > { %v855_v49 = vpack.c.bf16 %v853_v48, %v852_v46 }
 0x169   : > { %937 = vmatmul.bf16.gmra.mxu2 %v855_v49 }
 0x1dc   : > { %v933_v52 = vpop.f32.mrf.mxu2 }
 0x1dd   : > { %v10712_v53 = vadd.f32 %v10708_v50, %v933_v52 }
 0x1df   : > { %18038 = vst [vmem:[#allocation26_spill] sm:$0xff] %v10712_v53  ;;  %v10715_v54 = vadd.f32 %v943_v51, %v10712_v53 }
 0x1e1   : > { %1017 = vrot.lane.b32.xlu1 %v10715_v54, %s18006_s17  ;;  %981 = vrot.lane.b32.xlu2 %v10715_v54, %s17996_s24  ;;  %v1152_v31 = vrot.slane %v10715_v54, 4 }
 0x1e2   : > { %969 = vrot.lane.b32.xlu0 %v10715_v54, %s17994_s26 }
 0x1e4   : > { %v935_v55 = vpop.f32.mrf.mxu2 }
 0x1e5   : > { %v10742_v56 = vadd.f32 %v10708_v50, %v935_v55 }
 0x1e7   : > { %18039 = vst [vmem:[#allocation27_spill] sm:$0xff] %v10742_v56  ;;  %v10746_v58 = vadd.f32 %v944_v57, %v10742_v56 }
 0x1e9   : > { %1053 = vrot.lane.b32.xlu1 %v10715_v54, %s10475_s1  ;;  %993 = vrot.lane.b32.xlu2 %v10715_v54, %s18002_s21 }
 0x1ea   : > { %1005 = vrot.lane.b32.xlu0 %v10715_v54, %s18004_s22 }
 0x1ec   : > { %v938_v59 = vpop.f32.mrf.mxu2 }
 0x1ed   : > { %v10773_v60 = vadd.f32 %v10708_v50, %v938_v59 }
 0x1ef   : > { %18040 = vst [vmem:[#allocation28_spill] sm:$0xff] %v10773_v60  ;;  %v10777_v62 = vadd.f32 %v945_v61, %v10773_v60 }
 0x1f1   : > { %1089 = vrot.lane.b32.xlu1 %v10715_v54, %s10478_s23  ;;  %1029 = vrot.lane.b32.xlu2 %v10715_v54, %s18008_s30 }
 0x1f2   : > { %1041 = vrot.lane.b32.xlu0 %v10715_v54, %s10480_s0 }
 0x1f4   : > { %v940_v0 = vpop.f32.mrf.mxu2 }
 0x1f5   : > { %v10818_v1 = vadd.f32 %v10708_v50, %v940_v0 }
 0x1f7   : > { %18041 = vst [vmem:[#allocation29_spill] sm:$0xff] %v10818_v1  ;;  %v10822_v3 = vadd.f32 %v946_v2, %v10818_v1 }
 0x1f9   : > { %1125 = vrot.lane.b32.xlu1 %v10715_v54, %s10481_s20  ;;  %1065 = vrot.lane.b32.xlu2 %v10715_v54, %s10482_s29 }
 0x1fa   : > { %1077 = vrot.lane.b32.xlu0 %v10715_v54, %s10483_s9 }
 0x201   : > { %1007 = vrot.lane.b32.xlu1 %v10746_v58, %s18004_s22  ;;  %1101 = vrot.lane.b32.xlu2 %v10715_v54, %s10484_s19 }
 0x202   : > { %1113 = vrot.lane.b32.xlu0 %v10715_v54, %s10485_s27 }
 0x209   : > { %1043 = vrot.lane.b32.xlu1 %v10746_v58, %s10480_s0  ;;  %1137 = vrot.lane.b32.xlu2 %v10715_v54, %s18010_s5 }
 0x20a   : > { %971 = vrot.lane.b32.xlu0 %v10746_v58, %s17994_s26 }
 0x211   : > { %1079 = vrot.lane.b32.xlu1 %v10746_v58, %s10483_s9  ;;  %983 = vrot.lane.b32.xlu2 %v10746_v58, %s17996_s24 }
 0x212   : > { %995 = vrot.lane.b32.xlu0 %v10746_v58, %s18002_s21 }
 0x219   : > { %1115 = vrot.lane.b32.xlu1 %v10746_v58, %s10485_s27  ;;  %1019 = vrot.lane.b32.xlu2 %v10746_v58, %s18006_s17 }
 0x21a   : > { %1031 = vrot.lane.b32.xlu0 %v10746_v58, %s18008_s30 }
 0x221   : > { %973 = vrot.lane.b32.xlu1 %v10777_v62, %s17994_s26  ;;  %1055 = vrot.lane.b32.xlu2 %v10746_v58, %s10475_s1 }
 0x222   : > { %1067 = vrot.lane.b32.xlu0 %v10746_v58, %s10482_s29 }
 0x229   : > { %997 = vrot.lane.b32.xlu1 %v10777_v62, %s18002_s21  ;;  %1091 = vrot.lane.b32.xlu2 %v10746_v58, %s10478_s23 }
 0x22a   : > { %1103 = vrot.lane.b32.xlu0 %v10746_v58, %s10484_s19 }
 0x231   : > { %1033 = vrot.lane.b32.xlu1 %v10777_v62, %s18008_s30  ;;  %1127 = vrot.lane.b32.xlu2 %v10746_v58, %s10481_s20 }
 0x232   : > { %1139 = vrot.lane.b32.xlu0 %v10746_v58, %s18010_s5 }
 0x239   : > { %1069 = vrot.lane.b32.xlu1 %v10777_v62, %s10482_s29  ;;  %1009 = vrot.lane.b32.xlu2 %v10777_v62, %s18004_s22 }
 0x23a   : > { %985 = vrot.lane.b32.xlu0 %v10777_v62, %s17996_s24 }
 0x23b   : > { %v10809_v63 = vpop.permute.xlu2 %981 }
 0x23c   : > { %v1149_v34 = vrot.slane %v10809_v63, 4  ;;  %v1153_v36 = vsel %vm17849_vm1, %v10809_v63, %v1152_v31  ;;  %v10488_v63 = vmov 1934713408  }
 0x23d   : > { %v10916_v47 = vperm.slane %v1153_v36, %v10893_v30  ;;  %v1203_v0 = vunpack.c.l.s4 %v10488_v63 }
 0x23e   : > { %v1151_v46 = vsel %vm17849_vm1, %v1149_v34, %v10715_v54 }
 0x23f   : > { %v1157_v2 = vperm.slane %v1151_v46, %v10893_v30 }
 0x241   : > { %1105 = vrot.lane.b32.xlu1 %v10777_v62, %s10484_s19  ;;  %1045 = vrot.lane.b32.xlu2 %v10777_v62, %s10480_s0 }
 0x242   : > { %1021 = vrot.lane.b32.xlu0 %v10777_v62, %s18006_s17 }
 0x243   : > { %v994_v4 = vpop.permute.xlu2 %993 }
 0x244   : > { %v1162_v27 = vrot.slane %v994_v4, 4 }
 0x249   : > { %1141 = vrot.lane.b32.xlu1 %v10777_v62, %s18010_s5  ;;  %1081 = vrot.lane.b32.xlu2 %v10777_v62, %s10483_s9 }
 0x24a   : > { %1057 = vrot.lane.b32.xlu0 %v10777_v62, %s10475_s1 }
 0x24b   : > { %v1030_v7 = vpop.permute.xlu2 %1029 }
 0x24c   : > { %v1174_v40 = vrot.slane %v1030_v7, 4 }
 0x251   : > { %975 = vrot.lane.b32.xlu1 %v10822_v3, %s17994_s26  ;;  %1117 = vrot.lane.b32.xlu2 %v10777_v62, %s10485_s27 }
 0x252   : > { %1093 = vrot.lane.b32.xlu0 %v10777_v62, %s10478_s23 }
 0x253   : > { %v10830_v5 = vpop.permute.xlu1 %1017  ;;  %v10848_v12 = vpop.permute.xlu2 %1065 }
 0x254   : > { %v970_v6 = vpop.permute.xlu0 %969  ;;  %v1188_v41 = vrot.slane %v10830_v5, 4 }
 0x255   : > { %v1163_v28 = vsel %vm17849_vm1, %v1162_v27, %v970_v6  ;;  %v1164_v32 = vrot.slane %v970_v6, 4  ;;  %v1212_v6 = vrot.slane %v10916_v47, 4 }
 0x256   : > { %v10902_v37 = vperm.slane %v1163_v28, %v10893_v30 }
 0x257   : > { %v1165_v42 = vsel %vm17849_vm1, %v994_v4, %v1164_v32 }
 0x258   : > { %v1198_v50 = vrot.slane %v10902_v37, 4  ;;  %v10925_v57 = vperm.slane %v1165_v42, %v10893_v30 }
 0x259   : > { %987 = vrot.lane.b32.xlu1 %v10822_v3, %s17996_s24  ;;  %999 = vrot.lane.b32.xlu2 %v10822_v3, %s18002_s21 }
 0x25a   : > { %1129 = vrot.lane.b32.xlu0 %v10777_v62, %s10481_s20  ;;  %v1213_v31 = vsel %vm17849_vm1, %v10925_v57, %v1212_v6 }
 0x25b   : > { %v10838_v8 = vpop.permute.xlu1 %1053  ;;  %v10860_v15 = vpop.permute.xlu2 %1101 }
 0x25c   : > { %v1006_v9 = vpop.permute.xlu0 %1005 }
 0x25d   : > { %v1176_v33 = vrot.slane %v1006_v9, 4  ;;  %v1175_v48 = vsel %vm17849_vm1, %v1174_v40, %v1006_v9 }
 0x25e   : > { %v1181_v4 = vperm.slane %v1175_v48, %v10893_v30 }
 0x25f   : > { %v1177_v43 = vsel %vm17849_vm1, %v1030_v7, %v1176_v33 }
 0x260   : > { %v10928_v59 = vperm.slane %v1177_v43, %v10893_v30 }
 0x261   : > { %1023 = vrot.lane.b32.xlu1 %v10822_v3, %s18006_s17  ;;  %1035 = vrot.lane.b32.xlu2 %v10822_v3, %s18008_s30 }
 0x262   : > { %1011 = vrot.lane.b32.xlu0 %v10822_v3, %s18004_s22  ;;  %v1236_v26 = vrot.slane %v10928_v59, 4 }
 0x263   : > { %v10846_v10 = vpop.permute.xlu1 %1089  ;;  %v10872_v18 = vpop.permute.xlu2 %1137 }
 0x264   : > { %v1042_v11 = vpop.permute.xlu0 %1041  ;;  %v1298_v44 = vrot.slane %v10872_v18, 4  ;;  %v1274_v49 = vrot.slane %v10846_v10, 4 }
 0x265   : > { %v1186_v24 = vrot.slane %v1042_v11, 4  ;;  %v1189_v51 = vsel %vm17849_vm1, %v1042_v11, %v1188_v41 }
 0x266   : > { %v1275_v7 = vsel %vm17849_vm1, %v1274_v49, %v10848_v12  ;;  %v10938_v9 = vperm.slane %v1189_v51, %v10893_v30  ;;  %v1224_v49 = vrot.slane %v1181_v4, 4 }
 0x267   : > { %v1187_v29 = vsel %vm17849_vm1, %v1186_v24, %v10830_v5  ;;  %v1199_v24 = vsel %vm17849_vm1, %v1198_v50, %v1157_v2  ;;  %v1281_v32 = vperm.slane %v1275_v7, %v10893_v30 }
 0x268   : > { %v1193_v38 = vperm.slane %v1187_v29, %v10893_v30  ;;  %v10948_v29 = vunpack.c.0.s8 %v1203_v0  ;;  %v1237_v42 = vsel %vm17849_vm1, %v10938_v9, %v1236_v26 }
 0x269   : > { %1059 = vrot.lane.b32.xlu1 %v10822_v3, %s10475_s1  ;;  %1071 = vrot.lane.b32.xlu2 %v10822_v3, %s10482_s29  ;;  %v1310_v50 = vrot.slane %v1281_v32, 4 }
 0x26a   : > { %1047 = vrot.lane.b32.xlu0 %v10822_v3, %s10480_s0  ;;  %v1222_v52 = vrot.slane %v1193_v38, 4  ;;  %18043 = vst [vmem:[#allocation31_spill] sm:$0xff] %v10948_v29  ;;  %v1205_v40 = vperm.slane %v1199_v24, %v10948_v29  ;;  %v10965_v46 = vperm.slane %v1213_v31, %v10948_v29  ;;  %v10969_v51 = vperm.slane %v1237_v42, %v10948_v29 }
 0x26b   : > { %v10856_v13 = vpop.permute.xlu1 %1125  ;;  %v10884_v21 = vpop.permute.xlu2 %983  ;;  %v1225_v6 = vsel %vm17849_vm1, %v1193_v38, %v1224_v49  ;;  %v1200_v24 = vrot.slane %v1157_v2, 4 }
 0x26c   : > { %v10858_v14 = vpop.permute.xlu0 %1077  ;;  %v1286_v5 = vrot.slane %v10856_v13, 4  ;;  %v1223_v25 = vsel %vm17849_vm1, %v1222_v52, %v1181_v4  ;;  %v1260_v0 = vrot.slane %v10965_v46, 4  ;;  %v1233_v38 = vperm.slane %v1225_v6, %v10948_v29 }
 0x26d   : > { %v1262_v61 = vrot.slane %v10858_v14, 4  ;;  %v1229_v41 = vperm.slane %v1223_v25, %v10948_v29  ;;  %v1201_v42 = vsel %vm17849_vm1, %v10902_v37, %v1200_v24  ;;  %v1210_v37 = vrot.slane %v10925_v57, 4 }
 0x26e   : > { %v1287_v33 = vsel %vm17849_vm1, %v1286_v5, %v10860_v15  ;;  %v1261_v4 = vsel %vm17849_vm1, %v10969_v51, %v1260_v0  ;;  %v1276_v0 = vrot.slane %v10848_v12, 4  ;;  %v1209_v6 = vperm.slane %v1201_v42, %v10948_v29 }
 0x26f   : > { %v1263_v27 = vsel %vm17849_vm1, %v1262_v61, %v10838_v8  ;;  %v1293_v48 = vperm.slane %v1287_v33, %v10893_v30  ;;  %v1246_v61 = vrot.slane %v1229_v41, 4  ;;  %v1234_v57 = vrot.slane %v10938_v9, 4 }
 0x270   : > { %v1269_v43 = vperm.slane %v1263_v27, %v10893_v30  ;;  %v1277_v12 = vsel %vm17849_vm1, %v10846_v10, %v1276_v0  ;;  %v1211_v10 = vsel %vm17849_vm1, %v1210_v37, %v10916_v47  ;;  %v1252_v42 = vrot.slane %v1209_v6, 4 }
 0x271   : > { %1095 = vrot.lane.b32.xlu1 %v10822_v3, %s10478_s23  ;;  %1107 = vrot.lane.b32.xlu2 %v10822_v3, %s10484_s19  ;;  %v1247_v27 = vsel %vm17849_vm1, %v1246_v61, %v1205_v40  ;;  %v1250_v61 = vrot.slane %v1233_v38, 4  ;;  %v11027_v9 = vperm.slane %v1277_v12, %v10893_v30 }
 0x272   : > { %1083 = vrot.lane.b32.xlu0 %v10822_v3, %s10483_s9  ;;  %v1311_v5 = vsel %vm17849_vm1, %v1310_v50, %v1269_v43  ;;  %v2047_v50 = vsel %vm2046_vm2, %v1247_v27, -inf }
 0x273   : > { %v10868_v16 = vpop.permute.xlu1 %1007  ;;  %v10905_v39 = vpop.permute.xlu2 %1019  ;;  %v1317_v31 = vperm.slane %v1311_v5, %v10948_v29  ;;  %v1322_v0 = vrot.slane %v11027_v9, 4 }
 0x274   : > { %v10870_v17 = vpop.permute.xlu0 %1113 }
 0x275   : > { %v1299_v55 = vsel %vm17849_vm1, %v1298_v44, %v10870_v17  ;;  %v1300_v52 = vrot.slane %v10870_v17, 4 }
 0x276   : > { %v1305_v11 = vperm.slane %v1299_v55, %v10893_v30  ;;  %v1248_v55 = vrot.slane %v1205_v40, 4 }
 0x277   : > { %v1301_v17 = vsel %vm17849_vm1, %v10872_v18, %v1300_v52  ;;  %v1312_v18 = vrot.slane %v1269_v43, 4 }
 0x278   : > { %v1334_v36 = vrot.slane %v1305_v11, 4  ;;  %v1249_v7 = vsel %vm17849_vm1, %v1229_v41, %v1248_v55  ;;  %v2089_v41 = vsel %vm2046_vm2, %v1261_v4, -inf  ;;  %v10994_v49 = vperm.slane %v1301_v17, %v10893_v30 }
 0x279   : > { %1131 = vrot.lane.b32.xlu1 %v10822_v3, %s10481_s20  ;;  %1143 = vrot.lane.b32.xlu2 %v10822_v3, %s18010_s5  ;;  %v2053_v2 = vsel %vm2046_vm2, %v1249_v7, -inf  ;;  %v1288_v55 = vrot.slane %v10860_v15, 4  ;;  %v1313_v24 = vsel %vm17849_vm1, %v1281_v32, %v1312_v18  ;;  %v1235_v18 = vsel %vm17849_vm1, %v1234_v57, %v10928_v59 }
 0x27a   : > { %1119 = vrot.lane.b32.xlu0 %v10822_v3, %s10485_s27  ;;  %v1335_v63 = vsel %vm17849_vm1, %v1334_v36, %v1293_v48  ;;  %v1336_v36 = vrot.slane %v1293_v48, 4  ;;  %v1360_v48 = vrot.slane %v1317_v31, 4  ;;  %v1346_v7 = vrot.slane %v10994_v49, 4 }
 0x27b   : > { %v10880_v19 = vpop.permute.xlu1 %1043  ;;  %v10955_v34 = vpop.permute.xlu2 %1055  ;;  %v1341_v25 = vperm.slane %v1335_v63, %v10948_v29  ;;  %v1289_v43 = vsel %vm17849_vm1, %v10856_v13, %v1288_v55  ;;  %v1251_v13 = vsel %vm17849_vm1, %v1250_v61, %v1209_v6  ;;  %v1217_v55 = vperm.slane %v1211_v10, %v10948_v29 }
 0x27c   : > { %v10882_v20 = vpop.permute.xlu0 %971  ;;  %v1337_v63 = vsel %vm17849_vm1, %v1305_v11, %v1336_v36  ;;  %v1264_v11 = vrot.slane %v10838_v8, 4  ;;  %v1321_v8 = vperm.slane %v1313_v24, %v10948_v29  ;;  %v2059_v36 = vsel %vm2046_vm2, %v1251_v13, -inf }
 0x27d   : > { %v1358_v52 = vrot.slane %v1341_v25, 4  ;;  %v1361_v5 = vsel %vm17849_vm1, %v1341_v25, %v1360_v48  ;;  %v1345_v4 = vperm.slane %v1337_v63, %v10948_v29  ;;  %v1297_v25 = vperm.slane %v1289_v43, %v10893_v30 }
 0x27e   : > { %v2056_v17 = vsel %vm2046_vm2, %v1361_v5, -inf  ;;  %v1265_v27 = vsel %vm17849_vm1, %v10858_v14, %v1264_v11  ;;  %v1253_v48 = vsel %vm17849_vm1, %v1233_v38, %v1252_v42  ;;  %v1364_v61 = vrot.slane %v1321_v8, 4 }
 0x27f   : > { %v1359_v15 = vsel %vm17849_vm1, %v1358_v52, %v1317_v31  ;;  %v1347_v14 = vsel %vm17849_vm1, %v1346_v7, %v1297_v25  ;;  %v1241_v59 = vperm.slane %v1235_v18, %v10948_v29  ;;  %v1376_v43 = vrot.slane %v10746_v58, 4 }
 0x280   : > { %v2050_v32 = vsel %vm2046_vm2, %v1359_v15, -inf  ;;  %v11044_v63 = vperm.slane %v1347_v14, %v10948_v29  ;;  %v1410_v5 = vrot.slane %v10880_v19, 4  ;;  %v1365_v6 = vsel %vm17849_vm1, %v1345_v4, %v1364_v61 }
 0x281   : > { %v2065_v38 = vsel %vm2046_vm2, %v1253_v48, -inf  ;;  %v1256_v24 = vrot.slane %v1217_v55, 4  ;;  %v1258_v13 = vrot.slane %v10969_v51, 4  ;;  %v1374_v51 = vrot.slane %v10884_v21, 4 }
 0x282   : > { %v1366_v57 = vrot.slane %v11044_v63, 4 }
 0x283   : > { %v10888_v23 = vpop.permute.xlu1 %1079  ;;  %v10987_v33 = vpop.permute.xlu2 %1091 }
 0x284   : > { %v10886_v22 = vpop.permute.xlu0 %995 }
 0x285   : > { %v1386_v10 = vrot.slane %v10886_v22, 4 }
 0x28b   : > { %v10911_v45 = vpop.permute.xlu1 %1115 }
 0x28c   : > { %v10897_v35 = vpop.permute.xlu0 %1031 }
 0x28d   : > { %v1398_v11 = vrot.slane %v10897_v35, 4 }
 0x293   : > { %v10962_v44 = vpop.permute.xlu1 %973 }
 0x294   : > { %v10946_v28 = vpop.permute.xlu0 %1067 }
 0x29b   : > { %v10996_v40 = vpop.permute.xlu1 %997 }
 0x29c   : > { %v10982_v26 = vpop.permute.xlu0 %1103 }
 0x2a2   : > { %2054 = vmax.xlane.f32.xlu2 %v2053_v2  ;;  %v11029_v2 = vpop.permute.xlu2 %1127 }
 0x2a3   : > { %2090 = vmax.xlane.f32.xlu1 %v2089_v41  ;;  %v1362_v41 = vrot.slane %v1345_v4, 4  ;;  %v11038_v47 = vpop.permute.xlu1 %1033  ;;  %v1377_v4 = vsel %vm17849_vm1, %v10884_v21, %v1376_v43  ;;  %v1510_v14 = vrot.slane %v11029_v2, 4 }
 0x2a4   : > { %2048 = vmax.xlane.f32.xlu0 %v2047_v50  ;;  %v11020_v31 = vpop.permute.xlu0 %1139  ;;  %v11036_v50 = vperm.slane %v1265_v27, %v10893_v30  ;;  %v2068_v27 = vsel %vm2046_vm2, %v1365_v6, -inf  ;;  %v11081_v48 = vperm.slane %v1377_v4, %v10893_v30 }
 0x2a5   : > { %v1522_v52 = vrot.slane %v11020_v31, 4  ;;  %v1363_v37 = vsel %vm17849_vm1, %v1362_v41, %v1321_v8  ;;  %v1411_v8 = vsel %vm17849_vm1, %v1410_v5, %v10905_v39  ;;  %v1511_v5 = vsel %vm17849_vm1, %v1510_v14, %v10982_v26 }
 0x2a6   : > { %v1323_v15 = vsel %vm17849_vm1, %v1322_v0, %v11036_v50  ;;  %v2062_v12 = vsel %vm2046_vm2, %v1363_v37, -inf  ;;  %v1324_v61 = vrot.slane %v11036_v50, 4  ;;  %v1399_v0 = vsel %vm17849_vm1, %v1398_v11, %v10868_v16 }
 0x2a7   : > { %v1523_v7 = vsel %vm17849_vm1, %v1522_v52, %v10911_v45  ;;  %v1329_v41 = vperm.slane %v1323_v15, %v10948_v29  ;;  %v11088_v37 = vperm.slane %v1411_v8, %v10893_v30  ;;  %v1387_v50 = vsel %vm17849_vm1, %v1386_v10, %v10882_v20 }
 0x2a8   : > { %v1375_v11 = vsel %vm17849_vm1, %v1374_v51, %v10746_v58  ;;  %v1388_v10 = vrot.slane %v10882_v20, 4 }
 0x2a9   : > { %v1367_v21 = vsel %vm17849_vm1, %v1366_v57, %v1329_v41  ;;  %v1405_v57 = vperm.slane %v1399_v0, %v10893_v30 }
 0x2aa   : > { %2057 = vmax.xlane.f32.xlu2 %v2056_v17  ;;  %v1348_v17 = vrot.slane %v1297_v25, 4  ;;  %v1498_v25 = vrot.slane %v10987_v33, 4  ;;  %v11074_v42 = vpop.permute.xlu2 %1009 }
 0x2ab   : > { %2051 = vmax.xlane.f32.xlu1 %v2050_v32  ;;  %v1254_v32 = vrot.slane %v1241_v59, 4 }
 0x2ac   : > { %2060 = vmax.xlane.f32.xlu0 %v2059_v36  ;;  %v11068_v36 = vperm.slane %v1523_v7, %v10893_v30  ;;  %v11076_v18 = vpop.permute.xlu0 %985  ;;  %v1349_v52 = vsel %vm17849_vm1, %v10994_v49, %v1348_v17  ;;  %v1499_v43 = vsel %vm17849_vm1, %v1498_v25, %v10946_v28  ;;  %v11094_v49 = vpop.permute.xlu1 %1069  ;;  %v2074_v17 = vsel %vm2046_vm2, %v1367_v21, -inf }
 0x2ad   : > { %v1255_v6 = vsel %vm17849_vm1, %v1254_v32, %v1217_v55  ;;  %v1357_v15 = vperm.slane %v1349_v52, %v10948_v29  ;;  %v1400_v55 = vrot.slane %v10868_v16, 4  ;;  %v11109_v4 = vperm.slane %v1499_v43, %v10893_v30 }
 0x2ae   : > { %v1558_v7 = vrot.slane %v11068_v36, 4  ;;  %v11117_v32 = vperm.slane %v1387_v50, %v10893_v30  ;;  %v1325_v16 = vsel %vm17849_vm1, %v11027_v9, %v1324_v61  ;;  %v1412_v52 = vrot.slane %v10905_v39, 4 }
 0x2af   : > { %v1401_v51 = vsel %vm17849_vm1, %v10897_v35, %v1400_v55  ;;  %v1370_v25 = vrot.slane %v1357_v15, 4  ;;  %v1368_v21 = vrot.slane %v1329_v41, 4  ;;  %v1389_v9 = vsel %vm17849_vm1, %v10886_v22, %v1388_v10 }
 0x2b0   : > { %v1534_v20 = vrot.slane %v11109_v4, 4  ;;  %v1259_v35 = vsel %vm17849_vm1, %v1258_v13, %v10965_v46  ;;  %v1333_v61 = vperm.slane %v1325_v16, %v10948_v29  ;;  %v11139_v39 = vperm.slane %v1401_v51, %v10893_v30 }
 0x2b1   : > { %v1369_v50 = vsel %vm17849_vm1, %v11044_v63, %v1368_v21  ;;  %v1448_v46 = vrot.slane %v1405_v57, 4  ;;  %v2083_v63 = vsel %vm2046_vm2, %v1259_v35, -inf }
 0x2b2   : > { %2066 = vmax.xlane.f32.xlu2 %v2065_v38  ;;  %v1257_v38 = vsel %vm17849_vm1, %v1241_v59, %v1256_v24  ;;  %v2071_v59 = vsel %vm2046_vm2, %v1255_v6, -inf  ;;  %v1446_v24 = vrot.slane %v11088_v37, 4  ;;  %v11141_v6 = vpop.permute.xlu2 %1045  ;;  %v1371_v13 = vsel %vm17849_vm1, %v1370_v25, %v1333_v61 }
 0x2b3   : > { %2063 = vmax.xlane.f32.xlu1 %v2062_v12  ;;  %v1486_v12 = vrot.slane %v10888_v23, 4  ;;  %v2077_v8 = vsel %vm2046_vm2, %v1257_v38, -inf  ;;  %v1460_v16 = vrot.slane %v11139_v39, 4  ;;  %v1372_v25 = vrot.slane %v1333_v61, 4 }
 0x2b4   : > { %2069 = vmax.xlane.f32.xlu0 %v2068_v27  ;;  %v11112_v27 = vperm.slane %v1511_v5, %v10893_v30  ;;  %v1447_v43 = vsel %vm17849_vm1, %v1446_v24, %v1405_v57  ;;  %v1422_v5 = vrot.slane %v11117_v32, 4  ;;  %v11143_v41 = vpop.permute.xlu0 %1021  ;;  %v11159_v55 = vpop.permute.xlu1 %1105  ;;  %v1413_v24 = vsel %vm17849_vm1, %v10880_v19, %v1412_v52 }
 0x2b5   : > { %v1487_v0 = vsel %vm17849_vm1, %v1486_v12, %v10955_v34  ;;  %v11153_v38 = vperm.slane %v1447_v43, %v10948_v29  ;;  %v1381_v12 = vperm.slane %v1375_v11, %v10893_v30  ;;  %v2080_v57 = vsel %vm2046_vm2, %v1369_v50, -inf }
 0x2b6   : > { %v1559_v14 = vsel %vm17849_vm1, %v1558_v7, %v11112_v27  ;;  %v1493_v7 = vperm.slane %v1487_v0, %v10893_v30  ;;  %v2086_v11 = vsel %vm2046_vm2, %v1371_v13, -inf  ;;  %v1449_v19 = vsel %vm17849_vm1, %v11088_v37, %v1448_v46 }
 0x2b7   : > { %v11148_v22 = vperm.slane %v1559_v14, %v10948_v29  ;;  %v1423_v10 = vsel %vm17849_vm1, %v1422_v5, %v1381_v12  ;;  %v1470_v14 = vrot.slane %v11153_v38, 4  ;;  %v11175_v52 = vperm.slane %v1413_v24, %v10893_v30 }
 0x2b8   : > { %v1373_v43 = vsel %vm17849_vm1, %v1357_v15, %v1372_v25  ;;  %v11186_v61 = vperm.slane %v1449_v19, %v10948_v29  ;;  %v1424_v37 = vrot.slane %v1381_v12, 4  ;;  %v1524_v5 = vrot.slane %v10911_v45, 4 }
 0x2b9   : > { %v1582_v51 = vrot.slane %v11148_v22, 4  ;;  %v1461_v35 = vsel %vm17849_vm1, %v11175_v52, %v1460_v16 }
 0x2ba   : > { %2075 = vmax.xlane.f32.xlu2 %v2074_v17  ;;  %v11157_v17 = vperm.slane %v1389_v9, %v10893_v30  ;;  %v1429_v9 = vperm.slane %v1423_v10, %v10948_v29  ;;  %v11193_v13 = vpop.permute.xlu2 %1081  ;;  %v11202_v12 = vperm.slane %v1461_v35, %v10948_v29  ;;  %v1425_v45 = vsel %vm17849_vm1, %v11117_v32, %v1424_v37 }
 0x2bb   : > { %2072 = vmax.xlane.f32.xlu1 %v2071_v59  ;;  %v1436_v59 = vrot.slane %v11081_v48, 4  ;;  %v1474_v16 = vrot.slane %v11186_v61, 4  ;;  %v1500_v10 = vrot.slane %v10946_v28, 4  ;;  %v1560_v32 = vrot.slane %v11112_v27, 4 }
 0x2bc   : > { %2078 = vmax.xlane.f32.xlu0 %v2077_v8  ;;  %v1535_v8 = vsel %vm17849_vm1, %v1534_v20, %v1493_v7  ;;  %v1471_v50 = vsel %vm17849_vm1, %v1470_v14, %v1429_v9  ;;  %v11195_v15 = vpop.permute.xlu0 %1057  ;;  %v1433_v14 = vperm.slane %v1425_v45, %v10948_v29  ;;  %v1434_v28 = vrot.slane %v11157_v17, 4 }
 0x2bd   : > { %v1541_v0 = vperm.slane %v1535_v8, %v10948_v29  ;;  %v1437_v21 = vsel %vm17849_vm1, %v11157_v17, %v1436_v59  ;;  %v1525_v59 = vsel %vm17849_vm1, %v11020_v31, %v1524_v5  ;;  %v2095_v8 = vsel %vm2046_vm2, %v1471_v50, -inf }
 0x2be   : > { %v11191_v46 = vperm.slane %v1437_v21, %v10948_v29  ;;  %v1512_v31 = vrot.slane %v10982_v26, 4  ;;  %v1533_v25 = vperm.slane %v1525_v59, %v10893_v30  ;;  %v1475_v26 = vsel %vm17849_vm1, %v1474_v16, %v1433_v14 }
 0x2bf   : > { %v1583_v20 = vsel %vm17849_vm1, %v1582_v51, %v1541_v0  ;;  %v1584_v21 = vrot.slane %v1541_v0, 4  ;;  %v1561_v35 = vsel %vm17849_vm1, %v11068_v36, %v1560_v32  ;;  %v2107_v17 = vsel %vm2046_vm2, %v1475_v26, -inf }
 0x2c0   : > { %v2098_v24 = vsel %vm2046_vm2, %v1583_v20, -inf  ;;  %v1484_v51 = vrot.slane %v11191_v46, 4  ;;  %v1513_v20 = vsel %vm17849_vm1, %v11029_v2, %v1512_v31  ;;  %v1570_v0 = vrot.slane %v1533_v25, 4 }
 0x2c1   : > { %v1585_v27 = vsel %vm17849_vm1, %v11148_v22, %v1584_v21  ;;  %v1569_v36 = vperm.slane %v1561_v35, %v10948_v29  ;;  %v1488_v59 = vrot.slane %v10955_v34, 4  ;;  %v1435_v45 = vsel %vm17849_vm1, %v1434_v28, %v11081_v48 }
 0x2c2   : > { %2084 = vmax.xlane.f32.xlu2 %v2083_v63  ;;  %v2092_v63 = vsel %vm2046_vm2, %v1373_v43, -inf  ;;  %v1485_v19 = vsel %vm17849_vm1, %v11202_v12, %v1484_v51  ;;  %v1501_v43 = vsel %vm17849_vm1, %v10987_v33, %v1500_v10  ;;  %v1521_v33 = vperm.slane %v1513_v20, %v10893_v30  ;;  %v11237_v2 = vpop.permute.xlu2 %1117 }
 0x2c3   : > { %2081 = vmax.xlane.f32.xlu1 %v2080_v57  ;;  %v11206_v57 = vpop.permute.xlu1 %1141  ;;  %v2137_v37 = vsel %vm2046_vm2, %v1485_v19, -inf  ;;  %v11234_v5 = vperm.slane %v1501_v43, %v10893_v30  ;;  %v2104_v22 = vsel %vm2046_vm2, %v1585_v27, -inf  ;;  %v1489_v10 = vsel %vm17849_vm1, %v10888_v23, %v1488_v59 }
 0x2c4   : > { %2087 = vmax.xlane.f32.xlu0 %v2086_v11  ;;  %v1536_v11 = vrot.slane %v1493_v7, 4  ;;  %v11239_v50 = vpop.permute.xlu0 %1093  ;;  %v1476_v51 = vrot.slane %v1433_v14, 4  ;;  %v1441_v32 = vperm.slane %v1435_v45, %v10948_v29  ;;  %v1586_v26 = vrot.slane %v1569_v36, 4 }
 0x2c5   : > { %v1622_v43 = vrot.slane %v11038_v47, 4 }
 0x2c6   : > { %v1537_v7 = vsel %vm17849_vm1, %v11109_v4, %v1536_v11  ;;  %v1571_v11 = vsel %vm17849_vm1, %v1570_v0, %v1521_v33  ;;  %v1477_v19 = vsel %vm17849_vm1, %v11186_v61, %v1476_v51  ;;  %v1480_v27 = vrot.slane %v1441_v32, 4 }
 0x2c7   : > { %v1545_v4 = vperm.slane %v1537_v7, %v10948_v29  ;;  %v11263_v23 = vperm.slane %v1571_v11, %v10948_v29  ;;  %v1572_v7 = vrot.slane %v1521_v33, 4  ;;  %v2113_v61 = vsel %vm2046_vm2, %v1477_v19, -inf }
 0x2c8   : > { %v1610_v33 = vrot.slane %v10996_v40, 4  ;;  %v1624_v19 = vrot.slane %v11074_v42, 4 }
 0x2c9   : > { %v1588_v16 = vrot.slane %v1545_v4, 4  ;;  %v1590_v0 = vrot.slane %v11263_v23, 4  ;;  %v1587_v45 = vsel %vm17849_vm1, %v1586_v26, %v1545_v4 }
 0x2ca   : > { %2093 = vmax.xlane.f32.xlu2 %v2092_v63  ;;  %v1458_v63 = vrot.slane %v11175_v52, 4  ;;  %v1546_v52 = vrot.slane %v11234_v5, 4 }
 0x2cb   : > { %2099 = vmax.xlane.f32.xlu1 %v2098_v24  ;;  %v1472_v24 = vrot.slane %v1429_v9, 4  ;;  %v1634_v9 = vrot.slane %v11141_v6, 4  ;;  %v1589_v48 = vsel %vm17849_vm1, %v1569_v36, %v1588_v16  ;;  %v11281_v36 = vpop.permute.xlu2 %999 }
 0x2cc   : > { %2096 = vmax.xlane.f32.xlu0 %v2095_v8  ;;  %v11247_v8 = vpop.permute.xlu1 %975  ;;  %v1459_v34 = vsel %vm17849_vm1, %v1458_v63, %v11139_v39  ;;  %v2116_v28 = vsel %vm2046_vm2, %v1589_v48, -inf  ;;  %v11283_v63 = vpop.permute.xlu0 %1129 }
 0x2cd   : > { %v1473_v31 = vsel %vm17849_vm1, %v11153_v38, %v1472_v24  ;;  %v1497_v38 = vperm.slane %v1489_v10, %v10893_v30  ;;  %v1635_v14 = vsel %vm17849_vm1, %v1634_v9, %v11143_v41  ;;  %v1465_v21 = vperm.slane %v1459_v34, %v10948_v29 }
 0x2ce   : > { %v2101_v39 = vsel %vm2046_vm2, %v1473_v31, -inf  ;;  %v11275_v35 = vperm.slane %v1635_v14, %v10893_v30  ;;  %v1746_v24 = vrot.slane %v11206_v57, 4  ;;  %v1598_v10 = vrot.slane %v11076_v18, 4 }
 0x2cf   : > { %v1547_v20 = vsel %vm17849_vm1, %v1546_v52, %v1497_v38  ;;  %v1481_v59 = vsel %vm17849_vm1, %v1465_v21, %v1480_v27  ;;  %v1478_v11 = vrot.slane %v1465_v21, 4  ;;  %v1722_v31 = vrot.slane %v11239_v50, 4 }
 0x2d0   : > { %v11289_v16 = vperm.slane %v1547_v20, %v10948_v29  ;;  %v1612_v52 = vrot.slane %v10962_v44, 4  ;;  %v1670_v4 = vrot.slane %v11275_v35, 4  ;;  %v1734_v9 = vrot.slane %v11283_v63, 4 }
 0x2d1   : > { %v2110_v14 = vsel %vm2046_vm2, %v1587_v45, -inf }
 0x2d2   : > { %2138 = vmax.xlane.f32.xlu2 %v2137_v37  ;;  %v1573_v37 = vsel %vm17849_vm1, %v1533_v25, %v1572_v7  ;;  %v1623_v25 = vsel %vm17849_vm1, %v1622_v43, %v11074_v42  ;;  %v1591_v48 = vsel %vm17849_vm1, %v1590_v0, %v11289_v16  ;;  %v1747_v7 = vsel %vm17849_vm1, %v1746_v24, %v11237_v2 }
 0x2d3   : > { %2108 = vmax.xlane.f32.xlu1 %v2107_v17  ;;  %v1548_v17 = vrot.slane %v1497_v38, 4  ;;  %v11298_v34 = vperm.slane %v1573_v37, %v10948_v29  ;;  %v1611_v38 = vsel %vm17849_vm1, %v1610_v33, %v10962_v44  ;;  %v11311_v21 = vperm.slane %v1623_v25, %v10893_v30  ;;  %v11351_v25 = vpop.permute.xlu2 %1035 }
 0x2d4   : > { %2105 = vmax.xlane.f32.xlu0 %v2104_v22  ;;  %v1600_v22 = vrot.slane %v10777_v62, 4  ;;  %v11295_v51 = vpop.permute.xlu1 %987  ;;  %v1599_v42 = vsel %vm17849_vm1, %v1598_v10, %v10777_v62  ;;  %v1723_v44 = vsel %vm17849_vm1, %v1722_v31, %v11094_v49  ;;  %v11334_v0 = vperm.slane %v1747_v7, %v10893_v30 }
 0x2d5   : > { %v1549_v26 = vsel %vm17849_vm1, %v11234_v5, %v1548_v17  ;;  %v1594_v43 = vrot.slane %v11298_v34, 4  ;;  %v1735_v5 = vsel %vm17849_vm1, %v1734_v9, %v11159_v55  ;;  %v1671_v27 = vsel %vm17849_vm1, %v1670_v4, %v11311_v21 }
 0x2d6   : > { %v1601_v20 = vsel %vm17849_vm1, %v11076_v18, %v1600_v22  ;;  %v1479_v37 = vsel %vm17849_vm1, %v1478_v11, %v1441_v32  ;;  %v1557_v33 = vperm.slane %v1549_v26, %v10948_v29  ;;  %v11342_v18 = vperm.slane %v1599_v42, %v10893_v30 }
 0x2d7   : > { %v1636_v22 = vrot.slane %v11143_v41, 4  ;;  %v11346_v24 = vperm.slane %v1723_v44, %v10893_v30  ;;  %v11349_v45 = vperm.slane %v1601_v20, %v10893_v30  ;;  %v11354_v32 = vperm.slane %v1735_v5, %v10893_v30 }
 0x2d8   : > { %v11358_v11 = vperm.slane %v1671_v27, %v10948_v29  ;;  %v1625_v41 = vsel %vm17849_vm1, %v11038_v47, %v1624_v19  ;;  %v2119_v31 = vsel %vm2046_vm2, %v1479_v37, -inf  ;;  %v1613_v4 = vsel %vm17849_vm1, %v10996_v40, %v1612_v52 }
 0x2d9   : > { %v1782_v9 = vrot.slane %v11334_v0, 4  ;;  %v1637_v7 = vsel %vm17849_vm1, %v11141_v6, %v1636_v22  ;;  %v1758_v47 = vrot.slane %v11346_v24, 4  ;;  %v11381_v52 = vperm.slane %v1625_v41, %v10893_v30 }
 0x2da   : > { %2102 = vmax.xlane.f32.xlu2 %v2101_v39  ;;  %v1482_v39 = vrot.slane %v11202_v12, 4  ;;  %v2122_v12 = vsel %vm2046_vm2, %v1591_v48, -inf  ;;  %v1694_v26 = vrot.slane %v11358_v11, 4  ;;  %v1592_v44 = vrot.slane %v11289_v16, 4 }
 0x2db   : > { %2117 = vmax.xlane.f32.xlu1 %v2116_v28  ;;  %v2125_v28 = vsel %vm2046_vm2, %v1481_v59, -inf  ;;  %v1710_v59 = vrot.slane %v11193_v13, 4  ;;  %v1783_v42 = vsel %vm17849_vm1, %v1782_v9, %v11354_v32  ;;  %v1596_v27 = vrot.slane %v1557_v33, 4  ;;  %v11415_v41 = vpop.permute.xlu2 %1071 }
 0x2dc   : > { %2114 = vmax.xlane.f32.xlu0 %v2113_v61  ;;  %v11325_v61 = vperm.slane %v1611_v38, %v10893_v30  ;;  %v1483_v17 = vsel %vm17849_vm1, %v1482_v39, %v11191_v46  ;;  %v1595_v46 = vsel %vm17849_vm1, %v1594_v43, %v1557_v33  ;;  %v11369_v38 = vpop.permute.xlu1 %1023  ;;  %v11395_v43 = vperm.slane %v1637_v7, %v10893_v30 }
 0x2dd   : > { %v1711_v48 = vsel %vm17849_vm1, %v1710_v59, %v11195_v15  ;;  %v2131_v39 = vsel %vm2046_vm2, %v1483_v17, -inf  ;;  %v2134_v19 = vsel %vm2046_vm2, %v1595_v46, -inf  ;;  %v1593_v5 = vsel %vm17849_vm1, %v11263_v23, %v1592_v44 }
 0x2de   : > { %v1646_v10 = vrot.slane %v11325_v61, 4  ;;  %v11388_v6 = vperm.slane %v1711_v48, %v10893_v30  ;;  %v1789_v17 = vperm.slane %v1783_v42, %v10948_v29  ;;  %v1684_v16 = vrot.slane %v11381_v52, 4 }
 0x2df   : > { %v1672_v46 = vrot.slane %v11311_v21, 4  ;;  %v1597_v23 = vsel %vm17849_vm1, %v11298_v34, %v1596_v27  ;;  %v1648_v33 = vrot.slane %v11342_v18, 4  ;;  %v1736_v34 = vrot.slane %v11159_v55, 4 }
 0x2e0   : > { %v1647_v40 = vsel %vm17849_vm1, %v1646_v10, %v11342_v18  ;;  %v1759_v37 = vsel %vm17849_vm1, %v1758_v47, %v11388_v6  ;;  %v1748_v10 = vrot.slane %v11237_v2, 4  ;;  %v1685_v9 = vsel %vm17849_vm1, %v11395_v43, %v1684_v16 }
 0x2e1   : > { %v11398_v20 = vperm.slane %v1647_v40, %v10948_v29  ;;  %v1806_v21 = vrot.slane %v1789_v17, 4  ;;  %v2140_v47 = vsel %vm2046_vm2, %v1597_v23, -inf  ;;  %v11436_v40 = vperm.slane %v1685_v9, %v10948_v29 }
 0x2e2   : > { %2111 = vmax.xlane.f32.xlu2 %v2110_v14  ;;  %v11371_v14 = vpop.permute.xlu0 %1011  ;;  %v1749_v18 = vsel %vm17849_vm1, %v11206_v57, %v1748_v10  ;;  %v1737_v55 = vsel %vm17849_vm1, %v11283_v63, %v1736_v34  ;;  %v1784_v16 = vrot.slane %v11354_v32, 4  ;;  %v1760_v23 = vrot.slane %v11388_v6, 4 }
 0x2e3   : > { %2126 = vmax.xlane.f32.xlu1 %v2125_v28  ;;  %v1660_v28 = vrot.slane %v11349_v45, 4  ;;  %v1695_v59 = vsel %vm17849_vm1, %v1694_v26, %v11398_v20  ;;  %v1649_v26 = vsel %vm17849_vm1, %v11325_v61, %v1648_v33  ;;  %v11444_v42 = vperm.slane %v1749_v18, %v10893_v30  ;;  %v11467_v33 = vpop.permute.xlu2 %1107 }
 0x2e4   : > { %2123 = vmax.xlane.f32.xlu0 %v2122_v12  ;;  %v11392_v12 = vperm.slane %v1613_v4, %v10893_v30  ;;  %v1765_v4 = vperm.slane %v1759_v37, %v10948_v29  ;;  %v2143_v48 = vsel %vm2046_vm2, %v1695_v59, -inf  ;;  %v11453_v63 = vperm.slane %v1737_v55, %v10893_v30 }
 0x2e5   : > { %v1712_v37 = vrot.slane %v11195_v15, 4  ;;  %v1761_v6 = vsel %vm17849_vm1, %v11346_v24, %v1760_v23  ;;  %v1785_v34 = vsel %vm17849_vm1, %v11334_v0, %v1784_v16 }
 0x2e6   : > { %v1661_v22 = vsel %vm17849_vm1, %v11392_v12, %v1660_v28  ;;  %v1724_v28 = vrot.slane %v11094_v49, 4  ;;  %v1808_v57 = vrot.slane %v1765_v4, 4  ;;  %v1807_v44 = vsel %vm17849_vm1, %v1806_v21, %v1765_v4 }
 0x2e7   : > { %v11423_v2 = vperm.slane %v1661_v22, %v10948_v29  ;;  %v2146_v59 = vsel %vm2046_vm2, %v1807_v44, -inf  ;;  %v1657_v22 = vperm.slane %v1649_v26, %v10948_v29  ;;  %v1658_v32 = vrot.slane %v11392_v12, 4 }
 0x2e8   : > { %v1725_v27 = vsel %vm17849_vm1, %v11239_v50, %v1724_v28  ;;  %v1809_v49 = vsel %vm17849_vm1, %v1789_v17, %v1808_v57  ;;  %v1713_v4 = vsel %vm17849_vm1, %v11193_v13, %v1712_v37  ;;  %v1682_v12 = vrot.slane %v11395_v43, 4 }
 0x2e9   : > { %v11463_v50 = vperm.slane %v1725_v27, %v10893_v30  ;;  %v2152_v17 = vsel %vm2046_vm2, %v1809_v49, -inf  ;;  %v1700_v21 = vrot.slane %v1657_v22, 4  ;;  %v1659_v55 = vsel %vm17849_vm1, %v1658_v32, %v11349_v45 }
 0x2ea   : > { %2120 = vmax.xlane.f32.xlu2 %v2119_v31  ;;  %v2128_v31 = vsel %vm2046_vm2, %v1593_v5, -inf  ;;  %v11430_v7 = vpop.permute.xlu0 %1047  ;;  %v1721_v24 = vperm.slane %v1713_v4, %v10893_v30  ;;  %v1769_v43 = vperm.slane %v1761_v6, %v10948_v29  ;;  %v1793_v57 = vperm.slane %v1785_v34, %v10948_v29 }
 0x2eb   : > { %2135 = vmax.xlane.f32.xlu1 %v2134_v19  ;;  %v1673_v19 = vsel %vm17849_vm1, %v11275_v35, %v1672_v46  ;;  %v1708_v35 = vrot.slane %v11423_v2, 4  ;;  %v1794_v46 = vrot.slane %v11444_v42, 4  ;;  %v1770_v18 = vrot.slane %v11463_v50, 4  ;;  %v11508_v16 = vpop.permute.xlu2 %1143 }
 0x2ec   : > { %2132 = vmax.xlane.f32.xlu0 %v2131_v39  ;;  %v11428_v39 = vpop.permute.xlu1 %1059  ;;  %v1681_v5 = vperm.slane %v1673_v19, %v10948_v29  ;;  %v1696_v19 = vrot.slane %v11398_v20, 4  ;;  %v1683_v45 = vsel %vm17849_vm1, %v1682_v12, %v11381_v52  ;;  %v1858_v27 = vrot.slane %v11430_v7, 4 }
 0x2ed   : > { %v1709_v61 = vsel %vm17849_vm1, %v11436_v40, %v1708_v35  ;;  %v1771_v44 = vsel %vm17849_vm1, %v1770_v18, %v1721_v24  ;;  %v1665_v35 = vperm.slane %v1659_v55, %v10948_v29  ;;  %v1812_v49 = vrot.slane %v1769_v43, 4 }
 0x2ee   : > { %v1698_v10 = vrot.slane %v1681_v5, 4  ;;  %v2185_v15 = vsel %vm2046_vm2, %v1709_v61, -inf  ;;  %v1701_v13 = vsel %vm17849_vm1, %v1681_v5, %v1700_v21  ;;  %v1697_v0 = vsel %vm17849_vm1, %v11358_v11, %v1696_v19 }
 0x2ef   : > { %v2161_v20 = vsel %vm2046_vm2, %v1701_v13, -inf  ;;  %v2149_v5 = vsel %vm2046_vm2, %v1697_v0, -inf  ;;  %v1810_v61 = vrot.slane %v1793_v57, 4  ;;  %v1834_v37 = vrot.slane %v11281_v36, 4 }
 0x2f0   : > { %v1846_v52 = vrot.slane %v11351_v25, 4  ;;  %v1772_v23 = vrot.slane %v1721_v24, 4  ;;  %v1796_v32 = vrot.slane %v11453_v63, 4  ;;  %v1970_v6 = vrot.slane %v11508_v16, 4 }
 0x2f1   : > { %v1859_v34 = vsel %vm17849_vm1, %v1858_v27, %v11369_v38  ;;  %v1811_v12 = vsel %vm17849_vm1, %v1810_v61, %v1769_v43  ;;  %v1706_v18 = vrot.slane %v11436_v40, 4  ;;  %v1822_v61 = vrot.slane %v11295_v51, 4 }
 0x2f2   : > { %2129 = vmax.xlane.f32.xlu2 %v2128_v31  ;;  %v1795_v31 = vsel %vm17849_vm1, %v1794_v46, %v11453_v63  ;;  %v1824_v46 = vrot.slane %v10822_v3, 4  ;;  %v11545_v43 = vperm.slane %v1859_v34, %v10893_v30 }
 0x2f3   : > { %2144 = vmax.xlane.f32.xlu1 %v2143_v48  ;;  %v11477_v48 = vpop.permute.xlu0 %1083  ;;  %v11489_v28 = vperm.slane %v1795_v31, %v10948_v29 }
 0x2f4   : > { %2141 = vmax.xlane.f32.xlu0 %v2140_v47  ;;  %v11475_v9 = vpop.permute.xlu1 %1095  ;;  %v1699_v47 = vsel %vm17849_vm1, %v1698_v10, %v1657_v22  ;;  %v1689_v22 = vperm.slane %v1683_v45, %v10948_v29  ;;  %v1704_v10 = vrot.slane %v1665_v35, 4  ;;  %v1825_v63 = vsel %vm17849_vm1, %v11295_v51, %v1824_v46 }
 0x2f5   : > { %v2155_v26 = vsel %vm2046_vm2, %v1699_v47, -inf  ;;  %v1814_v11 = vrot.slane %v11489_v28, 4  ;;  %v1836_v47 = vrot.slane %v11247_v8, 4 }
 0x2f6   : > { %v1705_v13 = vsel %vm17849_vm1, %v1689_v22, %v1704_v10  ;;  %v1702_v45 = vrot.slane %v1689_v22, 4 }
 0x2fa   : > { %2147 = vmax.xlane.f32.xlu2 %v2146_v59  ;;  %v11511_v59 = vperm.slane %v1771_v44, %v10948_v29  ;;  %v1946_v44 = vrot.slane %v11475_v9, 4 }
 0x2fb   : > { %2153 = vmax.xlane.f32.xlu1 %v2152_v17  ;;  %v1813_v17 = vsel %vm17849_vm1, %v1793_v57, %v1812_v49  ;;  %v11522_v4 = vpop.permute.xlu0 %1119  ;;  %v2158_v57 = vsel %vm2046_vm2, %v1811_v12, -inf  ;;  %v2173_v49 = vsel %vm2046_vm2, %v1705_v13, -inf }
 0x2fc   : > { %2186 = vmax.xlane.f32.xlu0 %v2185_v15  ;;  %v1835_v15 = vsel %vm17849_vm1, %v1834_v37, %v11247_v8  ;;  %v11520_v31 = vpop.permute.xlu1 %1131  ;;  %v1815_v21 = vsel %vm17849_vm1, %v1814_v11, %v11511_v59  ;;  %v2164_v19 = vsel %vm2046_vm2, %v1813_v17, -inf  ;;  %v1971_v0 = vsel %vm17849_vm1, %v1970_v6, %v11522_v4 }
 0x2fd   : > { %v11537_v55 = vperm.slane %v1835_v15, %v10893_v30  ;;  %v1958_v24 = vrot.slane %v11520_v31, 4  ;;  %v2170_v40 = vsel %vm2046_vm2, %v1815_v21, -inf  ;;  %v1848_v8 = vrot.slane %v11371_v14, 4 }
 0x2fe   : > { %v1837_v11 = vsel %vm17849_vm1, %v11281_v36, %v1836_v47  ;;  %v11559_v27 = vperm.slane %v1971_v0, %v10893_v30  ;;  %v1847_v37 = vsel %vm17849_vm1, %v1846_v52, %v11371_v14  ;;  %v1860_v36 = vrot.slane %v11369_v38, 4 }
 0x2ff   : > { %v1959_v22 = vsel %vm17849_vm1, %v1958_v24, %v11467_v33  ;;  %v1849_v46 = vsel %vm17849_vm1, %v11351_v25, %v1848_v8  ;;  %v1894_v17 = vrot.slane %v11545_v43, 4  ;;  %v1947_v51 = vsel %vm17849_vm1, %v1946_v44, %v11415_v41 }
 0x300   : > { %v1703_v14 = vsel %vm17849_vm1, %v1702_v45, %v1665_v35  ;;  %v1861_v38 = vsel %vm17849_vm1, %v11430_v7, %v1860_v36  ;;  %v11584_v25 = vperm.slane %v1959_v22, %v10893_v30  ;;  %v2006_v15 = vrot.slane %v11559_v27, 4 }
 0x301   : > { %v11590_v21 = vperm.slane %v1849_v46, %v10893_v30  ;;  %v1934_v35 = vrot.slane %v11477_v48, 4  ;;  %v11594_v34 = vperm.slane %v1837_v11, %v10893_v30  ;;  %v11597_v7 = vperm.slane %v1947_v51, %v10893_v30 }
 0x302   : > { %2156 = vmax.xlane.f32.xlu2 %v2155_v26  ;;  %v1797_v26 = vsel %vm17849_vm1, %v11444_v42, %v1796_v32  ;;  %v1773_v42 = vsel %vm17849_vm1, %v11463_v50, %v1772_v23  ;;  %v1853_v23 = vperm.slane %v1847_v37, %v10893_v30  ;;  %v1823_v32 = vsel %vm17849_vm1, %v1822_v61, %v10822_v3 }
 0x303   : > { %2162 = vmax.xlane.f32.xlu1 %v2161_v20  ;;  %v11551_v20 = vperm.slane %v1825_v63, %v10893_v30  ;;  %v1781_v52 = vperm.slane %v1773_v42, %v10948_v29  ;;  %v2167_v12 = vsel %vm2046_vm2, %v1703_v14, -inf  ;;  %v11602_v47 = vperm.slane %v1861_v38, %v10893_v30 }
 0x304   : > { %2150 = vmax.xlane.f32.xlu0 %v2149_v5  ;;  %v1707_v5 = vsel %vm17849_vm1, %v1706_v18, %v11423_v2  ;;  %v1805_v2 = vperm.slane %v1797_v26, %v10948_v29  ;;  %v1895_v18 = vsel %vm17849_vm1, %v1894_v17, %v1853_v23  ;;  %v1816_v24 = vrot.slane %v11511_v59, 4 }
 0x305   : > { %v2179_v10 = vsel %vm2046_vm2, %v1707_v5, -inf  ;;  %v1884_v50 = vrot.slane %v11551_v20, 4  ;;  %v1820_v63 = vrot.slane %v1781_v52, 4  ;;  %v2007_v0 = vsel %vm17849_vm1, %v2006_v15, %v11584_v25 }
 0x306   : > { %v1818_v6 = vrot.slane %v1805_v2, 4  ;;  %v1908_v8 = vrot.slane %v11590_v21, 4  ;;  %v1901_v45 = vperm.slane %v1895_v18, %v10948_v29  ;;  %v1870_v5 = vrot.slane %v11537_v55, 4 }
 0x307   : > { %v1982_v59 = vrot.slane %v11597_v7, 4  ;;  %v1817_v42 = vsel %vm17849_vm1, %v11489_v28, %v1816_v24  ;;  %v2013_v61 = vperm.slane %v2007_v0, %v10948_v29  ;;  %v2008_v0 = vrot.slane %v11584_v25, 4 }
 0x308   : > { %v1819_v44 = vsel %vm17849_vm1, %v1818_v6, %v1781_v52  ;;  %v1909_v37 = vsel %vm17849_vm1, %v11602_v47, %v1908_v8  ;;  %v2176_v28 = vsel %vm2046_vm2, %v1817_v42, -inf  ;;  %v1972_v52 = vrot.slane %v11522_v4, 4 }
 0x309   : > { %v2182_v36 = vsel %vm2046_vm2, %v1819_v44, -inf  ;;  %v11639_v14 = vperm.slane %v1909_v37, %v10948_v29  ;;  %v2030_v15 = vrot.slane %v2013_v61, 4  ;;  %v1948_v44 = vrot.slane %v11415_v41, 4 }
 0x30a   : > { %2165 = vmax.xlane.f32.xlu2 %v2164_v19  ;;  %v1829_v19 = vperm.slane %v1823_v32, %v10893_v30  ;;  %v2009_v41 = vsel %vm17849_vm1, %v11559_v27, %v2008_v0 }
 0x30b   : > { %2171 = vmax.xlane.f32.xlu1 %v2170_v40  ;;  %v1885_v40 = vsel %vm17849_vm1, %v11594_v34, %v1884_v50  ;;  %v1896_v50 = vrot.slane %v1853_v23, 4 }
 0x30c   : > { %2159 = vmax.xlane.f32.xlu0 %v2158_v57  ;;  %v1935_v57 = vsel %vm17849_vm1, %v1934_v35, %v11428_v39  ;;  %v1871_v46 = vsel %vm17849_vm1, %v1870_v5, %v1829_v19  ;;  %v11633_v17 = vperm.slane %v1885_v40, %v10948_v29  ;;  %v1973_v40 = vsel %vm17849_vm1, %v11508_v16, %v1972_v52 }
 0x30d   : > { %v1941_v22 = vperm.slane %v1935_v57, %v10893_v30  ;;  %v1877_v38 = vperm.slane %v1871_v46, %v10948_v29  ;;  %v1897_v23 = vsel %vm17849_vm1, %v11545_v43, %v1896_v50  ;;  %v1949_v46 = vsel %vm17849_vm1, %v11475_v9, %v1948_v44 }
 0x30e   : > { %v1932_v35 = vrot.slane %v11633_v17, 4  ;;  %v1905_v43 = vperm.slane %v1897_v23, %v10948_v29  ;;  %v2017_v9 = vperm.slane %v2009_v41, %v10948_v29  ;;  %v1906_v52 = vrot.slane %v11602_v47, 4 }
 0x30f   : > { %v1983_v51 = vsel %vm17849_vm1, %v1982_v59, %v1941_v22  ;;  %v1984_v5 = vrot.slane %v1941_v22, 4  ;;  %v11665_v59 = vperm.slane %v1973_v40, %v10893_v30  ;;  %v1920_v22 = vrot.slane %v1877_v38, 4 }
 0x310   : > { %v1989_v18 = vperm.slane %v1983_v51, %v10948_v29  ;;  %v1933_v4 = vsel %vm17849_vm1, %v11639_v14, %v1932_v35  ;;  %v1922_v37 = vrot.slane %v1905_v43, 4  ;;  %v1936_v35 = vrot.slane %v11428_v39, 4 }
 0x311   : > { %v2018_v50 = vrot.slane %v11665_v59, 4  ;;  %v1921_v27 = vsel %vm17849_vm1, %v1901_v45, %v1920_v22  ;;  %v1985_v51 = vsel %vm17849_vm1, %v11597_v7, %v1984_v5  ;;  %v1882_v23 = vrot.slane %v11594_v34, 4 }
 0x312   : > { %2174 = vmax.xlane.f32.xlu2 %v2173_v49  ;;  %v1821_v49 = vsel %vm17849_vm1, %v1805_v2, %v1820_v63  ;;  %v1872_v63 = vrot.slane %v1829_v19, 4  ;;  %v2031_v8 = vsel %vm17849_vm1, %v2030_v15, %v1989_v18  ;;  %v2233_v19 = vsel %vm2046_vm2, %v1933_v4, -inf }
 0x313   : > { %2180 = vmax.xlane.f32.xlu1 %v2179_v10  ;;  %v2188_v2 = vsel %vm2046_vm2, %v1821_v49, -inf  ;;  %v1918_v10 = vrot.slane %v1901_v45, 4  ;;  %v2194_v25 = vsel %vm2046_vm2, %v2031_v8, -inf  ;;  %v1960_v49 = vrot.slane %v11467_v33, 4 }
 0x314   : > { %2168 = vmax.xlane.f32.xlu0 %v2167_v12  ;;  %v1873_v16 = vsel %vm17849_vm1, %v11537_v55, %v1872_v63  ;;  %v2032_v42 = vrot.slane %v1989_v18, 4  ;;  %v2197_v45 = vsel %vm2046_vm2, %v1921_v27, -inf  ;;  %v1993_v7 = vperm.slane %v1985_v51, %v10948_v29 }
 0x315   : > { %v11605_v13 = vpop.xlane.xlu2 %2054  ;;  %v1919_v12 = vsel %vm17849_vm1, %v1918_v10, %v1877_v38  ;;  %v1881_v33 = vperm.slane %v1873_v16, %v10948_v29  ;;  %v11693_v38 = vperm.slane %v1949_v46, %v10893_v30  ;;  %v1937_v63 = vsel %vm17849_vm1, %v11477_v48, %v1936_v35 }
 0x316   : > { %v11615_v26 = vpop.xlane.xlu1 %2090  ;;  %v2191_v57 = vsel %vm2046_vm2, %v1919_v12, -inf  ;;  %v2033_v55 = vsel %vm17849_vm1, %v2013_v61, %v2032_v42  ;;  %v2034_v12 = vrot.slane %v2017_v9, 4  ;;  %v1907_v39 = vsel %vm17849_vm1, %v1906_v52, %v11590_v21 }
 0x317   : > { %v11621_v11 = vpop.xlane.xlu0 %2048  ;;  %v2200_v15 = vsel %vm2046_vm2, %v2033_v55, -inf  ;;  %v1924_v4 = vrot.slane %v1881_v33, 4  ;;  %v1994_v0 = vrot.slane %v11693_v38, 4  ;;  %v1883_v34 = vsel %vm17849_vm1, %v1882_v23, %v11551_v20 }
 0x318   : > { %v1945_v5 = vperm.slane %v1937_v63, %v10893_v30  ;;  %v2035_v21 = vsel %vm17849_vm1, %v2034_v12, %v1993_v7  ;;  %v1913_v16 = vperm.slane %v1907_v39, %v10948_v29  ;;  %v1889_v41 = vperm.slane %v1883_v34, %v10948_v29 }
 0x319   : > { %v1925_v44 = vsel %vm17849_vm1, %v1905_v43, %v1924_v4 }
 0x31a   : > { %2183 = vmax.xlane.f32.xlu2 %v2182_v36  ;;  %v1995_v43 = vsel %vm17849_vm1, %v1994_v0, %v1945_v5  ;;  %v1996_v23 = vrot.slane %v1945_v5, 4 }
 0x31b   : > { %2189 = vmax.xlane.f32.xlu1 %v2188_v2  ;;  %v1961_v2 = vsel %vm17849_vm1, %v11520_v31, %v1960_v49  ;;  %v1923_v31 = vsel %vm17849_vm1, %v1922_v37, %v1881_v33  ;;  %v2275_v49 = vrot.slane %v11615_v26, 4  ;;  %v2209_v37 = vsel %vm2046_vm2, %v1925_v44, -inf }
 0x31c   : > { %2177 = vmax.xlane.f32.xlu0 %v2176_v28  ;;  %v1969_v61 = vperm.slane %v1961_v2, %v10893_v30  ;;  %v2203_v47 = vsel %vm2046_vm2, %v1923_v31, -inf  ;;  %v2206_v2 = vsel %vm2046_vm2, %v2035_v21, -inf  ;;  %v2001_v51 = vperm.slane %v1995_v43, %v10948_v29 }
 0x31d   : > { %v11643_v32 = vpop.xlane.xlu2 %2057 }
 0x31e   : > { %v11648_v6 = vpop.xlane.xlu1 %2051  ;;  %v2019_v18 = vsel %vm17849_vm1, %v2018_v50, %v1969_v61  ;;  %v2020_v42 = vrot.slane %v1969_v61, 4  ;;  %v1926_v50 = vrot.slane %v1913_v16, 4  ;;  %v2040_v43 = vrot.slane %v2001_v51, 4 }
 0x31f   : > { %v11652_v24 = vpop.xlane.xlu0 %2060  ;;  %v2025_v48 = vperm.slane %v2019_v18, %v10948_v29 }
 0x320   : > { %v2239_v27 = vrot.slane %v11652_v24, 4  ;;  %v2021_v61 = vsel %vm17849_vm1, %v11665_v59, %v2020_v42  ;;  %v1927_v12 = vsel %vm17849_vm1, %v1926_v50, %v1889_v41 }
 0x321   : > { %v2038_v55 = vrot.slane %v2025_v48, 4  ;;  %v2029_v59 = vperm.slane %v2021_v61, %v10948_v29  ;;  %v2215_v44 = vsel %vm2046_vm2, %v1927_v12, -inf }
 0x322   : > { %2192 = vmax.xlane.f32.xlu2 %v2191_v57  ;;  %v2240_v18 = vsel %vm17849_vm1, %v2239_v27, %v11621_v11 }
 0x323   : > { %2234 = vmax.xlane.f32.xlu1 %v2233_v19  ;;  %v2036_v19 = vrot.slane %v1993_v7, 4  ;;  %v1928_v7 = vrot.slane %v1889_v41, 4  ;;  %v11762_v5 = vperm.slane %v2240_v18, %v10893_v30 }
 0x324   : > { %2195 = vmax.xlane.f32.xlu0 %v2194_v25 }
 0x325   : > { %v11673_v36 = vpop.xlane.xlu2 %2066  ;;  %v2037_v20 = vsel %vm17849_vm1, %v2017_v9, %v2036_v19  ;;  %v1929_v4 = vsel %vm17849_vm1, %v1913_v16, %v1928_v7  ;;  %v1930_v19 = vrot.slane %v11639_v14, 4  ;;  %v1997_v16 = vsel %vm17849_vm1, %v11693_v38, %v1996_v23 }
 0x326   : > { %v11679_v10 = vpop.xlane.xlu1 %2063  ;;  %v2251_v8 = vrot.slane %v11673_v36, 4  ;;  %v2212_v33 = vsel %vm2046_vm2, %v2037_v20, -inf  ;;  %v2221_v21 = vsel %vm2046_vm2, %v1929_v4, -inf  ;;  %v2042_v20 = vrot.slane %v2029_v59, 4 }
 0x327   : > { %v11684_v28 = vpop.xlane.xlu0 %2069 }
 0x328   : > { %v2252_v22 = vsel %vm17849_vm1, %v2251_v8, %v11605_v13 }
 0x329   : > { %v11736_v9 = vperm.slane %v2252_v22, %v10893_v30  ;;  %v1931_v22 = vsel %vm17849_vm1, %v1930_v19, %v11633_v17 }
 0x32a   : > { %2201 = vmax.xlane.f32.xlu2 %v2200_v15  ;;  %v2227_v27 = vsel %vm2046_vm2, %v1931_v22, -inf }
 0x32b   : > { %2198 = vmax.xlane.f32.xlu1 %v2197_v45  ;;  %v2039_v45 = vsel %vm17849_vm1, %v2038_v55, %v2001_v51  ;;  %v2287_v39 = vrot.slane %v11736_v9, 4  ;;  %v2041_v55 = vsel %vm17849_vm1, %v2025_v48, %v2040_v43 }
 0x32c   : > { %2204 = vmax.xlane.f32.xlu0 %v2203_v47  ;;  %v2218_v8 = vsel %vm2046_vm2, %v2039_v45, -inf  ;;  %v2224_v51 = vsel %vm2046_vm2, %v2041_v55, -inf }
 0x32d   : > { %v11708_v40 = vpop.xlane.xlu2 %2075  ;;  %v2288_v14 = vsel %vm17849_vm1, %v2287_v39, %v11762_v5 }
 0x32e   : > { %v11713_v57 = vpop.xlane.xlu1 %2072  ;;  %v2294_v50 = vperm.slane %v2288_v14, %v10948_v29 }
 0x32f   : > { %v11718_v25 = vpop.xlane.xlu0 %2078 }
 0x330   : > { %v2276_v46 = vsel %vm17849_vm1, %v2275_v49, %v11718_v25  ;;  %v2277_v12 = vrot.slane %v11718_v25, 4 }
 0x331   : > { %v11739_v52 = vperm.slane %v2276_v46, %v10893_v30  ;;  %v2005_v46 = vperm.slane %v1997_v16, %v10948_v29 }
 0x332   : > { %2210 = vmax.xlane.f32.xlu2 %v2209_v37  ;;  %v2278_v39 = vsel %vm17849_vm1, %v11615_v26, %v2277_v12  ;;  %v2241_v26 = vrot.slane %v11621_v11, 4  ;;  %v2337_v11 = vrot.slane %v2294_v50, 4  ;;  %v2687_v12 = vrot.slane %v11679_v10, 4 }
 0x333   : > { %2207 = vmax.xlane.f32.xlu1 %v2206_v2  ;;  %v2311_v0 = vrot.slane %v11739_v52, 4 }
 0x334   : > { %2213 = vmax.xlane.f32.xlu0 %v2212_v33  ;;  %v2043_v33 = vsel %vm17849_vm1, %v2042_v20, %v2005_v46 }
 0x335   : > { %v2085_v31 = vpop.xlane.xlu2 %2084  ;;  %v2230_v17 = vsel %vm2046_vm2, %v2043_v33, -inf }
 0x336   : > { %v2263_v15 = vrot.slane %v2085_v31, 4  ;;  %v11743_v35 = vpop.xlane.xlu1 %2081 }
 0x337   : > { %v11746_v47 = vpop.xlane.xlu0 %2087 }
 0x338   : > { %v2264_v63 = vsel %vm17849_vm1, %v2263_v15, %v11713_v57  ;;  %v2044_v15 = vrot.slane %v2005_v46, 4  ;;  %v2699_v46 = vrot.slane %v11684_v28, 4  ;;  %v2711_v33 = vrot.slane %v11746_v47, 4 }
 0x339   : > { %v2270_v34 = vperm.slane %v2264_v63, %v10893_v30  ;;  %v2253_v63 = vrot.slane %v11605_v13, 4 }
 0x33a   : > { %2219 = vmax.xlane.f32.xlu2 %v2218_v8  ;;  %v2045_v7 = vsel %vm17849_vm1, %v2029_v59, %v2044_v15 }
 0x33b   : > { %2216 = vmax.xlane.f32.xlu1 %v2215_v44  ;;  %v2312_v49 = vsel %vm17849_vm1, %v2311_v0, %v2270_v34  ;;  %v2236_v18 = vsel %vm2046_vm2, %v2045_v7, -inf  ;;  %v2313_v4 = vrot.slane %v2270_v34, 4  ;;  %v2265_v0 = vrot.slane %v11713_v57, 4 }
 0x33c   : > { %2222 = vmax.xlane.f32.xlu0 %v2221_v21  ;;  %v2318_v42 = vperm.slane %v2312_v49, %v10948_v29  ;;  %v2254_v59 = vsel %vm17849_vm1, %v11673_v36, %v2253_v63  ;;  %v2286_v21 = vperm.slane %v2278_v39, %v10893_v30  ;;  %v2242_v36 = vsel %vm17849_vm1, %v11652_v24, %v2241_v26 }
 0x33d   : > { %v11769_v37 = vpop.xlane.xlu2 %2093  ;;  %v2266_v25 = vsel %vm17849_vm1, %v2085_v31, %v2265_v0  ;;  %v2314_v13 = vsel %vm17849_vm1, %v11739_v52, %v2313_v4  ;;  %v2262_v57 = vperm.slane %v2254_v59, %v10893_v30  ;;  %v2289_v49 = vrot.slane %v11762_v5, 4 }
 0x33e   : > { %v11773_v41 = vpop.xlane.xlu1 %2099  ;;  %v2335_v38 = vrot.slane %v2318_v42, 4  ;;  %v2723_v34 = vrot.slane %v11769_v37, 4  ;;  %v2274_v16 = vperm.slane %v2266_v25, %v10893_v30  ;;  %v2322_v31 = vperm.slane %v2314_v13, %v10948_v29 }
 0x33f   : > { %v11778_v2 = vpop.xlane.xlu0 %2096  ;;  %v2323_v20 = vrot.slane %v2286_v21, 4  ;;  %v2299_v43 = vrot.slane %v2262_v57, 4  ;;  %v2250_v22 = vperm.slane %v2242_v36, %v10893_v30  ;;  %v2290_v24 = vsel %vm17849_vm1, %v11736_v9, %v2289_v49 }
 0x340   : > { %v11786_v61 = vsel %vm17849_vm1, %v2335_v38, %v2294_v50  ;;  %v2724_v52 = vsel %vm17849_vm1, %v2723_v34, %v11743_v35  ;;  %v2325_v5 = vrot.slane %v2274_v16, 4  ;;  %v2701_v50 = vrot.slane %v11643_v32, 4 }
 0x341   : > { %v2324_v38 = vsel %vm17849_vm1, %v2323_v20, %v2274_v16  ;;  %v11839_v15 = vperm.slane %v2724_v52, %v10893_v30  ;;  %v2298_v9 = vperm.slane %v2290_v24, %v10948_v29  ;;  %v2301_v4 = vrot.slane %v2250_v22, 4 }
 0x342   : > { %2228 = vmax.xlane.f32.xlu2 %v2227_v27  ;;  %v2330_v63 = vperm.slane %v2324_v38, %v10948_v29  ;;  %v2702_v0 = vsel %vm17849_vm1, %v11684_v28, %v2701_v50  ;;  %v2712_v59 = vsel %vm17849_vm1, %v2711_v33, %v11708_v40  ;;  %v2326_v13 = vsel %vm17849_vm1, %v2286_v21, %v2325_v5 }
 0x343   : > { %2225 = vmax.xlane.f32.xlu1 %v2224_v51  ;;  %v2338_v51 = vsel %vm17849_vm1, %v2318_v42, %v2337_v11  ;;  %v2700_v42 = vsel %vm17849_vm1, %v2699_v46, %v11643_v32  ;;  %v2759_v26 = vrot.slane %v11839_v15, 4  ;;  %v2688_v36 = vsel %vm17849_vm1, %v2687_v12, %v11648_v6 }
 0x344   : > { %2231 = vmax.xlane.f32.xlu0 %v2230_v17  ;;  %v2339_v17 = vrot.slane %v2322_v31, 4  ;;  %v11864_v28 = vperm.slane %v2700_v42, %v10893_v30  ;;  %v2341_v21 = vrot.slane %v2298_v9, 4  ;;  %v2343_v20 = vrot.slane %v2330_v63, 4 }
 0x345   : > { %v11789_v45 = vpop.xlane.xlu2 %2138  ;;  %v2334_v46 = vperm.slane %v2326_v13, %v10948_v29  ;;  %v2725_v38 = vrot.slane %v11743_v35, 4 }
 0x346   : > { %v11791_v48 = vpop.xlane.xlu1 %2108  ;;  %v2387_v39 = vrot.slane %v11789_v45, 4  ;;  %v2340_v25 = vsel %vm17849_vm1, %v2339_v17, %v2298_v9  ;;  %v2694_v17 = vperm.slane %v2688_v36, %v10893_v30  ;;  %v2735_v35 = vrot.slane %v11864_v28, 4 }
 0x347   : > { %v11794_v23 = vpop.xlane.xlu0 %2105  ;;  %v2351_v52 = vrot.slane %v11791_v48, 4  ;;  %v2726_v12 = vsel %vm17849_vm1, %v11769_v37, %v2725_v38 }
 0x34a   : > { %2237 = vmax.xlane.f32.xlu2 %v2236_v18  ;;  %v2300_v18 = vsel %vm17849_vm1, %v2299_v43, %v2250_v22  ;;  %v2718_v43 = vperm.slane %v2712_v59, %v10893_v30  ;;  %v2302_v22 = vsel %vm17849_vm1, %v2262_v57, %v2301_v4 }
 0x34b   : > { %v2306_v16 = vperm.slane %v2300_v18, %v10948_v29  ;;  %v2310_v18 = vperm.slane %v2302_v22, %v10948_v29 }
 0x34d   : > { %v11802_v8 = vpop.xlane.xlu2 %2102  ;;  %v2345_v57 = vrot.slane %v2306_v16, 4  ;;  %v2344_v9 = vsel %vm17849_vm1, %v2343_v20, %v2306_v16  ;;  %v2734_v16 = vperm.slane %v2726_v12, %v10893_v30  ;;  %v2736_v20 = vsel %vm17849_vm1, %v2735_v35, %v2694_v17 }
 0x34e   : > { %v11806_v44 = vpop.xlane.xlu1 %2117 }
 0x34f   : > { %v11809_v19 = vpop.xlane.xlu0 %2114  ;;  %v2346_v42 = vsel %vm17849_vm1, %v2330_v63, %v2345_v57  ;;  %v2710_v63 = vperm.slane %v2702_v0, %v10893_v30 }
 0x350   : > { %v2363_v7 = vrot.slane %v11809_v19, 4 }
 0x352   : > { %v2364_v34 = vsel %vm17849_vm1, %v2363_v7, %v11802_v8  ;;  %v2760_v7 = vsel %vm17849_vm1, %v2759_v26, %v2718_v43  ;;  %v2689_v26 = vrot.slane %v11648_v6, 4  ;;  %v2737_v6 = vrot.slane %v2694_v17, 4 }
 0x353   : > { %v11878_v24 = vperm.slane %v2364_v34, %v10893_v30  ;;  %v2766_v13 = vperm.slane %v2760_v7, %v10948_v29  ;;  %v2713_v34 = vrot.slane %v11708_v40, 4  ;;  %v2771_v7 = vrot.slane %v2734_v16, 4 }
 0x355   : > { %v11824_v14 = vpop.xlane.xlu2 %2111  ;;  %v2399_v59 = vrot.slane %v11878_v24, 4  ;;  %v2714_v40 = vsel %vm17849_vm1, %v11746_v47, %v2713_v34  ;;  %v2783_v57 = vrot.slane %v2766_v13, 4  ;;  %v2690_v47 = vsel %vm17849_vm1, %v11679_v10, %v2689_v26 }
 0x356   : > { %v11829_v55 = vpop.xlane.xlu1 %2126  ;;  %v2722_v35 = vperm.slane %v2714_v40, %v10893_v30 }
 0x357   : > { %v11834_v27 = vpop.xlane.xlu0 %2123  ;;  %v2388_v32 = vsel %vm17849_vm1, %v2387_v39, %v11829_v55  ;;  %v2347_v39 = vrot.slane %v2334_v46, 4 }
 0x358   : > { %3139 = vrot.lane.b32.xlu0 %v2338_v51, %s18010_s5  ;;  %v11881_v5 = vperm.slane %v2388_v32, %v10893_v30  ;;  %v2342_v51 = vsel %vm17849_vm1, %v2322_v31, %v2341_v21  ;;  %v2352_v31 = vsel %vm17849_vm1, %v2351_v52, %v11778_v2  ;;  %v2761_v32 = vrot.slane %v2718_v43, 4 }
 0x359   : > { %v11913_v36 = vperm.slane %v2352_v31, %v10893_v30  ;;  %v2747_v31 = vrot.slane %v2710_v63, 4 }
 0x35a   : > { %v2762_v22 = vsel %vm17849_vm1, %v11839_v15, %v2761_v32  ;;  %v2742_v15 = vperm.slane %v2736_v20, %v10948_v29 }
 0x35b   : > { %v2400_v17 = vsel %vm17849_vm1, %v2399_v59, %v11913_v36 }
 0x35c   : > { %3155 = vrot.lane.b32.xlu1 %v2340_v25, %s10481_s20  ;;  %v2423_v25 = vrot.slane %v11881_v5, 4  ;;  %v11946_v10 = vperm.slane %v2400_v17, %v10948_v29  ;;  %v2785_v34 = vrot.slane %v2742_v15, 4 }
 0x35d   : > { %v11868_v49 = vpop.xlane.xlu2 %2120 }
 0x35e   : > { %v11872_v11 = vpop.xlane.xlu1 %2135  ;;  %v2377_v40 = vrot.slane %v11868_v49, 4 }
 0x35f   : > { %v11883_v33 = vpop.xlane.xlu0 %2132 }
 0x360   : > { %v2375_v50 = vrot.slane %v11883_v33, 4  ;;  %3171 = vrot.lane.b32.xlu0 %v2342_v51, %s10485_s27  ;;  %v2348_v51 = vsel %vm17849_vm1, %v2347_v39, %v2310_v18  ;;  %v2698_v39 = vperm.slane %v2690_v47, %v10893_v30 }
 0x362   : > { %v2376_v4 = vsel %vm17849_vm1, %v2375_v50, %v11868_v49  ;;  %3187 = vrot.lane.b32.xlu2 %v2344_v9, %s10484_s19  ;;  %v2349_v50 = vrot.slane %v2310_v18, 4  ;;  %v2770_v9 = vperm.slane %v2762_v22, %v10948_v29  ;;  %v2389_v49 = vrot.slane %v11829_v55, 4 }
 0x363   : > { %v11904_v37 = vperm.slane %v2376_v4, %v10893_v30  ;;  %v2738_v4 = vsel %vm17849_vm1, %v11864_v28, %v2737_v6 }
 0x364   : > { %3203 = vrot.lane.b32.xlu1 %v2346_v42, %s10478_s23  ;;  %v2350_v12 = vsel %vm17849_vm1, %v2334_v46, %v2349_v50  ;;  %v2784_v42 = vsel %vm17849_vm1, %v2783_v57, %v2742_v15  ;;  %v2772_v46 = vsel %vm17849_vm1, %v2771_v7, %v2722_v35  ;;  %v2746_v28 = vperm.slane %v2738_v4, %v10948_v29 }
 0x365   : > { %v11915_v21 = vpop.xlane.xlu2 %2129  ;;  %v2424_v52 = vsel %vm17849_vm1, %v2423_v25, %v11904_v37  ;;  %v2773_v25 = vrot.slane %v2722_v35, 4  ;;  %v2787_v32 = vrot.slane %v2770_v9, 4  ;;  %v2778_v50 = vperm.slane %v2772_v46, %v10948_v29 }
 0x366   : > { %v11922_v43 = vpop.xlane.xlu1 %2144  ;;  %v11927_v0 = vperm.slane %v2424_v52, %v10948_v29  ;;  %v2748_v52 = vsel %vm17849_vm1, %v2747_v31, %v2698_v39  ;;  %v2749_v57 = vrot.slane %v2698_v39, 4  ;;  %v2789_v47 = vrot.slane %v2746_v28, 4 }
 0x367   : > { %v11929_v38 = vpop.xlane.xlu0 %2141  ;;  %v2774_v6 = vsel %vm17849_vm1, %v2734_v16, %v2773_v25  ;;  %v2788_v17 = vsel %vm17849_vm1, %v2787_v32, %v2746_v28  ;;  %v2754_v7 = vperm.slane %v2748_v52, %v10948_v29  ;;  %v2378_v15 = vsel %vm17849_vm1, %v11883_v33, %v2377_v40 }
 0x368   : > { %3219 = vrot.lane.b32.xlu0 %v2348_v51, %s10483_s9  ;;  %v2447_v18 = vrot.slane %v11927_v0, 4  ;;  %v2786_v51 = vsel %vm17849_vm1, %v2766_v13, %v2785_v34  ;;  %v2782_v16 = vperm.slane %v2774_v6, %v10948_v29  ;;  %v2790_v13 = vsel %vm17849_vm1, %v2770_v9, %v2789_v47 }
 0x369   : > { %v2791_v35 = vrot.slane %v2778_v50, 4  ;;  %v2750_v4 = vsel %vm17849_vm1, %v2710_v63, %v2749_v57  ;;  %v2386_v55 = vperm.slane %v2378_v15, %v10893_v30  ;;  %v2425_v39 = vrot.slane %v11904_v37, 4 }
 0x36a   : > { %3235 = vrot.lane.b32.xlu2 %v2350_v12, %s10482_s29  ;;  %v11954_v59 = vsel %vm17849_vm1, %v2447_v18, %v11946_v10  ;;  %v2353_v12 = vrot.slane %v11778_v2, 4  ;;  %v2365_v18 = vrot.slane %v11802_v8, 4  ;;  %v2793_v9 = vrot.slane %v2754_v7, 4 }
 0x36b   : > { %v2390_v2 = vsel %vm17849_vm1, %v11789_v45, %v2389_v49  ;;  %v2792_v25 = vsel %vm17849_vm1, %v2791_v35, %v2754_v7  ;;  %v2795_v63 = vrot.slane %v2782_v16, 4  ;;  %v2758_v37 = vperm.slane %v2750_v4, %v10948_v29 }
 0x36c   : > { %3251 = vrot.lane.b32.xlu1 %v2784_v42, %s10475_s1  ;;  %v2401_v42 = vrot.slane %v11913_v36, 4  ;;  %v2354_v46 = vsel %vm17849_vm1, %v11791_v48, %v2353_v12  ;;  %v2811_v36 = vrot.slane %v11806_v44, 4  ;;  %v2366_v48 = vsel %vm17849_vm1, %v11809_v19, %v2365_v18 }
 0x36d   : > { %v11956_v26 = vpop.xlane.xlu2 %2147  ;;  %v2794_v28 = vsel %vm17849_vm1, %v2778_v50, %v2793_v9  ;;  %v2362_v45 = vperm.slane %v2354_v46, %v10893_v30  ;;  %v2398_v32 = vperm.slane %v2390_v2, %v10893_v30  ;;  %v2437_v52 = vrot.slane %v2386_v55, 4 }
 0x36e   : > { %v11959_v20 = vpop.xlane.xlu1 %2153  ;;  %v2402_v34 = vsel %vm17849_vm1, %v11878_v24, %v2401_v42  ;;  %v2426_v6 = vsel %vm17849_vm1, %v11881_v5, %v2425_v39  ;;  %v2835_v40 = vrot.slane %v11929_v38, 4  ;;  %v2374_v19 = vperm.slane %v2366_v48, %v10893_v30 }
 0x36f   : > { %v11964_v22 = vpop.xlane.xlu0 %2186  ;;  %v2410_v24 = vperm.slane %v2402_v34, %v10948_v29  ;;  %v2812_v50 = vsel %vm17849_vm1, %v2811_v36, %v11794_v23  ;;  %v2799_v57 = vrot.slane %v11824_v14, 4  ;;  %v2434_v5 = vperm.slane %v2426_v6, %v10948_v29 }
 0x370   : > { %3267 = vrot.lane.b32.xlu0 %v2786_v51, %s10480_s0  ;;  %v2796_v51 = vsel %vm17849_vm1, %v2795_v63, %v2758_v37  ;;  %v2413_v7 = vrot.slane %v2362_v45, 4  ;;  %v2435_v49 = vrot.slane %v2398_v32, 4  ;;  %v2438_v35 = vsel %vm17849_vm1, %v2398_v32, %v2437_v52 }
 0x371   : > { %v12024_v12 = vperm.slane %v2812_v50, %v10893_v30  ;;  %v2837_v18 = vrot.slane %v11915_v21, 4  ;;  %v2836_v4 = vsel %vm17849_vm1, %v2835_v40, %v11915_v21  ;;  %v2453_v39 = vrot.slane %v2410_v24, 4 }
 0x372   : > { %3283 = vrot.lane.b32.xlu2 %v2788_v17, %s18008_s30  ;;  %v2797_v17 = vrot.slane %v2758_v37, 4  ;;  %v2411_v9 = vrot.slane %v2374_v19, 4  ;;  %v2800_v46 = vsel %vm17849_vm1, %v2799_v57, %v11773_v41  ;;  %v2436_v2 = vsel %vm17849_vm1, %v2435_v49, %v2386_v55 }
 0x373   : > { %v2454_v63 = vsel %vm17849_vm1, %v2434_v5, %v2453_v39  ;;  %v2449_v36 = vrot.slane %v11946_v10, 4  ;;  %v12040_v21 = vperm.slane %v2438_v35, %v10948_v29  ;;  %v2801_v37 = vrot.slane %v11773_v41, 4 }
 0x374   : > { %3299 = vrot.lane.b32.xlu1 %v2790_v13, %s18006_s17  ;;  %v2798_v13 = vsel %vm17849_vm1, %v2782_v16, %v2797_v17  ;;  %v2414_v16 = vsel %vm17849_vm1, %v2374_v19, %v2413_v7  ;;  %v12044_v34 = vperm.slane %v2836_v4, %v10893_v30  ;;  %v2838_v55 = vsel %vm17849_vm1, %v11929_v38, %v2837_v18 }
 0x375   : > { %v11980_v31 = vpop.xlane.xlu2 %2156  ;;  %v2450_v48 = vsel %vm17849_vm1, %v11927_v0, %v2449_v36  ;;  %v2442_v32 = vperm.slane %v2436_v2, %v10948_v29  ;;  %v2847_v10 = vrot.slane %v12024_v12, 4  ;;  %v12054_v52 = vperm.slane %v2800_v46, %v10893_v30 }
 0x376   : > { %v11986_v33 = vpop.xlane.xlu1 %2162  ;;  %v2499_v41 = vrot.slane %v11964_v22, 4  ;;  %v12059_v6 = vperm.slane %v2414_v16, %v10948_v29  ;;  %v2412_v19 = vsel %vm17849_vm1, %v2411_v9, %v2362_v45  ;;  %v2825_v50 = vrot.slane %v11834_v27, 4 }
 0x377   : > { %v11992_v8 = vpop.xlane.xlu0 %2150  ;;  %v2475_v0 = vrot.slane %v11986_v33, 4  ;;  %v12070_v57 = vperm.slane %v2838_v55, %v10893_v30  ;;  %v2871_v17 = vrot.slane %v12044_v34, 4  ;;  %v2813_v18 = vrot.slane %v11794_v23, 4 }
 0x378   : > { %3315 = vrot.lane.b32.xlu0 %v2792_v25, %s18004_s22  ;;  %v2823_v25 = vrot.slane %v11872_v11, 4  ;;  %v2418_v39 = vperm.slane %v2412_v19, %v10948_v29  ;;  %v2848_v9 = vsel %vm17849_vm1, %v2847_v10, %v12054_v52  ;;  %v2826_v46 = vsel %vm17849_vm1, %v11872_v11, %v2825_v50 }
 0x379   : > { %v2476_v2 = vsel %vm17849_vm1, %v2475_v0, %v11992_v8  ;;  %v2883_v16 = vrot.slane %v12070_v57, 4  ;;  %v2814_v36 = vsel %vm17849_vm1, %v11806_v44, %v2813_v18  ;;  %v2463_v55 = vrot.slane %v11980_v31, 4 }
 0x37a   : > { %3331 = vrot.lane.b32.xlu2 %v2794_v28, %s18002_s21  ;;  %v2451_v28 = vrot.slane %v2434_v5, 4  ;;  %v2824_v38 = vsel %vm17849_vm1, %v2823_v25, %v11834_v27  ;;  %v2455_v27 = vrot.slane %v2442_v32, 4  ;;  %v2834_v10 = vperm.slane %v2826_v46, %v10893_v30 }
 0x37b   : > { %v2830_v4 = vperm.slane %v2824_v38, %v10893_v30  ;;  %v2802_v38 = vsel %vm17849_vm1, %v11824_v14, %v2801_v37  ;;  %v2822_v19 = vperm.slane %v2814_v36, %v10893_v30  ;;  %v2849_v46 = vrot.slane %v12054_v52, 4 }
 0x37c   : > { %3347 = vrot.lane.b32.xlu1 %v2796_v51, %s17996_s24  ;;  %v2459_v51 = vrot.slane %v12040_v21, 4  ;;  %v2452_v45 = vsel %vm17849_vm1, %v2451_v28, %v2410_v24  ;;  %v2854_v28 = vperm.slane %v2848_v9, %v10948_v29  ;;  %v2810_v18 = vperm.slane %v2802_v38, %v10893_v30 }
 0x37d   : > { %v12016_v47 = vpop.xlane.xlu2 %2165  ;;  %v2872_v11 = vsel %vm17849_vm1, %v2871_v17, %v2830_v4  ;;  %v2873_v50 = vrot.slane %v2830_v4, 4  ;;  %v2884_v17 = vsel %vm17849_vm1, %v2883_v16, %v2834_v10  ;;  %v2461_v4 = vrot.slane %v12059_v6, 4 }
 0x37e   : > { %v12019_v15 = vpop.xlane.xlu1 %2171  ;;  %v2460_v23 = vsel %vm17849_vm1, %v2459_v51, %v12059_v6  ;;  %v2457_v51 = vrot.slane %v2418_v39, 4  ;;  %v2878_v44 = vperm.slane %v2872_v11, %v10948_v29  ;;  %v2897_v37 = vrot.slane %v2854_v28, 4 }
 0x37f   : > { %v12029_v42 = vpop.xlane.xlu0 %2159  ;;  %v2874_v9 = vsel %vm17849_vm1, %v12044_v34, %v2873_v50  ;;  %v2462_v6 = vsel %vm17849_vm1, %v12040_v21, %v2461_v4  ;;  %v2861_v52 = vrot.slane %v2810_v18, 4 }
 0x380   : > { %3363 = vrot.lane.b32.xlu0 %v2798_v13, %s17994_s26  ;;  %v2458_v14 = vsel %vm17849_vm1, %v2442_v32, %v2457_v51  ;;  %v2882_v34 = vperm.slane %v2874_v9, %v10948_v29  ;;  %v2850_v51 = vsel %vm17849_vm1, %v12024_v12, %v2849_v46 }
 0x381   : > { %v2862_v12 = vsel %vm17849_vm1, %v2822_v19, %v2861_v52 }
 0x382   : > { %3173 = vrot.lane.b32.xlu2 %v2454_v63, %s10485_s27  ;;  %v2870_v9 = vperm.slane %v2862_v12, %v10948_v29 }
 0x384   : > { %3141 = vrot.lane.b32.xlu1 %v2450_v48, %s18010_s5  ;;  %v2456_v48 = vsel %vm17849_vm1, %v2455_v27, %v2418_v39 }
 0x385   : > { %v12064_v40 = vpop.xlane.xlu2 %2174 }
 0x386   : > { %v2500_v5 = vsel %vm17849_vm1, %v2499_v41, %v12064_v40  ;;  %v12075_v7 = vpop.xlane.xlu1 %2180  ;;  %v12112_v41 = vperm.slane %v2476_v2, %v10893_v30  ;;  %v2898_v2 = vsel %vm17849_vm1, %v2878_v44, %v2897_v37  ;;  %v2858_v37 = vperm.slane %v2850_v51, %v10948_v29 }
 0x387   : > { %v12078_v49 = vperm.slane %v2500_v5, %v10893_v30  ;;  %v12080_v13 = vpop.xlane.xlu0 %2168  ;;  %v2487_v35 = vrot.slane %v12075_v7, 4 }
 0x388   : > { %3157 = vrot.lane.b32.xlu0 %v2452_v45, %s10481_s20  ;;  %v2511_v39 = vrot.slane %v12112_v41, 4 }
 0x389   : > { %v2488_v24 = vsel %vm17849_vm1, %v2487_v35, %v12080_v13  ;;  %v2535_v25 = vrot.slane %v12078_v49, 4  ;;  %v2464_v35 = vsel %vm17849_vm1, %v2463_v55, %v11922_v43  ;;  %v2501_v55 = vrot.slane %v12064_v40, 4 }
 0x38a   : > { %v12101_v63 = vperm.slane %v2488_v24, %v10893_v30  ;;  %3221 = vrot.lane.b32.xlu2 %v2460_v23, %s10483_s9  ;;  %v12140_v24 = vperm.slane %v2884_v17, %v10948_v29  ;;  %v2859_v23 = vrot.slane %v2822_v19, 4  ;;  %v2470_v16 = vperm.slane %v2464_v35, %v10893_v30 }
 0x38b   : > { %v2885_v40 = vrot.slane %v2834_v10, 4 }
 0x38c   : > { %3189 = vrot.lane.b32.xlu1 %v2456_v48, %s10484_s19  ;;  %v2536_v5 = vsel %vm17849_vm1, %v2535_v25, %v12101_v63  ;;  %v2895_v25 = vrot.slane %v2878_v44, 4  ;;  %v2860_v11 = vsel %vm17849_vm1, %v2859_v23, %v2810_v18  ;;  %v2512_v36 = vsel %vm17849_vm1, %v2511_v39, %v2470_v16 }
 0x38d   : > { %v12117_v0 = vpop.xlane.xlu2 %2183  ;;  %v12143_v32 = vperm.slane %v2536_v5, %v10948_v29  ;;  %v2903_v38 = vrot.slane %v12140_v24, 4  ;;  %v2866_v17 = vperm.slane %v2860_v11, %v10948_v29  ;;  %v2899_v5 = vrot.slane %v2882_v34, 4 }
 0x38e   : > { %v12128_v27 = vpop.xlane.xlu1 %2189  ;;  %v2896_v50 = vsel %vm17849_vm1, %v2895_v25, %v2854_v28  ;;  %v12165_v35 = vperm.slane %v2512_v36, %v10948_v29  ;;  %v2502_v18 = vsel %vm17849_vm1, %v11964_v22, %v2501_v55  ;;  %v2489_v28 = vrot.slane %v12080_v13, 4 }
 0x38f   : > { %v12126_v45 = vpop.xlane.xlu0 %2177  ;;  %v2559_v21 = vrot.slane %v12143_v32, 4  ;;  %v2904_v4 = vsel %vm17849_vm1, %v2903_v38, %v2866_v17  ;;  %v2900_v19 = vsel %vm17849_vm1, %v2899_v5, %v2858_v37  ;;  %v2513_v22 = vrot.slane %v2470_v16, 4 }
 0x390   : > { %3205 = vrot.lane.b32.xlu0 %v2458_v14, %s10478_s23  ;;  %v2477_v14 = vrot.slane %v11992_v8, 4  ;;  %v2886_v8 = vsel %vm17849_vm1, %v12070_v57, %v2885_v40  ;;  %v2510_v46 = vperm.slane %v2502_v18, %v10893_v30  ;;  %v2537_v55 = vrot.slane %v12101_v63, 4 }
 0x391   : > { %v12179_v10 = vsel %vm17849_vm1, %v2559_v21, %v12165_v35  ;;  %v2894_v57 = vperm.slane %v2886_v8, %v10948_v29  ;;  %v2465_v38 = vrot.slane %v11922_v43, 4  ;;  %v2905_v21 = vrot.slane %v2866_v17, 4 }
 0x392   : > { %3269 = vrot.lane.b32.xlu2 %v2898_v2, %s10480_s0  ;;  %v2478_v13 = vsel %vm17849_vm1, %v11986_v33, %v2477_v14  ;;  %v2490_v2 = vsel %vm17849_vm1, %v12075_v7, %v2489_v28  ;;  %v2909_v33 = vrot.slane %v2870_v9, 4  ;;  %v2547_v11 = vrot.slane %v2510_v46, 4 }
 0x393   : > { %v12196_v25 = vperm.slane %v2478_v13, %v10893_v30  ;;  %v2498_v36 = vperm.slane %v2490_v2, %v10893_v30  ;;  %v2514_v7 = vsel %vm17849_vm1, %v12112_v41, %v2513_v22  ;;  %v2466_v5 = vsel %vm17849_vm1, %v11980_v31, %v2465_v38 }
 0x394   : > { %3237 = vrot.lane.b32.xlu1 %v2462_v6, %s10482_s29  ;;  %v2901_v6 = vrot.slane %v2858_v37, 4  ;;  %v2910_v51 = vsel %vm17849_vm1, %v2894_v57, %v2909_v33  ;;  %v2906_v41 = vsel %vm17849_vm1, %v12140_v24, %v2905_v21  ;;  %v2522_v43 = vperm.slane %v2514_v7, %v10948_v29 }
 0x395   : > { %v12154_v48 = vpop.xlane.xlu2 %2192  ;;  %v2523_v63 = vrot.slane %v12196_v25, 4  ;;  %v2548_v14 = vsel %vm17849_vm1, %v2547_v11, %v2498_v36  ;;  %v2549_v17 = vrot.slane %v2498_v36, 4  ;;  %v2935_v37 = vrot.slane %v12117_v0, 4 }
 0x396   : > { %v12174_v39 = vpop.xlane.xlu1 %2234  ;;  %v2902_v16 = vsel %vm17849_vm1, %v2882_v34, %v2901_v6  ;;  %v2907_v34 = vrot.slane %v2894_v57, 4  ;;  %v2538_v12 = vsel %vm17849_vm1, %v12078_v49, %v2537_v55  ;;  %v2947_v31 = vrot.slane %v12128_v27, 4 }
 0x397   : > { %v12160_v44 = vpop.xlane.xlu0 %2195  ;;  %v2474_v28 = vperm.slane %v2466_v5, %v10893_v30  ;;  %v2561_v22 = vrot.slane %v12165_v35, 4  ;;  %v2546_v13 = vperm.slane %v2538_v12, %v10948_v29  ;;  %v12236_v49 = vperm.slane %v2548_v14, %v10948_v29 }
 0x398   : > { %3253 = vrot.lane.b32.xlu0 %v2896_v50, %s10475_s1  ;;  %v2923_v50 = vrot.slane %v12016_v47, 4  ;;  %v2936_v2 = vsel %vm17849_vm1, %v2935_v37, %v12019_v15  ;;  %v2565_v6 = vrot.slane %v2522_v43, 4  ;;  %v2949_v35 = vrot.slane %v12126_v45, 4 }
 0x399   : > { %v2524_v57 = vsel %vm17849_vm1, %v2523_v63, %v2474_v28  ;;  %v2562_v11 = vsel %vm17849_vm1, %v12143_v32, %v2561_v22  ;;  %v2925_v36 = vrot.slane %v11959_v20, 4  ;;  %v2525_v55 = vrot.slane %v2474_v28, 4 }
 0x39a   : > { %3317 = vrot.lane.b32.xlu2 %v2904_v4, %s18004_s22  ;;  %v2924_v24 = vsel %vm17849_vm1, %v2923_v50, %v11959_v20  ;;  %v2911_v4 = vrot.slane %v12029_v42, 4  ;;  %v2566_v38 = vsel %vm17849_vm1, %v2546_v13, %v2565_v6  ;;  %v2530_v20 = vperm.slane %v2524_v57, %v10948_v29 }
 0x39b   : > { %v12244_v33 = vperm.slane %v2924_v24, %v10893_v30  ;;  %v2950_v5 = vsel %vm17849_vm1, %v12128_v27, %v2949_v35  ;;  %v2563_v14 = vrot.slane %v2546_v13, 4  ;;  %v2913_v37 = vrot.slane %v11956_v26, 4 }
 0x39c   : > { %3285 = vrot.lane.b32.xlu1 %v2900_v19, %s18008_s30  ;;  %v2908_v19 = vsel %vm17849_vm1, %v2907_v34, %v2870_v9  ;;  %v2948_v9 = vsel %vm17849_vm1, %v2947_v31, %v12126_v45  ;;  %v2912_v7 = vsel %vm17849_vm1, %v2911_v4, %v11956_v26  ;;  %v2926_v45 = vsel %vm17849_vm1, %v12016_v47, %v2925_v36 }
 0x39d   : > { %v12192_v23 = vpop.xlane.xlu2 %2201  ;;  %v2954_v32 = vperm.slane %v2948_v9, %v10893_v30  ;;  %v2959_v50 = vrot.slane %v12244_v33, 4  ;;  %v2918_v34 = vperm.slane %v2912_v7, %v10893_v30  ;;  %v12280_v27 = vperm.slane %v2926_v45, %v10893_v30 }
 0x39e   : > { %v12213_v40 = vpop.xlane.xlu1 %2198  ;;  %v12283_v4 = vperm.slane %v2950_v5, %v10893_v30  ;;  %v2611_v22 = vrot.slane %v12174_v39, 4  ;;  %v2564_v26 = vsel %vm17849_vm1, %v2563_v14, %v2522_v43 }
 0x39f   : > { %v12198_v52 = vpop.xlane.xlu0 %2204  ;;  %v2971_v7 = vrot.slane %v12280_v27, 4  ;;  %v2961_v45 = vrot.slane %v2918_v34, 4 }
 0x3a0   : > { %3301 = vrot.lane.b32.xlu0 %v2902_v16, %s18006_s17  ;;  %v2550_v16 = vsel %vm17849_vm1, %v2510_v46, %v2549_v17  ;;  %v2942_v46 = vperm.slane %v2936_v2, %v10893_v30  ;;  %v2526_v17 = vsel %vm17849_vm1, %v12196_v25, %v2525_v55  ;;  %v2937_v25 = vrot.slane %v12019_v15, 4 }
 0x3a1   : > { %v2558_v21 = vperm.slane %v2550_v16, %v10948_v29  ;;  %v2534_v13 = vperm.slane %v2526_v17, %v10948_v29  ;;  %v2960_v2 = vsel %vm17849_vm1, %v2959_v50, %v2918_v34  ;;  %v2914_v16 = vsel %vm17849_vm1, %v12029_v42, %v2913_v37 }
 0x3a2   : > { %3365 = vrot.lane.b32.xlu2 %v2910_v51, %s17994_s26  ;;  %v2567_v51 = vrot.slane %v12236_v49, 4  ;;  %v2985_v12 = vrot.slane %v2942_v46, 4  ;;  %v2938_v15 = vsel %vm17849_vm1, %v12117_v0, %v2937_v25  ;;  %v2995_v9 = vrot.slane %v12283_v4, 4 }
 0x3a3   : > { %v2571_v24 = vrot.slane %v2558_v21, 4  ;;  %v2966_v36 = vperm.slane %v2960_v2, %v10948_v29  ;;  %v2922_v14 = vperm.slane %v2914_v16, %v10893_v30  ;;  %v2569_v17 = vrot.slane %v2530_v20, 4 }
 0x3a4   : > { %3333 = vrot.lane.b32.xlu1 %v2906_v41, %s18002_s21  ;;  %v2568_v28 = vsel %vm17849_vm1, %v2567_v51, %v2530_v20  ;;  %v2986_v35 = vsel %vm17849_vm1, %v2954_v32, %v2985_v12  ;;  %v2573_v51 = vrot.slane %v2534_v13, 4  ;;  %v2962_v20 = vsel %vm17849_vm1, %v12244_v33, %v2961_v45 }
 0x3a5   : > { %v12224_v18 = vpop.xlane.xlu2 %2210  ;;  %v2572_v43 = vsel %vm17849_vm1, %v2571_v24, %v2534_v13  ;;  %v12316_v5 = vperm.slane %v2986_v35, %v10948_v29  ;;  %v3009_v34 = vrot.slane %v2966_v36, 4  ;;  %v2970_v33 = vperm.slane %v2962_v20, %v10948_v29 }
 0x3a6   : > { %v12268_v63 = vpop.xlane.xlu1 %2207  ;;  %v2587_v47 = vrot.slane %v12224_v18, 4 }
 0x3a7   : > { %v12230_v8 = vpop.xlane.xlu0 %2213  ;;  %v3013_v20 = vrot.slane %v2970_v33, 4 }
 0x3a8   : > { %3349 = vrot.lane.b32.xlu0 %v2908_v19, %s17996_s24  ;;  %v2983_v19 = vrot.slane %v2954_v32, 4  ;;  %v2588_v6 = vsel %vm17849_vm1, %v2587_v47, %v12213_v40  ;;  %v2946_v32 = vperm.slane %v2938_v15, %v10893_v30  ;;  %v2574_v47 = vsel %vm17849_vm1, %v2558_v21, %v2573_v51 }
 0x3a9   : > { %v12309_v42 = vperm.slane %v2588_v6, %v10893_v30  ;;  %v2570_v21 = vsel %vm17849_vm1, %v12236_v49, %v2569_v17 }
 0x3aa   : > { %3143 = vrot.lane.b32.xlu2 %v2562_v11, %s18010_s5  ;;  %v2575_v11 = vrot.slane %v12198_v52, 4  ;;  %v2984_v55 = vsel %vm17849_vm1, %v2983_v19, %v2942_v46  ;;  %v2996_v24 = vsel %vm17849_vm1, %v2995_v9, %v2946_v32  ;;  %v2973_v9 = vrot.slane %v2922_v14, 4 }
 0x3ab   : > { %v2990_v37 = vperm.slane %v2984_v55, %v10948_v29  ;;  %v2623_v19 = vrot.slane %v12309_v42, 4  ;;  %v3002_v6 = vperm.slane %v2996_v24, %v10948_v29  ;;  %v2997_v45 = vrot.slane %v2946_v32, 4 }
 0x3ac   : > { %3175 = vrot.lane.b32.xlu1 %v2566_v38, %s10485_s27  ;;  %v2576_v12 = vsel %vm17849_vm1, %v2575_v11, %v12154_v48 }
 0x3ad   : > { %v12270_v41 = vpop.xlane.xlu2 %2219  ;;  %v12336_v13 = vperm.slane %v2576_v12, %v10893_v30  ;;  %v3010_v2 = vsel %vm17849_vm1, %v2990_v37, %v3009_v34  ;;  %v3007_v15 = vrot.slane %v2990_v37, 4  ;;  %v3015_v55 = vrot.slane %v3002_v6, 4 }
 0x3ae   : > { %v2217_v46 = vpop.xlane.xlu1 %2216 }
 0x3af   : > { %v12276_v31 = vpop.xlane.xlu0 %2222  ;;  %v2624_v35 = vsel %vm17849_vm1, %v2623_v19, %v12336_v13  ;;  %v2601_v19 = vrot.slane %v2217_v46, 4 }
 0x3b0   : > { %3191 = vrot.lane.b32.xlu0 %v2568_v28, %s10484_s19  ;;  %v2612_v57 = vsel %vm17849_vm1, %v2611_v22, %v12276_v31  ;;  %v2613_v17 = vrot.slane %v12276_v31, 4  ;;  %v2998_v31 = vsel %vm17849_vm1, %v12283_v4, %v2997_v45 }
 0x3b1   : > { %v12312_v0 = vperm.slane %v2612_v57, %v10893_v30 }
 0x3b2   : > { %3159 = vrot.lane.b32.xlu2 %v2564_v26, %s10481_s20  ;;  %v3011_v26 = vrot.slane %v12316_v5, 4  ;;  %v2614_v24 = vsel %vm17849_vm1, %v12174_v39, %v2613_v17 }
 0x3b3   : > { %v2647_v22 = vrot.slane %v12312_v0, 4 }
 0x3b4   : > { %3223 = vrot.lane.b32.xlu1 %v2572_v43, %s10483_s9  ;;  %v2972_v43 = vsel %vm17849_vm1, %v2971_v7, %v2922_v14  ;;  %v3012_v11 = vsel %vm17849_vm1, %v3011_v26, %v2970_v33  ;;  %v3008_v7 = vsel %vm17849_vm1, %v3007_v15, %v2966_v36  ;;  %v2974_v14 = vsel %vm17849_vm1, %v12280_v27, %v2973_v9 }
 0x3b5   : > { %v2229_v38 = vpop.xlane.xlu2 %2228  ;;  %v2589_v36 = vrot.slane %v12213_v40, 4  ;;  %v2982_v27 = vperm.slane %v2974_v14, %v10948_v29  ;;  %v3006_v40 = vperm.slane %v2998_v31, %v10948_v29  ;;  %v2577_v15 = vrot.slane %v12154_v48, 4 }
 0x3b6   : > { %v2599_v50 = vrot.slane %v2229_v38, 4  ;;  %v2602_v26 = vsel %vm17849_vm1, %v2229_v38, %v2601_v19 }
 0x3b7   : > { %v12358_v37 = vpop.xlane.xlu0 %2231  ;;  %v3021_v33 = vrot.slane %v2982_v27, 4  ;;  %v2610_v38 = vperm.slane %v2602_v26, %v10893_v30  ;;  %v3019_v45 = vrot.slane %v3006_v40, 4 }
 0x3b8   : > { %v2600_v28 = vsel %vm17849_vm1, %v2599_v50, %v2217_v46  ;;  %3239 = vrot.lane.b32.xlu0 %v2574_v47, %s10482_s29  ;;  %v2978_v50 = vperm.slane %v2972_v43, %v10948_v29  ;;  %v2630_v47 = vperm.slane %v2624_v35, %v10948_v29  ;;  %v2625_v35 = vrot.slane %v12336_v13, 4 }
 0x3b9   : > { %v2606_v25 = vperm.slane %v2600_v28, %v10893_v30  ;;  %v3022_v43 = vsel %vm17849_vm1, %v3006_v40, %v3021_v33  ;;  %v3047_v14 = vrot.slane %v12358_v37, 4  ;;  %v3020_v31 = vsel %vm17849_vm1, %v3019_v45, %v2982_v27 }
 0x3ba   : > { %3207 = vrot.lane.b32.xlu2 %v2570_v21, %s10478_s23  ;;  %v3016_v32 = vsel %vm17849_vm1, %v3015_v55, %v2978_v50  ;;  %v3017_v34 = vrot.slane %v2978_v50, 4  ;;  %v12376_v21 = vpop.xlane.xlu1 %2225  ;;  %v2626_v13 = vsel %vm17849_vm1, %v12309_v42, %v2625_v35 }
 0x3bb   : > { %v2648_v57 = vsel %vm17849_vm1, %v2647_v22, %v2606_v25  ;;  %v2649_v28 = vrot.slane %v2606_v25, 4  ;;  %v2590_v25 = vsel %vm17849_vm1, %v12224_v18, %v2589_v36  ;;  %v2634_v36 = vperm.slane %v2626_v13, %v10948_v29 }
 0x3bc   : > { %3271 = vrot.lane.b32.xlu1 %v3010_v2, %s10480_s0  ;;  %v12343_v49 = vperm.slane %v2648_v57, %v10948_v29  ;;  %v3018_v4 = vsel %vm17849_vm1, %v3002_v6, %v3017_v34  ;;  %v2622_v2 = vperm.slane %v2614_v24, %v10893_v30  ;;  %v3014_v57 = vsel %vm17849_vm1, %v12316_v5, %v3013_v20 }
 0x3bd   : > { %v12345_v16 = vpop.xlane.xlu2 %2237  ;;  %v2650_v39 = vsel %vm17849_vm1, %v12312_v0, %v2649_v28  ;;  %v2598_v18 = vperm.slane %v2590_v25, %v10893_v30  ;;  %v2578_v5 = vsel %vm17849_vm1, %v12198_v52, %v2577_v15  ;;  %v3023_v24 = vrot.slane %v12268_v63, 4 }
 0x3be   : > { %v2671_v51 = vrot.slane %v12343_v49, 4  ;;  %v3059_v46 = vrot.slane %v12345_v16, 4  ;;  %v2658_v0 = vperm.slane %v2650_v39, %v10948_v29  ;;  %v2659_v9 = vrot.slane %v2622_v2, 4 }
 0x3bf   : > { %v2635_v48 = vrot.slane %v2598_v18, 4  ;;  %v2586_v28 = vperm.slane %v2578_v5, %v10893_v30  ;;  %v3048_v25 = vsel %vm17849_vm1, %v3047_v14, %v12270_v41  ;;  %v3024_v15 = vsel %vm17849_vm1, %v3023_v24, %v12160_v44 }
 0x3c0   : > { %3287 = vrot.lane.b32.xlu0 %v3012_v11, %s18008_s30  ;;  %v12364_v12 = vsel %vm17849_vm1, %v2671_v51, %v2630_v47  ;;  %v3060_v11 = vsel %vm17849_vm1, %v3059_v46, %v12376_v21  ;;  %v2673_v51 = vrot.slane %v2630_v47, 4  ;;  %v2660_v50 = vsel %vm17849_vm1, %v2659_v9, %v2610_v38 }
 0x3c1   : > { %v2661_v47 = vrot.slane %v2610_v38, 4  ;;  %v3066_v34 = vperm.slane %v3060_v11, %v10893_v30  ;;  %v2666_v42 = vperm.slane %v2660_v50, %v10948_v29  ;;  %v2637_v40 = vrot.slane %v2586_v28, 4 }
 0x3c2   : > { %3255 = vrot.lane.b32.xlu2 %v3008_v7, %s10475_s1  ;;  %v3035_v7 = vrot.slane %v12230_v8, 4  ;;  %v2674_v52 = vsel %vm17849_vm1, %v12343_v49, %v2673_v51  ;;  %v2636_v49 = vsel %vm17849_vm1, %v2635_v48, %v2586_v28  ;;  %v2677_v46 = vrot.slane %v2634_v36, 4 }
 0x3c3   : > { %v3095_v27 = vrot.slane %v3066_v34, 4  ;;  %v2679_v33 = vrot.slane %v2666_v42, 4  ;;  %v3061_v9 = vrot.slane %v12376_v21, 4  ;;  %v3037_v51 = vrot.slane %v12192_v23, 4 }
 0x3c4   : > { %3319 = vrot.lane.b32.xlu1 %v3016_v32, %s18004_s22  ;;  %v2675_v32 = vrot.slane %v2658_v0, 4  ;;  %v3036_v20 = vsel %vm17849_vm1, %v3035_v7, %v12192_v23  ;;  %v2678_v5 = vsel %vm17849_vm1, %v2658_v0, %v2677_v46  ;;  %v3030_v48 = vperm.slane %v3024_v15, %v10893_v30 }
 0x3c5   : > { %v12373_v22 = vpop.permute.xlu2 %3187  ;;  %v3042_v38 = vperm.slane %v3036_v20, %v10893_v30  ;;  %v3062_v50 = vsel %vm17849_vm1, %v12345_v16, %v3061_v9  ;;  %v3038_v0 = vsel %vm17849_vm1, %v12230_v8, %v3037_v51  ;;  %v3025_v16 = vrot.slane %v12160_v44, 4 }
 0x3c6   : > { %v2676_v26 = vsel %vm17849_vm1, %v2675_v32, %v2634_v36  ;;  %v12459_v8 = vperm.slane %v3038_v0, %v10893_v30  ;;  %v3049_v36 = vrot.slane %v12270_v41, 4 }
 0x3c8   : > { %3335 = vrot.lane.b32.xlu0 %v3018_v4, %s18002_s21  ;;  %v2662_v4 = vsel %vm17849_vm1, %v2622_v2, %v2661_v47  ;;  %v2638_v2 = vsel %vm17849_vm1, %v2598_v18, %v2637_v40  ;;  %v3071_v18 = vrot.slane %v3042_v38, 4  ;;  %v3070_v47 = vperm.slane %v3062_v50, %v10893_v30 }
 0x3c9   : > { %v2670_v11 = vperm.slane %v2662_v4, %v10948_v29  ;;  %v2646_v23 = vperm.slane %v2638_v2, %v10948_v29 }
 0x3ca   : > { %v12392_v6 = vpop.permute.xlu0 %3139  ;;  %3303 = vrot.lane.b32.xlu2 %v3014_v57, %s18006_s17  ;;  %v2642_v57 = vperm.slane %v2636_v49, %v10948_v29 }
 0x3cb   : > { %v2685_v20 = vrot.slane %v2646_v23, 4 }
 0x3cc   : > { %3367 = vrot.lane.b32.xlu1 %v3022_v43, %s17994_s26  ;;  %v3054_v43 = vperm.slane %v3048_v25, %v10893_v30  ;;  %v2680_v13 = vsel %vm17849_vm1, %v2679_v33, %v2642_v57  ;;  %v2681_v21 = vrot.slane %v2642_v57, 4  ;;  %v3072_v25 = vsel %vm17849_vm1, %v3071_v18, %v3030_v48 }
 0x3cd   : > { %v12404_v55 = vpop.permute.xlu2 %3235  ;;  %v3083_v33 = vrot.slane %v12459_v8, 4 }
 0x3ce   : > { %v12407_v17 = vpop.permute.xlu1 %3155  ;;  %v3096_v45 = vsel %vm17849_vm1, %v3095_v27, %v3054_v43  ;;  %v2682_v14 = vsel %vm17849_vm1, %v2666_v42, %v2681_v21  ;;  %v3097_v28 = vrot.slane %v3054_v43, 4  ;;  %v3375_v42 = vsel %vm2046_vm2, %v11786_v61, %v12392_v6 }
 0x3cf   : > { %v3102_v32 = vperm.slane %v3096_v45, %v10948_v29  ;;  %v3380_v44 = vsel %vm3379_vm3, %v3375_v42, %v12407_v17  ;;  %v3050_v27 = vsel %vm17849_vm1, %v12358_v37, %v3049_v36  ;;  %v3026_v61 = vsel %vm17849_vm1, %v12268_v63, %v3025_v16 }
 0x3d0   : > { %3145 = vrot.lane.b32.xlu0 %v2674_v52, %s18010_s5  ;;  %v2683_v52 = vrot.slane %v2670_v11, 4  ;;  %v3107_v6 = vrot.slane %v3070_v47, 4  ;;  %v2686_v17 = vsel %vm17849_vm1, %v2670_v11, %v2685_v20  ;;  %v3058_v37 = vperm.slane %v3050_v27, %v10893_v30 }
 0x3d1   : > { %v3119_v40 = vrot.slane %v3102_v32, 4  ;;  %v3034_v9 = vperm.slane %v3026_v61, %v10893_v30 }
 0x3d2   : > { %v3172_v19 = vpop.permute.xlu0 %3171  ;;  %3351 = vrot.lane.b32.xlu2 %v3020_v31, %s17996_s24  ;;  %v3073_v31 = vrot.slane %v3030_v48, 4  ;;  %v2684_v4 = vsel %vm17849_vm1, %v2683_v52, %v2646_v23  ;;  %v3109_v45 = vrot.slane %v3058_v37, 4 }
 0x3d3   : > { %v3385_v41 = vsel %vm3384_vm4, %v3380_v44, %v3172_v19  ;;  %v3085_v52 = vrot.slane %v3034_v9, 4  ;;  %v951_v44 = vlaneseq }
 0x3d4   : > { %3161 = vrot.lane.b32.xlu1 %v2676_v26, %s10481_s20  ;;  %v3098_v26 = vsel %vm17849_vm1, %v3066_v34, %v3097_v28  ;;  %v3078_v34 = vperm.slane %v3072_v25, %v10948_v29  ;;  %v3389_v19 = vsel %vm731_vm0, %v3385_v41, %v12373_v22  ;;  %v3074_v63 = vsel %vm17849_vm1, %v3042_v38, %v3073_v31 }
 0x3d5   : > { %v12431_v39 = vpop.permute.xlu2 %3283  ;;  %v3106_v46 = vperm.slane %v3098_v26, %v10948_v29  ;;  %v3108_v22 = vsel %vm17849_vm1, %v3107_v6, %v3058_v37  ;;  %v3082_v38 = vperm.slane %v3074_v63, %v10948_v29  ;;  %v3110_v0 = vsel %vm17849_vm1, %v3070_v47, %v3109_v45 }
 0x3d6   : > { %v3204_v35 = vpop.permute.xlu1 %3203  ;;  %v3120_v43 = vsel %vm17849_vm1, %v3119_v40, %v3078_v34  ;;  %v3121_v11 = vrot.slane %v3078_v34, 4  ;;  %v3114_v21 = vperm.slane %v3108_v22, %v10948_v29  ;;  %v3118_v47 = vperm.slane %v3110_v0, %v10948_v29 }
 0x3d7   : > { %v3394_v15 = vsel %vm3393_vm5, %v3389_v19, %v3204_v35  ;;  %v3123_v51 = vrot.slane %v3106_v46, 4  ;;  %v3086_v25 = vsel %vm17849_vm1, %v12459_v8, %v3085_v52 }
 0x3d8   : > { %3177 = vrot.lane.b32.xlu0 %v2678_v5, %s10485_s27  ;;  %v3122_v50 = vsel %vm17849_vm1, %v3102_v32, %v3121_v11  ;;  %v3127_v28 = vrot.slane %v3114_v21, 4  ;;  %v3131_v41 = vrot.slane %v3118_v47, 4  ;;  %v3094_v61 = vperm.slane %v3086_v25, %v10948_v29 }
 0x3d9   : > { %v3124_v23 = vsel %vm17849_vm1, %v3123_v51, %v3082_v38 }
 0x3da   : > { %v3220_v7 = vpop.permute.xlu0 %3219  ;;  %3193 = vrot.lane.b32.xlu2 %v2680_v13, %s10484_s19  ;;  %v3084_v13 = vsel %vm17849_vm1, %v3083_v33, %v3034_v9  ;;  %v3132_v34 = vsel %vm17849_vm1, %v3131_v41, %v3094_v61 }
 0x3db   : > { %v3399_v5 = vsel %vm3398_vm6, %v3394_v15, %v3220_v7  ;;  %v3090_v32 = vperm.slane %v3084_v13, %v10948_v29 }
 0x3dc   : > { %3209 = vrot.lane.b32.xlu1 %v2682_v14, %s10478_s23  ;;  %v3404_v48 = vsel %vm3403_vm7, %v3399_v5, %v12404_v55  ;;  %v3125_v14 = vrot.slane %v3082_v38, 4 }
 0x3dd   : > { %v12465_v24 = vpop.permute.xlu2 %3331  ;;  %v3128_v26 = vsel %vm17849_vm1, %v3127_v28, %v3090_v32  ;;  %v3129_v27 = vrot.slane %v3090_v32, 4 }
 0x3de   : > { %v3252_v49 = vpop.permute.xlu1 %3251  ;;  %v3126_v16 = vsel %vm17849_vm1, %v3106_v46, %v3125_v14 }
 0x3df   : > { %v3409_v18 = vsel %vm18000_vm8, %v3404_v48, %v3252_v49  ;;  %v3130_v40 = vsel %vm17849_vm1, %v3114_v21, %v3129_v27 }
 0x3e0   : > { %3225 = vrot.lane.b32.xlu0 %v2684_v4, %s10483_s9  ;;  %v952_v4 = vand.u32 127, %v951_v44 }
 0x3e2   : > { %v3268_v57 = vpop.permute.xlu0 %3267  ;;  %3241 = vrot.lane.b32.xlu2 %v2686_v17, %s10482_s29  ;;  %v12528_v46 = vand.u32 7, %v952_v4 }
 0x3e3   : > { %v3414_v7 = vsel %vm17999_vm9, %v3409_v18, %v3268_v57 }
 0x3e4   : > { %3257 = vrot.lane.b32.xlu1 %v3120_v43, %s10475_s1  ;;  %v3419_v31 = vsel %vm17998_vm10, %v3414_v7, %v12431_v39  ;;  %18044 = vst [vmem:[#allocation32_spill] sm:$0xff] %v12528_v46 }
 0x3e5   : > { %v12493_v2 = vpop.permute.xlu2 %3173 }
 0x3e6   : > { %v3300_v35 = vpop.permute.xlu1 %3299 }
 0x3e7   : > { %v3424_v36 = vsel %vm17853_vm11, %v3419_v31, %v3300_v35 }
 0x3e8   : > { %3273 = vrot.lane.b32.xlu0 %v3122_v50, %s10480_s0 }
 0x3ea   : > { %v3316_v55 = vpop.permute.xlu0 %3315  ;;  %3289 = vrot.lane.b32.xlu2 %v3124_v23, %s18008_s30 }
 0x3eb   : > { %v3429_v49 = vsel %vm17852_vm12, %v3424_v36, %v3316_v55 }
 0x3ec   : > { %3305 = vrot.lane.b32.xlu1 %v3126_v16, %s18006_s17  ;;  %v3434_v39 = vsel %vm17848_vm13, %v3429_v49, %v12465_v24  ;;  %v3133_v24 = vrot.slane %v3094_v61, 4 }
 0x3ed   : > { %v3222_v42 = vpop.permute.xlu2 %3221 }
 0x3ee   : > { %v3348_v20 = vpop.permute.xlu1 %3347  ;;  %v3134_v57 = vsel %vm17849_vm1, %v3118_v47, %v3133_v24 }
 0x3ef   : > { %v3439_v6 = vsel %vm17851_vm14, %v3434_v39, %v3348_v20 }
 0x3f0   : > { %3321 = vrot.lane.b32.xlu0 %v3128_v26, %s18004_s22 }
 0x3f2   : > { %v3364_v17 = vpop.permute.xlu0 %3363  ;;  %3337 = vrot.lane.b32.xlu2 %v3130_v40, %s18002_s21 }
 0x3f3   : > { %v3444_v8 = vsel %vm17850_vm15, %v3439_v6, %v3364_v17 }
 0x3f4   : > { %3353 = vrot.lane.b32.xlu1 %v3132_v34, %s17996_s24  ;;  %vm3448_vm13 = vcmp.ge.f32.partialorder %v10715_v54, %v3444_v8 }
 0x3f5   : > { %v3270_v37 = vpop.permute.xlu2 %3269  ;;  %v12534_v63 = vsel %vm3448_vm13, %v12528_v46, 8  ;;  %vm18045_vm13 = vcmask 850944  }
 0x3f6   : > { %v3142_v19 = vpop.permute.xlu1 %3141 }
 0x3f7   : > { %v3376_v5 = vsel %vm2046_vm2, %v11954_v59, %v3142_v19 }
 0x3f8   : > { %3369 = vrot.lane.b32.xlu0 %v3134_v57, %s17994_s26 }
 0x3fa   : > { %v3158_v33 = vpop.permute.xlu0 %3157  ;;  %3456 = vrot.lane.b32.xlu2 %v12534_v63, %s17994_s26 }
 0x3fb   : > { %v3381_v11 = vsel %vm3379_vm3, %v3376_v5, %v3158_v33 }
 0x3fc   : > { %3464 = vrot.lane.b32.xlu1 %v12534_v63, %s17996_s24  ;;  %v3386_v38 = vsel %vm3384_vm4, %v3381_v11, %v12493_v2 }
 0x3fd   : > { %v3318_v15 = vpop.permute.xlu2 %3317 }
 0x3fe   : > { %v3190_v43 = vpop.permute.xlu1 %3189 }
 0x3ff   : > { %v3390_v45 = vsel %vm731_vm0, %v3386_v38, %v3190_v43 }
 0x400   : > { %3472 = vrot.lane.b32.xlu0 %v12534_v63, %s18002_s21 }
 0x402   : > { %v3206_v54 = vpop.permute.xlu0 %3205  ;;  %3480 = vrot.lane.b32.xlu2 %v12534_v63, %s18004_s22 }
 0x403   : > { %v3395_v35 = vsel %vm3393_vm5, %v3390_v45, %v3206_v54 }
 0x404   : > { %3488 = vrot.lane.b32.xlu1 %v12534_v63, %s18006_s17  ;;  %v3400_v50 = vsel %vm3398_vm6, %v3395_v35, %v3222_v42 }
 0x405   : > { %v3366_v9 = vpop.permute.xlu2 %3365 }
 0x406   : > { %v3238_v22 = vpop.permute.xlu1 %3237 }
 0x407   : > { %v3405_v13 = vsel %vm3403_vm7, %v3400_v50, %v3238_v22 }
 0x408   : > { %3496 = vrot.lane.b32.xlu0 %v12534_v63, %s18008_s30 }
 0x40a   : > { %v3254_v51 = vpop.permute.xlu0 %3253  ;;  %3504 = vrot.lane.b32.xlu2 %v12534_v63, %s10480_s0 }
 0x40b   : > { %v3410_v2 = vsel %vm18000_vm8, %v3405_v13, %v3254_v51 }
 0x40c   : > { %3512 = vrot.lane.b32.xlu1 %v12534_v63, %s10475_s1  ;;  %v3415_v0 = vsel %vm17999_vm9, %v3410_v2, %v3270_v37 }
 0x40d   : > { %v3144_v59 = vpop.permute.xlu2 %3143 }
 0x40e   : > { %v3286_v48 = vpop.permute.xlu1 %3285  ;;  %v3377_v20 = vsel %vm2046_vm2, %v12179_v10, %v3144_v59 }
 0x40f   : > { %v3420_v18 = vsel %vm17998_vm10, %v3415_v0, %v3286_v48 }
 0x410   : > { %3520 = vrot.lane.b32.xlu0 %v12534_v63, %s10482_s29 }
 0x412   : > { %v3302_v21 = vpop.permute.xlu0 %3301  ;;  %3528 = vrot.lane.b32.xlu2 %v12534_v63, %s10483_s9 }
 0x413   : > { %v3425_v23 = vsel %vm17853_vm11, %v3420_v18, %v3302_v21 }
 0x414   : > { %3536 = vrot.lane.b32.xlu1 %v12534_v63, %s10478_s23  ;;  %v3430_v52 = vsel %vm17852_vm12, %v3425_v23, %v3318_v15 }
 0x415   : > { %v3160_v7 = vpop.permute.xlu2 %3159 }
 0x416   : > { %v3334_v14 = vpop.permute.xlu1 %3333  ;;  %v3382_v26 = vsel %vm3379_vm3, %v3377_v20, %v3160_v7 }
 0x417   : > { %v3435_v55 = vsel %vm18045_vm13, %v3430_v52, %v3334_v14 }
 0x418   : > { %3544 = vrot.lane.b32.xlu0 %v12534_v63, %s10484_s19 }
 0x41a   : > { %v3350_v32 = vpop.permute.xlu0 %3349  ;;  %3552 = vrot.lane.b32.xlu2 %v12534_v63, %s10485_s27 }
 0x41b   : > { %v3440_v16 = vsel %vm17851_vm14, %v3435_v55, %v3350_v32 }
 0x41c   : > { %v3445_v28 = vsel %vm17850_vm15, %v3440_v16, %v3366_v9  ;;  %3560 = vrot.lane.b32.xlu1 %v12534_v63, %s10481_s20 }
 0x41d   : > { %v3208_v47 = vpop.permute.xlu2 %3207  ;;  %vm3449_vm1 = vcmp.ge.f32.partialorder %v10746_v58, %v3445_v28 }
 0x41e   : > { %v3176_v31 = vpop.permute.xlu1 %3175  ;;  %v12585_v36 = vsel %vm3449_vm1, %v12528_v46, 8  ;;  %vm18046_vm1 = vmmov %vm18045_vm13 }
 0x41f   : > { %v3387_v41 = vsel %vm3384_vm4, %v3382_v26, %v3176_v31 }
 0x420   : > { %3568 = vrot.lane.b32.xlu0 %v12534_v63, %s18010_s5 }
 0x422   : > { %v3192_v42 = vpop.permute.xlu0 %3191  ;;  %3474 = vrot.lane.b32.xlu2 %v12585_v36, %s18002_s21 }
 0x423   : > { %v3391_v39 = vsel %vm731_vm0, %v3387_v41, %v3192_v42 }
 0x424   : > { %3458 = vrot.lane.b32.xlu1 %v12585_v36, %s17994_s26  ;;  %v3396_v40 = vsel %vm3393_vm5, %v3391_v39, %v3208_v47 }
 0x425   : > { %v3256_v44 = vpop.permute.xlu2 %3255 }
 0x426   : > { %v3224_v49 = vpop.permute.xlu1 %3223 }
 0x427   : > { %v3401_v61 = vsel %vm3398_vm6, %v3396_v40, %v3224_v49 }
 0x428   : > { %3466 = vrot.lane.b32.xlu0 %v12585_v36, %s17996_s24 }
 0x42a   : > { %v3240_v58 = vpop.permute.xlu0 %3239  ;;  %3498 = vrot.lane.b32.xlu2 %v12585_v36, %s18008_s30 }
 0x42b   : > { %v3406_v10 = vsel %vm3403_vm7, %v3401_v61, %v3240_v58 }
 0x42c   : > { %3482 = vrot.lane.b32.xlu1 %v12585_v36, %s18004_s22  ;;  %v3411_v8 = vsel %vm18000_vm8, %v3406_v10, %v3256_v44 }
 0x42d   : > { %v3304_v25 = vpop.permute.xlu2 %3303 }
 0x42e   : > { %v3272_v27 = vpop.permute.xlu1 %3271 }
 0x42f   : > { %v3416_v34 = vsel %vm17999_vm9, %v3411_v8, %v3272_v27 }
 0x430   : > { %3490 = vrot.lane.b32.xlu0 %v12585_v36, %s18006_s17 }
 0x432   : > { %v3288_v4 = vpop.permute.xlu0 %3287  ;;  %3522 = vrot.lane.b32.xlu2 %v12585_v36, %s10482_s29 }
 0x433   : > { %v3421_v37 = vsel %vm17998_vm10, %v3416_v34, %v3288_v4 }
 0x434   : > { %3506 = vrot.lane.b32.xlu1 %v12585_v36, %s10480_s0  ;;  %v3426_v19 = vsel %vm17853_vm11, %v3421_v37, %v3304_v25 }
 0x435   : > { %v3352_v6 = vpop.permute.xlu2 %3351 }
 0x436   : > { %v3320_v17 = vpop.permute.xlu1 %3319 }
 0x437   : > { %v3431_v33 = vsel %vm17852_vm12, %v3426_v19, %v3320_v17  ;;  %v3578_v19 = vrot.slane %v12534_v63, 4 }
 0x438   : > { %3514 = vrot.lane.b32.xlu0 %v12585_v36, %s10475_s1 }
 0x43a   : > { %v3336_v24 = vpop.permute.xlu0 %3335  ;;  %3546 = vrot.lane.b32.xlu2 %v12585_v36, %s10484_s19 }
 0x43b   : > { %v3436_v43 = vsel %vm18046_vm1, %v3431_v33, %v3336_v24 }
 0x43c   : > { %3530 = vrot.lane.b32.xlu1 %v12585_v36, %s10483_s9  ;;  %v3441_v54 = vsel %vm17851_vm14, %v3436_v43, %v3352_v6 }
 0x43d   : > { %v3194_v57 = vpop.permute.xlu2 %3193 }
 0x43e   : > { %v3368_v15 = vpop.permute.xlu1 %3367 }
 0x43f   : > { %v3446_v5 = vsel %vm17850_vm15, %v3441_v54, %v3368_v15 }
 0x440   : > { %3538 = vrot.lane.b32.xlu0 %v12585_v36, %s10478_s23  ;;  %vm3450_vm13 = vcmp.ge.f32.partialorder %v10777_v62, %v3446_v5 }
 0x441   : > { %v12635_v38 = vsel %vm3450_vm13, %v12528_v46, 8 }
 0x442   : > { %v3146_v9 = vpop.permute.xlu0 %3145  ;;  %3570 = vrot.lane.b32.xlu2 %v12585_v36, %s18010_s5 }
 0x443   : > { %v3378_v59 = vsel %vm2046_vm2, %v12364_v12, %v3146_v9 }
 0x444   : > { %3554 = vrot.lane.b32.xlu1 %v12585_v36, %s10485_s27 }
 0x445   : > { %v3242_v22 = vpop.permute.xlu2 %3241 }
 0x446   : > { %v3162_v11 = vpop.permute.xlu1 %3161 }
 0x447   : > { %v3383_v48 = vsel %vm3379_vm3, %v3378_v59, %v3162_v11 }
 0x448   : > { %3562 = vrot.lane.b32.xlu0 %v12585_v36, %s10481_s20 }
 0x44a   : > { %v3178_v51 = vpop.permute.xlu0 %3177  ;;  %3468 = vrot.lane.b32.xlu2 %v12635_v38, %s17996_s24 }
 0x44b   : > { %v3388_v13 = vsel %vm3384_vm4, %v3383_v48, %v3178_v51 }
 0x44c   : > { %3476 = vrot.lane.b32.xlu1 %v12635_v38, %s18002_s21  ;;  %v3392_v21 = vsel %vm731_vm0, %v3388_v13, %v3194_v57 }
 0x44d   : > { %v3290_v45 = vpop.permute.xlu2 %3289 }
 0x44e   : > { %v3210_v35 = vpop.permute.xlu1 %3209 }
 0x44f   : > { %v3397_v18 = vsel %vm3393_vm5, %v3392_v21, %v3210_v35 }
 0x450   : > { %3460 = vrot.lane.b32.xlu0 %v12635_v38, %s17994_s26 }
 0x452   : > { %v3226_v62 = vpop.permute.xlu0 %3225  ;;  %3492 = vrot.lane.b32.xlu2 %v12635_v38, %s18006_s17 }
 0x453   : > { %v3402_v7 = vsel %vm3398_vm6, %v3397_v18, %v3226_v62 }
 0x454   : > { %3500 = vrot.lane.b32.xlu1 %v12635_v38, %s18008_s30  ;;  %v3407_v23 = vsel %vm3403_vm7, %v3402_v7, %v3242_v22 }
 0x455   : > { %v3338_v2 = vpop.permute.xlu2 %3337 }
 0x456   : > { %v3258_v50 = vpop.permute.xlu1 %3257 }
 0x457   : > { %v3412_v14 = vsel %vm18000_vm8, %v3407_v23, %v3258_v50 }
 0x458   : > { %3484 = vrot.lane.b32.xlu0 %v12635_v38, %s18004_s22 }
 0x45a   : > { %v3274_v0 = vpop.permute.xlu0 %3273  ;;  %3516 = vrot.lane.b32.xlu2 %v12635_v38, %s10475_s1 }
 0x45b   : > { %v3417_v52 = vsel %vm17999_vm9, %v3412_v14, %v3274_v0 }
 0x45c   : > { %3524 = vrot.lane.b32.xlu1 %v12635_v38, %s10482_s29  ;;  %v3422_v16 = vsel %vm17998_vm10, %v3417_v52, %v3290_v45 }
 0x45d   : > { %v12665_v55 = vpop.permute.xlu2 %3456 }
 0x45e   : > { %v3306_v12 = vpop.permute.xlu1 %3305  ;;  %v3590_v22 = vrot.slane %v12665_v55, 4 }
 0x45f   : > { %v3427_v28 = vsel %vm17853_vm11, %v3422_v16, %v3306_v12 }
 0x460   : > { %3508 = vrot.lane.b32.xlu0 %v12635_v38, %s10480_s0 }
 0x462   : > { %v3322_v32 = vpop.permute.xlu0 %3321  ;;  %3540 = vrot.lane.b32.xlu2 %v12635_v38, %s10478_s23 }
 0x463   : > { %v3432_v47 = vsel %vm17852_vm12, %v3427_v28, %v3322_v32 }
 0x464   : > { %3548 = vrot.lane.b32.xlu1 %v12635_v38, %s10484_s19  ;;  %v3437_v42 = vsel %vm18046_vm1, %v3432_v47, %v3338_v2  ;;  %vm18047_vm1 = vcmask 1047556  }
 0x465   : > { %v3481_v58 = vpop.permute.xlu2 %3480  ;;  %vm18052_vm12 = vmmov %vm18047_vm1 }
 0x466   : > { %v3354_v31 = vpop.permute.xlu1 %3353  ;;  %v3602_v51 = vrot.slane %v3481_v58, 4  ;;  %vm18062_vm11 = vmmov %vm18047_vm1 }
 0x467   : > { %v3442_v44 = vsel %vm17851_vm14, %v3437_v42, %v3354_v31  ;;  %vm18050_vm14 = vmmov %vm18047_vm1 }
 0x468   : > { %3532 = vrot.lane.b32.xlu0 %v12635_v38, %s10483_s9 }
 0x46a   : > { %v3370_v49 = vpop.permute.xlu0 %3369  ;;  %3564 = vrot.lane.b32.xlu2 %v12635_v38, %s10481_s20 }
 0x46b   : > { %v3447_v20 = vsel %vm17850_vm15, %v3442_v44, %v3370_v49  ;;  %vm18049_vm15 = vmmov %vm18047_vm1 }
 0x46c   : > { %3572 = vrot.lane.b32.xlu1 %v12635_v38, %s18010_s5  ;;  %vm3451_vm13 = vcmp.ge.f32.partialorder %v10822_v3, %v3447_v20 }
 0x46d   : > { %v12687_v26 = vsel %vm3451_vm13, %v12528_v46, 8  ;;  %v3505_v41 = vpop.permute.xlu2 %3504  ;;  %vm18048_vm13 = vmmov %vm18047_vm1 }
 0x46e   : > { %v3465_v25 = vpop.permute.xlu1 %3464  ;;  %v3612_v57 = vrot.slane %v3505_v41, 4 }
 0x46f   : > { %v3576_v15 = vrot.slane %v3465_v25, 4  ;;  %v3579_v43 = vsel %vm18047_vm1, %v3465_v25, %v3578_v19 }
 0x470   : > { %3556 = vrot.lane.b32.xlu0 %v12635_v38, %s10485_s27  ;;  %v3587_v45 = vperm.slane %v3579_v43, %v10893_v30 }
 0x471   : > { %v3577_v59 = vsel %vm18050_vm14, %v3576_v15, %v12534_v63  ;;  %vm18055_vm14 = vmmov %vm18047_vm1 }
 0x472   : > { %v3473_v27 = vpop.permute.xlu0 %3472  ;;  %3462 = vrot.lane.b32.xlu2 %v12687_v26, %s17994_s26  ;;  %v3583_v63 = vperm.slane %v3577_v59, %v10893_v30  ;;  %v3638_v23 = vrot.slane %v3587_v45, 4 }
 0x473   : > { %v3588_v9 = vrot.slane %v3473_v27, 4  ;;  %v3591_v48 = vsel %vm18047_vm1, %v3473_v27, %v3590_v22 }
 0x474   : > { %3470 = vrot.lane.b32.xlu1 %v12687_v26, %s17996_s24  ;;  %v3599_v14 = vperm.slane %v3591_v48, %v10893_v30  ;;  %v3626_v49 = vrot.slane %v3583_v63, 4 }
 0x475   : > { %v12701_v40 = vpop.permute.xlu2 %3528 }
 0x476   : > { %v3489_v39 = vpop.permute.xlu1 %3488 }
 0x477   : > { %v3613_v5 = vsel %vm18048_vm13, %v3612_v57, %v3489_v39  ;;  %vm18051_vm13 = vmmov %vm18047_vm1  ;;  %v3614_v18 = vrot.slane %v3489_v39, 4  ;;  %v3688_v57 = vrot.slane %v12701_v40, 4 }
 0x478   : > { %3478 = vrot.lane.b32.xlu0 %v12687_v26, %s18002_s21  ;;  %v3619_v50 = vperm.slane %v3613_v5, %v10893_v30  ;;  %v3589_v2 = vsel %vm18051_vm13, %v3588_v9, %v12665_v55  ;;  %vm18056_vm13 = vmmov %vm18047_vm1 }
 0x479   : > { %v3595_v52 = vperm.slane %v3589_v2, %v10893_v30  ;;  %v3615_v42 = vsel %vm18055_vm14, %v3505_v41, %v3614_v18  ;;  %v3639_v20 = vsel %vm18056_vm13, %v3599_v14, %v3638_v23  ;;  %vm18059_vm14 = vmmov %vm18047_vm1 }
 0x47a   : > { %v3497_v3 = vpop.permute.xlu0 %3496  ;;  %3486 = vrot.lane.b32.xlu2 %v12687_v26, %s18004_s22  ;;  %v3648_v32 = vrot.slane %v3619_v50, 4  ;;  %v3623_v41 = vperm.slane %v3615_v42, %v10893_v30  ;;  %v12792_v9 = vperm.slane %v3639_v20, %v10948_v29  ;;  %vm18060_vm13 = vmmov %vm18047_vm1 }
 0x47b   : > { %v3600_v33 = vrot.slane %v3497_v3, 4  ;;  %v3603_v21 = vsel %vm18052_vm12, %v3497_v3, %v3602_v51  ;;  %vm18054_vm12 = vmmov %vm18047_vm1  ;;  %v3624_v25 = vrot.slane %v3595_v52, 4  ;;  %v3627_v2 = vsel %vm18060_vm13, %v3595_v52, %v3626_v49 }
 0x47c   : > { %3494 = vrot.lane.b32.xlu1 %v12687_v26, %s18006_s17  ;;  %v3611_v55 = vperm.slane %v3603_v21, %v10893_v30  ;;  %vm18066_vm13 = vmmov %vm18047_vm1 }
 0x47d   : > { %v12715_v6 = vpop.permute.xlu2 %3552  ;;  %v3601_v35 = vsel %vm18049_vm15, %v3600_v33, %v3481_v58  ;;  %vm18053_vm15 = vmmov %vm18047_vm1  ;;  %v3636_v58 = vrot.slane %v3599_v14, 4  ;;  %v3625_v48 = vsel %vm18047_vm1, %v3624_v25, %v3583_v63 }
 0x47e   : > { %v12699_v4 = vpop.permute.xlu1 %3512  ;;  %v3607_v7 = vperm.slane %v3601_v35, %v10893_v30  ;;  %v3662_v27 = vrot.slane %v3611_v55, 4  ;;  %v3631_v23 = vperm.slane %v3625_v48, %v10948_v29  ;;  %v3726_v49 = vrot.slane %v12715_v6, 4 }
 0x480   : > { %3502 = vrot.lane.b32.xlu0 %v12687_v26, %s18008_s30  ;;  %v3649_v44 = vsel %vm18047_vm1, %v3648_v32, %v3607_v7  ;;  %v3650_v5 = vrot.slane %v3607_v7, 4  ;;  %v3663_v51 = vsel %vm18059_vm14, %v3623_v41, %v3662_v27  ;;  %v3635_v32 = vperm.slane %v3627_v2, %v10948_v29  ;;  %vm18064_vm14 = vmmov %vm18047_vm1 }
 0x481   : > { %v3655_v43 = vperm.slane %v3649_v44, %v10948_v29  ;;  %v12810_v14 = vperm.slane %v3663_v51, %v10948_v29 }
 0x482   : > { %v12705_v61 = vpop.permute.xlu0 %3520  ;;  %3510 = vrot.lane.b32.xlu2 %v12687_v26, %s10480_s0 }
 0x483   : > { %v3672_v18 = vrot.slane %v3655_v43, 4  ;;  %v3702_v48 = vrot.slane %v12705_v61, 4 }
 0x484   : > { %3518 = vrot.lane.b32.xlu1 %v12687_v26, %s10475_s1 }
 0x485   : > { %v12731_v37 = vpop.permute.xlu2 %3474 }
 0x486   : > { %v12711_v10 = vpop.permute.xlu1 %3536 }
 0x487   : > { %v3700_v0 = vrot.slane %v12711_v10, 4 }
 0x488   : > { %3526 = vrot.lane.b32.xlu0 %v12687_v26, %s10482_s29 }
 0x489   : > { %v3701_v47 = vsel %vm18054_vm12, %v3700_v0, %v12705_v61  ;;  %vm18058_vm12 = vmmov %vm18047_vm1  ;;  %v3660_v0 = vrot.slane %v3623_v41, 4 }
 0x48a   : > { %v12717_v17 = vpop.permute.xlu0 %3544  ;;  %3534 = vrot.lane.b32.xlu2 %v12687_v26, %s10483_s9  ;;  %v12779_v39 = vperm.slane %v3701_v47, %v10893_v30  ;;  %v3689_v22 = vsel %vm18058_vm12, %v3688_v57, %v12699_v4  ;;  %vm18063_vm12 = vmmov %vm18047_vm1 }
 0x48b   : > { %v3651_v63 = vsel %vm18063_vm12, %v3619_v50, %v3650_v5  ;;  %v3673_v50 = vsel %vm18047_vm1, %v3672_v18, %v3631_v23  ;;  %vm18068_vm12 = vmmov %vm18047_vm1 }
 0x48c   : > { %3542 = vrot.lane.b32.xlu1 %v12687_v26, %s10478_s23  ;;  %v3736_v35 = vrot.slane %v12779_v39, 4  ;;  %v3659_v27 = vperm.slane %v3651_v63, %v10948_v29 }
 0x48d   : > { %v12748_v62 = vpop.permute.xlu2 %3498 }
 0x48e   : > { %v12723_v8 = vpop.permute.xlu1 %3560  ;;  %v3676_v63 = vrot.slane %v3659_v27, 4 }
 0x48f   : > { %v3712_v16 = vrot.slane %v12723_v8, 4 }
 0x490   : > { %3550 = vrot.lane.b32.xlu0 %v12687_v26, %s10484_s19 }
 0x492   : > { %v12727_v34 = vpop.permute.xlu0 %3568  ;;  %3558 = vrot.lane.b32.xlu2 %v12687_v26, %s10485_s27 }
 0x493   : > { %v3724_v11 = vrot.slane %v12727_v34, 4  ;;  %v3727_v57 = vsel %vm18066_vm13, %v12727_v34, %v3726_v49  ;;  %vm18071_vm13 = vmmov %vm18047_vm1 }
 0x494   : > { %3566 = vrot.lane.b32.xlu1 %v12687_v26, %s10481_s20 }
 0x495   : > { %v3725_v12 = vsel %vm18053_vm15, %v3724_v11, %v12715_v6  ;;  %vm18057_vm15 = vmmov %vm18047_vm1  ;;  %v12788_v15 = vpop.permute.xlu2 %3522 }
 0x496   : > { %v12735_v24 = vpop.permute.xlu1 %3458  ;;  %v12773_v31 = vperm.slane %v3725_v12, %v10893_v30  ;;  %v3713_v3 = vsel %vm18057_vm15, %v3712_v16, %v12717_v17  ;;  %vm18061_vm15 = vmmov %vm18047_vm1  ;;  %v12806_v12 = vperm.slane %v3689_v22, %v10893_v30  ;;  %v12842_v22 = vsel %vm2046_vm2, %v3673_v50, 2147483647 }
 0x497   : > { %v3719_v11 = vperm.slane %v3713_v3, %v10893_v30  ;;  %v3637_v21 = vsel %vm18061_vm15, %v3636_v58, %v3587_v45  ;;  %v3686_v45 = vrot.slane %v12792_v9, 4  ;;  %v3690_v58 = vrot.slane %v12699_v4, 4  ;;  %vm18067_vm15 = vmmov %vm18047_vm1 }
 0x498   : > { %3574 = vrot.lane.b32.xlu0 %v12687_v26, %s18010_s5  ;;  %v3760_v33 = vrot.slane %v12773_v31, 4  ;;  %v3737_v52 = vsel %vm18064_vm14, %v3736_v35, %v12806_v12  ;;  %v12821_v42 = vperm.slane %v3637_v21, %v10948_v29  ;;  %v3674_v35 = vrot.slane %v3631_v23, 4  ;;  %vm18069_vm14 = vmmov %vm18047_vm1 }
 0x499   : > { %v3687_v6 = vsel %vm18067_vm15, %v12810_v14, %v3686_v45  ;;  %v3743_v4 = vperm.slane %v3737_v52, %v10948_v29  ;;  %v3691_v34 = vsel %vm18068_vm12, %v12701_v40, %v3690_v58  ;;  %v3762_v2 = vrot.slane %v3719_v11, 4  ;;  %vm18072_vm15 = vmmov %vm18047_vm1 }
 0x49a   : > { %v12741_v54 = vpop.permute.xlu0 %3466  ;;  %v3761_v7 = vsel %vm18062_vm11, %v3760_v33, %v3719_v11  ;;  %vm18065_vm11 = vmmov %vm18047_vm1  ;;  %v3682_v21 = vrot.slane %v12821_v42, 4  ;;  %v12852_v18 = vsel %vm2046_vm2, %v3687_v6, 2147483647  ;;  %v3714_v45 = vrot.slane %v12717_v17, 4 }
 0x49b   : > { %v3767_v47 = vperm.slane %v3761_v7, %v10948_v29  ;;  %v3661_v44 = vsel %vm18065_vm11, %v3660_v0, %v3611_v55  ;;  %v3678_v55 = vrot.slane %v3635_v32, 4  ;;  %v12849_v0 = vperm.slane %v3727_v57, %v10893_v30  ;;  %vm18070_vm11 = vmmov %vm18047_vm1 }
 0x49c   : > { %v3667_v33 = vperm.slane %v3661_v44, %v10948_v29  ;;  %v3675_v7 = vsel %vm18069_vm14, %v3655_v43, %v3674_v35  ;;  %v3703_v23 = vsel %vm18070_vm11, %v12711_v10, %v3702_v48  ;;  %v4474_v40 = vshra.s32 %v12842_v22, 16  ;;  %vm18073_vm12 = vmmov %vm18047_vm1 }
 0x49d   : > { %v12833_v41 = vpop.permute.xlu2 %3546  ;;  %v3784_v51 = vrot.slane %v3767_v47, 4  ;;  %v3786_v61 = vrot.slane %v3743_v4, 4  ;;  %v3699_v11 = vperm.slane %v3691_v34, %v10893_v30  ;;  %v3679_v44 = vsel %vm18071_vm13, %v3659_v27, %v3678_v55  ;;  %vm18074_vm14 = vmmov %vm18047_vm1 }
 0x49e   : > { %v12754_v13 = vpop.permute.xlu1 %3482  ;;  %v3680_v49 = vrot.slane %v3667_v33, 4  ;;  %v3715_v58 = vsel %vm18072_vm15, %v12723_v8, %v3714_v45  ;;  %v3763_v43 = vsel %vm18073_vm12, %v12773_v31, %v3762_v2  ;;  %v12868_v17 = vsel %vm2046_vm2, %v3675_v7, 2147483647  ;;  %vm18075_vm11 = vmmov %vm18047_vm1 }
 0x49f   : > { %v3785_v52 = vsel %vm18047_vm1, %v3784_v51, %v3743_v4  ;;  %v3787_v10 = vsel %vm18074_vm14, %v3767_v47, %v3786_v61  ;;  %v3711_v50 = vperm.slane %v3703_v23, %v10893_v30  ;;  %v3772_v57 = vrot.slane %v12849_v0, 4  ;;  %vm18077_vm13 = vmmov %vm18047_vm1 }
 0x4a0   : > { %v4684_v27 = vshra.s32 %v12852_v18, 16  ;;  %v3677_v4 = vsel %vm18075_vm11, %v3676_v63, %v3635_v32  ;;  %v3738_v8 = vrot.slane %v12806_v12, 4  ;;  %v12877_v55 = vcvt.s32.f32 %v4474_v40  ;;  %vm18078_vm15 = vmmov %vm18047_vm1 }
 0x4a1   : > { %v12880_v31 = vsel %vm2046_vm2, %v3785_v52, 2147483647  ;;  %v12883_v47 = vsel %vm2046_vm2, %v3679_v44, 2147483647  ;;  %v3723_v51 = vperm.slane %v3715_v58, %v10893_v30  ;;  %v12889_v34 = vsel %vm2046_vm2, %v3787_v10, 2147483647  ;;  %vm18079_vm12 = vmmov %vm18047_vm1 }
 0x4a2   : > { %v12768_v28 = vpop.permute.xlu0 %3490  ;;  %18076 = vst [vmem:[#allocation33_spill] sm:$0xff] %v12883_v47  ;;  %v3771_v48 = vperm.slane %v3763_v43, %v10948_v29  ;;  %v3684_v32 = vrot.slane %v12810_v14, 4  ;;  %v3750_v12 = vrot.slane %v3699_v11, 4  ;;  %v4504_v7 = vshra.s32 %v12868_v17, 16  ;;  %vm18080_vm14 = vmmov %vm18047_vm1 }
 0x4a3   : > { %v12898_v63 = vsel %vm2046_vm2, %v3677_v4, 2147483647  ;;  %v3681_v23 = vsel %vm18047_vm1, %v3680_v49, %v12821_v42  ;;  %v3748_v45 = vrot.slane %v3711_v50, 4  ;;  %v3773_v40 = vsel %vm18077_vm13, %v3772_v57, %v3723_v51  ;;  %vm18081_vm11 = vmmov %vm18047_vm1 }
 0x4a4   : > { %v12903_v61 = vcvt.s32.f32 %v4684_v27  ;;  %v4489_v14 = vshra.s32 %v12880_v31, 16  ;;  %v4519_v52 = vshra.s32 %v12889_v34, 16  ;;  %v4564_v44 = vshra.s32 %v12883_v47, 16  ;;  %vm18088_vm13 = vmmov %vm18047_vm1 }
 0x4a5   : > { %v12893_v2 = vpop.permute.xlu2 %3570  ;;  %v3739_v58 = vsel %vm18078_vm15, %v12779_v39, %v3738_v8  ;;  %v3683_v43 = vsel %vm18079_vm12, %v3667_v33, %v3682_v21  ;;  %v3751_v10 = vsel %vm18080_vm14, %v3711_v50, %v3750_v12  ;;  %v4534_v42 = vshra.s32 %v12898_v63, 16  ;;  %vm18089_vm15 = vmmov %vm18047_vm1 }
 0x4a6   : > { %v12783_v19 = vpop.permute.xlu1 %3506  ;;  %v3788_v49 = vrot.slane %v3771_v48, 4  ;;  %v3685_v57 = vsel %vm18081_vm11, %v3684_v32, %v12792_v9  ;;  %v3812_v27 = vrot.slane %v12731_v37, 4  ;;  %v12918_v4 = vperm.slane %v3773_v40, %v10948_v29  ;;  %vm18091_vm12 = vmmov %vm18047_vm1 }
 0x4a7   : > { %v12920_v3 = vcvt.s32.f32 %v4504_v7  ;;  %v12923_v39 = vsel %vm2046_vm2, %v3681_v23, 2147483647  ;;  %v3749_v33 = vsel %vm18047_vm1, %v3748_v45, %v3699_v11  ;;  %v12926_v21 = vcvt.s32.f32 %v4489_v14  ;;  %vm18092_vm14 = vmmov %vm18047_vm1 }
 0x4a8   : > { %18083 = vst [vmem:[#allocation35_spill] sm:$0xff] %v12923_v39  ;;  %v3747_v50 = vperm.slane %v3739_v58, %v10948_v29  ;;  %v12930_v8 = vsel %vm2046_vm2, %v3683_v43, 2147483647  ;;  %v12933_v9 = vperm.slane %v3751_v10, %v10948_v29  ;;  %v3774_v32 = vrot.slane %v3723_v51, 4  ;;  %vm18093_vm11 = vmmov %vm18047_vm1 }
 0x4a9   : > { %18082 = vst [vmem:[#allocation34_spill] sm:$0xff] %v12920_v3  ;;  %v12935_v12 = vcvt.s32.f32 %v4519_v52  ;;  %v12938_v7 = vsel %vm2046_vm2, %v3685_v57, 2147483647  ;;  %v3836_v23 = vrot.slane %v12783_v19, 4  ;;  %v12946_v45 = vcvt.s32.f32 %v4534_v42 }
 0x4aa   : > { %v12799_v59 = vpop.permute.xlu0 %3514  ;;  %18084 = vst [vmem:[#allocation36_spill] sm:$0xff] %v12930_v8  ;;  %v12948_v14 = vcvt.s32.f32 %v4564_v44  ;;  %v3789_v58 = vsel %vm18088_vm13, %v3788_v49, %v3747_v50  ;;  %v12953_v51 = vperm.slane %v3749_v33, %v10948_v29  ;;  %v3792_v52 = vrot.slane %v12918_v4, 4  ;;  %vm18095_vm13 = vmmov %vm18047_vm1 }
 0x4ab   : > { %18085 = vst [vmem:[#allocation37_spill] sm:$0xff] %v12938_v7  ;;  %v4594_v43 = vshra.s32 %v12923_v39, 16  ;;  %v4624_v10 = vshra.s32 %v12930_v8, 16  ;;  %v3948_v57 = vrot.slane %v12893_v2, 4  ;;  %v3790_v25 = vrot.slane %v3747_v50, 4 }
 0x4ac   : > { %18086 = vst [vmem:[#allocation38_spill] sm:$0xff] %v12946_v45  ;;  %v4654_v44 = vshra.s32 %v12938_v7, 16  ;;  %v3824_v49 = vrot.slane %v12748_v62, 4  ;;  %v3775_v20 = vsel %vm18089_vm15, %v12849_v0, %v3774_v32  ;;  %v3814_v33 = vrot.slane %v12735_v24, 4  ;;  %vm18098_vm15 = vmmov %vm18047_vm1 }
 0x4ad   : > { %18087 = vst [vmem:[#allocation39_spill] sm:$0xff] %v12948_v14  ;;  %v12965_v46 = vpop.permute.xlu2 %3468  ;;  %v12968_v1 = vsel %vm2046_vm2, %v3789_v58, 2147483647  ;;  %v3837_v60 = vsel %vm18091_vm12, %v3836_v23, %v12768_v28  ;;  %v3791_v53 = vsel %vm18093_vm11, %v3771_v48, %v3790_v25  ;;  %v3793_v0 = vsel %vm18047_vm1, %v3792_v52, %v12953_v51  ;;  %vm18099_vm12 = vmmov %vm18047_vm1 }
 0x4ae   : > { %v12814_v16 = vpop.permute.xlu1 %3530  ;;  %18090 = vst [vmem:[#allocation40_spill] sm:$0xff] %v12968_v1  ;;  %v12979_v32 = vcvt.s32.f32 %v4594_v43  ;;  %v12981_v7 = vcvt.s32.f32 %v4624_v10  ;;  %v3794_v58 = vrot.slane %v12953_v51, 4  ;;  %v4549_v8 = vshra.s32 %v12968_v1, 16  ;;  %vm18103_vm11 = vmmov %vm18047_vm1 }
 0x4af   : > { %v12987_v39 = vcvt.s32.f32 %v4654_v44  ;;  %v3783_v25 = vperm.slane %v3775_v20, %v10948_v29  ;;  %v3843_v48 = vperm.slane %v3837_v60, %v10893_v30  ;;  %v12996_v43 = vsel %vm2046_vm2, %v3791_v53, 2147483647 }
 0x4b0   : > { %18094 = vst [vmem:[#allocation41_spill] sm:$0xff] %v12979_v32  ;;  %v3813_v51 = vsel %vm18098_vm15, %v3812_v27, %v12735_v24  ;;  %v3815_v10 = vsel %vm18099_vm12, %v12731_v37, %v3814_v33  ;;  %v13008_v60 = vsel %vm2046_vm2, %v3793_v0, 2147483647  ;;  %v3800_v20 = vrot.slane %v12741_v54, 4  ;;  %vm18106_vm15 = vmmov %vm18047_vm1 }
 0x4b1   : > { %18096 = vst [vmem:[#allocation42_spill] sm:$0xff] %v12987_v39  ;;  %v18102_v53 = vrot.slane %v12585_v36, 4  ;;  %v3826_v27 = vrot.slane %v12754_v13, 4  ;;  %v3912_v33 = vrot.slane %v12814_v16, 4  ;;  %v13025_v0 = vcvt.s32.f32 %v4549_v8  ;;  %vm18107_vm12 = vmmov %vm18047_vm1 }
 0x4b2   : > { %v12839_v5 = vpop.permute.xlu0 %3538  ;;  %18097 = vst [vmem:[#allocation43_spill] sm:$0xff] %v12996_v43  ;;  %v4579_v1 = vshra.s32 %v12996_v43, 16  ;;  %v3872_v47 = vrot.slane %v3843_v48, 4  ;;  %v3796_v8 = vrot.slane %v3783_v25, 4 }
 0x4b3   : > { %v3924_v56 = vrot.slane %v12839_v5, 4  ;;  %18101 = vst [vmem:[#allocation44_spill] sm:$0xff] %v13008_v60  ;;  %v3803_v24 = vsel %vm18103_vm11, %v12741_v54, %v18102_v53  ;;  %v4609_v53 = vshra.s32 %v13008_v60, 16  ;;  %vm18109_vm11 = vmmov %vm18047_vm1 }
 0x4b4   : > { %18104 = vst [vmem:[#allocation45_spill] sm:$0xff] %v13025_v0  ;;  %v13051_v60 = vcvt.s32.f32 %v4579_v1 }
 0x4b6   : > { %v12872_v6 = vpop.permute.xlu1 %3554 }
 0x4b7   : > { %v3949_v50 = vsel %vm18092_vm14, %v3948_v57, %v12872_v6  ;;  %v3798_v57 = vrot.slane %v12933_v9, 4  ;;  %vm18100_vm14 = vmmov %vm18047_vm1 }
 0x4b8   : > { %v12993_v52 = vperm.slane %v3949_v50, %v10893_v30 }
 0x4ba   : > { %v12886_v35 = vpop.permute.xlu0 %3562 }
 0x4bb   : > { %4477 = vmin.xlane.f32.xlu2 %v12877_v55  ;;  %v3936_v42 = vrot.slane %v12886_v35, 4 }
 0x4bd   : > { %v3937_v23 = vsel %vm18095_vm13, %v3936_v42, %v12833_v41  ;;  %v3925_v42 = vsel %vm18100_vm14, %v3924_v56, %v12788_v15  ;;  %v3825_v56 = vsel %vm18047_vm1, %v3824_v49, %v12754_v13  ;;  %v3823_v13 = vperm.slane %v3815_v10, %v10893_v30  ;;  %vm18105_vm13 = vmmov %vm18047_vm1 }
 0x4be   : > { %4687 = vmin.xlane.f32.xlu1 %v12903_v61  ;;  %v12941_v40 = vpop.permute.xlu1 %3476  ;;  %v13017_v37 = vperm.slane %v3937_v23, %v10893_v30  ;;  %v13029_v54 = vperm.slane %v3925_v42, %v10893_v30  ;;  %v3984_v23 = vrot.slane %v12993_v52, 4  ;;  %v3811_v49 = vperm.slane %v3803_v24, %v10893_v30  ;;  %vm18108_vm14 = vmmov %vm18047_vm1 }
 0x4bf   : > { %v3827_v43 = vsel %vm18105_vm13, %v12748_v62, %v3826_v27  ;;  %v3831_v42 = vperm.slane %v3825_v56, %v10893_v30  ;;  %v3801_v10 = vsel %vm18107_vm12, %v3800_v20, %v12585_v36  ;;  %v3913_v24 = vsel %vm18108_vm14, %v3912_v33, %v12799_v59  ;;  %vm18111_vm13 = vmmov %vm18047_vm1 }
 0x4c0   : > { %v3795_v62 = vsel %vm18109_vm11, %v12918_v4, %v3794_v58  ;;  %v13058_v56 = vcvt.s32.f32 %v4609_v53  ;;  %v3862_v36 = vrot.slane %v3811_v49, 4  ;;  %v13063_v20 = vperm.slane %v3827_v43, %v10893_v30  ;;  %vm18114_vm12 = vmmov %vm18047_vm1 }
 0x4c1   : > { %v3807_v4 = vperm.slane %v3801_v10, %v10893_v30  ;;  %v13078_v33 = vsel %vm2046_vm2, %v3795_v62, 2147483647  ;;  %v3799_v53 = vsel %vm18114_vm12, %v3783_v25, %v3798_v57  ;;  %v3860_v10 = vrot.slane %v3823_v13, 4  ;;  %vm18115_vm14 = vmmov %vm18047_vm1 }
 0x4c2   : > { %v12943_v11 = vpop.permute.xlu0 %3460  ;;  %4492 = vmin.xlane.f32.xlu0 %v12926_v21  ;;  %18110 = vst [vmem:[#allocation46_spill] sm:$0xff] %v13058_v56  ;;  %vm18116_vm11 = vmmov %vm18047_vm1 }
 0x4c3   : > { %4522 = vmin.xlane.f32.xlu2 %v12935_v12  ;;  %18113 = vst [vmem:[#allocation47_spill] sm:$0xff] %v13078_v33  ;;  %v3850_v62 = vrot.slane %v3807_v4, 4  ;;  %vm18121_vm12 = vmmov %vm18047_vm1 }
 0x4c6   : > { %4507 = vmin.xlane.f32.xlu1 %v12920_v3  ;;  %v13023_v50 = vpop.permute.xlu1 %3500  ;;  %v13043_v3 = vpop.permute.xlu2 %3492 }
 0x4ca   : > { %v13004_v44 = vpop.permute.xlu0 %3484  ;;  %4537 = vmin.xlane.f32.xlu0 %v12946_v45  ;;  %v3838_v45 = vrot.slane %v12768_v28, 4  ;;  %v3960_v28 = vrot.slane %v13029_v54, 4 }
 0x4cb   : > { %4567 = vmin.xlane.f32.xlu2 %v12948_v14  ;;  %v13034_v14 = vperm.slane %v3813_v51, %v10893_v30  ;;  %v3985_v51 = vsel %vm18106_vm15, %v3984_v23, %v13017_v37  ;;  %v3873_v23 = vsel %vm18111_vm13, %v3872_v47, %v3831_v42  ;;  %vm18112_vm15 = vmmov %vm18047_vm1 }
 0x4cc   : > { %v3839_v27 = vsel %vm18047_vm1, %v12783_v19, %v3838_v45  ;;  %v13067_v1 = vperm.slane %v3985_v51, %v10948_v29  ;;  %v3874_v19 = vrot.slane %v3831_v42, 4  ;;  %v3919_v45 = vperm.slane %v3913_v24, %v10893_v30  ;;  %vm18119_vm13 = vmmov %vm18047_vm1 }
 0x4cd   : > { %v3797_v47 = vsel %vm18112_vm15, %v3796_v8, %v12933_v9  ;;  %v3847_v43 = vperm.slane %v3839_v27, %v10893_v30  ;;  %v13082_v51 = vperm.slane %v3873_v23, %v10948_v29  ;;  %v3848_v42 = vrot.slane %v13034_v14, 4  ;;  %vm18120_vm15 = vmmov %vm18047_vm1 }
 0x4ce   : > { %4552 = vmin.xlane.f32.xlu1 %v13025_v0  ;;  %v3875_v24 = vsel %vm18115_vm14, %v3843_v48, %v3874_v19  ;;  %v3961_v0 = vsel %vm18116_vm11, %v3960_v28, %v3919_v45  ;;  %v3886_v9 = vrot.slane %v13063_v20, 4  ;;  %v13089_v8 = vpop.permute.xlu1 %3524  ;;  %v13093_v57 = vsel %vm2046_vm2, %v3797_v47, 2147483647  ;;  %vm18122_vm14 = vmmov %vm18047_vm1 }
 0x4cf   : > { %18117 = vst [vmem:[#allocation48_spill] sm:$0xff] %v13093_v57  ;;  %v4008_v25 = vrot.slane %v13067_v1, 4  ;;  %v4639_v27 = vshra.s32 %v13078_v33, 16  ;;  %v13098_v48 = vsel %vm2046_vm2, %v3799_v53, 2147483647  ;;  %v3849_v28 = vsel %vm18119_vm13, %v3848_v42, %v3807_v4  ;;  %v13114_v33 = vpop.permute.xlu2 %3516  ;;  %vm18123_vm11 = vmmov %vm18047_vm1 }
 0x4d0   : > { %18118 = vst [vmem:[#allocation49_spill] sm:$0xff] %v13098_v48  ;;  %v13103_v23 = vperm.slane %v3961_v0, %v10948_v29  ;;  %v13107_v19 = vperm.slane %v3875_v24, %v10948_v29  ;;  %v3861_v47 = vsel %vm18121_vm12, %v3860_v10, %v3811_v49  ;;  %v3950_v53 = vrot.slane %v12872_v6, 4  ;;  %vm18124_vm13 = vmmov %vm18047_vm1 }
 0x4d1   : > { %v4669_v4 = vshra.s32 %v13093_v57, 16  ;;  %v3938_v42 = vrot.slane %v12833_v41, 4  ;;  %v4699_v0 = vshra.s32 %v13098_v48, 16  ;;  %v3855_v49 = vperm.slane %v3849_v28, %v10948_v29  ;;  %vm18130_vm12 = vmmov %vm18047_vm1 }
 0x4d2   : > { %4582 = vmin.xlane.f32.xlu0 %v13051_v60  ;;  %v13071_v58 = vpop.permute.xlu0 %3508  ;;  %v4009_v24 = vsel %vm18122_vm14, %v4008_v25, %v13103_v23  ;;  %v3884_v10 = vrot.slane %v3847_v43, 4  ;;  %v13127_v6 = vcvt.s32.f32 %v4639_v27  ;;  %v3851_v41 = vsel %vm18123_vm11, %v13034_v14, %v3850_v62  ;;  %vm18132_vm14 = vmmov %vm18047_vm1 }
 0x4d3   : > { %4612 = vmin.xlane.f32.xlu2 %v13058_v56  ;;  %v3863_v56 = vsel %vm18047_vm1, %v3823_v13, %v3862_v36  ;;  %v3887_v13 = vsel %vm18120_vm15, %v3847_v43, %v3886_v9  ;;  %v3896_v36 = vrot.slane %v13082_v51, 4  ;;  %v3914_v9 = vrot.slane %v12799_v59, 4  ;;  %vm18127_vm15 = vmmov %vm18047_vm1 }
 0x4d4   : > { %v3962_v57 = vrot.slane %v3919_v45, 4  ;;  %v3900_v25 = vrot.slane %v13107_v19, 4  ;;  %v3951_v43 = vsel %vm18124_vm13, %v12893_v2, %v3950_v53  ;;  %v13141_v27 = vsel %vm2046_vm2, %v4009_v24, 2147483647  ;;  %vm18133_vm11 = vmmov %vm18047_vm1 }
 0x4d5   : > { %v3897_v48 = vsel %vm18047_vm1, %v3896_v36, %v3855_v49  ;;  %18126 = vst [vmem:[#allocation51_spill] sm:$0xff] %v13141_v27  ;;  %v4024_v14 = vrot.slane %v12965_v46, 4  ;;  %v3915_v59 = vsel %vm18127_vm15, %v12814_v16, %v3914_v9  ;;  %v13148_v45 = vcvt.s32.f32 %v4699_v0  ;;  %vm18134_vm13 = vmmov %vm18047_vm1 }
 0x4d6   : > { %4597 = vmin.xlane.f32.xlu1 %v12979_v32  ;;  %v13111_v32 = vperm.slane %v3863_v56, %v10948_v29  ;;  %v13124_v56 = vperm.slane %v3887_v13, %v10948_v29  ;;  %v13138_v13 = vcvt.s32.f32 %v4669_v4  ;;  %v3859_v2 = vperm.slane %v3851_v41, %v10948_v29  ;;  %v13166_v41 = vpop.permute.xlu1 %3548  ;;  %vm18135_vm15 = vmmov %vm18047_vm1 }
 0x4d7   : > { %18128 = vst [vmem:[#allocation52_spill] sm:$0xff] %v13148_v45  ;;  %v18129_v62 = vrot.slane %v12635_v38, 4  ;;  %v3986_v53 = vrot.slane %v13017_v37, 4  ;;  %v13157_v4 = vsel %vm2046_vm2, %v3897_v48, 2147483647  ;;  %v3963_v16 = vsel %vm18133_vm11, %v13029_v54, %v3962_v57  ;;  %vm18141_vm11 = vmmov %vm18047_vm1 }
 0x4d8   : > { %18125 = vst [vmem:[#allocation50_spill] sm:$0xff] %v13138_v13  ;;  %v13164_v0 = vperm.slane %v3951_v43, %v10893_v30  ;;  %v4729_v9 = vshra.s32 %v13141_v27, 16  ;;  %v3885_v37 = vsel %vm18134_vm13, %v3884_v10, %v13063_v20  ;;  %v3923_v48 = vperm.slane %v3915_v59, %v10893_v30  ;;  %v13188_v10 = vpop.permute.xlu2 %3540  ;;  %vm18143_vm13 = vmmov %vm18047_vm1 }
 0x4d9   : > { %v4027_v36 = vsel %vm18130_vm12, %v12965_v46, %v18129_v62  ;;  %18131 = vst [vmem:[#allocation53_spill] sm:$0xff] %v13157_v4  ;;  %v3901_v46 = vsel %vm18047_vm1, %v3900_v25, %v3859_v2  ;;  %v3898_v62 = vrot.slane %v3855_v49, 4  ;;  %vm18136_vm12 = vmmov %vm18047_vm1  ;;  %v18137_v43 = vrot.slane %v12788_v15, 4 }
 0x4da   : > { %4627 = vmin.xlane.f32.xlu0 %v12981_v7  ;;  %v13136_v28 = vpop.permute.xlu0 %3532  ;;  %v4025_v54 = vsel %vm18136_vm12, %v4024_v14, %v12635_v38  ;;  %v13178_v57 = vperm.slane %v4027_v36, %v10893_v30  ;;  %v13193_v38 = vsel %vm2046_vm2, %v3901_v46, 2147483647  ;;  %v3987_v15 = vsel %vm18141_vm11, %v12993_v52, %v3986_v53  ;;  %vm18149_vm12 = vmmov %vm18047_vm1 }
 0x4db   : > { %4657 = vmin.xlane.f32.xlu2 %v12987_v39  ;;  %v3910_v39 = vrot.slane %v13111_v32, 4  ;;  %18140 = vst [vmem:[#allocation55_spill] sm:$0xff] %v13193_v38  ;;  %v13200_v14 = vcvt.s32.f32 %v4729_v9  ;;  %v4010_v59 = vrot.slane %v13103_v23, 4  ;;  %v13204_v36 = vperm.slane %v3861_v47, %v10948_v29  ;;  %vm18151_vm11 = vmmov %vm18047_vm1 }
 0x4dc   : > { %v3974_v46 = vrot.slane %v3923_v48, 4  ;;  %v3899_v53 = vsel %vm18143_vm13, %v13082_v51, %v3898_v62  ;;  %v3995_v23 = vperm.slane %v3987_v15, %v10948_v29  ;;  %vm18155_vm13 = vmmov %vm18047_vm1 }
 0x4dd   : > { %v3911_v24 = vsel %vm18132_vm14, %v13124_v56, %v3910_v39  ;;  %v3939_v39 = vsel %vm18135_vm15, %v12886_v35, %v3938_v42  ;;  %vm18138_vm14 = vmmov %vm18047_vm1  ;;  %v4714_v35 = vshra.s32 %v13157_v4, 16  ;;  %v3971_v42 = vperm.slane %v3963_v16, %v10948_v29  ;;  %18142 = vst [vmem:[#allocation56_spill] sm:$0xff] %v13200_v14 }
 0x4de   : > { %4642 = vmin.xlane.f32.xlu1 %v13127_v6  ;;  %v3927_v25 = vsel %vm18138_vm14, %v12839_v5, %v18137_v43  ;;  %v13186_v20 = vsel %vm2046_vm2, %v3911_v24, 2147483647  ;;  %v3996_v5 = vrot.slane %v13164_v0, 4  ;;  %v3947_v49 = vperm.slane %v3939_v39, %v10893_v30  ;;  %vm18145_vm15 = vmmov %vm18047_vm1 }
 0x4df   : > { %18139 = vst [vmem:[#allocation54_spill] sm:$0xff] %v13186_v20  ;;  %v13207_v24 = vperm.slane %v4025_v54, %v10893_v30  ;;  %v4924_v16 = vshra.s32 %v13186_v20, 16  ;;  %v3935_v43 = vperm.slane %v3927_v25, %v10893_v30  ;;  %v4011_v52 = vsel %vm18047_vm1, %v13067_v1, %v4010_v59  ;;  %vm18150_vm14 = vmmov %vm18047_vm1 }
 0x4e0   : > { %v13220_v39 = vcvt.s32.f32 %v4714_v35  ;;  %v4774_v54 = vshra.s32 %v13193_v38, 16  ;;  %v13224_v25 = vperm.slane %v3885_v37, %v10948_v29  ;;  %v3997_v20 = vsel %vm18145_vm15, %v3996_v5, %v3947_v49  ;;  %v13238_v38 = vpop.permute.xlu1 %3572  ;;  %vm18156_vm15 = vmmov %vm18047_vm1 }
 0x4e1   : > { %v4060_v1 = vrot.slane %v13071_v58, 4  ;;  %v4014_v59 = vrot.slane %v3971_v42, 4  ;;  %v13229_v62 = vcvt.s32.f32 %v4924_v16  ;;  %v13232_v15 = vsel %vm2046_vm2, %v4011_v52, 2147483647 }
 0x4e2   : > { %4672 = vmin.xlane.f32.xlu0 %v13138_v13  ;;  %v13218_v9 = vpop.permute.xlu0 %3556  ;;  %18144 = vst [vmem:[#allocation57_spill] sm:$0xff] %v13220_v39  ;;  %v13235_v35 = vsel %vm2046_vm2, %v3899_v53, 2147483647  ;;  %v3972_v47 = vrot.slane %v3935_v43, 4  ;;  %v3975_v37 = vsel %vm18149_vm12, %v3935_v43, %v3974_v46  ;;  %v3998_v51 = vrot.slane %v3947_v49, 4  ;;  %vm18157_vm12 = vmmov %vm18047_vm1 }
 0x4e3   : > { %4702 = vmin.xlane.f32.xlu2 %v13148_v45  ;;  %18146 = vst [vmem:[#allocation58_spill] sm:$0xff] %v13229_v62  ;;  %v4015_v5 = vsel %vm18150_vm14, %v3995_v23, %v4014_v59  ;;  %v13246_v52 = vperm.slane %v3997_v20, %v10948_v29  ;;  %v4012_v53 = vrot.slane %v3995_v23, 4  ;;  %v4061_v46 = vsel %vm18047_vm1, %v4060_v1, %v13043_v3  ;;  %vm18159_vm14 = vmmov %vm18047_vm1 }
 0x4e4   : > { %18147 = vst [vmem:[#allocation59_spill] sm:$0xff] %v13232_v15  ;;  %v13251_v43 = vcvt.s32.f32 %v4774_v54  ;;  %v4744_v59 = vshra.s32 %v13235_v35, 16  ;;  %v4172_v49 = vrot.slane %v13238_v38, 4  ;;  %v13260_v20 = vsel %vm2046_vm2, %v4015_v5, 2147483647 }
 0x4e5   : > { %18148 = vst [vmem:[#allocation60_spill] sm:$0xff] %v13235_v35  ;;  %v3973_v1 = vsel %vm18155_vm13, %v3972_v47, %v3923_v48  ;;  %v13267_v54 = vperm.slane %v3975_v37, %v10948_v29  ;;  %v4048_v16 = vrot.slane %v13023_v50, 4  ;;  %v3906_v35 = vrot.slane %v13204_v36, 4  ;;  %vm18162_vm13 = vmmov %vm18047_vm1 }
 0x4e6   : > { %4732 = vmin.xlane.f32.xlu1 %v13200_v14  ;;  %v3902_v14 = vrot.slane %v3859_v2, 4  ;;  %18152 = vst [vmem:[#allocation61_spill] sm:$0xff] %v13251_v43  ;;  %v13275_v5 = vperm.slane %v4061_v46, %v10893_v30  ;;  %v4819_v47 = vshra.s32 %v13260_v20, 16 }
 0x4e7   : > { %18153 = vst [vmem:[#allocation62_spill] sm:$0xff] %v13260_v20  ;;  %v4049_v46 = vsel %vm18162_vm13, %v4048_v16, %v13004_v44  ;;  %vm18171_vm13 = vmmov %vm18047_vm1 }
 0x4e8   : > { %v3903_v2 = vsel %vm18151_vm11, %v13107_v19, %v3902_v14  ;;  %v4036_v19 = vrot.slane %v12941_v40, 4  ;;  %v13256_v14 = vpop.permute.xlu2 %3564  ;;  %vm18160_vm11 = vmmov %vm18047_vm1  ;;  %v13324_v20 = vperm.slane %v4049_v46, %v10893_v30  ;;  %v4050_v46 = vrot.slane %v13004_v44, 4  ;;  %v13343_v27 = vpop.permute.xlu1 %3470 }
 0x4e9   : > { %v13263_v23 = vsel %vm2046_vm2, %v3903_v2, 2147483647  ;;  %v4013_v2 = vsel %vm18157_vm12, %v4012_v53, %v3971_v42  ;;  %v13291_v42 = vcvt.s32.f32 %v4744_v59  ;;  %v4096_v59 = vrot.slane %v13275_v5, 4  ;;  %vm18168_vm12 = vmmov %vm18047_vm1 }
 0x4ea   : > { %4717 = vmin.xlane.f32.xlu0 %v13220_v39  ;;  %v4759_v39 = vshra.s32 %v13232_v15, 16  ;;  %18154 = vst [vmem:[#allocation63_spill] sm:$0xff] %v13263_v23  ;;  %v3999_v15 = vsel %vm18156_vm15, %v13164_v0, %v3998_v51  ;;  %v4804_v37 = vshra.s32 %v13263_v23, 16  ;;  %v4037_v4 = vsel %vm18160_vm11, %v4036_v19, %v12943_v11  ;;  %v13289_v51 = vpop.permute.xlu0 %3478  ;;  %vm18165_vm15 = vmmov %vm18047_vm1 }
 0x4eb   : > { %4927 = vmin.xlane.f32.xlu2 %v13229_v62  ;;  %v4016_v62 = vrot.slane %v13246_v52, 4  ;;  %v4173_v0 = vsel %vm18047_vm1, %v4172_v49, %v13218_v9  ;;  %18161 = vst [vmem:[#allocation65_spill] sm:$0xff] %v13291_v42  ;;  %v13297_v53 = vperm.slane %v3999_v15, %v10948_v29  ;;  %v3904_v19 = vrot.slane %v13224_v25, 4  ;;  %vm18170_vm11 = vmmov %vm18047_vm1 }
 0x4ec   : > { %v13279_v48 = vcvt.s32.f32 %v4759_v39  ;;  %v13294_v39 = vperm.slane %v3973_v1, %v10948_v29  ;;  %v4038_v49 = vrot.slane %v12943_v11, 4  ;;  %v4043_v16 = vperm.slane %v4037_v4, %v10893_v30 }
 0x4ed   : > { %v13316_v23 = vperm.slane %v4173_v0, %v10893_v30  ;;  %v4148_v11 = vrot.slane %v13188_v10, 4 }
 0x4ee   : > { %4777 = vmin.xlane.f32.xlu1 %v13251_v43  ;;  %18158 = vst [vmem:[#allocation64_spill] sm:$0xff] %v13279_v48  ;;  %v3907_v43 = vsel %vm18159_vm14, %v13224_v25, %v3906_v35  ;;  %v13303_v35 = vsel %vm2046_vm2, %v4013_v2, 2147483647  ;;  %v4017_v15 = vsel %vm18165_vm15, %v4016_v62, %v13294_v39  ;;  %v13318_v2 = vcvt.s32.f32 %v4819_v47  ;;  %vm18169_vm14 = vmmov %vm18047_vm1 }
 0x4ef   : > { %18163 = vst [vmem:[#allocation66_spill] sm:$0xff] %v13303_v35  ;;  %v13310_v1 = vsel %vm2046_vm2, %v3907_v43, 2147483647  ;;  %v13320_v25 = vcvt.s32.f32 %v4804_v37  ;;  %v4160_v43 = vrot.slane %v13256_v14, 4  ;;  %v4136_v62 = vrot.slane %v13136_v28, 4  ;;  %vm18174_vm15 = vmmov %vm18047_vm1 }
 0x4f0   : > { %18164 = vst [vmem:[#allocation67_spill] sm:$0xff] %v13310_v1  ;;  %v13331_v4 = vsel %vm2046_vm2, %v4017_v15, 2147483647  ;;  %v3905_v47 = vsel %vm18168_vm12, %v3904_v19, %v13204_v36  ;;  %v4020_v37 = vrot.slane %v13297_v53, 4  ;;  %v4039_v0 = vsel %vm18169_vm14, %v12941_v40, %v4038_v49  ;;  %vm18175_vm12 = vmmov %vm18047_vm1 }
 0x4f1   : > { %18166 = vst [vmem:[#allocation68_spill] sm:$0xff] %v13318_v2  ;;  %v4097_v15 = vsel %vm18047_vm1, %v4096_v59, %v13324_v20  ;;  %v4149_v36 = vsel %vm18171_vm13, %v4148_v11, %v13089_v8  ;;  %v4208_v19 = vrot.slane %v13316_v23, 4  ;;  %v4864_v40 = vshra.s32 %v13310_v1, 16  ;;  %vm18177_vm14 = vmmov %vm18047_vm1 }
 0x4f2   : > { %4762 = vmin.xlane.f32.xlu0 %v13279_v48  ;;  %18167 = vst [vmem:[#allocation69_spill] sm:$0xff] %v13331_v4  ;;  %v13339_v48 = vpop.permute.xlu2 %3462  ;;  %v4849_v44 = vshra.s32 %v13331_v4, 16  ;;  %v13355_v45 = vsel %vm2046_vm2, %v3905_v47, 2147483647  ;;  %v4137_v59 = vsel %vm18174_vm15, %v4136_v62, %v13114_v33  ;;  %v4021_v11 = vsel %vm18175_vm12, %v4020_v37, %v13267_v54  ;;  %v13380_v1 = vpop.permute.xlu0 %3502  ;;  %vm18179_vm13 = vmmov %vm18047_vm1 }
 0x4f3   : > { %4747 = vmin.xlane.f32.xlu2 %v13291_v42  ;;  %v4789_v42 = vshra.s32 %v13303_v35, 16  ;;  %v4161_v35 = vsel %vm18170_vm11, %v4160_v43, %v13166_v41  ;;  %18173 = vst [vmem:[#allocation71_spill] sm:$0xff] %v13355_v45  ;;  %v3908_v43 = vrot.slane %v13124_v56, 4  ;;  %v13370_v4 = vperm.slane %v4039_v0, %v10893_v30  ;;  %vm18178_vm11 = vmmov %vm18047_vm1 }
 0x4f4   : > { %v13359_v13 = vperm.slane %v4161_v35, %v10893_v30  ;;  %v18176_v47 = vrot.slane %v13207_v24, 4  ;;  %v4051_v35 = vsel %vm18178_vm11, %v13023_v50, %v4050_v46  ;;  %v13378_v62 = vperm.slane %v4149_v36, %v10893_v30  ;;  %vm18182_vm15 = vmmov %vm18047_vm1 }
 0x4f5   : > { %v13351_v49 = vcvt.s32.f32 %v4789_v42  ;;  %v13367_v42 = vperm.slane %v4097_v15, %v10948_v29  ;;  %v13387_v15 = vcvt.s32.f32 %v4864_v40  ;;  %v13394_v50 = vsel %vm2046_vm2, %v4021_v11, 2147483647  ;;  %vm18185_vm12 = vmmov %vm18047_vm1 }
 0x4f6   : > { %4822 = vmin.xlane.f32.xlu1 %v13318_v2  ;;  %v4072_v2 = vrot.slane %v4043_v16, 4  ;;  %v4075_v56 = vsel %vm18177_vm14, %v4043_v16, %v18176_v47  ;;  %v4209_v0 = vsel %vm18179_vm13, %v4208_v19, %v13359_v13  ;;  %v4834_v16 = vshra.s32 %v13355_v45, 16  ;;  %18181 = vst [vmem:[#allocation73_spill] sm:$0xff] %v13394_v50  ;;  %vm18186_vm14 = vmmov %vm18047_vm1 }
 0x4f7   : > { %18172 = vst [vmem:[#allocation70_spill] sm:$0xff] %v13351_v49  ;;  %v13391_v47 = vperm.slane %v4137_v59, %v10893_v30  ;;  %v3909_v46 = vsel %vm18182_vm15, %v3908_v43, %v13111_v32  ;;  %v4018_v36 = vrot.slane %v13294_v39, 4  ;;  %v13404_v19 = vcvt.s32.f32 %v4849_v44  ;;  %vm18189_vm11 = vmmov %vm18047_vm1 }
 0x4f8   : > { %v4073_v37 = vsel %vm18047_vm1, %v4072_v2, %v13207_v24  ;;  %18180 = vst [vmem:[#allocation72_spill] sm:$0xff] %v13387_v15  ;;  %v13400_v24 = vperm.slane %v4051_v35, %v10893_v30  ;;  %v4150_v2 = vrot.slane %v13089_v8, 4  ;;  %v4120_v40 = vrot.slane %v13367_v42, 4  ;;  %vm18191_vm13 = vmmov %vm18047_vm1 }
 0x4f9   : > { %18183 = vst [vmem:[#allocation74_spill] sm:$0xff] %v13404_v19  ;;  %v4184_v59 = vrot.slane %v13378_v62, 4  ;;  %v18184_v11 = vrot.slane %v13043_v3, 4  ;;  %v4215_v39 = vperm.slane %v4209_v0, %v10948_v29  ;;  %v4019_v43 = vsel %vm18186_vm14, %v13246_v52, %v4018_v36  ;;  %v13430_v52 = vpop.permute.xlu1 %3494  ;;  %vm18192_vm15 = vmmov %vm18047_vm1 }
 0x4fa   : > { %4807 = vmin.xlane.f32.xlu0 %v13320_v25  ;;  %v4174_v8 = vrot.slane %v13218_v9, 4  ;;  %v4909_v35 = vshra.s32 %v13394_v50, 16  ;;  %v13418_v44 = vsel %vm2046_vm2, %v3909_v46, 2147483647  ;;  %v13421_v45 = vperm.slane %v4073_v37, %v10948_v29  ;;  %vm18194_vm14 = vmmov %vm18047_vm1 }
 0x4fb   : > { %4792 = vmin.xlane.f32.xlu2 %v13351_v49  ;;  %v4063_v32 = vsel %vm18185_vm12, %v13071_v58, %v18184_v11  ;;  %18187 = vst [vmem:[#allocation75_spill] sm:$0xff] %v13418_v44  ;;  %v18188_v3 = vrot.slane %v13178_v57, 4  ;;  %v4098_v0 = vrot.slane %v13324_v20, 4  ;;  %v13428_v11 = vpop.permute.xlu2 %3486  ;;  %v13432_v9 = vcvt.s32.f32 %v4834_v16  ;;  %vm18193_vm12 = vmmov %vm18047_vm1 }
 0x4fc   : > { %v4185_v46 = vsel %vm18047_vm1, %v4184_v59, %v13391_v47  ;;  %v4110_v36 = vrot.slane %v13400_v24, 4  ;;  %v4071_v37 = vperm.slane %v4063_v32, %v10893_v30  ;;  %v13440_v50 = vsel %vm2046_vm2, %v4019_v43, 2147483647 }
 0x4fd   : > { %v4087_v58 = vsel %vm18189_vm11, %v13370_v4, %v18188_v3  ;;  %18190 = vst [vmem:[#allocation76_spill] sm:$0xff] %v13440_v50  ;;  %v4121_v20 = vsel %vm18191_vm13, %v4120_v40, %v13421_v45  ;;  %v4151_v3 = vsel %vm18192_vm15, %v13188_v10, %v4150_v2  ;;  %v4894_v16 = vshra.s32 %v13418_v44, 16  ;;  %v13457_v10 = vpop.permute.xlu0 %3526  ;;  %vm18196_vm11 = vmmov %vm18047_vm1 }
 0x4fe   : > { %4867 = vmin.xlane.f32.xlu1 %v13387_v15  ;;  %v4022_v59 = vrot.slane %v13267_v54, 4  ;;  %v4232_v15 = vrot.slane %v4215_v39, 4  ;;  %v4099_v32 = vsel %vm18193_vm12, %v13275_v5, %v4098_v0  ;;  %v4175_v43 = vsel %vm18194_vm14, %v13238_v38, %v4174_v8  ;;  %vm18197_vm13 = vmmov %vm18047_vm1 }
 0x4ff   : > { %v4191_v40 = vperm.slane %v4185_v46, %v10948_v29  ;;  %v4138_v49 = vrot.slane %v13114_v33, 4  ;;  %v4879_v2 = vshra.s32 %v13440_v50, 16  ;;  %v13461_v44 = vsel %vm2046_vm2, %v4121_v20, 2147483647  ;;  %vm18199_vm15 = vmmov %vm18047_vm1 }
 0x500   : > { %18195 = vst [vmem:[#allocation77_spill] sm:$0xff] %v13461_v44  ;;  %v4023_v54 = vsel %vm18196_vm11, %v13297_v53, %v4022_v59  ;;  %v4083_v5 = vperm.slane %v4075_v56, %v10948_v29  ;;  %v13467_v38 = vperm.slane %v4151_v3, %v10893_v30  ;;  %v4111_v8 = vsel %vm18047_vm1, %v4071_v37, %v4110_v36  ;;  %vm18201_vm12 = vmmov %vm18047_vm1 }
 0x501   : > { %v13473_v33 = vperm.slane %v4175_v43, %v10893_v30  ;;  %v4233_v0 = vsel %vm18197_vm13, %v4232_v15, %v4191_v40  ;;  %v13477_v46 = vperm.slane %v4087_v58, %v10948_v29  ;;  %v4107_v53 = vperm.slane %v4099_v32, %v10948_v29  ;;  %vm18203_vm14 = vmmov %vm18047_vm1 }
 0x502   : > { %4852 = vmin.xlane.f32.xlu0 %v13404_v19  ;;  %v13453_v19 = vcvt.s32.f32 %v4909_v35  ;;  %v4162_v35 = vrot.slane %v13166_v41, 4  ;;  %v13480_v56 = vcvt.s32.f32 %v4894_v16  ;;  %v4954_v20 = vshra.s32 %v13461_v44, 16  ;;  %vm18206_vm11 = vmmov %vm18047_vm1 }
 0x503   : > { %4837 = vmin.xlane.f32.xlu2 %v13432_v9  ;;  %v13484_v36 = vsel %vm2046_vm2, %v4023_v54, 2147483647  ;;  %v4234_v41 = vrot.slane %v4191_v40, 4  ;;  %v4108_v3 = vrot.slane %v4071_v37, 4  ;;  %v13487_v59 = vperm.slane %v4111_v8, %v10948_v29  ;;  %v13503_v8 = vpop.permute.xlu2 %3510  ;;  %vm18207_vm13 = vmmov %vm18047_vm1 }
 0x504   : > { %18198 = vst [vmem:[#allocation78_spill] sm:$0xff] %v13484_v36  ;;  %v4139_v15 = vsel %vm18199_vm15, %v13136_v28, %v4138_v49  ;;  %v13491_v43 = vcvt.s32.f32 %v4879_v2  ;;  %v4163_v58 = vsel %vm18201_vm12, %v13256_v14, %v4162_v35  ;;  %v4186_v16 = vrot.slane %v13391_v47, 4  ;;  %v13505_v28 = vpop.permute.xlu1 %3518  ;;  %vm18209_vm15 = vmmov %vm18047_vm1 }
 0x505   : > { %v13498_v32 = vsel %vm2046_vm2, %v4233_v0, 2147483647  ;;  %v4235_v37 = vsel %vm18203_vm14, %v4215_v39, %v4234_v41  ;;  %v4084_v40 = vrot.slane %v13370_v4, 4  ;;  %v4220_v54 = vrot.slane %v13473_v33, 4  ;;  %vm18210_vm12 = vmmov %vm18047_vm1 }
 0x506   : > { %4912 = vmin.xlane.f32.xlu1 %v13453_v19  ;;  %18200 = vst [vmem:[#allocation79_spill] sm:$0xff] %v13491_v43  ;;  %v4939_v14 = vshra.s32 %v13484_v36, 16  ;;  %v4124_v49 = vrot.slane %v4107_v53, 4  ;;  %v4196_v47 = vrot.slane %v13467_v38, 4  ;;  %v4147_v2 = vperm.slane %v4139_v15, %v10893_v30  ;;  %vm18211_vm14 = vmmov %vm18047_vm1 }
 0x507   : > { %18202 = vst [vmem:[#allocation80_spill] sm:$0xff] %v13498_v32  ;;  %v13511_v35 = vcvt.s32.f32 %v4954_v20  ;;  %v4134_v39 = vrot.slane %v13477_v46, 4  ;;  %v4262_v4 = vrot.slane %v13339_v48, 4  ;;  %v13516_v0 = vperm.slane %v4163_v58, %v10893_v30  ;;  %v13530_v58 = vpop.permute.xlu0 %3550 }
 0x508   : > { %v4969_v41 = vshra.s32 %v13498_v32, 16  ;;  %v13520_v44 = vsel %vm2046_vm2, %v4235_v37, 2147483647  ;;  %v4109_v36 = vsel %vm18206_vm11, %v4108_v3, %v13400_v24  ;;  %v4187_v15 = vsel %vm18207_vm13, %v13378_v62, %v4186_v16  ;;  %vm18212_vm11 = vmmov %vm18047_vm1 }
 0x509   : > { %18204 = vst [vmem:[#allocation81_spill] sm:$0xff] %v13511_v35  ;;  %v4135_v20 = vsel %vm18047_vm1, %v13487_v59, %v4134_v39  ;;  %v13532_v50 = vcvt.s32.f32 %v4939_v14  ;;  %v4125_v37 = vsel %vm18209_vm15, %v4124_v49, %v4083_v5  ;;  %v4126_v32 = vrot.slane %v4083_v5, 4  ;;  %vm18217_vm13 = vmmov %vm18047_vm1 }
 0x50a   : > { %4897 = vmin.xlane.f32.xlu0 %v13480_v56  ;;  %18205 = vst [vmem:[#allocation82_spill] sm:$0xff] %v13520_v44  ;;  %v4221_v24 = vsel %vm18210_vm12, %v4220_v54, %v13516_v0  ;;  %v4999_v39 = vshra.s32 %v13520_v44, 16  ;;  %v4198_v62 = vrot.slane %v4147_v2, 4  ;;  %v13542_v16 = vcvt.s32.f32 %v4969_v41  ;;  %vm18218_vm15 = vmmov %vm18047_vm1 }
 0x50b   : > { %4882 = vmin.xlane.f32.xlu2 %v13491_v43  ;;  %v4210_v43 = vrot.slane %v13359_v13, 4  ;;  %18208 = vst [vmem:[#allocation83_spill] sm:$0xff] %v13532_v50  ;;  %v4197_v13 = vsel %vm18211_vm14, %v4196_v47, %v4147_v2  ;;  %v13545_v14 = vsel %vm2046_vm2, %v4135_v20, 2147483647  ;;  %v4195_v5 = vperm.slane %v4187_v15, %v10948_v29  ;;  %vm18220_vm12 = vmmov %vm18047_vm1 }
 0x50c   : > { %18213 = vst [vmem:[#allocation84_spill] sm:$0xff] %v13542_v16  ;;  %v18215_v49 = vrot.slane %v12687_v26, 4  ;;  %v4222_v47 = vrot.slane %v13516_v0, 4  ;;  %v4274_v2 = vrot.slane %v13428_v11, 4  ;;  %v4085_v20 = vsel %vm18218_vm15, %v4084_v40, %v13178_v57  ;;  %vm18222_vm14 = vmmov %vm18047_vm1 }
 0x50d   : > { %v4211_v3 = vsel %vm18212_vm11, %v13316_v23, %v4210_v43  ;;  %18214 = vst [vmem:[#allocation85_spill] sm:$0xff] %v13545_v14  ;;  %v13554_v23 = vsel %vm2046_vm2, %v4125_v37, 2147483647  ;;  %v13558_v43 = vperm.slane %v4221_v24, %v10948_v29  ;;  %v13567_v15 = vperm.slane %v4197_v13, %v10948_v29  ;;  %v13577_v24 = vpop.permute.xlu2 %3534  ;;  %vm18223_vm11 = vmmov %vm18047_vm1 }
 0x50e   : > { %4957 = vmin.xlane.f32.xlu1 %v13511_v35  ;;  %v4122_v35 = vrot.slane %v13421_v45, 4  ;;  %v4251_v54 = vsel %vm18047_vm1, %v13343_v27, %v18215_v49  ;;  %18216 = vst [vmem:[#allocation86_spill] sm:$0xff] %v13554_v23  ;;  %v4127_v45 = vsel %vm18217_vm13, %v4107_v53, %v4126_v32  ;;  %v4219_v41 = vperm.slane %v4211_v3, %v10948_v29  ;;  %v13579_v3 = vpop.permute.xlu1 %3542  ;;  %vm18225_vm13 = vmmov %vm18047_vm1 }
 0x50f   : > { %v13569_v37 = vcvt.s32.f32 %v4999_v39  ;;  %v5164_v53 = vshra.s32 %v13545_v14, 16  ;;  %v13575_v0 = vperm.slane %v4251_v54, %v10893_v30  ;;  %v5014_v49 = vshra.s32 %v13554_v23, 16  ;;  %vm18227_vm15 = vmmov %vm18047_vm1 }
 0x510   : > { %v4123_v32 = vsel %vm18220_vm12, %v13367_v42, %v4122_v35  ;;  %v13583_v57 = vsel %vm2046_vm2, %v4127_v45, 2147483647  ;;  %v4238_v40 = vrot.slane %v4195_v5, 4  ;;  %v13587_v13 = vsel %vm18222_vm14, %v13467_v38, %v4198_v62  ;;  %vm18228_vm12 = vmmov %vm18047_vm1 }
 0x511   : > { %18219 = vst [vmem:[#allocation87_spill] sm:$0xff] %v13569_v37  ;;  %v4263_v42 = vsel %vm18223_vm11, %v13289_v51, %v4262_v4  ;;  %v4240_v35 = vrot.slane %v13558_v43, 4  ;;  %v13594_v39 = vperm.slane %v4085_v20, %v10948_v29  ;;  %v4248_v54 = vrot.slane %v13343_v27, 4  ;;  %vm18229_vm14 = vmmov %vm18047_vm1 }
 0x512   : > { %4942 = vmin.xlane.f32.xlu0 %v13532_v50  ;;  %18221 = vst [vmem:[#allocation88_spill] sm:$0xff] %v13583_v57  ;;  %v4260_v45 = vrot.slane %v13289_v51, 4  ;;  %v4239_v23 = vsel %vm18047_vm1, %v4219_v41, %v4238_v40  ;;  %v13600_v14 = vperm.slane %v4109_v36, %v10948_v29  ;;  %v4284_v38 = vrot.slane %v13503_v8, 4  ;;  %v13614_v40 = vpop.permute.xlu0 %3574  ;;  %vm18230_vm11 = vmmov %vm18047_vm1 }
 0x513   : > { %4972 = vmin.xlane.f32.xlu2 %v13542_v16  ;;  %v13603_v62 = vcvt.s32.f32 %v5164_v53  ;;  %v5044_v4 = vshra.s32 %v13583_v57, 16  ;;  %v4310_v20 = vrot.slane %v13575_v0, 4  ;;  %v13611_v27 = vperm.slane %v4263_v42, %v10893_v30 }
 0x514   : > { %v4272_v51 = vrot.slane %v13380_v1, 4  ;;  %v13616_v36 = vcvt.s32.f32 %v5014_v49  ;;  %v4285_v53 = vsel %vm18225_vm13, %v4284_v38, %v13430_v52  ;;  %v13622_v57 = vsel %vm2046_vm2, %v4239_v23, 2147483647  ;;  %vm18233_vm13 = vmmov %vm18047_vm1 }
 0x515   : > { %18224 = vst [vmem:[#allocation89_spill] sm:$0xff] %v13603_v62  ;;  %v4236_v44 = vrot.slane %v4219_v41, 4  ;;  %v4249_v42 = vsel %vm18228_vm12, %v4248_v54, %v12687_v26  ;;  %v4261_v16 = vsel %vm18229_vm14, %v4260_v45, %v13339_v48  ;;  %v4132_v38 = vrot.slane %v13487_v59, 4  ;;  %vm18236_vm12 = vmmov %vm18047_vm1 }
 0x516   : > { %5002 = vmin.xlane.f32.xlu1 %v13569_v37  ;;  %v13607_v37 = vsel %vm2046_vm2, %v4123_v32, 2147483647  ;;  %18226 = vst [vmem:[#allocation90_spill] sm:$0xff] %v13622_v57  ;;  %v4241_v32 = vsel %vm18227_vm15, %v4240_v35, %v13567_v15  ;;  %v4223_v23 = vsel %vm18230_vm11, %v13473_v33, %v4222_v47  ;;  %v13636_v50 = vcvt.s32.f32 %v5044_v4  ;;  %vm18234_vm15 = vmmov %vm18047_vm1  ;;  %v13658_v4 = vpop.permute.xlu2 %3558 }
 0x517   : > { %v4984_v49 = vshra.s32 %v13607_v37, 16  ;;  %v4130_v41 = vrot.slane %v13594_v39, 4  ;;  %v13640_v26 = vperm.slane %v4285_v53, %v10893_v30  ;;  %v4273_v48 = vsel %vm18047_vm1, %v4272_v51, %v13428_v11  ;;  %v13661_v51 = vpop.permute.xlu1 %3566  ;;  %vm18237_vm14 = vmmov %vm18047_vm1 }
 0x518   : > { %18231 = vst [vmem:[#allocation91_spill] sm:$0xff] %v13636_v50  ;;  %v5059_v35 = vshra.s32 %v13622_v57, 16  ;;  %v13646_v54 = vsel %vm2046_vm2, %v4241_v32, 2147483647  ;;  %v13649_v59 = vperm.slane %v4249_v42, %v10893_v30  ;;  %v13652_v33 = vperm.slane %v4261_v16, %v10893_v30  ;;  %vm18238_vm11 = vmmov %vm18047_vm1 }
 0x519   : > { %18232 = vst [vmem:[#allocation92_spill] sm:$0xff] %v13646_v54  ;;  %v4311_v47 = vsel %vm18233_vm13, %v13611_v27, %v4310_v20  ;;  %v4237_v45 = vsel %vm18234_vm15, %v4236_v44, %v4195_v5  ;;  %v4372_v11 = vrot.slane %v13579_v3, 4  ;;  %v13663_v53 = vcvt.s32.f32 %v4984_v49  ;;  %vm18242_vm13 = vmmov %vm18047_vm1 }
 0x51a   : > { %5167 = vmin.xlane.f32.xlu0 %v13603_v62  ;;  %v4396_v62 = vrot.slane %v13614_v40, 4  ;;  %v4131_v32 = vsel %vm18236_vm12, %v13600_v14, %v4130_v41  ;;  %v4231_v16 = vperm.slane %v4223_v23, %v10948_v29  ;;  %v4275_v20 = vsel %vm18237_vm14, %v13380_v1, %v4274_v2  ;;  %vm18243_vm15 = vmmov %vm18047_vm1 }
 0x51b   : > { %5017 = vmin.xlane.f32.xlu2 %v13616_v36  ;;  %18235 = vst [vmem:[#allocation93_spill] sm:$0xff] %v13663_v53  ;;  %v13671_v42 = vperm.slane %v4273_v48, %v10893_v30  ;;  %v5089_v5 = vshra.s32 %v13646_v54, 16  ;;  %v4286_v57 = vrot.slane %v13430_v52, 4  ;;  %v4320_v49 = vrot.slane %v13640_v26, 4  ;;  %vm18245_vm12 = vmmov %vm18047_vm1 }
 0x51c   : > { %v4397_v44 = vsel %vm18238_vm11, %v4396_v62, %v13658_v4  ;;  %v13681_v41 = vsel %vm2046_vm2, %v4237_v45, 2147483647  ;;  %v4384_v23 = vrot.slane %v13661_v51, 4  ;;  %v13686_v1 = vsel %vm2046_vm2, %v4131_v32, 2147483647  ;;  %vm18247_vm14 = vmmov %vm18047_vm1 }
 0x51d   : > { %18240 = vst [vmem:[#allocation95_spill] sm:$0xff] %v13681_v41  ;;  %v4133_v2 = vsel %vm18047_vm1, %v4132_v38, %v13477_v46  ;;  %v4128_v62 = vrot.slane %v13600_v14, 4  ;;  %v13692_v52 = vperm.slane %v4275_v20, %v10893_v30  ;;  %v4373_v48 = vsel %vm18242_vm13, %v4372_v11, %v13457_v10  ;;  %vm18248_vm11 = vmmov %vm18047_vm1 }
 0x51e   : > { %5047 = vmin.xlane.f32.xlu1 %v13636_v50  ;;  %v13678_v50 = vcvt.s32.f32 %v5059_v35  ;;  %18241 = vst [vmem:[#allocation96_spill] sm:$0xff] %v13686_v1  ;;  %v13697_v35 = vperm.slane %v4397_v44, %v10893_v30  ;;  %v4244_v45 = vrot.slane %v4231_v16, 4  ;;  %v4321_v32 = vsel %vm18243_vm15, %v4320_v49, %v13671_v42  ;;  %vm18249_vm13 = vmmov %vm18047_vm1 }
 0x51f   : > { %v13702_v54 = vcvt.s32.f32 %v5089_v5  ;;  %v5029_v46 = vshra.s32 %v13681_v41, 16  ;;  %v4207_v14 = vperm.slane %v13587_v13, %v10948_v29  ;;  %v4360_v38 = vrot.slane %v13577_v24, 4  ;;  %vm18253_vm15 = vmmov %vm18047_vm1 }
 0x520   : > { %18239 = vst [vmem:[#allocation94_spill] sm:$0xff] %v13678_v50  ;;  %v4287_v11 = vsel %vm18245_vm12, %v13503_v8, %v4286_v57  ;;  %v5104_v20 = vshra.s32 %v13686_v1, 16  ;;  %v13712_v44 = vsel %vm2046_vm2, %v4133_v2, 2147483647  ;;  %v13716_v5 = vperm.slane %v4373_v48, %v10893_v30  ;;  %vm18254_vm12 = vmmov %vm18047_vm1 }
 0x521   : > { %18244 = vst [vmem:[#allocation97_spill] sm:$0xff] %v13702_v54  ;;  %v4385_v49 = vsel %vm18247_vm14, %v4384_v23, %v13530_v58  ;;  %v4129_v13 = vsel %vm18248_vm11, %v4128_v62, %v13594_v39  ;;  %v4334_v8 = vrot.slane %v13692_v52, 4  ;;  %v4432_v57 = vrot.slane %v13697_v35, 4  ;;  %vm18255_vm14 = vmmov %vm18047_vm1 }
 0x522   : > { %4987 = vmin.xlane.f32.xlu0 %v13663_v53  ;;  %18246 = vst [vmem:[#allocation98_spill] sm:$0xff] %v13712_v44  ;;  %v4245_v2 = vsel %vm18047_vm1, %v4244_v45, %v4207_v14  ;;  %v13727_v1 = vperm.slane %v4321_v32, %v10948_v29  ;;  %v13730_v48 = vperm.slane %v4287_v11, %v10893_v30  ;;  %v13732_v41 = vcvt.s32.f32 %v5029_v46  ;;  %vm18256_vm11 = vmmov %vm18047_vm1 }
 0x523   : > { %5062 = vmin.xlane.f32.xlu2 %v13678_v50  ;;  %v4296_v50 = vrot.slane %v13652_v33, 4  ;;  %v5134_v23 = vshra.s32 %v13712_v44, 16  ;;  %v4361_v39 = vsel %vm18249_vm13, %v4360_v38, %v13505_v28  ;;  %v13738_v62 = vperm.slane %v4385_v49, %v10893_v30  ;;  %vm18259_vm13 = vmmov %vm18047_vm1 }
 0x524   : > { %v13740_v53 = vcvt.s32.f32 %v5104_v20  ;;  %v13743_v45 = vsel %vm2046_vm2, %v4129_v13, 2147483647  ;;  %v4408_v32 = vrot.slane %v13716_v5, 4  ;;  %v13748_v46 = vsel %vm2046_vm2, %v4245_v2, 2147483647 }
 0x525   : > { %18251 = vst [vmem:[#allocation100_spill] sm:$0xff] %v13743_v45  ;;  %v4297_v38 = vsel %vm18254_vm12, %v4296_v50, %v13649_v59  ;;  %v13754_v11 = vperm.slane %v4311_v47, %v10948_v29  ;;  %v4335_v20 = vsel %vm18255_vm14, %v13730_v48, %v4334_v8  ;;  %v4344_v49 = vrot.slane %v13727_v1, 4  ;;  %vm18261_vm12 = vmmov %vm18047_vm1 }
 0x526   : > { %5092 = vmin.xlane.f32.xlu1 %v13702_v54  ;;  %v4246_v54 = vrot.slane %v4207_v14, 4  ;;  %18250 = vst [vmem:[#allocation99_spill] sm:$0xff] %v13740_v53  ;;  %v4433_v13 = vsel %vm18256_vm11, %v4432_v57, %v13738_v62  ;;  %v13763_v2 = vperm.slane %v4361_v39, %v10893_v30  ;;  %v5074_v50 = vshra.s32 %v13743_v45, 16  ;;  %vm18264_vm14 = vmmov %vm18047_vm1 }
 0x527   : > { %18252 = vst [vmem:[#allocation101_spill] sm:$0xff] %v13748_v46  ;;  %v4242_v47 = vrot.slane %v13567_v15, 4  ;;  %v4303_v44 = vperm.slane %v4297_v38, %v10948_v29  ;;  %v4439_v39 = vperm.slane %v4433_v13, %v10948_v29  ;;  %v4374_v45 = vrot.slane %v13457_v10, 4  ;;  %vm18265_vm11 = vmmov %vm18047_vm1 }
 0x528   : > { %v4247_v14 = vsel %vm18253_vm15, %v4231_v16, %v4246_v54  ;;  %v13765_v54 = vcvt.s32.f32 %v5134_v23  ;;  %v5149_v16 = vshra.s32 %v13748_v46, 16  ;;  %v13780_v23 = vperm.slane %v4335_v20, %v10948_v29  ;;  %vm18260_vm15 = vmmov %vm18047_vm1 }
 0x529   : > { %v13771_v8 = vsel %vm2046_vm2, %v4247_v14, 2147483647  ;;  %v4243_v57 = vsel %vm18047_vm1, %v13558_v43, %v4242_v47  ;;  %v4409_v15 = vsel %vm18259_vm13, %v4408_v32, %v13763_v2  ;;  %v4322_v14 = vrot.slane %v13671_v42, 4  ;;  %vm18268_vm13 = vmmov %vm18047_vm1 }
 0x52a   : > { %5032 = vmin.xlane.f32.xlu0 %v13732_v41  ;;  %18257 = vst [vmem:[#allocation102_spill] sm:$0xff] %v13765_v54  ;;  %v4398_v46 = vrot.slane %v13658_v4, 4  ;;  %v4345_v38 = vsel %vm18260_vm15, %v4344_v49, %v4303_v44  ;;  %v5179_v43 = vshra.s32 %v13771_v8, 16  ;;  %v4358_v20 = vrot.slane %v13754_v11, 4  ;;  %vm18269_vm15 = vmmov %vm18047_vm1 }
 0x52b   : > { %5107 = vmin.xlane.f32.xlu2 %v13740_v53  ;;  %18258 = vst [vmem:[#allocation103_spill] sm:$0xff] %v13771_v8  ;;  %v13797_v13 = vcvt.s32.f32 %v5149_v16  ;;  %v13800_v42 = vsel %vm2046_vm2, %v4243_v57, 2147483647  ;;  %v4415_v4 = vperm.slane %v4409_v15, %v10948_v29  ;;  %v4298_v10 = vrot.slane %v13649_v59, 4 }
 0x52c   : > { %v4399_v47 = vsel %vm18261_vm12, %v13614_v40, %v4398_v46  ;;  %18262 = vst [vmem:[#allocation104_spill] sm:$0xff] %v13800_v42  ;;  %v13806_v49 = vsel %vm2046_vm2, %v4345_v38, 2147483647  ;;  %v4456_v40 = vrot.slane %v4439_v39, 4  ;;  %v4375_v46 = vsel %vm18265_vm11, %v13579_v3, %v4374_v45  ;;  %vm18270_vm12 = vmmov %vm18047_vm1 }
 0x52d   : > { %18263 = vst [vmem:[#allocation105_spill] sm:$0xff] %v13806_v49  ;;  %v4434_v16 = vrot.slane %v13738_v62, 4  ;;  %v4323_v57 = vsel %vm18047_vm1, %v13640_v26, %v4322_v14  ;;  %v4386_v59 = vrot.slane %v13530_v58, 4  ;;  %v13818_v15 = vperm.slane %v4399_v47, %v10893_v30  ;;  %vm18272_vm11 = vmmov %vm18047_vm1 }
 0x52e   : > { %v13774_v53 = vpop.xlane.xlu2 %4477  ;;  %5137 = vmin.xlane.f32.xlu1 %v13765_v54  ;;  %v13789_v54 = vcvt.s32.f32 %v5074_v50  ;;  %v4359_v50 = vsel %vm18264_vm14, %v13780_v23, %v4358_v20  ;;  %v13820_v38 = vcvt.s32.f32 %v5179_v43  ;;  %v5119_v20 = vshra.s32 %v13800_v42, 16  ;;  %vm18271_vm14 = vmmov %vm18047_vm1 }
 0x52f   : > { %v5194_v3 = vshra.s32 %v13806_v49, 16  ;;  %v13827_v62 = vsel %vm2046_vm2, %v4359_v50, 2147483647  ;;  %v4458_v45 = vrot.slane %v4415_v4, 4  ;;  %v4387_v26 = vsel %vm18268_vm13, %v13661_v51, %v4386_v59  ;;  %vm18277_vm13 = vmmov %vm18047_vm1 }
 0x530   : > { %18266 = vst [vmem:[#allocation106_spill] sm:$0xff] %v13820_v38  ;;  %v4457_v58 = vsel %vm18269_vm15, %v4456_v40, %v4415_v4  ;;  %v4299_v43 = vsel %vm18270_vm12, %v13652_v33, %v4298_v10  ;;  %v4331_v47 = vperm.slane %v4323_v57, %v10948_v29  ;;  %v4362_v49 = vrot.slane %v13505_v28, 4  ;;  %vm18278_vm15 = vmmov %vm18047_vm1 }
 0x531   : > { %v13795_v32 = vpop.xlane.xlu1 %4687  ;;  %18267 = vst [vmem:[#allocation107_spill] sm:$0xff] %v13827_v62  ;;  %v13840_v50 = vperm.slane %v4375_v46, %v10893_v30  ;;  %v4435_v42 = vsel %vm18271_vm14, %v13697_v35, %v4434_v16  ;;  %v4459_v51 = vsel %vm18272_vm11, %v4439_v39, %v4458_v45  ;;  %v4444_v59 = vrot.slane %v13818_v15, 4  ;;  %vm18281_vm12 = vmmov %vm18047_vm1 }
 0x532   : > { %5077 = vmin.xlane.f32.xlu0 %v13789_v54  ;;  %v5404_v4 = vshra.s32 %v13827_v62, 16  ;;  %v4346_v40 = vrot.slane %v4303_v44, 4  ;;  %v13850_v33 = vperm.slane %v4387_v26, %v10893_v30  ;;  %v13854_v28 = vcvt.s32.f32 %v5194_v3  ;;  %vm18282_vm14 = vmmov %vm18047_vm1 }
 0x533   : > { %5152 = vmin.xlane.f32.xlu2 %v13797_v13  ;;  %v13857_v46 = vsel %vm2046_vm2, %v4457_v58, 2147483647  ;;  %v4307_v35 = vperm.slane %v4299_v43, %v10948_v29  ;;  %v13862_v39 = vsel %vm2046_vm2, %v4459_v51, 2147483647  ;;  %v4348_v16 = vrot.slane %v4331_v47, 4  ;;  %vm18283_vm11 = vmmov %vm18047_vm1 }
 0x534   : > { %18274 = vst [vmem:[#allocation109_spill] sm:$0xff] %v13854_v28  ;;  %v4347_v44 = vsel %vm18047_vm1, %v13727_v1, %v4346_v40  ;;  %v4443_v57 = vperm.slane %v4435_v42, %v10948_v29  ;;  %v4410_v3 = vrot.slane %v13763_v2, 4  ;;  %v4363_v45 = vsel %vm18277_vm13, %v13577_v24, %v4362_v49  ;;  %vm18287_vm13 = vmmov %vm18047_vm1 }
 0x535   : > { %v13823_v8 = vpop.xlane.xlu0 %4492  ;;  %18275 = vst [vmem:[#allocation110_spill] sm:$0xff] %v13857_v46  ;;  %v4445_v26 = vsel %vm18278_vm15, %v4444_v59, %v13850_v33  ;;  %v13874_v58 = vcvt.s32.f32 %v5404_v4  ;;  %v5209_v43 = vshra.s32 %v13857_v46, 16  ;;  %v5239_v42 = vshra.s32 %v13862_v39, 16  ;;  %vm18289_vm15 = vmmov %vm18047_vm1 }
 0x536   : > { %v13831_v14 = vpop.xlane.xlu2 %4522  ;;  %5182 = vmin.xlane.f32.xlu1 %v13820_v38  ;;  %v13846_v38 = vcvt.s32.f32 %v5119_v20  ;;  %18276 = vst [vmem:[#allocation111_spill] sm:$0xff] %v13862_v39  ;;  %v4332_v20 = vrot.slane %v13730_v48, 4  ;;  %v13881_v48 = vsel %vm2046_vm2, %v4347_v44, 2147483647  ;;  %v4350_v2 = vrot.slane %v4307_v35, 4 }
 0x537   : > { %18279 = vst [vmem:[#allocation112_spill] sm:$0xff] %v13874_v58  ;;  %v4411_v51 = vsel %vm18281_vm12, %v13716_v5, %v4410_v3  ;;  %v4420_v24 = vrot.slane %v13840_v50, 4  ;;  %v4349_v59 = vsel %vm18282_vm14, %v4348_v16, %v4307_v35  ;;  %v4460_v4 = vrot.slane %v4443_v57, 4  ;;  %vm18291_vm12 = vmmov %vm18047_vm1 }
 0x538   : > { %18273 = vst [vmem:[#allocation108_spill] sm:$0xff] %v13846_v38  ;;  %v4333_v40 = vsel %vm18283_vm11, %v4332_v20, %v13692_v52  ;;  %v13893_v39 = vperm.slane %v4445_v26, %v10948_v29  ;;  %v4351_v44 = vsel %vm18047_vm1, %v4331_v47, %v4350_v2  ;;  %v4371_v46 = vperm.slane %v4363_v45, %v10893_v30  ;;  %vm18293_vm14 = vmmov %vm18047_vm1 }
 0x539   : > { %v13852_v10 = vpop.xlane.xlu1 %4507  ;;  %18280 = vst [vmem:[#allocation113_spill] sm:$0xff] %v13881_v48  ;;  %v13897_v5 = vcvt.s32.f32 %v5209_v43  ;;  %v5224_v3 = vshra.s32 %v13881_v48, 16  ;;  %v4419_v62 = vperm.slane %v4411_v51, %v10948_v29  ;;  %v13904_v16 = vcvt.s32.f32 %v5239_v42  ;;  %vm18294_vm11 = vmmov %vm18047_vm1 }
 0x53a   : > { %5122 = vmin.xlane.f32.xlu0 %v13846_v38  ;;  %v13907_v52 = vsel %vm2046_vm2, %v4349_v59, 2147483647  ;;  %v4339_v20 = vperm.slane %v4333_v40, %v10948_v29  ;;  %v4421_v47 = vsel %vm18287_vm13, %v4420_v24, %v4371_v46  ;;  %v13913_v45 = vsel %vm2046_vm2, %v4351_v44, 2147483647  ;;  %vm18299_vm13 = vmmov %vm18047_vm1 }
 0x53b   : > { %5197 = vmin.xlane.f32.xlu2 %v13854_v28  ;;  %18284 = vst [vmem:[#allocation114_spill] sm:$0xff] %v13897_v5  ;;  %v4461_v26 = vsel %vm18289_vm15, %v4460_v4, %v4419_v62  ;;  %v13918_v43 = vcvt.s32.f32 %v5224_v3  ;;  %v5254_v42 = vshra.s32 %v13907_v52, 16  ;;  %v4462_v2 = vrot.slane %v4419_v62, 4  ;;  %vm18302_vm15 = vmmov %vm18047_vm1 }
 0x53c   : > { %18285 = vst [vmem:[#allocation115_spill] sm:$0xff] %v13904_v16  ;;  %v5284_v59 = vshra.s32 %v13913_v45, 16  ;;  %v13927_v40 = vsel %vm2046_vm2, %v4461_v26, 2147483647  ;;  %v4427_v4 = vperm.slane %v4421_v47, %v10948_v29  ;;  %v4352_v30 = vrot.slane %v4339_v20, 4 }
 0x53d   : > { %v13877_v1 = vpop.xlane.xlu0 %4537  ;;  %18286 = vst [vmem:[#allocation116_spill] sm:$0xff] %v13907_v52  ;;  %v4463_v3 = vsel %vm18293_vm14, %v4443_v57, %v4462_v2  ;;  %v4446_v62 = vrot.slane %v13850_v33, 4  ;;  %v5269_v52 = vshra.s32 %v13927_v40, 16  ;;  %v4422_v2 = vrot.slane %v4371_v46, 4  ;;  %vm18304_vm14 = vmmov %vm18047_vm1 }
 0x53e   : > { %v13886_v49 = vpop.xlane.xlu2 %4567  ;;  %5407 = vmin.xlane.f32.xlu1 %v13874_v58  ;;  %v4308_v58 = vrot.slane %v13611_v27, 4  ;;  %18288 = vst [vmem:[#allocation117_spill] sm:$0xff] %v13913_v45  ;;  %v4464_v27 = vrot.slane %v13893_v39, 4  ;;  %v13942_v47 = vcvt.s32.f32 %v5284_v59  ;;  %v13945_v45 = vsel %vm2046_vm2, %v4463_v3, 2147483647 }
 0x53f   : > { %18290 = vst [vmem:[#allocation118_spill] sm:$0xff] %v13918_v43  ;;  %v5299_v59 = vshra.s32 %v13945_v45, 16 }
 0x540   : > { %v4309_v51 = vsel %vm18291_vm12, %v4308_v58, %v13575_v0  ;;  %18292 = vst [vmem:[#allocation119_spill] sm:$0xff] %v13927_v40  ;;  %v4465_v0 = vsel %vm18294_vm11, %v4464_v27, %v4427_v4  ;;  %v13936_v58 = vcvt.s32.f32 %v5254_v42  ;;  %v4447_v27 = vsel %vm18299_vm13, %v13818_v15, %v4446_v62  ;;  %vm18303_vm12 = vmmov %vm18047_vm1 }
 0x541   : > { %v13902_v35 = vpop.xlane.xlu1 %4552  ;;  %v4315_v26 = vperm.slane %v4309_v51, %v10948_v29  ;;  %18296 = vst [vmem:[#allocation121_spill] sm:$0xff] %v13942_v47  ;;  %v13949_v57 = vsel %vm2046_vm2, %v4465_v0, 2147483647  ;;  %v4356_v42 = vrot.slane %v13780_v23, 4  ;;  %v13956_v51 = vcvt.s32.f32 %v5269_v52  ;;  %vm18309_vm11 = vmmov %vm18047_vm1 }
 0x542   : > { %5212 = vmin.xlane.f32.xlu0 %v13897_v5  ;;  %18295 = vst [vmem:[#allocation120_spill] sm:$0xff] %v13936_v58  ;;  %v5329_v0 = vshra.s32 %v13949_v57, 16  ;;  %v4455_v15 = vperm.slane %v4447_v27, %v10948_v29  ;;  %v13974_v52 = vcvt.s32.f32 %v5299_v59  ;;  %vm18312_vm13 = vmmov %vm18047_vm1 }
 0x543   : > { %5242 = vmin.xlane.f32.xlu2 %v13904_v16  ;;  %18297 = vst [vmem:[#allocation122_spill] sm:$0xff] %v13945_v45  ;;  %v4353_v33 = vsel %vm18047_vm1, %v4352_v30, %v4315_v26  ;;  %v4354_v3 = vrot.slane %v4315_v26, 4  ;;  %v4423_v30 = vsel %vm18302_vm15, %v13840_v50, %v4422_v2  ;;  %v4357_v46 = vsel %vm18304_vm14, %v4356_v42, %v13754_v11 }
 0x544   : > { %18298 = vst [vmem:[#allocation123_spill] sm:$0xff] %v13949_v57  ;;  %v4431_v57 = vperm.slane %v4423_v30, %v10948_v29  ;;  %v13980_v50 = vcvt.s32.f32 %v5329_v0  ;;  %v4468_v42 = vrot.slane %v4455_v15, 4  ;;  %vm4479_vm15 = vcmp.eq.f32.partialorder %v12877_v55, %v13774_v53 }
 0x545   : > { %v13923_v24 = vpop.xlane.xlu0 %4582  ;;  %18300 = vst [vmem:[#allocation124_spill] sm:$0xff] %v13956_v51  ;;  %v4355_v23 = vsel %vm18303_vm12, %v4339_v20, %v4354_v3  ;;  %v13987_v20 = vsel %vm2046_vm2, %v4357_v46, 2147483647  ;;  %vm4689_vm12 = vcmp.eq.f32.partialorder %v12903_v61, %v13795_v32  ;;  %vm4494_vm14 = vcmp.eq.f32.partialorder %v12926_v21, %v13823_v8 }
 0x546   : > { %v13930_v44 = vpop.xlane.xlu2 %4612  ;;  %5227 = vmin.xlane.f32.xlu1 %v13918_v43  ;;  %18305 = vst [vmem:[#allocation126_spill] sm:$0xff] %v13974_v52  ;;  %v13983_v27 = vsel %vm2046_vm2, %v4355_v23, 2147483647  ;;  %v5374_v3 = vshra.s32 %v13987_v20, 16  ;;  %v4470_v30 = vrot.slane %v4431_v57, 4  ;;  %v4518_v55 = vand.u32 65535, %v12889_v34 }
 0x547   : > { %18306 = vst [vmem:[#allocation127_spill] sm:$0xff] %v13980_v50  ;;  %v5344_v2 = vshra.s32 %v13983_v27, 16  ;;  %v4533_v61 = vand.u32 65535, %v12898_v63  ;;  %v18324_v34 = vld [vmem:[#allocation34_spill] sm:$0xff] }
 0x548   : > { %18307 = vst [vmem:[#allocation128_spill] sm:$0xff] %v13983_v27  ;;  %v4471_v46 = vsel %vm18312_vm13, %v4455_v15, %v4470_v30  ;;  %v4473_v30 = vand.u32 65535, %v12842_v22 }
 0x549   : > { %v13940_v16 = vpop.xlane.xlu1 %4597  ;;  %18308 = vst [vmem:[#allocation129_spill] sm:$0xff] %v13987_v20 }
 0x54a   : > { %5257 = vmin.xlane.f32.xlu0 %v13936_v58  ;;  %v13963_v58 = vsel %vm2046_vm2, %v4353_v33, 2147483647  ;;  %v4466_v33 = vrot.slane %v4427_v4, 4 }
 0x54b   : > { %5287 = vmin.xlane.f32.xlu2 %v13942_v47  ;;  %18301 = vst [vmem:[#allocation125_spill] sm:$0xff] %v13963_v58  ;;  %v5314_v26 = vshra.s32 %v13963_v58, 16 }
 0x54c   : > { %v4467_v11 = vsel %vm18309_vm11, %v13893_v39, %v4466_v33  ;;  %v4469_v39 = vsel %vm18047_vm1, %v4468_v42, %v4431_v57  ;;  %vm4524_vm11 = vcmp.eq.f32.partialorder %v12935_v12, %v13831_v14  ;;  %vm4509_vm1 = vcmp.eq.f32.partialorder %v18324_v34, %v13852_v10  ;;  %v18326_v12 = vld [vmem:[#allocation33_spill] sm:$0xff]  ;;  %v18330_v34 = vld [vmem:[#allocation43_spill] sm:$0xff] }
 0x54d   : > { %v13959_v40 = vpop.xlane.xlu0 %4627  ;;  %v13992_v4 = vcvt.s32.f32 %v5314_v26  ;;  %v13999_v0 = vsel %vm2046_vm2, %v4467_v11, 2147483647  ;;  %v14006_v26 = vcvt.s32.f32 %v5344_v2  ;;  %v14014_v11 = vsel %vm2046_vm2, %v4469_v39, 2147483647 }
 0x54e   : > { %v13968_v62 = vpop.xlane.xlu2 %4657  ;;  %5272 = vmin.xlane.f32.xlu1 %v13956_v51  ;;  %18311 = vst [vmem:[#allocation131_spill] sm:$0xff] %v13999_v0  ;;  %v5359_v33 = vshra.s32 %v13999_v0, 16  ;;  %v5389_v15 = vshra.s32 %v14014_v11, 16 }
 0x54f   : > { %18310 = vst [vmem:[#allocation130_spill] sm:$0xff] %v13992_v4 }
 0x550   : > { %18313 = vst [vmem:[#allocation132_spill] sm:$0xff] %v14006_v26  ;;  %v14021_v57 = vcvt.s32.f32 %v5359_v33  ;;  %v14031_v39 = vcvt.s32.f32 %v5389_v15  ;;  %v4475_v33 = vcvt.s32.f32 %v4473_v30 }
 0x551   : > { %v13978_v47 = vpop.xlane.xlu1 %4642  ;;  %18315 = vst [vmem:[#allocation134_spill] sm:$0xff] %v14014_v11 }
 0x552   : > { %5302 = vmin.xlane.f32.xlu0 %v13974_v52  ;;  %v14018_v52 = vsel %vm2046_vm2, %v4471_v46, 2147483647  ;;  %18317 = vst [vmem:[#allocation136_spill] sm:$0xff] %v14021_v57  ;;  %v4480_v22 = vsel %vm4479_vm15, %v4475_v33, inf  ;;  %v4520_v33 = vcvt.s32.f32 %v4518_v55  ;;  %v4535_v55 = vcvt.s32.f32 %v4533_v61  ;;  %v18332_v61 = vld [vmem:[#allocation45_spill] sm:$0xff] }
 0x553   : > { %5332 = vmin.xlane.f32.xlu2 %v13980_v50  ;;  %v14011_v50 = vcvt.s32.f32 %v5374_v3  ;;  %18316 = vst [vmem:[#allocation135_spill] sm:$0xff] %v14018_v52  ;;  %v5419_v2 = vshra.s32 %v14018_v52, 16 }
 0x554   : > { %18318 = vst [vmem:[#allocation137_spill] sm:$0xff] %v14031_v39  ;;  %v4525_v21 = vsel %vm4524_vm11, %v4520_v33, inf }
 0x555   : > { %v13995_v59 = vpop.xlane.xlu0 %4672  ;;  %18314 = vst [vmem:[#allocation133_spill] sm:$0xff] %v14011_v50 }
 0x556   : > { %v14001_v23 = vpop.xlane.xlu2 %4702  ;;  %5317 = vmin.xlane.f32.xlu1 %v13992_v4 }
 0x559   : > { %v14009_v29 = vpop.xlane.xlu1 %4732 }
 0x55a   : > { %5347 = vmin.xlane.f32.xlu0 %v14006_v26  ;;  %v14035_v26 = vcvt.s32.f32 %v5419_v2 }
 0x55b   : > { %5377 = vmin.xlane.f32.xlu2 %v14011_v50  ;;  %v4683_v50 = vand.u32 65535, %v12852_v18 }
 0x55c   : > { %18320 = vst [vmem:[#allocation139_spill] sm:$0xff] %v14035_v26 }
 0x55d   : > { %v14024_v42 = vpop.xlane.xlu0 %4717  ;;  %v4685_v2 = vcvt.s32.f32 %v4683_v50 }
 0x55e   : > { %v14027_v3 = vpop.xlane.xlu2 %4927  ;;  %5362 = vmin.xlane.f32.xlu1 %v14021_v57  ;;  %v4488_v57 = vand.u32 65535, %v12880_v31 }
 0x560   : > { %v4490_v30 = vcvt.s32.f32 %v4488_v57  ;;  %v18325_v57 = vld [vmem:[#allocation38_spill] sm:$0xff] }
 0x561   : > { %v14033_v46 = vpop.xlane.xlu1 %4777  ;;  %vm4539_vm13 = vcmp.eq.f32.partialorder %v18325_v57, %v13877_v1 }
 0x562   : > { %18319 = vst [vmem:[#allocation138_spill] sm:$0xff] %v14033_v46  ;;  %5392 = vmin.xlane.f32.xlu0 %v14031_v39  ;;  %v4495_v31 = vsel %vm4494_vm14, %v4490_v30, inf  ;;  %v4540_v63 = vsel %vm4539_vm13, %v4535_v55, inf  ;;  %vm4584_vm14 = vcmp.eq.f32.partialorder %v13051_v60, %v13923_v24  ;;  %vm4629_vm13 = vcmp.eq.f32.partialorder %v12981_v7, %v13959_v40 }
 0x563   : > { %5422 = vmin.xlane.f32.xlu2 %v14035_v26  ;;  %v4690_v26 = vsel %vm4689_vm12, %v4685_v2, inf  ;;  %v4563_v2 = vand.u32 65535, %v18326_v12  ;;  %vm4554_vm12 = vcmp.eq.f32.partialorder %v18332_v61, %v13902_v35  ;;  %v18333_v12 = vld [vmem:[#allocation44_spill] sm:$0xff] }
 0x564   : > { %v4608_v55 = vand.u32 65535, %v18333_v12  ;;  %v18336_v61 = vld [vmem:[#allocation36_spill] sm:$0xff]  ;;  %v18338_v12 = vld [vmem:[#allocation37_spill] sm:$0xff] }
 0x565   : > { %v14043_v4 = vpop.xlane.xlu0 %4762  ;;  %v4565_v33 = vcvt.s32.f32 %v4563_v2 }
 0x566   : > { %18321 = vst [vmem:[#allocation140_spill] sm:$0xff] %v14043_v4  ;;  %v14045_v15 = vpop.xlane.xlu2 %4747  ;;  %4481 = vmin.xlane.f32.xlu1 %v4480_v22  ;;  %v4503_v22 = vand.u32 65535, %v12868_v17 }
 0x569   : > { %v14052_v18 = vpop.xlane.xlu1 %4822 }
 0x56a   : > { %18322 = vst [vmem:[#allocation141_spill] sm:$0xff] %v14052_v18  ;;  %4691 = vmin.xlane.f32.xlu0 %v4690_v26  ;;  %v4505_v26 = vcvt.s32.f32 %v4503_v22  ;;  %v4578_v22 = vand.u32 65535, %v18330_v34  ;;  %v18335_v34 = vld [vmem:[#allocation35_spill] sm:$0xff] }
 0x56b   : > { %4496 = vmin.xlane.f32.xlu2 %v4495_v31  ;;  %v18328_v31 = vld [vmem:[#allocation39_spill] sm:$0xff] }
 0x56c   : > { %v4510_v30 = vsel %vm4509_vm1, %v4505_v26, inf  ;;  %vm4569_vm15 = vcmp.eq.f32.partialorder %v18328_v31, %v13886_v49  ;;  %v4580_v2 = vcvt.s32.f32 %v4578_v22  ;;  %v18337_v22 = vld [vmem:[#allocation41_spill] sm:$0xff] }
 0x56d   : > { %v14058_v50 = vpop.xlane.xlu0 %4807  ;;  %v4570_v57 = vsel %vm4569_vm15, %v4565_v33, inf  ;;  %v18334_v33 = vld [vmem:[#allocation46_spill] sm:$0xff]  ;;  %vm4599_vm1 = vcmp.eq.f32.partialorder %v18337_v22, %v13940_v16  ;;  %v18342_v22 = vld [vmem:[#allocation48_spill] sm:$0xff] }
 0x56e   : > { %18323 = vst [vmem:[#allocation142_spill] sm:$0xff] %v14058_v50  ;;  %v14060_v39 = vpop.xlane.xlu2 %4792  ;;  %4526 = vmin.xlane.f32.xlu1 %v4525_v21  ;;  %v18329_v21 = vld [vmem:[#allocation40_spill] sm:$0xff]  ;;  %v4585_v31 = vsel %vm4584_vm14, %v4580_v2, inf  ;;  %vm4614_vm11 = vcmp.eq.f32.partialorder %v18334_v33, %v13930_v44  ;;  %v4653_v2 = vand.u32 65535, %v18338_v12  ;;  %v18344_v12 = vld [vmem:[#allocation49_spill] sm:$0xff] }
 0x56f   : > { %v4548_v51 = vand.u32 65535, %v18329_v21  ;;  %v4610_v21 = vcvt.s32.f32 %v4608_v55 }
 0x571   : > { %v14067_v17 = vpop.xlane.xlu1 %4867  ;;  %v4550_v26 = vcvt.s32.f32 %v4548_v51  ;;  %v4623_v51 = vand.u32 65535, %v18336_v61  ;;  %v4615_v60 = vsel %vm4614_vm11, %v4610_v21, inf  ;;  %v18340_v21 = vld [vmem:[#allocation42_spill] sm:$0xff]  ;;  %v18341_v61 = vld [vmem:[#allocation47_spill] sm:$0xff] }
 0x572   : > { %18327 = vst [vmem:[#allocation34_spill] sm:$0xff] %v14067_v17  ;;  %4511 = vmin.xlane.f32.xlu0 %v4510_v30  ;;  %vm4659_vm15 = vcmp.eq.f32.partialorder %v18340_v21, %v13968_v62 }
 0x573   : > { %4541 = vmin.xlane.f32.xlu2 %v4540_v63  ;;  %v4555_v30 = vsel %vm4554_vm12, %v4550_v26, inf  ;;  %v4625_v55 = vcvt.s32.f32 %v4623_v51  ;;  %vm4644_vm12 = vcmp.eq.f32.partialorder %v13127_v6, %v13978_v47  ;;  %v18347_v6 = vld [vmem:[#allocation53_spill] sm:$0xff] }
 0x575   : > { %v14073_v11 = vpop.xlane.xlu0 %4852  ;;  %v4630_v33 = vsel %vm4629_vm13, %v4625_v55, inf  ;;  %v4698_v55 = vand.u32 65535, %v18344_v12  ;;  %v18349_v12 = vld [vmem:[#allocation57_spill] sm:$0xff] }
 0x576   : > { %18331 = vst [vmem:[#allocation38_spill] sm:$0xff] %v14073_v11  ;;  %v14075_v0 = vpop.xlane.xlu2 %4837  ;;  %4571 = vmin.xlane.f32.xlu1 %v4570_v57  ;;  %v4593_v57 = vand.u32 65535, %v18335_v34  ;;  %v4655_v34 = vcvt.s32.f32 %v4653_v2  ;;  %vm4719_vm13 = vcmp.eq.f32.partialorder %v18349_v12, %v14024_v42 }
 0x578   : > { %v4595_v26 = vcvt.s32.f32 %v4593_v57  ;;  %v4668_v57 = vand.u32 65535, %v18342_v22  ;;  %v4660_v7 = vsel %vm4659_vm15, %v4655_v34, inf  ;;  %v18345_v34 = vld [vmem:[#allocation52_spill] sm:$0xff]  ;;  %v18346_v22 = vld [vmem:[#allocation51_spill] sm:$0xff] }
 0x579   : > { %v14082_v63 = vpop.xlane.xlu1 %4912  ;;  %vm4704_vm11 = vcmp.eq.f32.partialorder %v18345_v34, %v14001_v23 }
 0x57a   : > { %4556 = vmin.xlane.f32.xlu0 %v4555_v30  ;;  %v4600_v30 = vsel %vm4599_vm1, %v4595_v26, inf  ;;  %v18343_v26 = vld [vmem:[#allocation50_spill] sm:$0xff]  ;;  %v4670_v2 = vcvt.s32.f32 %v4668_v57  ;;  %v18348_v57 = vld [vmem:[#allocation56_spill] sm:$0xff] }
 0x57b   : > { %4586 = vmin.xlane.f32.xlu2 %v4585_v31  ;;  %vm4674_vm14 = vcmp.eq.f32.partialorder %v18343_v26, %v13995_v59  ;;  %vm4734_vm1 = vcmp.eq.f32.partialorder %v18348_v57, %v14009_v29  ;;  %v18353_v57 = vld [vmem:[#allocation59_spill] sm:$0xff] }
 0x57c   : > { %v4675_v21 = vsel %vm4674_vm14, %v4670_v2, inf  ;;  %v18350_v2 = vld [vmem:[#allocation54_spill] sm:$0xff] }
 0x57d   : > { %v14088_v52 = vpop.xlane.xlu0 %4897 }
 0x57e   : > { %v14090_v45 = vpop.xlane.xlu2 %4882  ;;  %4616 = vmin.xlane.f32.xlu1 %v4615_v60  ;;  %v4638_v60 = vand.u32 65535, %v18341_v61  ;;  %v4700_v61 = vcvt.s32.f32 %v4698_v55 }
 0x580   : > { %v4640_v51 = vcvt.s32.f32 %v4638_v60  ;;  %v4713_v60 = vand.u32 65535, %v18347_v6  ;;  %v4705_v26 = vsel %vm4704_vm11, %v4700_v61, inf  ;;  %v18351_v61 = vld [vmem:[#allocation58_spill] sm:$0xff] }
 0x581   : > { %v14097_v31 = vpop.xlane.xlu1 %4957  ;;  %vm4929_vm15 = vcmp.eq.f32.partialorder %v18351_v61, %v14027_v3 }
 0x582   : > { %18339 = vst [vmem:[#allocation33_spill] sm:$0xff] %v14097_v31  ;;  %4601 = vmin.xlane.f32.xlu0 %v4600_v30  ;;  %v4645_v30 = vsel %vm4644_vm12, %v4640_v51, inf  ;;  %v4715_v55 = vcvt.s32.f32 %v4713_v60  ;;  %v18354_v60 = vld [vmem:[#allocation61_spill] sm:$0xff] }
 0x583   : > { %4631 = vmin.xlane.f32.xlu2 %v4630_v33  ;;  %vm4779_vm12 = vcmp.eq.f32.partialorder %v18354_v60, %v14033_v46  ;;  %v18359_v60 = vld [vmem:[#allocation63_spill] sm:$0xff] }
 0x585   : > { %v14103_v43 = vpop.xlane.xlu0 %4942 }
 0x586   : > { %v14105_v20 = vpop.xlane.xlu2 %4972  ;;  %4661 = vmin.xlane.f32.xlu1 %v4660_v7  ;;  %v4728_v7 = vand.u32 65535, %v18346_v22  ;;  %v4720_v22 = vsel %vm4719_vm13, %v4715_v55, inf  ;;  %v18356_v55 = vld [vmem:[#allocation60_spill] sm:$0xff]  ;;  %vm4809_vm13 = vcmp.eq.f32.partialorder %v13320_v25, %v14058_v50 }
 0x588   : > { %v4730_v51 = vcvt.s32.f32 %v4728_v7  ;;  %v4758_v7 = vand.u32 65535, %v18353_v57 }
 0x589   : > { %v14112_v33 = vpop.xlane.xlu1 %5002 }
 0x58a   : > { %4646 = vmin.xlane.f32.xlu0 %v4645_v30  ;;  %v4923_v30 = vand.u32 65535, %v18350_v2  ;;  %v18355_v2 = vld [vmem:[#allocation64_spill] sm:$0xff] }
 0x58b   : > { %4676 = vmin.xlane.f32.xlu2 %v4675_v21  ;;  %v4735_v21 = vsel %vm4734_vm1, %v4730_v51, inf  ;;  %vm4764_vm14 = vcmp.eq.f32.partialorder %v18355_v2, %v14043_v4 }
 0x58c   : > { %v4925_v6 = vcvt.s32.f32 %v4923_v30  ;;  %v4760_v30 = vcvt.s32.f32 %v4758_v7  ;;  %v18360_v7 = vld [vmem:[#allocation68_spill] sm:$0xff] }
 0x58d   : > { %v14118_v58 = vpop.xlane.xlu0 %5167  ;;  %vm4824_vm1 = vcmp.eq.f32.partialorder %v18360_v7, %v14052_v18  ;;  %v18364_v7 = vld [vmem:[#allocation69_spill] sm:$0xff] }
 0x58e   : > { %v14120_v27 = vpop.xlane.xlu2 %5017  ;;  %4706 = vmin.xlane.f32.xlu1 %v4705_v26  ;;  %v18352_v26 = vld [vmem:[#allocation55_spill] sm:$0xff]  ;;  %v4930_v12 = vsel %vm4929_vm15, %v4925_v6, inf  ;;  %v18357_v6 = vld [vmem:[#allocation65_spill] sm:$0xff] }
 0x58f   : > { %v4773_v48 = vand.u32 65535, %v18352_v26  ;;  %v4765_v26 = vsel %vm4764_vm14, %v4760_v30, inf  ;;  %vm4749_vm11 = vcmp.eq.f32.partialorder %v18357_v6, %v14045_v15 }
 0x591   : > { %v14127_v34 = vpop.xlane.xlu1 %5047  ;;  %v4775_v51 = vcvt.s32.f32 %v4773_v48  ;;  %v4803_v48 = vand.u32 65535, %v18359_v60  ;;  %v18363_v60 = vld [vmem:[#allocation67_spill] sm:$0xff] }
 0x592   : > { %4736 = vmin.xlane.f32.xlu0 %v4735_v21  ;;  %v4743_v21 = vand.u32 65535, %v18356_v55  ;;  %v18361_v55 = vld [vmem:[#allocation66_spill] sm:$0xff] }
 0x593   : > { %4721 = vmin.xlane.f32.xlu2 %v4720_v22  ;;  %v4780_v22 = vsel %vm4779_vm12, %v4775_v51, inf  ;;  %v4788_v30 = vand.u32 65535, %v18361_v55  ;;  %v18366_v55 = vld [vmem:[#allocation74_spill] sm:$0xff] }
 0x594   : > { %v4745_v57 = vcvt.s32.f32 %v4743_v21  ;;  %v4805_v21 = vcvt.s32.f32 %v4803_v48  ;;  %v18365_v48 = vld [vmem:[#allocation72_spill] sm:$0xff]  ;;  %vm4854_vm14 = vcmp.eq.f32.partialorder %v18366_v55, %v14073_v11 }
 0x595   : > { %v14133_v5 = vpop.xlane.xlu0 %4987  ;;  %vm4869_vm12 = vcmp.eq.f32.partialorder %v18365_v48, %v14067_v17  ;;  %v18369_v48 = vld [vmem:[#allocation75_spill] sm:$0xff] }
 0x596   : > { %v14135_v28 = vpop.xlane.xlu2 %5062  ;;  %4931 = vmin.xlane.f32.xlu1 %v4930_v12  ;;  %v18358_v12 = vld [vmem:[#allocation62_spill] sm:$0xff]  ;;  %v4750_v2 = vsel %vm4749_vm11, %v4745_v57, inf  ;;  %v4810_v6 = vsel %vm4809_vm13, %v4805_v21, inf  ;;  %v18367_v21 = vld [vmem:[#allocation71_spill] sm:$0xff]  ;;  %vm4839_vm11 = vcmp.eq.f32.partialorder %v13432_v9, %v14075_v0  ;;  %vm4899_vm13 = vcmp.eq.f32.partialorder %v13480_v56, %v14088_v52  ;;  %v18370_v9 = vld [vmem:[#allocation76_spill] sm:$0xff] }
 0x597   : > { %v4818_v38 = vand.u32 65535, %v18358_v12  ;;  %v18362_v57 = vld [vmem:[#allocation70_spill] sm:$0xff]  ;;  %v4790_v12 = vcvt.s32.f32 %v4788_v30 }
 0x598   : > { %vm4794_vm15 = vcmp.eq.f32.partialorder %v18362_v57, %v14060_v39 }
 0x599   : > { %v14142_v61 = vpop.xlane.xlu1 %5092  ;;  %v4820_v51 = vcvt.s32.f32 %v4818_v38  ;;  %v4848_v38 = vand.u32 65535, %v18364_v7  ;;  %v4795_v25 = vsel %vm4794_vm15, %v4790_v12, inf  ;;  %v18368_v7 = vld [vmem:[#allocation73_spill] sm:$0xff] }
 0x59a   : > { %4781 = vmin.xlane.f32.xlu0 %v4780_v22 }
 0x59b   : > { %4766 = vmin.xlane.f32.xlu2 %v4765_v26  ;;  %v4825_v22 = vsel %vm4824_vm1, %v4820_v51, inf  ;;  %v4850_v30 = vcvt.s32.f32 %v4848_v38  ;;  %vm4914_vm1 = vcmp.eq.f32.partialorder %v13453_v19, %v14082_v63  ;;  %v18373_v19 = vld [vmem:[#allocation78_spill] sm:$0xff] }
 0x59d   : > { %v14148_v46 = vpop.xlane.xlu0 %5032 }
 0x59e   : > { %v14150_v4 = vpop.xlane.xlu2 %5107  ;;  %4751 = vmin.xlane.f32.xlu1 %v4750_v2  ;;  %v4863_v2 = vand.u32 65535, %v18363_v60  ;;  %v4855_v60 = vsel %vm4854_vm14, %v4850_v30, inf }
 0x5a0   : > { %v4865_v51 = vcvt.s32.f32 %v4863_v2  ;;  %v4893_v2 = vand.u32 65535, %v18369_v48 }
 0x5a1   : > { %v14157_v26 = vpop.xlane.xlu1 %5137 }
 0x5a2   : > { %4826 = vmin.xlane.f32.xlu0 %v4825_v22  ;;  %v4833_v22 = vand.u32 65535, %v18367_v21  ;;  %v4895_v21 = vcvt.s32.f32 %v4893_v2  ;;  %v18376_v2 = vld [vmem:[#allocation81_spill] sm:$0xff] }
 0x5a3   : > { %4811 = vmin.xlane.f32.xlu2 %v4810_v6  ;;  %v4870_v6 = vsel %vm4869_vm12, %v4865_v51, inf  ;;  %v4878_v51 = vand.u32 65535, %v18370_v9  ;;  %vm4959_vm12 = vcmp.eq.f32.partialorder %v18376_v2, %v14097_v31  ;;  %v18381_v2 = vld [vmem:[#allocation85_spill] sm:$0xff] }
 0x5a4   : > { %v4835_v12 = vcvt.s32.f32 %v4833_v22 }
 0x5a5   : > { %v14163_v18 = vpop.xlane.xlu0 %5077 }
 0x5a6   : > { %v14165_v50 = vpop.xlane.xlu2 %5152  ;;  %4796 = vmin.xlane.f32.xlu1 %v4795_v25  ;;  %v4908_v25 = vand.u32 65535, %v18368_v7  ;;  %v4840_v55 = vsel %vm4839_vm11, %v4835_v12, inf  ;;  %v4880_v12 = vcvt.s32.f32 %v4878_v51  ;;  %v18372_v7 = vld [vmem:[#allocation77_spill] sm:$0xff] }
 0x5a7   : > { %v4953_v48 = vand.u32 65535, %v18372_v7 }
 0x5a8   : > { %v4910_v38 = vcvt.s32.f32 %v4908_v25  ;;  %v4938_v25 = vand.u32 65535, %v18373_v19 }
 0x5a9   : > { %v14172_v57 = vpop.xlane.xlu1 %5182 }
 0x5aa   : > { %4871 = vmin.xlane.f32.xlu0 %v4870_v6  ;;  %v4915_v22 = vsel %vm4914_vm1, %v4910_v38, inf  ;;  %v4900_v6 = vsel %vm4899_vm13, %v4895_v21, inf  ;;  %v4955_v38 = vcvt.s32.f32 %v4953_v48  ;;  %v18377_v21 = vld [vmem:[#allocation83_spill] sm:$0xff]  ;;  %v4940_v51 = vcvt.s32.f32 %v4938_v25 }
 0x5ab   : > { %4856 = vmin.xlane.f32.xlu2 %v4855_v60  ;;  %v18371_v60 = vld [vmem:[#allocation79_spill] sm:$0xff]  ;;  %vm4944_vm14 = vcmp.eq.f32.partialorder %v18377_v21, %v14103_v43  ;;  %v5163_v48 = vand.u32 65535, %v18381_v2 }
 0x5ac   : > { %vm4884_vm15 = vcmp.eq.f32.partialorder %v18371_v60, %v14090_v45  ;;  %v4960_v60 = vsel %vm4959_vm12, %v4955_v38, inf  ;;  %v4945_v19 = vsel %vm4944_vm14, %v4940_v51, inf  ;;  %v18383_v25 = vld [vmem:[#allocation87_spill] sm:$0xff]  ;;  %v18384_v51 = vld [vmem:[#allocation89_spill] sm:$0xff] }
 0x5ad   : > { %v14178_v17 = vpop.xlane.xlu0 %5122  ;;  %v4885_v56 = vsel %vm4884_vm15, %v4880_v12, inf  ;;  %v18379_v12 = vld [vmem:[#allocation84_spill] sm:$0xff]  ;;  %vm5004_vm1 = vcmp.eq.f32.partialorder %v18383_v25, %v14112_v33  ;;  %vm5169_vm13 = vcmp.eq.f32.partialorder %v18384_v51, %v14118_v58  ;;  %vm5019_vm15 = vcmp.eq.f32.partialorder %v13616_v36, %v14120_v27  ;;  %v18392_v36 = vld [vmem:[#allocation90_spill] sm:$0xff] }
 0x5ae   : > { %v14180_v11 = vpop.xlane.xlu2 %5197  ;;  %4841 = vmin.xlane.f32.xlu1 %v4840_v55  ;;  %vm4974_vm11 = vcmp.eq.f32.partialorder %v18379_v12, %v14105_v20 }
 0x5b1   : > { %v14187_v30 = vpop.xlane.xlu1 %5407 }
 0x5b2   : > { %4916 = vmin.xlane.f32.xlu0 %v4915_v22  ;;  %v18378_v22 = vld [vmem:[#allocation80_spill] sm:$0xff] }
 0x5b3   : > { %4901 = vmin.xlane.f32.xlu2 %v4900_v6  ;;  %v4968_v6 = vand.u32 65535, %v18378_v22 }
 0x5b5   : > { %v14193_v55 = vpop.xlane.xlu0 %5212 }
 0x5b6   : > { %18374 = vst [vmem:[#allocation39_spill] sm:$0xff] %v14193_v55  ;;  %4886 = vmin.xlane.f32.xlu1 %v4885_v56  ;;  %v14195_v9 = vpop.xlane.xlu2 %5242  ;;  %v4970_v56 = vcvt.s32.f32 %v4968_v6  ;;  %v5165_v6 = vcvt.s32.f32 %v5163_v48  ;;  %v18390_v48 = vld [vmem:[#allocation91_spill] sm:$0xff] }
 0x5b7   : > { %18375 = vst [vmem:[#allocation40_spill] sm:$0xff] %v14195_v9  ;;  %v18380_v9 = vld [vmem:[#allocation82_spill] sm:$0xff]  ;;  %vm5049_vm12 = vcmp.eq.f32.partialorder %v18390_v48, %v14127_v34  ;;  %v18395_v48 = vld [vmem:[#allocation95_spill] sm:$0xff] }
 0x5b8   : > { %v4998_v55 = vand.u32 65535, %v18380_v9  ;;  %v4975_v21 = vsel %vm4974_vm11, %v4970_v56, inf  ;;  %v5170_v2 = vsel %vm5169_vm13, %v5165_v6, inf  ;;  %v18391_v6 = vld [vmem:[#allocation93_spill] sm:$0xff]  ;;  %vm5034_vm13 = vcmp.eq.f32.partialorder %v13732_v41, %v14148_v46  ;;  %v18400_v41 = vld [vmem:[#allocation99_spill] sm:$0xff] }
 0x5b9   : > { %v14202_v7 = vpop.xlane.xlu1 %5227  ;;  %vm4989_vm14 = vcmp.eq.f32.partialorder %v18391_v6, %v14133_v5 }
 0x5ba   : > { %4961 = vmin.xlane.f32.xlu0 %v4960_v60  ;;  %v5000_v38 = vcvt.s32.f32 %v4998_v55  ;;  %v18385_v60 = vld [vmem:[#allocation86_spill] sm:$0xff]  ;;  %v4983_v55 = vand.u32 65535, %v13607_v37 }
 0x5bb   : > { %4946 = vmin.xlane.f32.xlu2 %v4945_v19  ;;  %v5013_v19 = vand.u32 65535, %v18385_v60 }
 0x5bc   : > { %v5005_v12 = vsel %vm5004_vm1, %v5000_v38, inf }
 0x5bd   : > { %v14208_v31 = vpop.xlane.xlu0 %5257  ;;  %v5015_v56 = vcvt.s32.f32 %v5013_v19  ;;  %v4985_v19 = vcvt.s32.f32 %v4983_v55  ;;  %v18397_v55 = vld [vmem:[#allocation97_spill] sm:$0xff] }
 0x5be   : > { %4976 = vmin.xlane.f32.xlu1 %v4975_v21  ;;  %v14210_v22 = vpop.xlane.xlu2 %5287  ;;  %v18387_v21 = vld [vmem:[#allocation88_spill] sm:$0xff]  ;;  %vm5094_vm1 = vcmp.eq.f32.partialorder %v18397_v55, %v14142_v61 }
 0x5bf   : > { %18382 = vst [vmem:[#allocation43_spill] sm:$0xff] %v14210_v22  ;;  %v5043_v22 = vand.u32 65535, %v18387_v21  ;;  %v5020_v51 = vsel %vm5019_vm15, %v5015_v56, inf  ;;  %v4990_v37 = vsel %vm4989_vm14, %v4985_v19, inf  ;;  %v18393_v56 = vld [vmem:[#allocation94_spill] sm:$0xff]  ;;  %vm5109_vm15 = vcmp.eq.f32.partialorder %v18400_v41, %v14150_v4 }
 0x5c0   : > { %vm5064_vm11 = vcmp.eq.f32.partialorder %v18393_v56, %v14135_v28  ;;  %v4499_v56 = vcvt.f32.s32 %v13823_v8  ;;  %v4619_v41 = vcvt.f32.s32 %v13930_v44  ;;  %vm5079_vm14 = vcmp.eq.f32.partialorder %v13789_v54, %v14163_v18 }
 0x5c1   : > { %v14217_v9 = vpop.xlane.xlu1 %5272  ;;  %v5045_v38 = vcvt.s32.f32 %v5043_v22  ;;  %v5028_v22 = vand.u32 65535, %v18395_v48  ;;  %v4514_v48 = vcvt.f32.s32 %v13852_v10  ;;  %v4559_v10 = vcvt.f32.s32 %v13902_v35  ;;  %v18404_v35 = vld [vmem:[#allocation102_spill] sm:$0xff] }
 0x5c2   : > { %18386 = vst [vmem:[#allocation45_spill] sm:$0xff] %v14217_v9  ;;  %5006 = vmin.xlane.f32.xlu0 %v5005_v12  ;;  %v5058_v12 = vand.u32 65535, %v18392_v36  ;;  %v4709_v54 = vcvt.f32.s32 %v14001_v23  ;;  %v18411_v23 = vld [vmem:[#allocation104_spill] sm:$0xff] }
 0x5c3   : > { %5171 = vmin.xlane.f32.xlu2 %v5170_v2  ;;  %v5050_v2 = vsel %vm5049_vm12, %v5045_v38, inf  ;;  %v4484_v38 = vcvt.f32.s32 %v13774_v53  ;;  %v4544_v53 = vcvt.f32.s32 %v13877_v1  ;;  %v14265_v1 = vshll.u32 %v4499_v56, 16 }
 0x5c4   : > { %vm5139_vm12 = vcmp.eq.f32.partialorder %v18404_v35, %v14157_v26  ;;  %v4604_v56 = vcvt.f32.s32 %v13940_v16  ;;  %v4679_v35 = vcvt.f32.s32 %v13995_v59 }
 0x5c5   : > { %v14223_v25 = vpop.xlane.xlu0 %5302  ;;  %v14257_v55 = vshll.u32 %v4484_v38, 16 }
 0x5c6   : > { %18388 = vst [vmem:[#allocation44_spill] sm:$0xff] %v14223_v25  ;;  %5021 = vmin.xlane.f32.xlu1 %v5020_v51  ;;  %v14225_v60 = vpop.xlane.xlu2 %5332  ;;  %v5060_v51 = vcvt.s32.f32 %v5058_v12  ;;  %v18398_v12 = vld [vmem:[#allocation96_spill] sm:$0xff] }
 0x5c7   : > { %18389 = vst [vmem:[#allocation46_spill] sm:$0xff] %v14225_v60  ;;  %v18394_v60 = vld [vmem:[#allocation92_spill] sm:$0xff] }
 0x5c8   : > { %v5088_v25 = vand.u32 65535, %v18394_v60  ;;  %v5065_v6 = vsel %vm5064_vm11, %v5060_v51, inf  ;;  %v4694_v60 = vcvt.f32.s32 %v13795_v32  ;;  %v4529_v51 = vcvt.f32.s32 %v13831_v14 }
 0x5c9   : > { %v14232_v21 = vpop.xlane.xlu1 %5317  ;;  %v4574_v14 = vcvt.f32.s32 %v13886_v49  ;;  %vm5154_vm11 = vcmp.eq.f32.partialorder %v13797_v13, %v14165_v50  ;;  %v14314_v13 = vshll.u32 %v4679_v35, 16  ;;  %v18418_v35 = vld [vmem:[#allocation108_spill] sm:$0xff] }
 0x5ca   : > { %5051 = vmin.xlane.f32.xlu0 %v5050_v2  ;;  %v5090_v19 = vcvt.s32.f32 %v5088_v25  ;;  %v5103_v2 = vand.u32 65535, %v18398_v12  ;;  %v14260_v12 = vshll.u32 %v4694_v60, 16  ;;  %v4589_v60 = vcvt.f32.s32 %v13923_v24 }
 0x5cb   : > { %4991 = vmin.xlane.f32.xlu2 %v4990_v37  ;;  %v5030_v37 = vcvt.s32.f32 %v5028_v22  ;;  %v18401_v22 = vld [vmem:[#allocation98_spill] sm:$0xff]  ;;  %v4634_v24 = vcvt.f32.s32 %v13959_v40  ;;  %v14300_v40 = vshll.u32 %v4619_v41, 16  ;;  %18413 = vst [vmem:[#allocation49_spill] sm:$0xff] %v14314_v13 }
 0x5cc   : > { %v5105_v32 = vcvt.s32.f32 %v5103_v2  ;;  %v5133_v8 = vand.u32 65535, %v18401_v22  ;;  %v14273_v2 = vshll.u32 %v4544_v53, 16  ;;  %v14285_v53 = vshll.u32 %v4574_v14, 16  ;;  %v18423_v13 = vld [vmem:[#allocation142_spill] sm:$0xff] }
 0x5cd   : > { %v14238_v9 = vpop.xlane.xlu0 %5347  ;;  %v5035_v25 = vsel %vm5034_vm13, %v5030_v37, inf  ;;  %v14267_v37 = vshll.u32 %v4529_v51, 16  ;;  %v14287_v22 = vshll.u32 %v4559_v10, 16  ;;  %18408 = vst [vmem:[#allocation47_spill] sm:$0xff] %v14300_v40  ;;  %v14305_v10 = vshll.u32 %v4634_v24, 16 }
 0x5ce   : > { %5066 = vmin.xlane.f32.xlu1 %v5065_v6  ;;  %v14240_v36 = vpop.xlane.xlu2 %5377  ;;  %v5095_v6 = vsel %vm5094_vm1, %v5090_v19, inf  ;;  %v18402_v19 = vld [vmem:[#allocation100_spill] sm:$0xff]  ;;  %v5135_v51 = vcvt.s32.f32 %v5133_v8  ;;  %v4934_v24 = vcvt.f32.s32 %v14027_v3  ;;  %vm5124_vm13 = vcmp.eq.f32.partialorder %v18418_v35, %v14178_v17  ;;  %v18425_v35 = vld [vmem:[#allocation34_spill] sm:$0xff] }
 0x5cf   : > { %18396 = vst [vmem:[#allocation35_spill] sm:$0xff] %v14240_v36  ;;  %v4754_v3 = vcvt.f32.s32 %v14045_v15 }
 0x5d0   : > { %18406 = vst [vmem:[#allocation37_spill] sm:$0xff] %v14287_v22  ;;  %v5140_v16 = vsel %vm5139_vm12, %v5135_v51, inf  ;;  %v4724_v51 = vcvt.f32.s32 %v14024_v42  ;;  %v18416_v42 = vld [vmem:[#allocation106_spill] sm:$0xff]  ;;  %v14340_v22 = vshll.u32 %v4934_v24, 16 }
 0x5d1   : > { %v14252_v36 = vpop.xlane.xlu1 %5362  ;;  %vm5184_vm1 = vcmp.eq.f32.partialorder %v18416_v42, %v14172_v57  ;;  %v4799_v42 = vcvt.f32.s32 %v14060_v39 }
 0x5d2   : > { %18399 = vst [vmem:[#allocation36_spill] sm:$0xff] %v14252_v36  ;;  %5096 = vmin.xlane.f32.xlu0 %v5095_v6  ;;  %v5073_v36 = vand.u32 65535, %v18402_v19  ;;  %v14269_v6 = vshll.u32 %v4514_v48, 16  ;;  %v18405_v48 = vld [vmem:[#allocation101_spill] sm:$0xff]  ;;  %v4664_v19 = vcvt.f32.s32 %v13968_v62  ;;  %v18410_v62 = vld [vmem:[#allocation103_spill] sm:$0xff]  ;;  %v14332_v40 = vshll.u32 %v4724_v51, 16 }
 0x5d3   : > { %5036 = vmin.xlane.f32.xlu2 %v5035_v25  ;;  %v5110_v25 = vsel %vm5109_vm15, %v5105_v32, inf  ;;  %v5148_v32 = vand.u32 65535, %v18405_v48  ;;  %v5178_v59 = vand.u32 65535, %v18410_v62  ;;  %v5118_v48 = vand.u32 65535, %v18411_v23  ;;  %18424 = vst [vmem:[#allocation56_spill] sm:$0xff] %v14340_v22  ;;  %v18426_v51 = vld [vmem:[#allocation109_spill] sm:$0xff] }
 0x5d4   : > { %v5075_v44 = vcvt.s32.f32 %v5073_v36  ;;  %v14302_v36 = vshll.u32 %v4604_v56, 16  ;;  %18421 = vst [vmem:[#allocation53_spill] sm:$0xff] %v14332_v40  ;;  %vm5199_vm15 = vcmp.eq.f32.partialorder %v18426_v51, %v14180_v11  ;;  %v18431_v40 = vld [vmem:[#allocation38_spill] sm:$0xff]  ;;  %v4844_v22 = vcvt.f32.s32 %v14075_v0  ;;  %v18437_v0 = vld [vmem:[#allocation112_spill] sm:$0xff] }
 0x5d5   : > { %v14271_v38 = vpop.xlane.xlu0 %5392  ;;  %v5180_v23 = vcvt.s32.f32 %v5178_v59  ;;  %v4859_v24 = vcvt.f32.s32 %v18431_v40  ;;  %v4904_v51 = vcvt.f32.s32 %v14088_v52  ;;  %vm5409_vm12 = vcmp.eq.f32.partialorder %v18437_v0, %v14187_v30 }
 0x5d6   : > { %5111 = vmin.xlane.f32.xlu1 %v5110_v25  ;;  %v14277_v49 = vpop.xlane.xlu2 %5422  ;;  %v4649_v25 = vcvt.f32.s32 %v13978_v47  ;;  %v5080_v14 = vsel %vm5079_vm14, %v5075_v44, inf  ;;  %18409 = vst [vmem:[#allocation48_spill] sm:$0xff] %v14302_v36  ;;  %v5150_v47 = vcvt.s32.f32 %v5148_v32  ;;  %v14310_v44 = vshll.u32 %v4664_v19, 16  ;;  %v18417_v19 = vld [vmem:[#allocation140_spill] sm:$0xff] }
 0x5d7   : > { %18403 = vst [vmem:[#allocation41_spill] sm:$0xff] %v14277_v49  ;;  %v14295_v49 = vshll.u32 %v4589_v60, 16  ;;  %v4739_v60 = vcvt.f32.s32 %v14009_v29  ;;  %v14318_v32 = vshll.u32 %v4709_v54, 16 }
 0x5d8   : > { %v5155_v56 = vsel %vm5154_vm11, %v5150_v47, inf }
 0x5d9   : > { %v14293_v8 = vpop.xlane.xlu1 %4481  ;;  %18407 = vst [vmem:[#allocation42_spill] sm:$0xff] %v14295_v49  ;;  %v14330_v54 = vshll.u32 %v4739_v60, 16  ;;  %v4814_v49 = vcvt.f32.s32 %v18423_v13 }
 0x5da   : > { %5141 = vmin.xlane.f32.xlu0 %v5140_v16  ;;  %v14312_v16 = vshll.u32 %v4649_v25, 16  ;;  %18414 = vst [vmem:[#allocation52_spill] sm:$0xff] %v14318_v32  ;;  %v4769_v25 = vcvt.f32.s32 %v18417_v19  ;;  %v5185_v19 = vsel %vm5184_vm1, %v5180_v23, inf  ;;  %v14350_v23 = vshll.u32 %v4754_v3, 16 }
 0x5db   : > { %5081 = vmin.xlane.f32.xlu2 %v5080_v14  ;;  %v18415_v14 = vld [vmem:[#allocation138_spill] sm:$0xff]  ;;  %18420 = vst [vmem:[#allocation51_spill] sm:$0xff] %v14330_v54  ;;  %v14357_v54 = vshll.u32 %v4814_v49, 16  ;;  %v4919_v3 = vcvt.f32.s32 %v14082_v63  ;;  %v4889_v49 = vcvt.f32.s32 %v14090_v45  ;;  %v18443_v63 = vld [vmem:[#allocation33_spill] sm:$0xff] }
 0x5dc   : > { %18412 = vst [vmem:[#allocation50_spill] sm:$0xff] %v14312_v16  ;;  %v4784_v62 = vcvt.f32.s32 %v18415_v14  ;;  %v18419_v16 = vld [vmem:[#allocation105_spill] sm:$0xff]  ;;  %v4964_v52 = vcvt.f32.s32 %v18443_v63 }
 0x5dd   : > { %v14316_v41 = vpop.xlane.xlu0 %4691  ;;  %v5193_v47 = vand.u32 65535, %v18419_v16  ;;  %v18422_v14 = vld [vmem:[#allocation141_spill] sm:$0xff]  ;;  %v4874_v16 = vcvt.f32.s32 %v18425_v35  ;;  %18430 = vst [vmem:[#allocation58_spill] sm:$0xff] %v14350_v23  ;;  %v18432_v35 = vld [vmem:[#allocation110_spill] sm:$0xff]  ;;  %v14389_v63 = vshll.u32 %v4919_v3, 16 }
 0x5de   : > { %5156 = vmin.xlane.f32.xlu1 %v5155_v56  ;;  %v14322_v29 = vpop.xlane.xlu2 %4496  ;;  %v5120_v56 = vcvt.s32.f32 %v5118_v48  ;;  %v4829_v32 = vcvt.f32.s32 %v18422_v14  ;;  %v14345_v15 = vshll.u32 %v4784_v62, 16  ;;  %v14347_v48 = vshll.u32 %v4769_v25, 16  ;;  %v18429_v14 = vld [vmem:[#allocation107_spill] sm:$0xff]  ;;  %18434 = vst [vmem:[#allocation59_spill] sm:$0xff] %v14357_v54  ;;  %v18444_v23 = vld [vmem:[#allocation113_spill] sm:$0xff] }
 0x5df   : > { %v5195_v13 = vcvt.s32.f32 %v5193_v47  ;;  %v5403_v39 = vand.u32 65535, %v18429_v14  ;;  %v14359_v62 = vshll.u32 %v4799_v42, 16  ;;  %v14363_v47 = vshll.u32 %v4874_v16, 16  ;;  %v18438_v42 = vld [vmem:[#allocation39_spill] sm:$0xff]  ;;  %v18439_v14 = vld [vmem:[#allocation114_spill] sm:$0xff]  ;;  %18451 = vst [vmem:[#allocation62_spill] sm:$0xff] %v14389_v63 }
 0x5e0   : > { %v5125_v60 = vsel %vm5124_vm13, %v5120_v56, inf  ;;  %18427 = vst [vmem:[#allocation57_spill] sm:$0xff] %v14345_v15  ;;  %v14355_v56 = vshll.u32 %v4829_v32, 16  ;;  %vm5214_vm14 = vcmp.eq.f32.partialorder %v18439_v14, %v18438_v42  ;;  %v14375_v16 = vshll.u32 %v4859_v24, 16  ;;  %v18447_v15 = vld [vmem:[#allocation40_spill] sm:$0xff]  ;;  %v18469_v63 = vld [vmem:[#allocation134_spill] sm:$0xff] }
 0x5e1   : > { %v14338_v59 = vpop.xlane.xlu1 %4526  ;;  %18428 = vst [vmem:[#allocation54_spill] sm:$0xff] %v14347_v48  ;;  %v5405_v32 = vcvt.s32.f32 %v5403_v39  ;;  %v5223_v0 = vand.u32 65535, %v18444_v23  ;;  %v18445_v48 = vld [vmem:[#allocation117_spill] sm:$0xff]  ;;  %v18446_v39 = vld [vmem:[#allocation128_spill] sm:$0xff] }
 0x5e2   : > { %5186 = vmin.xlane.f32.xlu0 %v5185_v19  ;;  %v5208_v19 = vand.u32 65535, %v18432_v35  ;;  %18433 = vst [vmem:[#allocation55_spill] sm:$0xff] %v14355_v56  ;;  %v18440_v35 = vld [vmem:[#allocation111_spill] sm:$0xff]  ;;  %v5283_v45 = vand.u32 65535, %v18445_v48  ;;  %v5343_v56 = vand.u32 65535, %v18446_v39  ;;  %v18449_v24 = vld [vmem:[#allocation116_spill] sm:$0xff] }
 0x5e3   : > { %5126 = vmin.xlane.f32.xlu2 %v5125_v60  ;;  %18435 = vst [vmem:[#allocation61_spill] sm:$0xff] %v14359_v62  ;;  %v5200_v60 = vsel %vm5199_vm15, %v5195_v13, inf  ;;  %v5238_v13 = vand.u32 65535, %v18440_v35  ;;  %v14377_v62 = vshll.u32 %v4844_v22, 16  ;;  %v18448_v35 = vld [vmem:[#allocation115_spill] sm:$0xff]  ;;  %v5253_v22 = vand.u32 65535, %v18449_v24 }
 0x5e4   : > { %18436 = vst [vmem:[#allocation64_spill] sm:$0xff] %v14363_v47  ;;  %v5410_v47 = vsel %vm5409_vm12, %v5405_v32, inf  ;;  %vm5244_vm11 = vcmp.eq.f32.partialorder %v18448_v35, %v18447_v15  ;;  %v14393_v32 = vshll.u32 %v4889_v49, 16  ;;  %v14395_v48 = vshll.u32 %v4964_v52, 16  ;;  %v18454_v39 = vld [vmem:[#allocation129_spill] sm:$0xff] }
 0x5e5   : > { %v14361_v25 = vpop.xlane.xlu0 %4511  ;;  %18441 = vst [vmem:[#allocation60_spill] sm:$0xff] %v14375_v16  ;;  %v18450_v16 = vld [vmem:[#allocation125_spill] sm:$0xff]  ;;  %v5240_v23 = vcvt.s32.f32 %v5238_v13  ;;  %v5373_v35 = vand.u32 65535, %v18454_v39  ;;  %v5009_v24 = vcvt.f32.s32 %v14112_v33  ;;  %v18455_v13 = vld [vmem:[#allocation118_spill] sm:$0xff]  ;;  %v5255_v52 = vcvt.s32.f32 %v5253_v22 }
 0x5e6   : > { %5201 = vmin.xlane.f32.xlu1 %v5200_v60  ;;  %v14367_v40 = vpop.xlane.xlu2 %4541  ;;  %18442 = vst [vmem:[#allocation65_spill] sm:$0xff] %v14377_v62  ;;  %v5210_v60 = vcvt.s32.f32 %v5208_v19  ;;  %v5313_v62 = vand.u32 65535, %v18450_v16  ;;  %v14391_v19 = vshll.u32 %v4904_v51, 16  ;;  %v5225_v16 = vcvt.s32.f32 %v5223_v0  ;;  %v18456_v0 = vld [vmem:[#allocation120_spill] sm:$0xff] }
 0x5e7   : > { %18452 = vst [vmem:[#allocation63_spill] sm:$0xff] %v14393_v32  ;;  %v5245_v3 = vsel %vm5244_vm11, %v5240_v23, inf  ;;  %v14403_v51 = vcvt.s32.f32 %v5343_v56  ;;  %vm5229_vm1 = vcmp.eq.f32.partialorder %v18455_v13, %v14202_v7  ;;  %v5024_v33 = vcvt.f32.s32 %v14120_v27  ;;  %v18460_v27 = vld [vmem:[#allocation122_spill] sm:$0xff] }
 0x5e8   : > { %v5215_v14 = vsel %vm5214_vm14, %v5210_v60, inf  ;;  %18453 = vst [vmem:[#allocation68_spill] sm:$0xff] %v14395_v48  ;;  %v4979_v60 = vcvt.f32.s32 %v14105_v20  ;;  %v5174_v20 = vcvt.f32.s32 %v14118_v58  ;;  %v5054_v39 = vcvt.f32.s32 %v14127_v34 }
 0x5e9   : > { %v14380_v54 = vpop.xlane.xlu1 %4571  ;;  %vm5259_vm13 = vcmp.eq.f32.partialorder %v18456_v0, %v14208_v31  ;;  %v14421_v13 = vcvt.s32.f32 %v5373_v35  ;;  %v5230_v58 = vsel %vm5229_vm1, %v5225_v16, inf  ;;  %v5298_v34 = vand.u32 65535, %v18460_v27  ;;  %v18461_v0 = vld [vmem:[#allocation43_spill] sm:$0xff] }
 0x5ea   : > { %5411 = vmin.xlane.f32.xlu0 %v5410_v47  ;;  %v4949_v47 = vcvt.f32.s32 %v14103_v43  ;;  %v5285_v43 = vcvt.s32.f32 %v5283_v45  ;;  %v14418_v23 = vshll.u32 %v4979_v60, 16  ;;  %v14423_v45 = vshll.u32 %v5009_v24, 16  ;;  %v18462_v60 = vld [vmem:[#allocation121_spill] sm:$0xff]  ;;  %v18467_v27 = vld [vmem:[#allocation123_spill] sm:$0xff] }
 0x5eb   : > { %5216 = vmin.xlane.f32.xlu2 %v5215_v14  ;;  %v14409_v14 = vcvt.s32.f32 %v5313_v62  ;;  %v5069_v62 = vcvt.f32.s32 %v14135_v28  ;;  %v5099_v48 = vcvt.f32.s32 %v14142_v61  ;;  %vm5289_vm15 = vcmp.eq.f32.partialorder %v18462_v60, %v18461_v0  ;;  %v18465_v28 = vld [vmem:[#allocation135_spill] sm:$0xff] }
 0x5ec   : > { %v14416_v56 = vshll.u32 %v4949_v47, 16  ;;  %18458 = vst [vmem:[#allocation70_spill] sm:$0xff] %v14418_v23  ;;  %v5260_v47 = vsel %vm5259_vm13, %v5255_v52, inf  ;;  %v18463_v23 = vld [vmem:[#allocation119_spill] sm:$0xff]  ;;  %v14433_v35 = vshll.u32 %v5174_v20, 16  ;;  %v14435_v24 = vshll.u32 %v5024_v33, 16 }
 0x5ed   : > { %v14401_v36 = vpop.xlane.xlu0 %4556  ;;  %18459 = vst [vmem:[#allocation67_spill] sm:$0xff] %v14423_v45  ;;  %v14437_v45 = vshll.u32 %v5054_v39, 16  ;;  %v5418_v16 = vand.u32 65535, %v18465_v28  ;;  %v5328_v61 = vand.u32 65535, %v18467_v27  ;;  %v14445_v60 = vshll.u32 %v5069_v62, 16  ;;  %v18472_v27 = vld [vmem:[#allocation45_spill] sm:$0xff] }
 0x5ee   : > { %v14405_v49 = vpop.xlane.xlu2 %4586  ;;  %5246 = vmin.xlane.f32.xlu1 %v5245_v3  ;;  %18457 = vst [vmem:[#allocation66_spill] sm:$0xff] %v14416_v56  ;;  %v4994_v3 = vcvt.f32.s32 %v14133_v5  ;;  %v5268_v5 = vand.u32 65535, %v18463_v23  ;;  %v5388_v56 = vand.u32 65535, %v18469_v63  ;;  %v5039_v20 = vcvt.f32.s32 %v14148_v46 }
 0x5ef   : > { %18464 = vst [vmem:[#allocation69_spill] sm:$0xff] %v14433_v35  ;;  %v5290_v33 = vsel %vm5289_vm15, %v5285_v43, inf  ;;  %v5300_v39 = vcvt.s32.f32 %v5298_v34  ;;  %v14450_v35 = vshll.u32 %v5099_v48, 16  ;;  %v5144_v63 = vcvt.f32.s32 %v14157_v26  ;;  %v18475_v43 = vld [vmem:[#allocation126_spill] sm:$0xff] }
 0x5f0   : > { %v14440_v32 = vshll.u32 %v4994_v3, 16  ;;  %18470 = vst [vmem:[#allocation74_spill] sm:$0xff] %v14445_v60  ;;  %v5270_v28 = vcvt.s32.f32 %v5268_v5  ;;  %v5084_v62 = vcvt.f32.s32 %v14163_v18  ;;  %v5159_v46 = vcvt.f32.s32 %v14165_v50  ;;  %v18474_v60 = vld [vmem:[#allocation44_spill] sm:$0xff] }
 0x5f1   : > { %v14426_v22 = vpop.xlane.xlu1 %4616  ;;  %18471 = vst [vmem:[#allocation71_spill] sm:$0xff] %v14450_v35  ;;  %vm5304_vm14 = vcmp.eq.f32.partialorder %v18475_v43, %v18474_v60  ;;  %v5189_v48 = vcvt.f32.s32 %v14172_v57  ;;  %v5330_v34 = vcvt.s32.f32 %v5328_v61  ;;  %v14465_v35 = vcvt.s32.f32 %v5388_v56  ;;  %v18476_v57 = vld [vmem:[#allocation46_spill] sm:$0xff]  ;;  %v18477_v61 = vld [vmem:[#allocation127_spill] sm:$0xff] }
 0x5f2   : > { %5231 = vmin.xlane.f32.xlu0 %v5230_v58  ;;  %18466 = vst [vmem:[#allocation72_spill] sm:$0xff] %v14440_v32  ;;  %v18468_v58 = vld [vmem:[#allocation131_spill] sm:$0xff]  ;;  %v14467_v5 = vshll.u32 %v5039_v20, 16  ;;  %v14470_v32 = vcvt.s32.f32 %v5418_v16  ;;  %v5204_v18 = vcvt.f32.s32 %v14180_v11  ;;  %v5414_v50 = vcvt.f32.s32 %v14187_v30 }
 0x5f3   : > { %5261 = vmin.xlane.f32.xlu2 %v5260_v47  ;;  %v5358_v52 = vand.u32 65535, %v18468_v58  ;;  %v5114_v47 = vcvt.f32.s32 %v14150_v4  ;;  %v18473_v58 = vld [vmem:[#allocation124_spill] sm:$0xff]  ;;  %v5305_v43 = vsel %vm5304_vm14, %v5300_v39, inf  ;;  %vm5334_vm11 = vcmp.eq.f32.partialorder %v18477_v61, %v18476_v57 }
 0x5f4   : > { %vm5274_vm12 = vcmp.eq.f32.partialorder %v18473_v58, %v18472_v27  ;;  %v14478_v56 = vshll.u32 %v5144_v63, 16  ;;  %v14480_v20 = vshll.u32 %v5084_v62, 16  ;;  %v14484_v16 = vshll.u32 %v5189_v48, 16 }
 0x5f5   : > { %v14448_v23 = vpop.xlane.xlu0 %4601  ;;  %v14463_v4 = vcvt.s32.f32 %v5358_v52  ;;  %v5275_v58 = vsel %vm5274_vm12, %v5270_v28, inf  ;;  %v14476_v52 = vshll.u32 %v5114_v47, 16  ;;  %v5249_v11 = vcvt.f32.s32 %v18447_v15 }
 0x5f6   : > { %v14453_v3 = vpop.xlane.xlu2 %4631  ;;  %5291 = vmin.xlane.f32.xlu1 %v5290_v33  ;;  %v5129_v33 = vcvt.f32.s32 %v14178_v17  ;;  %v14482_v17 = vshll.u32 %v5159_v46, 16  ;;  %v5234_v30 = vcvt.f32.s32 %v14202_v7  ;;  %v4573_v39 = vcvt.f32.s32 %v14380_v54  ;;  %v18478_v7 = vld [vmem:[#allocation130_spill] sm:$0xff] }
 0x5f7   : > { %v5264_v47 = vcvt.f32.s32 %v14208_v31  ;;  %v5294_v63 = vcvt.f32.s32 %v18461_v0  ;;  %v5335_v62 = vsel %vm5334_vm11, %v5330_v34, inf  ;;  %v14495_v46 = vshll.u32 %v5204_v18, 16  ;;  %v18479_v34 = vld [vmem:[#allocation132_spill] sm:$0xff] }
 0x5f8   : > { %v14489_v28 = vshll.u32 %v5129_v33, 16  ;;  %v5279_v48 = vcvt.f32.s32 %v18472_v27  ;;  %vm5319_vm1 = vcmp.eq.f32.partialorder %v18478_v7, %v14232_v21  ;;  %v5309_v31 = vcvt.f32.s32 %v18474_v60 }
 0x5f9   : > { %v4662_v26 = vpop.xlane.xlu1 %4661  ;;  %v5339_v0 = vcvt.f32.s32 %v18476_v57  ;;  %vm5349_vm13 = vcmp.eq.f32.partialorder %v18479_v34, %v14238_v9  ;;  %v14509_v33 = vshll.u32 %v5249_v11, 16  ;;  %v14511_v18 = vshll.u32 %v5234_v30, 16 }
 0x5fa   : > { %5276 = vmin.xlane.f32.xlu0 %v5275_v58  ;;  %v14514_v27 = vadd.s32 %v14285_v53, %v4573_v39  ;;  %v14516_v61 = vshll.u32 %v5264_v47, 16  ;;  %v5324_v7 = vcvt.f32.s32 %v14232_v21  ;;  %v5320_v60 = vsel %vm5319_vm1, %v14409_v14, inf  ;;  %v18482_v53 = vld [vmem:[#allocation35_spill] sm:$0xff]  ;;  %v18483_v39 = vld [vmem:[#allocation133_spill] sm:$0xff] }
 0x5fb   : > { %5306 = vmin.xlane.f32.xlu2 %v5305_v43  ;;  %v14497_v43 = vshll.u32 %v5414_v50, 16  ;;  %18480 = vst [vmem:[#allocation73_spill] sm:$0xff] %v14509_v33  ;;  %v4663_v50 = vcvt.f32.s32 %v4662_v26  ;;  %v14524_v54 = vshll.u32 %v5279_v48, 16  ;;  %v4513_v11 = vcvt.f32.s32 %v14361_v25 }
 0x5fc   : > { %v5350_v30 = vsel %vm5349_vm13, %v14403_v51, inf  ;;  %vm5379_vm15 = vcmp.eq.f32.partialorder %v18483_v39, %v18482_v53  ;;  %v14530_v26 = vshll.u32 %v5309_v31, 16  ;;  %v14532_v47 = vshll.u32 %v5339_v0, 16 }
 0x5fd   : > { %v14493_v58 = vpop.xlane.xlu0 %4646  ;;  %18481 = vst [vmem:[#allocation75_spill] sm:$0xff] %v14524_v54  ;;  %v4693_v21 = vcvt.f32.s32 %v14316_v41  ;;  %v4543_v14 = vcvt.f32.s32 %v14367_v40  ;;  %v5444_v48 = vrot.slane %v14514_v27, 4  ;;  %v4633_v25 = vcvt.f32.s32 %v14453_v3 }
 0x5fe   : > { %v14500_v15 = vpop.xlane.xlu2 %4676  ;;  %5336 = vmin.xlane.f32.xlu1 %v5335_v62  ;;  %v14518_v62 = vshll.u32 %v5294_v63, 16  ;;  %18484 = vst [vmem:[#allocation76_spill] sm:$0xff] %v14530_v26  ;;  %v4483_v63 = vcvt.f32.s32 %v14293_v8  ;;  %v14540_v51 = vadd.s32 %v14310_v44, %v4663_v50  ;;  %v14542_v34 = vshll.u32 %v5324_v7, 16  ;;  %v18487_v44 = vld [vmem:[#allocation36_spill] sm:$0xff] }
 0x5ff   : > { %18485 = vst [vmem:[#allocation79_spill] sm:$0xff] %v14532_v47  ;;  %v4498_v31 = vcvt.f32.s32 %v14322_v29  ;;  %v4528_v0 = vcvt.f32.s32 %v14338_v59  ;;  %v5380_v41 = vsel %vm5379_vm15, %v14421_v13, inf  ;;  %v5354_v40 = vcvt.f32.s32 %v14238_v9  ;;  %v18488_v50 = vld [vmem:[#allocation136_spill] sm:$0xff]  ;;  %v18489_v13 = vld [vmem:[#allocation137_spill] sm:$0xff] }
 0x600   : > { %18486 = vst [vmem:[#allocation77_spill] sm:$0xff] %v14542_v34  ;;  %v4516_v8 = vadd.s32 %v14269_v6, %v4513_v11  ;;  %vm5364_vm12 = vcmp.eq.f32.partialorder %v18488_v50, %v18487_v44  ;;  %v5384_v29 = vcvt.f32.s32 %v18482_v53  ;;  %v4696_v59 = vadd.s32 %v14260_v12, %v4693_v21 }
 0x601   : > { %v14522_v57 = vpop.xlane.xlu1 %4706  ;;  %v4546_v7 = vadd.s32 %v14273_v2, %v4543_v14  ;;  %vm5394_vm14 = vcmp.eq.f32.partialorder %v18489_v13, %v14271_v38  ;;  %v4486_v9 = vadd.s32 %v14257_v55, %v4483_v63  ;;  %vm18490_vm11 = vcmask 1047556   ;;  %v18491_v55 = vld [vmem:[#allocation48_spill] sm:$0xff]  ;;  %v18492_v63 = vld [vmem:[#allocation41_spill] sm:$0xff] }
 0x602   : > { %5321 = vmin.xlane.f32.xlu0 %v5320_v60  ;;  %v5445_v6 = vsel %vm18490_vm11, %v5444_v48, %v4516_v8  ;;  %v5456_v11 = vrot.slane %v14540_v51, 4  ;;  %v5369_v39 = vcvt.f32.s32 %v18487_v44  ;;  %v14568_v53 = vadd.s32 %v14267_v37, %v4528_v0  ;;  %v18493_v48 = vld [vmem:[#allocation139_spill] sm:$0xff]  ;;  %v18495_v37 = vld [vmem:[#allocation30_spill] sm:$0xff]  ;;  %vm18497_vm13 = vmmov %vm18490_vm11 }
 0x603   : > { %5351 = vmin.xlane.f32.xlu2 %v5350_v30  ;;  %v4603_v30 = vcvt.f32.s32 %v14448_v23  ;;  %v4636_v23 = vadd.s32 %v14305_v10, %v4633_v25  ;;  %v5365_v12 = vsel %vm5364_vm12, %v14463_v4, inf  ;;  %v4558_v21 = vcvt.f32.s32 %v14401_v36  ;;  %vm18499_vm15 = vmmov %vm18490_vm11 }
 0x604   : > { %v5395_v10 = vsel %vm5394_vm14, %v14465_v35, inf  ;;  %vm5424_vm1 = vcmp.eq.f32.partialorder %v18493_v48, %v18492_v63  ;;  %v14578_v25 = vshll.u32 %v5354_v40, 16  ;;  %v14581_v0 = vperm.slane %v5445_v6, %v18495_v37  ;;  %vm18500_vm12 = vmmov %vm18490_vm11 }
 0x605   : > { %v14546_v60 = vpop.xlane.xlu0 %4736  ;;  %v4606_v14 = vadd.s32 %v18491_v55, %v4603_v30  ;;  %v14583_v4 = vshll.u32 %v5384_v29, 16  ;;  %v5434_v44 = vrot.slane %v4486_v9, 4  ;;  %v5470_v36 = vrot.slane %v4636_v23, 4  ;;  %vm18502_vm14 = vmmov %vm18490_vm11 }
 0x606   : > { %v14552_v3 = vpop.xlane.xlu2 %4721  ;;  %5381 = vmin.xlane.f32.xlu1 %v5380_v41  ;;  %v4501_v41 = vadd.s32 %v14265_v1, %v4498_v31  ;;  %18494 = vst [vmem:[#allocation78_spill] sm:$0xff] %v14578_v25  ;;  %v5468_v1 = vrot.slane %v4696_v59, 4  ;;  %v5432_v31 = vrot.slane %v4546_v7, 4  ;;  %v14586_v50 = vshll.u32 %v5369_v39, 16 }
 0x607   : > { %18496 = vst [vmem:[#allocation81_spill] sm:$0xff] %v14583_v4  ;;  %v5457_v30 = vsel %vm18497_vm13, %v5456_v11, %v4606_v14  ;;  %v4588_v35 = vcvt.f32.s32 %v14405_v49  ;;  %v5894_v6 = vrot.slane %v14568_v53, 4  ;;  %v5435_v29 = vsel %vm18500_vm12, %v4546_v7, %v5434_v44  ;;  %v18503_v44 = vld [vmem:[#allocation42_spill] sm:$0xff] }
 0x608   : > { %18498 = vst [vmem:[#allocation83_spill] sm:$0xff] %v14586_v50  ;;  %v5469_v13 = vsel %vm18499_vm15, %v5468_v1, %v4636_v23  ;;  %v5882_v55 = vrot.slane %v4501_v41, 4  ;;  %v5446_v11 = vrot.slane %v4516_v8, 4  ;;  %v5433_v39 = vsel %vm18502_vm14, %v5432_v31, %v4486_v9 }
 0x609   : > { %v14571_v2 = vpop.xlane.xlu1 %4931  ;;  %v5480_v49 = vrot.slane %v14581_v0, 4  ;;  %v5463_v23 = vperm.slane %v5457_v30, %v18495_v37  ;;  %v5471_v1 = vsel %vm18490_vm11, %v4696_v59, %v5470_v36  ;;  %v4678_v33 = vcvt.f32.s32 %v14500_v15 }
 0x60a   : > { %5366 = vmin.xlane.f32.xlu0 %v5365_v12  ;;  %v5425_v12 = vsel %vm5424_vm1, %v14470_v32, inf  ;;  %v5475_v32 = vperm.slane %v5469_v13, %v18495_v37  ;;  %v4708_v7 = vcvt.f32.s32 %v14522_v57  ;;  %v4618_v8 = vcvt.f32.s32 %v14426_v22  ;;  %vm18504_vm1 = vmmov %vm18490_vm11 }
 0x60b   : > { %5396 = vmin.xlane.f32.xlu2 %v5395_v10  ;;  %v18501_v10 = vld [vmem:[#allocation37_spill] sm:$0xff]  ;;  %v5458_v9 = vrot.slane %v4606_v14, 4  ;;  %v5439_v30 = vperm.slane %v5433_v39, %v18495_v37  ;;  %v5447_v59 = vsel %vm18504_vm1, %v14514_v27, %v5446_v11  ;;  %vm18505_vm13 = vmmov %vm18504_vm1  ;;  %v14617_v57 = vperm.slane %v5471_v1, %v18495_v37  ;;  %v18510_v11 = vld [vmem:[#allocation47_spill] sm:$0xff] }
 0x60c   : > { %v4561_v48 = vadd.s32 %v18501_v10, %v4558_v21  ;;  %v14606_v21 = vperm.slane %v5435_v29, %v18495_v37  ;;  %vm18506_vm15 = vmmov %vm18504_vm1  ;;  %v4648_v22 = vcvt.f32.s32 %v14493_v58  ;;  %v5504_v14 = vrot.slane %v5475_v32, 4  ;;  %v18507_v29 = vld [vmem:[#allocation49_spill] sm:$0xff] }
 0x60d   : > { %v14590_v40 = vpop.xlane.xlu0 %4781  ;;  %v5459_v13 = vsel %vm18506_vm15, %v14540_v51, %v5458_v9  ;;  %v4681_v10 = vadd.s32 %v18507_v29, %v4678_v33  ;;  %vm18509_vm12 = vmmov %vm18504_vm1  ;;  %v14626_v27 = vperm.slane %v5447_v59, %v18495_v37  ;;  %v4621_v1 = vadd.s32 %v18510_v11, %v4618_v8  ;;  %v18513_v29 = vld [vmem:[#allocation50_spill] sm:$0xff] }
 0x60e   : > { %v14596_v42 = vpop.xlane.xlu2 %4766  ;;  %5426 = vmin.xlane.f32.xlu1 %v5425_v12  ;;  %v4591_v12 = vadd.s32 %v18503_v44, %v4588_v35  ;;  %v5880_v36 = vrot.slane %v4561_v48, 4  ;;  %v5883_v15 = vsel %vm18505_vm13, %v4561_v48, %v5882_v55  ;;  %v5506_v35 = vrot.slane %v5463_v23, 4  ;;  %v18508_v44 = vld [vmem:[#allocation52_spill] sm:$0xff]  ;;  %vm18511_vm14 = vmmov %vm18504_vm1 }
 0x60f   : > { %v4711_v39 = vadd.s32 %v18508_v44, %v4708_v7  ;;  %v5481_v47 = vsel %vm18509_vm12, %v5480_v49, %v5439_v30  ;;  %v14629_v55 = vperm.slane %v5883_v15, %v18495_v37  ;;  %vm18512_vm11 = vmmov %vm18504_vm1  ;;  %v5467_v33 = vperm.slane %v5459_v13, %v18495_v37  ;;  %v18514_v44 = vld [vmem:[#allocation31_spill] sm:$0xff] }
 0x610   : > { %v5892_v48 = vrot.slane %v4591_v12, 4  ;;  %v5881_v58 = vsel %vm18511_vm14, %v5880_v36, %v4501_v41  ;;  %v5895_v9 = vsel %vm18512_vm11, %v4591_v12, %v5894_v6  ;;  %v5505_v49 = vsel %vm18504_vm1, %v5504_v14, %v5463_v23  ;;  %vm18516_vm13 = vmmov %vm18504_vm1 }
 0x611   : > { %v14610_v31 = vpop.xlane.xlu1 %4751  ;;  %v5516_v59 = vrot.slane %v14617_v57, 4  ;;  %v4651_v15 = vadd.s32 %v18513_v29, %v4648_v22  ;;  %v14643_v54 = vperm.slane %v5481_v47, %v18514_v44  ;;  %v5507_v8 = vsel %vm18516_vm13, %v5475_v32, %v5506_v35  ;;  %vm18517_vm15 = vmmov %vm18504_vm1 }
 0x612   : > { %v5482_v11 = vrot.slane %v5439_v30, 4  ;;  %v5494_v41 = vrot.slane %v14606_v21, 4  ;;  %v5904_v36 = vrot.slane %v4681_v10, 4  ;;  %v5916_v6 = vrot.slane %v4711_v39, 4  ;;  %vm18519_vm12 = vmmov %vm18504_vm1 }
 0x613   : > { %18515 = vst [vmem:[#allocation80_spill] sm:$0xff] %v14643_v54  ;;  %v5492_v12 = vrot.slane %v14626_v27, 4  ;;  %v5893_v13 = vsel %vm18517_vm15, %v5892_v48, %v14568_v53  ;;  %v5906_v23 = vrot.slane %v4621_v1, 4  ;;  %v14653_v22 = vperm.slane %v5505_v49, %v18514_v44  ;;  %vm18520_vm14 = vmmov %vm18504_vm1 }
 0x614   : > { %v14656_v47 = vperm.slane %v5881_v58, %v18495_v37  ;;  %v14660_v30 = vperm.slane %v5895_v9, %v18495_v37  ;;  %v5515_v35 = vperm.slane %v5507_v8, %v18514_v44  ;;  %v5918_v29 = vrot.slane %v4651_v15, 4  ;;  %vm18521_vm11 = vmmov %vm18504_vm1 }
 0x615   : > { %v14632_v51 = vpop.xlane.xlu0 %4826  ;;  %18518 = vst [vmem:[#allocation84_spill] sm:$0xff] %v14653_v22  ;;  %v5907_v50 = vsel %vm18519_vm12, %v4681_v10, %v5906_v23  ;;  %v5530_v53 = vrot.slane %v14643_v54, 4  ;;  %v5517_v48 = vsel %vm18520_vm14, %v5516_v59, %v5467_v33  ;;  %v5905_v49 = vsel %vm18521_vm11, %v5904_v36, %v4621_v1  ;;  %vm18522_vm13 = vmmov %vm18504_vm1 }
 0x616   : > { %v14637_v7 = vpop.xlane.xlu2 %4811  ;;  %v5917_v26 = vsel %vm18504_vm1, %v5916_v6, %v4651_v15  ;;  %v4738_v58 = vcvt.f32.s32 %v14546_v60  ;;  %v5483_v32 = vsel %vm18522_vm13, %v14581_v0, %v5482_v11  ;;  %v14672_v9 = vperm.slane %v5893_v13, %v18495_v37  ;;  %vm18523_vm15 = vmmov %vm18504_vm1  ;;  %v18525_v13 = vld [vmem:[#allocation51_spill] sm:$0xff] }
 0x617   : > { %v5919_v8 = vsel %vm18523_vm15, %v4711_v39, %v5918_v29  ;;  %v4723_v10 = vcvt.f32.s32 %v14552_v3  ;;  %vm18524_vm12 = vmmov %vm18504_vm1  ;;  %v5518_v1 = vrot.slane %v5467_v33, 4  ;;  %v4783_v15 = vcvt.f32.s32 %v14590_v40 }
 0x618   : > { %v5531_v59 = vsel %vm18524_vm12, %v14653_v22, %v5530_v53  ;;  %v5532_v0 = vrot.slane %v5515_v35, 4  ;;  %v5523_v11 = vperm.slane %v5517_v48, %v18514_v44  ;;  %v5911_v36 = vperm.slane %v5905_v49, %v18495_v37  ;;  %vm18527_vm14 = vmmov %vm18504_vm1 }
 0x619   : > { %v14650_v14 = vpop.xlane.xlu1 %4796  ;;  %v14687_v39 = vperm.slane %v5907_v50, %v18495_v37  ;;  %v5923_v3 = vperm.slane %v5917_v26, %v18495_v37  ;;  %v5491_v6 = vperm.slane %v5483_v32, %v18514_v44  ;;  %v14693_v40 = vperm.slane %v5919_v8, %v18495_v37  ;;  %v18526_v50 = vld [vmem:[#allocation53_spill] sm:$0xff]  ;;  %vm18529_vm11 = vmmov %vm18504_vm1 }
 0x61a   : > { %v14696_v29 = vadd.s32 %v18525_v13, %v4738_v58  ;;  %v4933_v53 = vcvt.f32.s32 %v14571_v2  ;;  %v5928_v49 = vrot.slane %v14672_v9, 4  ;;  %v5493_v26 = vsel %vm18527_vm14, %v5492_v12, %v14606_v21  ;;  %v18528_v32 = vld [vmem:[#allocation57_spill] sm:$0xff]  ;;  %v18530_v21 = vld [vmem:[#allocation56_spill] sm:$0xff]  ;;  %vm18531_vm13 = vmmov %vm18504_vm1 }
 0x61b   : > { %v4786_v33 = vadd.s32 %v18528_v32, %v4783_v15  ;;  %v5533_v8 = vsel %vm18529_vm11, %v5532_v0, %v5491_v6  ;;  %v5536_v22 = vrot.slane %v5523_v11, 4  ;;  %v5519_v58 = vsel %vm18504_vm1, %v14617_v57, %v5518_v1  ;;  %vm18532_vm15 = vmmov %vm18504_vm1 }
 0x61c   : > { %v5954_v13 = vrot.slane %v5911_v36, 4  ;;  %v5952_v48 = vrot.slane %v5923_v3, 4  ;;  %v5534_v34 = vrot.slane %v5491_v6, 4  ;;  %v14713_v12 = vadd.s32 %v18530_v21, %v4933_v53  ;;  %vm18533_vm12 = vmmov %vm18504_vm1 }
 0x61d   : > { %v14676_v23 = vpop.xlane.xlu0 %4871  ;;  %v5499_v15 = vperm.slane %v5493_v26, %v18514_v44  ;;  %v4828_v0 = vcvt.f32.s32 %v14632_v51  ;;  %v5495_v1 = vsel %vm18532_vm15, %v14626_v27, %v5494_v41  ;;  %v5527_v6 = vperm.slane %v5519_v58, %v18514_v44  ;;  %vm18534_vm14 = vmmov %vm18504_vm1  ;;  %v18536_v58 = vld [vmem:[#allocation55_spill] sm:$0xff] }
 0x61e   : > { %6328 = vrot.lane.b32.xlu0 %v5531_v59, %s18010_s5  ;;  %v14682_v60 = vpop.xlane.xlu2 %4856  ;;  %v4726_v59 = vadd.s32 %v18526_v50, %v4723_v10  ;;  %v5535_v57 = vsel %vm18531_vm13, %v5515_v35, %v5534_v34  ;;  %v5544_v2 = vrot.slane %v4786_v33, 4  ;;  %v4768_v50 = vcvt.f32.s32 %v14596_v42  ;;  %vm18535_vm11 = vmmov %vm18504_vm1 }
 0x61f   : > { %v5537_v26 = vsel %vm18533_vm12, %v5536_v22, %v5499_v15  ;;  %v4753_v51 = vcvt.f32.s32 %v14610_v31  ;;  %v4813_v21 = vcvt.f32.s32 %v14637_v7  ;;  %v5953_v34 = vsel %vm18534_vm14, %v5952_v48, %v5911_v36  ;;  %vm18538_vm13 = vmmov %vm18504_vm1 }
 0x620   : > { %v5580_v27 = vrot.slane %v14713_v12, 4  ;;  %v5538_v35 = vrot.slane %v5499_v15, 4  ;;  %v5503_v42 = vperm.slane %v5495_v1, %v18514_v44  ;;  %v5540_v7 = vrot.slane %v5527_v6, 4  ;;  %v18539_v15 = vld [vmem:[#allocation58_spill] sm:$0xff]  ;;  %v18540_v1 = vld [vmem:[#allocation59_spill] sm:$0xff]  ;;  %vm18541_vm15 = vmmov %vm18504_vm1 }
 0x621   : > { %v4842_v54 = vpop.xlane.xlu1 %4841  ;;  %v4816_v25 = vadd.s32 %v18540_v1, %v4813_v21  ;;  %vm18542_vm12 = vmmov %vm18504_vm1 }
 0x622   : > { %v4843_v4 = vcvt.f32.s32 %v4842_v54  ;;  %v5539_v48 = vsel %vm18538_vm13, %v5523_v11, %v5538_v35  ;;  %v5929_v11 = vsel %vm18542_vm12, %v5928_v49, %v14656_v47  ;;  %vm18544_vm14 = vmmov %vm18504_vm1 }
 0x623   : > { %6336 = vrot.lane.b32.xlu2 %v5533_v8, %s10481_s20  ;;  %v5546_v8 = vrot.slane %v4726_v59, 4  ;;  %v5541_v35 = vsel %vm18544_vm14, %v5540_v7, %v5503_v42  ;;  %vm18546_vm13 = vmmov %vm18504_vm1  ;;  %v4798_v7 = vcvt.f32.s32 %v14650_v14 }
 0x624   : > { %vm18549_vm12 = vmmov %vm18504_vm1 }
 0x625   : > { %v14717_v32 = vpop.xlane.xlu0 %4916  ;;  %v5547_v41 = vsel %vm18535_vm11, %v4786_v33, %v5546_v8  ;;  %v5959_v33 = vperm.slane %v5953_v34, %v18514_v44  ;;  %v4756_v8 = vadd.s32 %v18539_v15, %v4753_v51  ;;  %v18543_v51 = vld [vmem:[#allocation65_spill] sm:$0xff]  ;;  %vm18545_vm11 = vmmov %vm18504_vm1  ;;  %v18547_v15 = vld [vmem:[#allocation64_spill] sm:$0xff] }
 0x626   : > { %6344 = vrot.lane.b32.xlu0 %v5535_v57, %s10485_s27  ;;  %v4902_v53 = vpop.xlane.xlu2 %4901  ;;  %v4831_v57 = vadd.s32 %v18536_v58, %v4828_v0  ;;  %v4846_v21 = vadd.s32 %v18543_v51, %v4843_v4  ;;  %v5935_v4 = vperm.slane %v5929_v11, %v18514_v44  ;;  %vm18551_vm14 = vmmov %vm18504_vm1 }
 0x627   : > { %v4903_v10 = vcvt.f32.s32 %v4902_v53  ;;  %6352 = vrot.lane.b32.xlu1 %v5537_v26, %s10484_s19  ;;  %v5545_v53 = vsel %vm18504_vm1, %v5544_v2, %v4726_v59  ;;  %v18537_v26 = vld [vmem:[#allocation54_spill] sm:$0xff]  ;;  %v4873_v59 = vcvt.f32.s32 %v14676_v23  ;;  %v5542_v2 = vrot.slane %v5503_v42, 4 }
 0x628   : > { %v4771_v36 = vadd.s32 %v18537_v26, %v4768_v50  ;;  %v14755_v50 = vperm.slane %v5545_v53, %v18495_v37  ;;  %v6004_v0 = vrot.slane %v4831_v57, 4  ;;  %v5558_v49 = vrot.slane %v4756_v8, 4 }
 0x629   : > { %v14735_v22 = vadd.s32 %v14391_v19, %v4903_v10  ;;  %v14737_v31 = vpop.xlane.xlu1 %4886  ;;  %v5955_v19 = vsel %vm18541_vm15, %v5923_v3, %v5954_v13  ;;  %v14749_v10 = vperm.slane %v5547_v41, %v18495_v37  ;;  %v5543_v23 = vsel %vm18545_vm11, %v5527_v6, %v5542_v2  ;;  %vm18548_vm15 = vmmov %vm18504_vm1 }
 0x62a   : > { %v6006_v3 = vrot.slane %v4771_v36, 4  ;;  %v5976_v41 = vrot.slane %v5959_v33, 4  ;;  %v5963_v58 = vperm.slane %v5955_v19, %v18514_v44  ;;  %v5556_v26 = vrot.slane %v4816_v25, 4  ;;  %vm18552_vm11 = vmmov %vm18504_vm1 }
 0x62b   : > { %v5568_v54 = vrot.slane %v14735_v22, 4  ;;  %6360 = vrot.lane.b32.xlu2 %v5539_v48, %s10478_s23  ;;  %v4876_v1 = vadd.s32 %v18547_v15, %v4873_v59  ;;  %v5594_v6 = vrot.slane %v14755_v50, 4  ;;  %v6005_v19 = vsel %vm18548_vm15, %v6004_v0, %v4771_v36  ;;  %vm18556_vm15 = vmmov %vm18504_vm1 }
 0x62c   : > { %v6007_v42 = vsel %vm18546_vm13, %v4831_v57, %v6006_v3  ;;  %v5559_v2 = vsel %vm18549_vm12, %v4816_v25, %v5558_v49  ;;  %v5977_v14 = vsel %vm18552_vm11, %v5976_v41, %v5935_v4  ;;  %v5980_v57 = vrot.slane %v5963_v58, 4  ;;  %vm18554_vm13 = vmmov %vm18504_vm1 }
 0x62d   : > { %v14758_v34 = vpop.xlane.xlu0 %4961  ;;  %v5569_v53 = vsel %vm18504_vm1, %v5568_v54, %v4846_v21  ;;  %v18550_v54 = vrot.slane %v14656_v47, 4  ;;  %v18553_v59 = vrot.slane %v14693_v40, 4  ;;  %v14789_v25 = vperm.slane %v6007_v42, %v18495_v37  ;;  %vm18557_vm12 = vmmov %vm18504_vm1 }
 0x62e   : > { %6368 = vrot.lane.b32.xlu0 %v5541_v35, %s10483_s9  ;;  %v4947_v13 = vpop.xlane.xlu2 %4946  ;;  %v14781_v35 = vperm.slane %v5569_v53, %v18495_v37  ;;  %v5557_v0 = vsel %vm18554_vm13, %v5556_v26, %v4756_v8  ;;  %v14794_v3 = vperm.slane %v5559_v2, %v18495_v37  ;;  %v5581_v49 = vsel %vm18556_vm15, %v5580_v27, %v4876_v1  ;;  %vm18560_vm11 = vmmov %vm18504_vm1 }
 0x62f   : > { %6376 = vrot.lane.b32.xlu1 %v5543_v23, %s10482_s29  ;;  %v5931_v11 = vsel %vm18551_vm14, %v14672_v9, %v18550_v54  ;;  %v5965_v36 = vsel %vm18504_vm1, %v18553_v59, %v14687_v39  ;;  %v4948_v47 = vcvt.f32.s32 %v4947_v13  ;;  %v5978_v9 = vrot.slane %v5935_v4, 4  ;;  %v18555_v23 = vld [vmem:[#allocation61_spill] sm:$0xff]  ;;  %vm18559_vm14 = vmmov %vm18504_vm1 }
 0x630   : > { %v4801_v41 = vadd.s32 %v18555_v23, %v4798_v7  ;;  %v5939_v53 = vperm.slane %v5931_v11, %v18514_v44  ;;  %v14800_v15 = vperm.slane %v6005_v19, %v18495_v37  ;;  %v18558_v13 = vrot.slane %v14660_v30, 4  ;;  %vm18563_vm13 = vmmov %vm18504_vm1 }
 0x631   : > { %v14774_v51 = vpop.xlane.xlu1 %4976  ;;  %v5979_v8 = vsel %vm18557_vm12, %v5959_v33, %v5978_v9  ;;  %v5971_v4 = vperm.slane %v5965_v36, %v18514_v44  ;;  %v5563_v7 = vperm.slane %v5557_v0, %v18495_v37  ;;  %v5570_v2 = vrot.slane %v4846_v21, 4  ;;  %vm18564_vm15 = vmmov %vm18504_vm1 }
 0x632   : > { %v5941_v26 = vsel %vm18559_vm14, %v18558_v13, %v14629_v55  ;;  %v5618_v27 = vrot.slane %v14781_v35, 4  ;;  %v5981_v54 = vsel %vm18560_vm11, %v5980_v57, %v5939_v53  ;;  %v5582_v11 = vrot.slane %v4876_v1, 4  ;;  %vm18565_vm12 = vmmov %vm18504_vm1 }
 0x633   : > { %6384 = vrot.lane.b32.xlu2 %v5977_v14, %s10475_s1  ;;  %v5587_v33 = vperm.slane %v5581_v49, %v18495_v37  ;;  %v18561_v14 = vld [vmem:[#allocation66_spill] sm:$0xff]  ;;  %v18562_v36 = vrot.slane %v14687_v39, 4  ;;  %v4918_v0 = vcvt.f32.s32 %v14717_v32  ;;  %v5571_v9 = vsel %vm18563_vm13, %v14735_v22, %v5570_v2  ;;  %vm18567_vm14 = vmmov %vm18504_vm1 }
 0x634   : > { %v14818_v59 = vadd.s32 %v18561_v14, %v4948_v47  ;;  %v5982_v23 = vrot.slane %v5939_v53, 4  ;;  %v5947_v1 = vperm.slane %v5941_v26, %v18514_v44  ;;  %v5604_v57 = vrot.slane %v14794_v3, 4  ;;  %vm18568_vm11 = vmmov %vm18504_vm1 }
 0x635   : > { %v14802_v42 = vpop.xlane.xlu0 %5006  ;;  %v5967_v21 = vsel %vm18504_vm1, %v14693_v40, %v18562_v36  ;;  %v5992_v49 = vrot.slane %v4801_v41, 4  ;;  %v4888_v47 = vcvt.f32.s32 %v14737_v31  ;;  %v5984_v13 = vrot.slane %v5971_v4, 4  ;;  %vm18571_vm13 = vmmov %vm18504_vm1 }
 0x636   : > { %6392 = vrot.lane.b32.xlu0 %v5979_v8, %s10480_s0  ;;  %v14813_v19 = vpop.xlane.xlu2 %5171  ;;  %v4858_v39 = vcvt.f32.s32 %v14682_v60  ;;  %v5983_v40 = vsel %vm18564_vm15, %v5963_v58, %v5982_v23  ;;  %v14836_v32 = vperm.slane %v5967_v21, %v18514_v44  ;;  %v5619_v22 = vsel %vm18565_vm12, %v5587_v33, %v5618_v27  ;;  %v18569_v58 = vld [vmem:[#allocation62_spill] sm:$0xff]  ;;  %v18570_v27 = vld [vmem:[#allocation63_spill] sm:$0xff]  ;;  %vm18573_vm15 = vmmov %vm18504_vm1 }
 0x637   : > { %6400 = vrot.lane.b32.xlu1 %v5981_v54, %s18008_s30  ;;  %v5592_v53 = vrot.slane %v5563_v7, 4  ;;  %v18566_v26 = vrot.slane %v14696_v29, 4  ;;  %v5579_v54 = vperm.slane %v5571_v9, %v18495_v37  ;;  %v6028_v31 = vrot.slane %v14818_v59, 4  ;;  %vm18574_vm12 = vmmov %vm18504_vm1 }
 0x638   : > { %v5583_v60 = vsel %vm18568_vm11, %v14713_v12, %v5582_v11  ;;  %v4921_v14 = vadd.s32 %v18569_v58, %v4918_v0  ;;  %v5986_v36 = vrot.slane %v5947_v1, 4  ;;  %v5595_v21 = vsel %vm18504_vm1, %v5563_v7, %v5594_v6  ;;  %v18575_v11 = vld [vmem:[#allocation60_spill] sm:$0xff]  ;;  %vm18577_vm11 = vmmov %vm18504_vm1 }
 0x639   : > { %v14831_v8 = vpop.xlane.xlu1 %5021  ;;  %v5995_v2 = vsel %vm18567_vm14, %v4801_v41, %v18566_v26  ;;  %v4891_v23 = vadd.s32 %v18570_v27, %v4888_v47  ;;  %v5985_v41 = vsel %vm18571_vm13, %v5984_v13, %v5947_v1  ;;  %v18572_v9 = vrot.slane %v14629_v55, 4  ;;  %vm18576_vm14 = vmmov %vm18504_vm1 }
 0x63a   : > { %v5993_v12 = vsel %vm18574_vm12, %v5992_v49, %v14696_v29  ;;  %v4861_v0 = vadd.s32 %v18575_v11, %v4858_v39  ;;  %v5987_v7 = vsel %vm18576_vm14, %v5971_v4, %v5986_v36  ;;  %v5988_v1 = vrot.slane %v14836_v32, 4  ;;  %vm18578_vm13 = vmmov %vm18504_vm1 }
 0x63b   : > { %6408 = vrot.lane.b32.xlu2 %v5983_v40, %s18006_s17  ;;  %v5943_v26 = vsel %vm18573_vm15, %v14660_v30, %v18572_v9  ;;  %v5627_v40 = vperm.slane %v5619_v22, %v18514_v44  ;;  %v5591_v55 = vperm.slane %v5583_v60, %v18495_v37  ;;  %v5630_v47 = vrot.slane %v5579_v54, 4  ;;  %vm18579_vm15 = vmmov %vm18504_vm1 }
 0x63c   : > { %v6029_v30 = vsel %vm18577_vm11, %v6028_v31, %v4891_v23  ;;  %v5603_v13 = vperm.slane %v5595_v21, %v18514_v44  ;;  %v5616_v29 = vrot.slane %v5587_v33, 4  ;;  %v6016_v49 = vrot.slane %v4921_v14, 4  ;;  %vm18580_vm12 = vmmov %vm18504_vm1 }
 0x63d   : > { %v14850_v48 = vpop.xlane.xlu0 %5051  ;;  %v14871_v39 = vperm.slane %v5943_v26, %v18514_v44  ;;  %v5593_v22 = vsel %vm18504_vm1, %v5592_v53, %v14755_v50  ;;  %v6040_v4 = vrot.slane %v14800_v15, 4  ;;  %v14878_v60 = vperm.slane %v5995_v2, %v18495_v37  ;;  %vm18581_vm14 = vmmov %vm18504_vm1 }
 0x63e   : > { %6416 = vrot.lane.b32.xlu0 %v5985_v41, %s18004_s22  ;;  %v14862_v6 = vpop.xlane.xlu2 %4991  ;;  %v5644_v36 = vrot.slane %v5627_v40, 4  ;;  %v14883_v21 = vperm.slane %v5993_v12, %v18495_v37  ;;  %v14886_v33 = vperm.slane %v6029_v30, %v18495_v37  ;;  %v5617_v50 = vsel %vm18579_vm15, %v5616_v29, %v14781_v35  ;;  %vm18582_vm11 = vmmov %vm18504_vm1 }
 0x63f   : > { %6424 = vrot.lane.b32.xlu1 %v5987_v7, %s18002_s21  ;;  %v5989_v27 = vsel %vm18578_vm13, %v5988_v1, %v14871_v39  ;;  %v6030_v53 = vrot.slane %v4891_v23, 4  ;;  %v5646_v2 = vrot.slane %v5603_v13, 4  ;;  %v14894_v41 = vperm.slane %v5593_v22, %v18514_v44  ;;  %vm18583_vm13 = vmmov %vm18504_vm1 }
 0x640   : > { %v5631_v9 = vsel %vm18580_vm12, %v5591_v55, %v5630_v47  ;;  %v5628_v26 = vrot.slane %v5591_v55, 4  ;;  %v6018_v12 = vrot.slane %v4861_v0, 4  ;;  %v6017_v11 = vsel %vm18581_vm14, %v6016_v49, %v4861_v0  ;;  %vm18584_vm15 = vmmov %vm18504_vm1 }
 0x641   : > { %v14880_v31 = vpop.xlane.xlu1 %5066  ;;  %v5605_v7 = vsel %vm18582_vm11, %v5604_v57, %v14749_v10  ;;  %v6031_v1 = vsel %vm18504_vm1, %v14818_v59, %v6030_v53  ;;  %v5645_v23 = vsel %vm18583_vm13, %v5644_v36, %v5603_v13  ;;  %v5647_v30 = vsel %vm18584_vm15, %v5627_v40, %v5646_v2  ;;  %vm18585_vm12 = vmmov %vm18504_vm1 }
 0x642   : > { %v14907_v29 = vperm.slane %v5617_v50, %v18514_v44  ;;  %v6064_v55 = vrot.slane %v14886_v33, 4  ;;  %v5053_v47 = vcvt.f32.s32 %v14850_v48  ;;  %v5629_v57 = vsel %vm18585_vm12, %v5628_v26, %v5579_v54  ;;  %vm18586_vm14 = vmmov %vm18504_vm1 }
 0x643   : > { %6432 = vrot.lane.b32.xlu2 %v5989_v27, %s17996_s24  ;;  %v14916_v59 = vperm.slane %v5631_v9, %v18514_v44  ;;  %v4963_v13 = vcvt.f32.s32 %v14758_v34  ;;  %v5023_v40 = vcvt.f32.s32 %v14831_v8  ;;  %v5642_v49 = vrot.slane %v14894_v41, 4  ;;  %vm18587_vm11 = vmmov %vm18504_vm1 }
 0x644   : > { %v5611_v22 = vperm.slane %v5605_v7, %v18514_v44  ;;  %v6019_v36 = vsel %vm18586_vm14, %v4921_v14, %v6018_v12  ;;  %v14926_v27 = vperm.slane %v6017_v11, %v18495_v37  ;;  %v14929_v54 = vperm.slane %v6031_v1, %v18495_v37  ;;  %vm18589_vm13 = vmmov %vm18504_vm1  ;;  %v18590_v7 = vld [vmem:[#allocation68_spill] sm:$0xff] }
 0x645   : > { %v14902_v35 = vpop.xlane.xlu0 %5096  ;;  %v5173_v34 = vcvt.f32.s32 %v14813_v19  ;;  %v5643_v8 = vsel %vm18587_vm11, %v14907_v29, %v5642_v49  ;;  %v5635_v53 = vperm.slane %v5629_v57, %v18514_v44  ;;  %v18588_v2 = vrot.slane %v14749_v10, 4  ;;  %vm18591_vm15 = vmmov %vm18504_vm1 }
 0x646   : > { %6338 = vrot.lane.b32.xlu0 %v5645_v23, %s10481_s20  ;;  %v14912_v0 = vpop.xlane.xlu2 %5036  ;;  %v14940_v14 = vadd.s32 %v14437_v45, %v5053_v47  ;;  %v4993_v26 = vcvt.f32.s32 %v14862_v6  ;;  %v5652_v12 = vrot.slane %v14916_v59, 4  ;;  %v6065_v19 = vsel %vm18589_vm13, %v6064_v55, %v14926_v27  ;;  %v18592_v55 = vld [vmem:[#allocation69_spill] sm:$0xff]  ;;  %vm18593_vm12 = vmmov %vm18504_vm1 }
 0x647   : > { %6346 = vrot.lane.b32.xlu1 %v5647_v30, %s10485_s27  ;;  %v5607_v9 = vsel %vm18504_vm1, %v14794_v3, %v18588_v2  ;;  %v14947_v11 = vperm.slane %v6019_v36, %v18495_v37  ;;  %v4966_v1 = vadd.s32 %v18590_v7, %v4963_v13  ;;  %v5026_v10 = vadd.s32 %v14435_v24, %v5023_v40  ;;  %v18594_v36 = vld [vmem:[#allocation72_spill] sm:$0xff]  ;;  %vm18595_vm14 = vmmov %vm18504_vm1 }
 0x648   : > { %v5650_v3 = vrot.slane %v5611_v22, 4  ;;  %v6076_v45 = vrot.slane %v14929_v54, 4  ;;  %v5008_v23 = vcvt.f32.s32 %v14802_v42  ;;  %v14955_v6 = vperm.slane %v5607_v9, %v18514_v44  ;;  %vm18597_vm11 = vmmov %vm18504_vm1 }
 0x649   : > { %v5112_v50 = vpop.xlane.xlu1 %5111  ;;  %v6041_v30 = vsel %vm18591_vm15, %v6040_v4, %v14883_v21  ;;  %v5176_v47 = vadd.s32 %v18592_v55, %v5173_v34  ;;  %v6071_v24 = vperm.slane %v6065_v19, %v18514_v44  ;;  %v5668_v40 = vrot.slane %v14940_v14, 4  ;;  %vm18598_vm13 = vmmov %vm18504_vm1 }
 0x64a   : > { %v5113_v57 = vcvt.f32.s32 %v5112_v50  ;;  %v5651_v13 = vsel %vm18593_vm12, %v5635_v53, %v5650_v3  ;;  %v5653_v2 = vsel %vm18595_vm14, %v5652_v12, %v14955_v6  ;;  %v5648_v9 = vrot.slane %v5635_v53, 4  ;;  %vm18599_vm15 = vmmov %vm18504_vm1 }
 0x64b   : > { %6330 = vrot.lane.b32.xlu2 %v5643_v8, %s18010_s5  ;;  %v4996_v8 = vadd.s32 %v18594_v36, %v4993_v26  ;;  %v5656_v4 = vrot.slane %v5026_v10, 4  ;;  %v6047_v50 = vperm.slane %v6041_v30, %v18514_v44  ;;  %v6042_v19 = vrot.slane %v14883_v21, 4  ;;  %vm18600_vm12 = vmmov %vm18504_vm1 }
 0x64c   : > { %v6066_v3 = vrot.slane %v14926_v27, 4  ;;  %v6078_v26 = vrot.slane %v14947_v11, 4  ;;  %v5658_v55 = vrot.slane %v4966_v1, 4  ;;  %v5116_v36 = vadd.s32 %v14476_v52, %v5113_v57  ;;  %vm18601_vm14 = vmmov %vm18504_vm1 }
 0x64d   : > { %v5142_v49 = vpop.xlane.xlu0 %5141  ;;  %v5669_v30 = vsel %vm18597_vm11, %v5668_v40, %v4996_v8  ;;  %v5649_v21 = vsel %vm18504_vm1, %v5648_v9, %v5611_v22  ;;  %v5657_v27 = vsel %vm18598_vm13, %v5656_v4, %v4966_v1  ;;  %v6077_v52 = vsel %vm18599_vm15, %v6076_v45, %v14947_v11  ;;  %vm18602_vm11 = vmmov %vm18504_vm1 }
 0x64e   : > { %6362 = vrot.lane.b32.xlu0 %v5651_v13, %s10478_s23  ;;  %v5082_v42 = vpop.xlane.xlu2 %5081  ;;  %v5143_v7 = vcvt.f32.s32 %v5142_v49  ;;  %v6088_v49 = vrot.slane %v6071_v24, 4  ;;  %v6090_v13 = vrot.slane %v6047_v50, 4  ;;  %v5068_v57 = vcvt.f32.s32 %v14880_v31  ;;  %vm18603_vm13 = vmmov %vm18504_vm1 }
 0x64f   : > { %v5083_v34 = vcvt.f32.s32 %v5082_v42  ;;  %6370 = vrot.lane.b32.xlu1 %v5653_v2, %s10483_s9  ;;  %v18596_v42 = vld [vmem:[#allocation67_spill] sm:$0xff]  ;;  %v5692_v2 = vrot.slane %v5176_v47, 4  ;;  %v5659_v40 = vsel %vm18601_vm14, %v5026_v10, %v5658_v55  ;;  %v14990_v22 = vperm.slane %v5669_v30, %v18495_v37  ;;  %vm18604_vm15 = vmmov %vm18504_vm1 }
 0x650   : > { %v5146_v53 = vadd.s32 %v14478_v56, %v5143_v7  ;;  %v14976_v48 = vadd.s32 %v18596_v42, %v5008_v23  ;;  %v5670_v56 = vrot.slane %v4996_v8, 4  ;;  %v6043_v7 = vsel %vm18600_vm12, %v14800_v15, %v6042_v19  ;;  %vm18605_vm12 = vmmov %vm18504_vm1 }
 0x651   : > { %v5157_v12 = vpop.xlane.xlu1 %5156  ;;  %v5086_v58 = vadd.s32 %v14480_v20, %v5083_v34  ;;  %v5694_v1 = vrot.slane %v5116_v36, 4  ;;  %v6089_v9 = vsel %vm18602_vm11, %v6088_v49, %v6047_v50  ;;  %v5693_v4 = vsel %vm18504_vm1, %v5692_v2, %v5116_v36  ;;  %vm18607_vm14 = vmmov %vm18504_vm1 }
 0x652   : > { %v5680_v23 = vrot.slane %v5146_v53, 4  ;;  %v6091_v31 = vsel %vm18603_vm13, %v6071_v24, %v6090_v13  ;;  %v6067_v15 = vsel %vm18604_vm15, %v14886_v33, %v6066_v3  ;;  %v15001_v10 = vperm.slane %v6077_v52, %v18514_v44  ;;  %v18606_v24 = vld [vmem:[#allocation74_spill] sm:$0xff]  ;;  %vm18609_vm11 = vmmov %vm18504_vm1 }
 0x653   : > { %6354 = vrot.lane.b32.xlu2 %v5649_v21, %s10484_s19  ;;  %v15004_v45 = vperm.slane %v5657_v27, %v18495_v37  ;;  %v5682_v8 = vrot.slane %v5086_v58, 4  ;;  %v5654_v34 = vrot.slane %v14955_v6, 4  ;;  %v6051_v50 = vperm.slane %v6043_v7, %v18514_v44  ;;  %vm18610_vm13 = vmmov %vm18504_vm1 }
 0x654   : > { %v5671_v19 = vsel %vm18605_vm12, %v14940_v14, %v5670_v56  ;;  %v15012_v55 = vadd.s32 %v18606_v24, %v5068_v57  ;;  %v5681_v33 = vsel %vm18607_vm14, %v5680_v23, %v5086_v58  ;;  %v18608_v3 = vrot.slane %v14789_v25, 4  ;;  %vm18611_vm15 = vmmov %vm18504_vm1 }
 0x655   : > { %v5187_v20 = vpop.xlane.xlu0 %5186  ;;  %v5704_v36 = vrot.slane %v14990_v22, 4  ;;  %v5695_v49 = vsel %vm18504_vm1, %v5176_v47, %v5694_v1  ;;  %v5699_v6 = vperm.slane %v5693_v4, %v18495_v37  ;;  %v6075_v14 = vperm.slane %v6067_v15, %v18514_v44  ;;  %vm18612_vm12 = vmmov %vm18504_vm1 }
 0x656   : > { %6386 = vrot.lane.b32.xlu0 %v6089_v9, %s10475_s1  ;;  %v14995_v11 = vpop.xlane.xlu2 %5126  ;;  %v6053_v13 = vsel %vm18609_vm11, %v18608_v3, %v14878_v60  ;;  %v5158_v2 = vcvt.f32.s32 %v5157_v12  ;;  %v5655_v30 = vsel %vm18610_vm13, %v14916_v59, %v5654_v34  ;;  %v6096_v58 = vrot.slane %v15001_v10, 4  ;;  %vm18613_vm14 = vmmov %vm18504_vm1 }
 0x657   : > { %6394 = vrot.lane.b32.xlu1 %v6091_v31, %s10480_s0  ;;  %v6079_v21 = vsel %vm18611_vm15, %v14929_v54, %v6078_v26  ;;  %v15031_v27 = vperm.slane %v5671_v19, %v18495_v37  ;;  %v5683_v47 = vsel %vm18612_vm12, %v5146_v53, %v5682_v8  ;;  %v5687_v52 = vperm.slane %v5681_v33, %v18495_v37  ;;  %vm18614_vm11 = vmmov %vm18504_vm1 }
 0x658   : > { %v6094_v56 = vrot.slane %v6051_v50, 4  ;;  %v5038_v12 = vcvt.f32.s32 %v14912_v0  ;;  %v15038_v57 = vperm.slane %v5695_v49, %v18495_v37  ;;  %v5188_v59 = vcvt.f32.s32 %v5187_v20  ;;  %vm18616_vm13 = vmmov %vm18504_vm1 }
 0x659   : > { %v15022_v42 = vpop.xlane.xlu1 %5201  ;;  %v15041_v23 = vperm.slane %v6053_v13, %v18514_v44  ;;  %v5728_v54 = vrot.slane %v5699_v6, 4  ;;  %v15047_v53 = vperm.slane %v6079_v21, %v18514_v44  ;;  %v5705_v1 = vsel %vm18614_vm11, %v5704_v36, %v15004_v45  ;;  %vm18617_vm15 = vmmov %vm18504_vm1  ;;  %v18621_v21 = vld [vmem:[#allocation71_spill] sm:$0xff] }
 0x65a   : > { %v6095_v7 = vsel %vm18613_vm14, %v6075_v14, %v6094_v56  ;;  %v15052_v0 = vperm.slane %v5683_v47, %v18495_v37  ;;  %v15055_v9 = vadd.s32 %v14482_v17, %v5158_v2  ;;  %v6092_v31 = vrot.slane %v6075_v14, 4  ;;  %vm18618_vm12 = vmmov %vm18504_vm1 }
 0x65b   : > { %6378 = vrot.lane.b32.xlu2 %v5655_v30, %s10482_s29  ;;  %v6097_v4 = vsel %vm18504_vm1, %v6096_v58, %v15041_v23  ;;  %v5098_v15 = vcvt.f32.s32 %v14902_v35  ;;  %v5730_v8 = vrot.slane %v5687_v52, 4  ;;  %v18615_v34 = vrot.slane %v14878_v60, 4  ;;  %vm18619_vm14 = vmmov %vm18504_vm1 }
 0x65c   : > { %v5729_v17 = vsel %vm18617_vm15, %v5728_v54, %v5687_v52  ;;  %v5740_v24 = vrot.slane %v15038_v57, 4  ;;  %v15071_v33 = vadd.s32 %v14484_v16, %v5188_v59  ;;  %v5128_v3 = vcvt.f32.s32 %v14995_v11  ;;  %vm18620_vm11 = vmmov %vm18504_vm1 }
 0x65d   : > { %v15043_v26 = vpop.xlane.xlu0 %5411  ;;  %v6055_v19 = vsel %vm18616_vm13, %v14789_v25, %v18615_v34  ;;  %v15075_v13 = vperm.slane %v5705_v1, %v18514_v44  ;;  %v6118_v35 = vrot.slane %v14976_v48, 4  ;;  %v5667_v36 = vperm.slane %v5659_v40, %v18495_v37  ;;  %vm18622_vm13 = vmmov %vm18504_vm1  ;;  %v18625_v34 = vld [vmem:[#allocation70_spill] sm:$0xff] }
 0x65e   : > { %6410 = vrot.lane.b32.xlu0 %v6095_v7, %s18006_s17  ;;  %v15058_v20 = vpop.xlane.xlu2 %5216  ;;  %v15080_v60 = vadd.s32 %v14467_v5, %v5038_v12  ;;  %v6100_v49 = vrot.slane %v15047_v53, 4  ;;  %v6128_v14 = vrot.slane %v15055_v9, 4  ;;  %v6093_v16 = vsel %vm18618_vm12, %v6092_v31, %v6051_v50  ;;  %vm18623_vm15 = vmmov %vm18504_vm1 }
 0x65f   : > { %6418 = vrot.lane.b32.xlu1 %v6097_v4, %s18004_s22  ;;  %v15088_v11 = vperm.slane %v5729_v17, %v18514_v44  ;;  %v5741_v2 = vsel %vm18619_vm14, %v5740_v24, %v15052_v0  ;;  %v5716_v30 = vrot.slane %v15031_v27, 4  ;;  %v6116_v40 = vrot.slane %v15012_v55, 4  ;;  %vm18626_vm12 = vmmov %vm18504_vm1 }
 0x660   : > { %v15096_v5 = vperm.slane %v6055_v19, %v18514_v44  ;;  %v5731_v58 = vsel %vm18620_vm11, %v5699_v6, %v5730_v8  ;;  %v15100_v47 = vadd.s32 %v18621_v21, %v5098_v15  ;;  %v6140_v50 = vrot.slane %v15071_v33, 4  ;;  %vm18627_vm14 = vmmov %vm18504_vm1 }
 0x661   : > { %v15082_v25 = vpop.xlane.xlu1 %5246  ;;  %v5131_v52 = vadd.s32 %v14489_v28, %v5128_v3  ;;  %v5754_v56 = vrot.slane %v15075_v13, 4  ;;  %v5706_v12 = vrot.slane %v15004_v45, 4  ;;  %v6104_v59 = vrot.slane %v15080_v60, 4  ;;  %vm18628_vm11 = vmmov %vm18504_vm1 }
 0x662   : > { %v6101_v7 = vsel %vm18504_vm1, %v6100_v49, %v15096_v5  ;;  %v15112_v6 = vperm.slane %v5741_v2, %v18514_v44  ;;  %v5399_v1 = vcvt.f32.s32 %v14271_v38  ;;  %v6129_v4 = vsel %vm18622_vm13, %v6128_v14, %v15100_v47  ;;  %vm18629_vm13 = vmmov %vm18504_vm1 }
 0x663   : > { %6402 = vrot.lane.b32.xlu2 %v6093_v16, %s18008_s30  ;;  %v5755_v45 = vsel %vm18623_vm15, %v15088_v11, %v5754_v56  ;;  %v5739_v31 = vperm.slane %v5731_v58, %v18514_v44  ;;  %v5429_v15 = vcvt.f32.s32 %v18492_v63  ;;  %v18624_v8 = vcvt.f32.s32 %v14774_v51  ;;  %vm18630_vm15 = vmmov %vm18504_vm1 }
 0x664   : > { %v5718_v17 = vrot.slane %v5667_v36, 4  ;;  %v6119_v38 = vsel %vm18626_vm12, %v15012_v55, %v6118_v35  ;;  %v6117_v24 = vsel %vm18627_vm14, %v6116_v40, %v14976_v48  ;;  %v6141_v3 = vsel %vm18628_vm11, %v6140_v50, %v5131_v52  ;;  %vm18631_vm12 = vmmov %vm18504_vm1 }
 0x665   : > { %v15107_v54 = vpop.xlane.xlu0 %5231  ;;  %v4981_v19 = vadd.s32 %v18625_v34, %v18624_v8  ;;  %v6098_v49 = vrot.slane %v15041_v23, 4  ;;  %v5717_v14 = vsel %vm18504_vm1, %v5716_v30, %v5667_v36  ;;  %v6135_v51 = vperm.slane %v6129_v4, %v18495_v37  ;;  %vm18632_vm14 = vmmov %vm18504_vm1 }
 0x666   : > { %6434 = vrot.lane.b32.xlu0 %v6101_v7, %s17996_s24  ;;  %v15118_v28 = vpop.xlane.xlu2 %5261  ;;  %v5760_v2 = vrot.slane %v15112_v6, 4  ;;  %v5707_v55 = vsel %vm18630_vm15, %v14990_v22, %v5706_v12  ;;  %v15141_v35 = vperm.slane %v6119_v38, %v18495_v37  ;;  %v5742_v48 = vrot.slane %v15052_v0, 4  ;;  %vm18633_vm11 = vmmov %vm18504_vm1 }
 0x667   : > { %6332 = vrot.lane.b32.xlu1 %v5755_v45, %s18010_s5  ;;  %v6105_v63 = vsel %vm18629_vm13, %v6104_v59, %v4981_v19  ;;  %v6099_v23 = vsel %vm18631_vm12, %v15001_v10, %v6098_v49  ;;  %v5756_v40 = vrot.slane %v5739_v31, 4  ;;  %v15146_v36 = vshll.u32 %v5399_v1, 16  ;;  %vm18634_vm13 = vmmov %vm18504_vm1 }
 0x668   : > { %v6123_v30 = vperm.slane %v6117_v24, %v18495_v37  ;;  %v6147_v58 = vperm.slane %v6141_v3, %v18495_v37  ;;  %v5723_v21 = vperm.slane %v5717_v14, %v18514_v44  ;;  %v6111_v22 = vperm.slane %v6105_v63, %v18495_v37  ;;  %vm18635_vm15 = vmmov %vm18504_vm1 }
 0x669   : > { %v5292_v16 = vpop.xlane.xlu1 %5291  ;;  %v5715_v56 = vperm.slane %v5707_v55, %v18514_v44  ;;  %v5719_v0 = vsel %vm18632_vm14, %v15031_v27, %v5718_v17  ;;  %v6106_v10 = vrot.slane %v4981_v19, 4  ;;  %v6178_v12 = vrot.slane %v6135_v51, 4  ;;  %vm18636_vm12 = vmmov %vm18504_vm1 }
 0x66a   : > { %v5293_v50 = vcvt.f32.s32 %v5292_v16  ;;  %v6142_v59 = vrot.slane %v5131_v52, 4  ;;  %v5761_v1 = vsel %vm18633_vm11, %v5760_v2, %v5723_v21  ;;  %v15159_v4 = vshll.u32 %v5429_v15, 16  ;;  %vm18637_vm14 = vmmov %vm18504_vm1 }
 0x66b   : > { %6426 = vrot.lane.b32.xlu2 %v6099_v23, %s18002_s21  ;;  %v6164_v45 = vrot.slane %v15141_v35, 4  ;;  %v5757_v34 = vsel %vm18504_vm1, %v5756_v40, %v5715_v56  ;;  %v5743_v27 = vsel %vm18634_vm13, %v15038_v57, %v5742_v48  ;;  %v6130_v19 = vrot.slane %v15100_v47, 4  ;;  %vm18638_vm11 = vmmov %vm18504_vm1 }
 0x66c   : > { %v6107_v52 = vsel %vm18635_vm15, %v15080_v60, %v6106_v10  ;;  %v6176_v17 = vrot.slane %v6147_v58, 4  ;;  %v5727_v15 = vperm.slane %v5719_v0, %v18514_v44  ;;  %v6152_v38 = vrot.slane %v6123_v30, 4  ;;  %vm18639_vm13 = vmmov %vm18504_vm1 }
 0x66d   : > { %v15156_v7 = vpop.xlane.xlu0 %5276  ;;  %v6154_v24 = vrot.slane %v6111_v22, 4  ;;  %v15174_v3 = vadd.s32 %v14518_v62, %v5293_v50  ;;  %v5758_v49 = vrot.slane %v5715_v56, 4  ;;  %v6143_v14 = vsel %vm18636_vm12, %v15071_v33, %v6142_v59  ;;  %vm18640_vm15 = vmmov %vm18504_vm1 }
 0x66e   : > { %6356 = vrot.lane.b32.xlu0 %v5761_v1, %s10484_s19  ;;  %v15163_v8 = vpop.xlane.xlu2 %5306  ;;  %v5263_v57 = vcvt.f32.s32 %v15118_v28  ;;  %v5751_v60 = vperm.slane %v5743_v27, %v18514_v44  ;;  %v6179_v63 = vsel %vm18637_vm14, %v6147_v58, %v6178_v12  ;;  %v15184_v16 = vperm.slane %v6107_v52, %v18495_v37  ;;  %vm18641_vm12 = vmmov %vm18504_vm1 }
 0x66f   : > { %6340 = vrot.lane.b32.xlu1 %v5757_v34, %s10481_s20  ;;  %v6131_v2 = vsel %vm18638_vm11, %v15055_v9, %v6130_v19  ;;  %v5233_v62 = vcvt.f32.s32 %v15107_v54  ;;  %v5759_v55 = vsel %vm18504_vm1, %v5739_v31, %v5758_v49  ;;  %v5413_v33 = vcvt.f32.s32 %v15043_v26  ;;  %vm18642_vm14 = vmmov %vm18504_vm1  ;;  %v18644_v19 = vld [vmem:[#allocation78_spill] sm:$0xff] }
 0x670   : > { %v5766_v28 = vrot.slane %v5727_v15, 4  ;;  %v5762_v48 = vrot.slane %v5723_v21, 4  ;;  %v6177_v23 = vsel %vm18639_vm13, %v6176_v17, %v6135_v51  ;;  %v15194_v40 = vperm.slane %v6143_v14, %v18495_v37  ;;  %vm18643_vm11 = vmmov %vm18504_vm1 }
 0x671   : > { %v15179_v47 = vpop.xlane.xlu1 %5336  ;;  %v5203_v58 = vcvt.f32.s32 %v15022_v42  ;;  %v5780_v50 = vrot.slane %v15174_v3, 4  ;;  %v15199_v9 = vperm.slane %v6179_v63, %v18514_v44  ;;  %v5266_v54 = vadd.s32 %v14516_v61, %v5263_v57  ;;  %vm18645_vm13 = vmmov %vm18504_vm1 }
 0x672   : > { %v5767_v26 = vsel %vm18640_vm15, %v5751_v60, %v5766_v28  ;;  %v5763_v31 = vsel %vm18641_vm12, %v15112_v6, %v5762_v48  ;;  %v6155_v21 = vsel %vm18642_vm14, %v6123_v30, %v6154_v24  ;;  %v5236_v51 = vadd.s32 %v14511_v18, %v5233_v62  ;;  %vm18646_vm15 = vmmov %vm18504_vm1 }
 0x673   : > { %6348 = vrot.lane.b32.xlu2 %v5759_v55, %s10485_s27  ;;  %v5764_v42 = vrot.slane %v5751_v60, 4  ;;  %v6153_v0 = vsel %vm18643_vm11, %v6152_v38, %v6111_v22  ;;  %v6183_v10 = vperm.slane %v6177_v23, %v18514_v44  ;;  %v6166_v12 = vrot.slane %v15184_v16, 4  ;;  %vm18648_vm12 = vmmov %vm18504_vm1 }
 0x674   : > { %v6139_v61 = vperm.slane %v6131_v2, %v18495_v37  ;;  %v5416_v59 = vadd.s32 %v14497_v43, %v5413_v33  ;;  %v6188_v18 = vrot.slane %v15194_v40, 4  ;;  %v5206_v30 = vadd.s32 %v14495_v46, %v5203_v58  ;;  %v18647_v33 = vld [vmem:[#allocation81_spill] sm:$0xff]  ;;  %vm18649_vm14 = vmmov %vm18504_vm1 }
 0x675   : > { %v5322_v1 = vpop.xlane.xlu0 %5321  ;;  %v5781_v34 = vsel %vm18504_vm1, %v5780_v50, %v5236_v51  ;;  %v6204_v22 = vrot.slane %v15199_v9, 4  ;;  %v5768_v27 = vrot.slane %v5266_v54, 4  ;;  %v6163_v38 = vperm.slane %v6155_v21, %v18514_v44  ;;  %vm18650_vm11 = vmmov %vm18504_vm1 }
 0x676   : > { %6380 = vrot.lane.b32.xlu0 %v5767_v26, %s10482_s29  ;;  %v5352_v56 = vpop.xlane.xlu2 %5351  ;;  %v6159_v43 = vperm.slane %v6153_v0, %v18514_v44  ;;  %v5323_v24 = vcvt.f32.s32 %v5322_v1  ;;  %v5765_v14 = vsel %vm18645_vm13, %v5764_v42, %v5727_v15  ;;  %v6200_v57 = vrot.slane %v6183_v10, 4  ;;  %v18651_v26 = vld [vmem:[#allocation77_spill] sm:$0xff]  ;;  %vm18652_vm13 = vmmov %vm18504_vm1 }
 0x677   : > { %v5353_v6 = vcvt.f32.s32 %v5352_v56  ;;  %6364 = vrot.lane.b32.xlu1 %v5763_v31, %s10478_s23  ;;  %v6190_v60 = vrot.slane %v6139_v61, 4  ;;  %v5804_v63 = vrot.slane %v5416_v59, 4  ;;  %v15223_v46 = vperm.slane %v5781_v34, %v18495_v37 }
 0x678   : > { %v6165_v2 = vsel %vm18646_vm15, %v6164_v45, %v15184_v16  ;;  %v5770_v62 = vrot.slane %v5206_v30, 4  ;;  %v6205_v48 = vsel %vm18648_vm12, %v6204_v22, %v6163_v38  ;;  %v5769_v15 = vsel %vm18649_vm14, %v5768_v27, %v5206_v30  ;;  %vm18653_vm15 = vmmov %vm18504_vm1 }
 0x679   : > { %v5356_v52 = vadd.s32 %v18644_v19, %v5353_v6  ;;  %v5382_v17 = vpop.xlane.xlu1 %5381  ;;  %v6202_v58 = vrot.slane %v6159_v43, 4  ;;  %v6189_v50 = vsel %vm18504_vm1, %v6188_v18, %v6139_v61  ;;  %v5326_v31 = vadd.s32 %v18651_v26, %v5323_v24  ;;  %vm18654_vm12 = vmmov %vm18504_vm1 }
 0x67a   : > { %v5383_v49 = vcvt.f32.s32 %v5382_v17  ;;  %v6201_v45 = vsel %vm18652_vm13, %v6200_v57, %v6159_v43  ;;  %v6171_v42 = vperm.slane %v6165_v2, %v18514_v44  ;;  %v5248_v0 = vcvt.f32.s32 %v15082_v25  ;;  %vm18655_vm14 = vmmov %vm18504_vm1 }
 0x67b   : > { %6372 = vrot.lane.b32.xlu2 %v5765_v14, %s10483_s9  ;;  %v5806_v55 = vrot.slane %v5356_v52, 4  ;;  %v5805_v23 = vsel %vm18650_vm11, %v5804_v63, %v5356_v52  ;;  %v5782_v1 = vrot.slane %v5236_v51, 4  ;;  %v5771_v6 = vsel %vm18653_vm15, %v5266_v54, %v5770_v62  ;;  %vm18656_vm11 = vmmov %vm18504_vm1 }
 0x67c   : > { %v5386_v28 = vadd.s32 %v18647_v33, %v5383_v49  ;;  %v5816_v30 = vrot.slane %v15223_v46, 4  ;;  %v5811_v18 = vperm.slane %v5805_v23, %v18495_v37  ;;  %v6203_v22 = vsel %vm18656_vm11, %v6183_v10, %v6202_v58  ;;  %vm18657_vm13 = vmmov %vm18504_vm1 }
 0x67d   : > { %v5807_v61 = vsel %vm18654_vm12, %v5416_v59, %v5806_v55  ;;  %v5775_v27 = vperm.slane %v5769_v15, %v18495_v37  ;;  %v5783_v19 = vsel %vm18504_vm1, %v15174_v3, %v5782_v1  ;;  %v6195_v52 = vperm.slane %v6189_v50, %v18514_v44  ;;  %v5367_v57 = vpop.xlane.xlu0 %5366  ;;  %vm18658_vm15 = vmmov %vm18504_vm1 }
 0x67e   : > { %v5792_v21 = vrot.slane %v5386_v28, 4  ;;  %6404 = vrot.lane.b32.xlu0 %v6205_v48, %s18008_s30  ;;  %v5397_v56 = vpop.xlane.xlu2 %5396  ;;  %v5794_v17 = vrot.slane %v5326_v31, 4  ;;  %v6210_v24 = vrot.slane %v6171_v42, 4  ;;  %v6206_v59 = vrot.slane %v6163_v38, 4  ;;  %vm18659_vm12 = vmmov %vm18504_vm1 }
 0x67f   : > { %6388 = vrot.lane.b32.xlu1 %v6201_v45, %s10475_s1  ;;  %v15253_v49 = vperm.slane %v5807_v61, %v18495_v37  ;;  %v5817_v10 = vsel %vm18657_vm13, %v5816_v30, %v5775_v27  ;;  %v6191_v3 = vsel %vm18658_vm15, %v15194_v40, %v6190_v60  ;;  %v5840_v63 = vrot.slane %v5811_v18, 4  ;;  %vm18661_vm11 = vmmov %vm18504_vm1  ;;  %v18663_v45 = vld [vmem:[#allocation76_spill] sm:$0xff] }
 0x680   : > { %v5793_v34 = vsel %vm18655_vm14, %v5792_v21, %v5326_v31  ;;  %v5795_v2 = vsel %vm18659_vm12, %v5386_v28, %v5794_v17  ;;  %v5398_v62 = vcvt.f32.s32 %v5397_v56  ;;  %v15264_v38 = vperm.slane %v5783_v19, %v18495_v37  ;;  %vm18660_vm14 = vmmov %vm18504_vm1 }
 0x681   : > { %v5799_v51 = vperm.slane %v5793_v34, %v18495_v37  ;;  %v5427_v54 = vpop.xlane.xlu1 %5426  ;;  %v5308_v33 = vcvt.f32.s32 %v15163_v8  ;;  %v6211_v48 = vsel %vm18660_vm14, %v6195_v52, %v6210_v24  ;;  %v6207_v15 = vsel %vm18661_vm11, %v15199_v9, %v6206_v59  ;;  %vm18662_vm13 = vmmov %vm18504_vm1  ;;  %v18665_v34 = vld [vmem:[#allocation83_spill] sm:$0xff] }
 0x682   : > { %v5428_v43 = vcvt.f32.s32 %v5427_v54  ;;  %v5368_v23 = vcvt.f32.s32 %v5367_v57  ;;  %v6208_v60 = vrot.slane %v6195_v52, 4  ;;  %v5852_v58 = vrot.slane %v15253_v49, 4  ;;  %vm18664_vm15 = vmmov %vm18504_vm1  ;;  %v18669_v52 = vld [vmem:[#allocation75_spill] sm:$0xff] }
 0x683   : > { %v5842_v14 = vrot.slane %v5799_v51, 4  ;;  %6396 = vrot.lane.b32.xlu2 %v6203_v22, %s10480_s0  ;;  %v5841_v28 = vsel %vm18504_vm1, %v5840_v63, %v5799_v51  ;;  %v5803_v8 = vperm.slane %v5795_v2, %v18495_v37  ;;  %v15281_v50 = vperm.slane %v5817_v10, %v18514_v44  ;;  %vm18666_vm12 = vmmov %vm18504_vm1  ;;  %v18673_v63 = vld [vmem:[#allocation73_spill] sm:$0xff] }
 0x684   : > { %v15261_v55 = vadd.s32 %v15159_v4, %v5428_v43  ;;  %v15275_v4 = vperm.slane %v6191_v3, %v18514_v44  ;;  %v5818_v26 = vrot.slane %v5775_v27, 4  ;;  %v5278_v31 = vcvt.f32.s32 %v15156_v7  ;;  %vm18667_vm14 = vmmov %vm18504_vm1  ;;  %v18670_v43 = vld [vmem:[#allocation79_spill] sm:$0xff] }
 0x685   : > { %v5843_v9 = vsel %vm18662_vm13, %v5811_v18, %v5842_v14  ;;  %v15286_v21 = vadd.s32 %v15146_v36, %v5398_v62  ;;  %v15290_v1 = vadd.s32 %v18663_v45, %v5308_v33  ;;  %v5338_v30 = vcvt.f32.s32 %v15179_v47  ;;  %vm18668_vm11 = vmmov %vm18504_vm1 }
 0x686   : > { %6428 = vrot.lane.b32.xlu0 %v6211_v48, %s18002_s21  ;;  %v15271_v40 = vpop.permute.xlu2 %6336  ;;  %v6252_v56 = vrot.slane %v15261_v55, 4  ;;  %v15294_v61 = vperm.slane %v5841_v28, %v18514_v44  ;;  %v6167_v18 = vsel %vm18664_vm15, %v15141_v35, %v6166_v12  ;;  %v5371_v7 = vadd.s32 %v18665_v34, %v5368_v23  ;;  %vm18671_vm13 = vmmov %vm18504_vm1 }
 0x687   : > { %6412 = vrot.lane.b32.xlu1 %v6207_v15, %s18006_s17  ;;  %v6209_v36 = vsel %vm18666_vm12, %v6208_v60, %v6171_v42  ;;  %v6212_v22 = vrot.slane %v15275_v4, 4  ;;  %v5851_v27 = vperm.slane %v5843_v9, %v18514_v44  ;;  %v5779_v19 = vperm.slane %v5771_v6, %v18495_v37  ;;  %vm18672_vm15 = vmmov %vm18504_vm1  ;;  %v18675_v60 = vld [vmem:[#allocation39_spill] sm:$0xff] }
 0x688   : > { %v5828_v47 = vrot.slane %v15264_v38, 4  ;;  %v5866_v51 = vrot.slane %v15281_v50, 4  ;;  %v5853_v16 = vsel %vm18667_vm14, %v5852_v58, %v5803_v8  ;;  %v6240_v35 = vrot.slane %v15286_v21, 4  ;;  %vm18674_vm12 = vmmov %vm18504_vm1 }
 0x689   : > { %v6253_v12 = vsel %vm18668_vm11, %v6252_v56, %v5371_v7  ;;  %v15312_v42 = vperm.slane %v6167_v18, %v18514_v44  ;;  %v5819_v54 = vsel %vm18504_vm1, %v15223_v46, %v5818_v26  ;;  %v15317_v6 = vadd.s32 %v18669_v52, %v5278_v31  ;;  %vm18677_vm14 = vmmov %vm18504_vm1 }
 0x68a   : > { %v6228_v17 = vrot.slane %v15290_v1, 4  ;;  %v5341_v24 = vadd.s32 %v18670_v43, %v5338_v30  ;;  %v5867_v59 = vsel %vm18671_vm13, %v15294_v61, %v5866_v51  ;;  %v5854_v14 = vrot.slane %v5803_v8, 4  ;;  %vm18678_vm11 = vmmov %vm18504_vm1 }
 0x68b   : > { %6420 = vrot.lane.b32.xlu2 %v6209_v36, %s18004_s22  ;;  %v6213_v10 = vsel %vm18672_vm15, %v6212_v22, %v15312_v42  ;;  %v5868_v3 = vrot.slane %v5851_v27, 4  ;;  %v5859_v46 = vperm.slane %v5853_v16, %v18514_v44  ;;  %v5251_v2 = vadd.s32 %v18673_v63, %v5248_v0  ;;  %vm18679_vm13 = vmmov %vm18504_vm1 }
 0x68c   : > { %v6259_v62 = vperm.slane %v6253_v12, %v18495_v37  ;;  %v5827_v33 = vperm.slane %v5819_v54, %v18514_v44  ;;  %v5218_v48 = vcvt.f32.s32 %v15058_v20  ;;  %v6241_v15 = vsel %vm18674_vm12, %v6240_v35, %v5341_v24  ;;  %vm18680_vm15 = vmmov %vm18504_vm1 }
 0x68d   : > { %v18676_v28 = vcvt.f32.s32 %v18675_v60  ;;  %v5830_v8 = vrot.slane %v5779_v19, 4  ;;  %v6229_v25 = vsel %vm18677_vm14, %v6228_v17, %v5251_v2  ;;  %v5829_v0 = vsel %vm18678_vm11, %v5828_v47, %v5779_v19  ;;  %vm18681_vm12 = vmmov %vm18504_vm1 }
 0x68e   : > { %6334 = vrot.lane.b32.xlu0 %v5867_v59, %s18010_s5  ;;  %v15324_v57 = vpop.permute.xlu2 %6360  ;;  %v6216_v9 = vrot.slane %v15317_v6, 4  ;;  %v5869_v26 = vsel %vm18504_vm1, %v5868_v3, %v5827_v33  ;;  %v5872_v31 = vrot.slane %v5859_v46, 4  ;;  %v5855_v20 = vsel %vm18679_vm13, %v15253_v49, %v5854_v14  ;;  %vm18682_vm14 = vmmov %vm18504_vm1 }
 0x68f   : > { %6436 = vrot.lane.b32.xlu1 %v6213_v10, %s17996_s24  ;;  %v5220_v58 = vshll.u32 %v18676_v28, 16  ;;  %v6247_v56 = vperm.slane %v6241_v15, %v18495_v37  ;;  %v6288_v45 = vrot.slane %v6259_v62, 4  ;;  %v5870_v30 = vrot.slane %v5827_v33, 4  ;;  %vm18683_vm11 = vmmov %vm18504_vm1 }
 0x690   : > { %v15337_v23 = vpop.permute.xlu0 %6328  ;;  %v6235_v34 = vperm.slane %v6229_v25, %v18495_v37  ;;  %v5835_v36 = vperm.slane %v5829_v0, %v18514_v44  ;;  %v6254_v22 = vrot.slane %v5371_v7, 4  ;;  %v5831_v47 = vsel %vm18681_vm12, %v15264_v38, %v5830_v8  ;;  %vm18684_vm13 = vmmov %vm18504_vm1 }
 0x691   : > { %v5221_v18 = vadd.s32 %v5220_v58, %v5218_v48  ;;  %v5871_v19 = vsel %vm18680_vm15, %v5851_v27, %v5870_v30  ;;  %v5863_v51 = vperm.slane %v5855_v20, %v18514_v44  ;;  %v6230_v12 = vrot.slane %v5251_v2, 4  ;;  %vm18685_vm15 = vmmov %vm18504_vm1 }
 0x692   : > { %v5873_v35 = vsel %vm18683_vm11, %v5872_v31, %v5835_v36  ;;  %v6290_v54 = vrot.slane %v6247_v56, 4  ;;  %v6255_v7 = vsel %vm18504_vm1, %v15261_v55, %v6254_v22  ;;  %v6289_v27 = vsel %vm18684_vm13, %v6288_v45, %v6247_v56  ;;  %vm18686_vm12 = vmmov %vm18504_vm1 }
 0x693   : > { %6342 = vrot.lane.b32.xlu2 %v5869_v26, %s10481_s20  ;;  %v6217_v49 = vsel %vm18682_vm14, %v6216_v9, %v5221_v18  ;;  %v6264_v38 = vrot.slane %v6235_v34, 4  ;;  %v5874_v17 = vrot.slane %v5835_v36, 4  ;;  %v5839_v43 = vperm.slane %v5831_v47, %v18514_v44  ;;  %vm18687_vm14 = vmmov %vm18504_vm1 }
 0x694   : > { %v6223_v59 = vperm.slane %v6217_v49, %v18495_v37  ;;  %v6231_v14 = vsel %vm18685_vm15, %v15290_v1, %v6230_v12  ;;  %v5876_v3 = vrot.slane %v5863_v51, 4  ;;  %v6242_v63 = vrot.slane %v5341_v24, 4  ;;  %vm18688_vm11 = vmmov %vm18504_vm1 }
 0x695   : > { %v6263_v55 = vperm.slane %v6255_v7, %v18495_v37  ;;  %v5875_v2 = vsel %vm18686_vm12, %v5859_v46, %v5874_v17  ;;  %v6295_v33 = vperm.slane %v6289_v27, %v18514_v44  ;;  %v6291_v48 = vsel %vm18687_vm14, %v6259_v62, %v6290_v54  ;;  %vm18689_vm13 = vmmov %vm18504_vm1 }
 0x696   : > { %6350 = vrot.lane.b32.xlu0 %v5871_v19, %s10485_s27  ;;  %v15357_v16 = vpop.permute.xlu2 %6384  ;;  %v6243_v15 = vsel %vm18688_vm11, %v15286_v21, %v6242_v63  ;;  %v5878_v60 = vrot.slane %v5839_v43, 4  ;;  %v6265_v1 = vsel %vm18504_vm1, %v6264_v38, %v6223_v59  ;;  %v6218_v28 = vrot.slane %v5221_v18, 4  ;;  %vm18690_vm15 = vmmov %vm18504_vm1 }
 0x697   : > { %6358 = vrot.lane.b32.xlu1 %v5873_v35, %s10484_s19  ;;  %v6266_v58 = vrot.slane %v6223_v59, 4  ;;  %v6239_v24 = vperm.slane %v6231_v14, %v18495_v37  ;;  %v5877_v8 = vsel %vm18689_vm13, %v5876_v3, %v5839_v43  ;;  %v6300_v25 = vrot.slane %v6263_v55, 4  ;;  %vm18691_vm12 = vmmov %vm18504_vm1 }
 0x698   : > { %v15364_v52 = vpop.permute.xlu0 %6344  ;;  %v5879_v0 = vsel %vm18690_vm15, %v5863_v51, %v5878_v60  ;;  %v6312_v62 = vrot.slane %v6295_v33, 4  ;;  %v6299_v9 = vperm.slane %v6291_v48, %v18514_v44  ;;  %v6251_v21 = vperm.slane %v6243_v15, %v18495_v37  ;;  %vm18692_vm14 = vmmov %vm18504_vm1 }
 0x699   : > { %v15370_v10 = vpop.permute.xlu1 %6352  ;;  %v6271_v26 = vperm.slane %v6265_v1, %v18514_v44  ;;  %v6219_v31 = vsel %vm18691_vm12, %v15317_v6, %v6218_v28  ;;  %v6276_v56 = vrot.slane %v6239_v24, 4  ;;  %v6267_v30 = vsel %vm18692_vm14, %v6235_v34, %v6266_v58  ;;  %vm18693_vm11 = vmmov %vm18504_vm1 }
 0x69a   : > { %v6316_v36 = vrot.slane %v6299_v9, 4  ;;  %v6301_v22 = vsel %vm18504_vm1, %v6300_v25, %v6251_v21  ;;  %v6227_v19 = vperm.slane %v6219_v31, %v18495_v37  ;;  %v6302_v47 = vrot.slane %v6251_v21, 4  ;;  %vm18694_vm13 = vmmov %vm18504_vm1 }
 0x69b   : > { %6366 = vrot.lane.b32.xlu2 %v5875_v2, %s10478_s23  ;;  %v6313_v18 = vsel %vm18693_vm11, %v6312_v62, %v6271_v26  ;;  %v6314_v51 = vrot.slane %v6271_v26, 4  ;;  %v6275_v6 = vperm.slane %v6267_v30, %v18514_v44  ;;  %vm18695_vm15 = vmmov %vm18504_vm1  ;;  %v6307_v12 = vperm.slane %v6301_v22, %v18514_v44  ;;  %v18708_v22 = vld [vmem:[#allocation29_spill] sm:$0xff] }
 0x69c   : > { %v6277_v35 = vsel %vm18695_vm15, %v6276_v56, %v6227_v19  ;;  %vm18696_vm12 = vmmov %vm18504_vm1  ;;  %v6278_v43 = vrot.slane %v6227_v19, 4  ;;  %v6102_v25 = vrot.slane %v15096_v5, 4  ;;  %v6214_v26 = vrot.slane %v15312_v42, 4 }
 0x69d   : > { %v6315_v49 = vsel %vm18694_vm13, %v6295_v33, %v6314_v51  ;;  %v6317_v54 = vsel %vm18696_vm12, %v6316_v36, %v6275_v6  ;;  %vm18697_vm14 = vmmov %vm18504_vm1  ;;  %v6318_v38 = vrot.slane %v6275_v6, 4  ;;  %v6283_v17 = vperm.slane %v6277_v35, %v18514_v44 }
 0x69e   : > { %6374 = vrot.lane.b32.xlu0 %v5877_v8, %s10483_s9  ;;  %v15383_v46 = vpop.permute.xlu2 %6408  ;;  %v6303_v7 = vsel %vm18697_vm14, %v6263_v55, %v6302_v47  ;;  %v6320_v14 = vrot.slane %v6307_v12, 4  ;;  %vm18698_vm11 = vmmov %vm18504_vm1 }
 0x69f   : > { %6382 = vrot.lane.b32.xlu1 %v5879_v0, %s10482_s29  ;;  %v6319_v3 = vsel %vm18698_vm11, %v6299_v9, %v6318_v38  ;;  %v6311_v63 = vperm.slane %v6303_v7, %v18514_v44  ;;  %v6322_v2 = vrot.slane %v6283_v17, 4  ;;  %vm18699_vm13 = vmmov %vm18504_vm1 }
 0x6a0   : > { %v15392_v20 = vpop.permute.xlu0 %6368  ;;  %v6321_v33 = vsel %vm18504_vm1, %v6320_v14, %v6283_v17  ;;  %v6279_v55 = vsel %vm18699_vm13, %v6239_v24, %v6278_v43  ;;  %vm18700_vm15 = vmmov %vm18504_vm1  ;;  %v5990_v24 = vrot.slane %v14871_v39, 4  ;;  %v6215_v39 = vsel %vm18504_vm1, %v15275_v4, %v6214_v26  ;;  %v18707_v4 = vld [vmem:[#allocation28_spill] sm:$0xff]  ;;  %v10004_v26 = vld [vmem:[#allocation8 + $0x18] sm:$0xff] }
 0x6a1   : > { %v15394_v45 = vpop.permute.xlu1 %6376  ;;  %v6323_v15 = vsel %vm18700_vm15, %v6307_v12, %v6322_v2  ;;  %v6324_v60 = vrot.slane %v6311_v63, 4  ;;  %v6287_v28 = vperm.slane %v6279_v55, %v18514_v44  ;;  %vm18701_vm12 = vmmov %vm18504_vm1  ;;  %v10008_v2 = vld [vmem:[#allocation8 + $0x38] sm:$0xff] }
 0x6a2   : > { %vm18702_vm14 = vmmov %vm18504_vm1  ;;  %9207 = vmatpush.bf16.msrb.mxu0 %v10008_v2 }
 0x6a3   : > { %6390 = vrot.lane.b32.xlu2 %v6313_v18, %s10475_s1  ;;  %v6325_v8 = vsel %vm18701_vm12, %v6324_v60, %v6287_v28  ;;  %v5991_v0 = vsel %vm18702_vm14, %v14836_v32, %v5990_v24  ;;  %vm18703_vm11 = vmmov %vm18504_vm1  ;;  %v6326_v32 = vrot.slane %v6287_v28, 4  ;;  %v18706_v18 = vld [vmem:[#allocation27_spill] sm:$0xff] }
 0x6a4   : > { %v6103_v9 = vsel %vm18703_vm11, %v15047_v53, %v6102_v25  ;;  %vm18704_vm13 = vmmov %vm18504_vm1  ;;  %v18705_v53 = vld [vmem:[#allocation26_spill] sm:$0xff]  ;;  %v10006_v28 = vld [vmem:[#allocation8 + $0x28] sm:$0xff] }
 0x6a5   : > { %v6327_v5 = vsel %vm18704_vm13, %v6311_v63, %v6326_v32  ;;  %v10005_v25 = vld [vmem:[#allocation8 + $0x20] sm:$0xff]  ;;  %vm18709_vm15 = vmmov %vm18504_vm1  ;;  %vm18716_vm13 = vcmask 785408  }
 0x6a6   : > { %6398 = vrot.lane.b32.xlu0 %v6315_v49, %s10480_s0  ;;  %v15406_v34 = vpop.permute.xlu2 %6432  ;;  %vm18712_vm12 = vmmov %vm18504_vm1 }
 0x6a7   : > { %6406 = vrot.lane.b32.xlu1 %v6317_v54, %s18008_s30  ;;  %vm18713_vm14 = vmmov %vm18504_vm1 }
 0x6a8   : > { %v15411_v27 = vpop.permute.xlu0 %6392  ;;  %vm18714_vm11 = vmmov %vm18504_vm1  ;;  %vm18715_vm1 = vcmask 719872  }
 0x6a9   : > { %v15414_v59 = vpop.permute.xlu1 %6400 }
 0x6ab   : > { %6414 = vrot.lane.b32.xlu2 %v6319_v3, %s18006_s17 }
 0x6ae   : > { %6422 = vrot.lane.b32.xlu0 %v6321_v33, %s18004_s22  ;;  %v15422_v48 = vpop.permute.xlu2 %6330 }
 0x6af   : > { %6430 = vrot.lane.b32.xlu1 %v6323_v15, %s18002_s21  ;;  %v10007_v15 = vld [vmem:[#allocation8 + $0x30] sm:$0xff] }
 0x6b0   : > { %v15426_v1 = vpop.permute.xlu0 %6416  ;;  %9208 = vmatpush.bf16.msrb.mxu0 %v10007_v15  ;;  %v10003_v15 = vld [vmem:[#allocation8 + $0x10] sm:$0xff] }
 0x6b1   : > { %v15429_v58 = vpop.permute.xlu1 %6424 }
 0x6b3   : > { %6438 = vrot.lane.b32.xlu2 %v6325_v8, %s17996_s24 }
 0x6b4   : > { %9209 = vmatpush.bf16.msrb.mxu0 %v10006_v28  ;;  %v18710_v28 = vld [vmem:[#allocation84_spill] sm:$0xff] }
 0x6b6   : > { %6440 = vrot.lane.b32.xlu0 %v5991_v0, %s17994_s26  ;;  %v15438_v62 = vpop.permute.xlu2 %6354  ;;  %v5752_v0 = vrot.slane %v15088_v11, 4 }
 0x6b7   : > { %6442 = vrot.lane.b32.xlu1 %v6103_v9, %s17994_s26 }
 0x6b8   : > { %v15443_v21 = vpop.permute.xlu0 %6338  ;;  %9210 = vmatpush.bf16.msrb.mxu0 %v10005_v25  ;;  %v5528_v25 = vrot.slane %v18710_v28, 4 }
 0x6b9   : > { %v15446_v31 = vpop.permute.xlu1 %6346 }
 0x6bb   : > { %6444 = vrot.lane.b32.xlu2 %v6215_v39, %s17994_s26  ;;  %v5753_v39 = vsel %vm18709_vm15, %v5752_v0, %v15075_v13  ;;  %v10002_v0 = vld [vmem:[#allocation8 + $0x8] sm:$0xff]  ;;  %vm18717_vm15 = vcmask 850944  }
 0x6bc   : > { %9211 = vmatpush.bf16.msrb.mxu0 %v10004_v26 }
 0x6be   : > { %6446 = vrot.lane.b32.xlu0 %v6327_v5, %s17994_s26  ;;  %v15453_v56 = vpop.permute.xlu2 %6378 }
 0x6bf   : > { %6528 = vrot.lane.b32.xlu1 %v18705_v53, %s17994_s26 }
 0x6c0   : > { %v15457_v30 = vpop.permute.xlu0 %6362  ;;  %9212 = vmatpush.bf16.msrb.mxu0 %v10003_v15 }
 0x6c1   : > { %v15459_v42 = vpop.permute.xlu1 %6370 }
 0x6c3   : > { %6530 = vrot.lane.b32.xlu2 %v18706_v18, %s17994_s26 }
 0x6c4   : > { %9213 = vmatpush.bf16.msrb.mxu0 %v10002_v0 }
 0x6c6   : > { %6532 = vrot.lane.b32.xlu0 %v18707_v4, %s17994_s26  ;;  %v15465_v36 = vpop.permute.xlu2 %6402 }
 0x6c7   : > { %6534 = vrot.lane.b32.xlu1 %v18708_v22, %s17994_s26  ;;  %s18001_s26 = sshll.u32 %s15627_s18, 5 }
 0x6c8   : > { %v15469_v19 = vpop.permute.xlu0 %6386 }
 0x6c9   : > { %v15471_v47 = vpop.permute.xlu1 %6394 }
 0x6cb   : > { %6540 = vrot.lane.b32.xlu2 %v18705_v53, %s17996_s24 }
 0x6ce   : > { %6542 = vrot.lane.b32.xlu0 %v18706_v18, %s17996_s24  ;;  %v15477_v51 = vpop.permute.xlu2 %6426 }
 0x6cf   : > { %6544 = vrot.lane.b32.xlu1 %v18707_v4, %s17996_s24 }
 0x6d0   : > { %v15481_v6 = vpop.permute.xlu0 %6410 }
 0x6d1   : > { %v15483_v49 = vpop.permute.xlu1 %6418 }
 0x6d3   : > { %6546 = vrot.lane.b32.xlu2 %v18708_v22, %s17996_s24  ;;  %s15674_s24 = scalar_lea.vmem [#allocation12], %s18001_s26  ;;  %s18978_s26 = smov 88  }
 0x6d6   : > { %6552 = vrot.lane.b32.xlu0 %v18705_v53, %s18002_s21  ;;  %v6349_v35 = vpop.permute.xlu2 %6348 }
 0x6d7   : > { %6554 = vrot.lane.b32.xlu1 %v18706_v18, %s18002_s21 }
 0x6d8   : > { %v15491_v12 = vpop.permute.xlu0 %6434 }
 0x6d9   : > { %v6333_v54 = vpop.permute.xlu1 %6332 }
 0x6da   : > { %v6450_v5 = vsel %vm2046_vm2, %v5753_v39, %v6333_v54  ;;  %v5640_v54 = vrot.slane %v14907_v29, 4 }
 0x6db   : > { %6556 = vrot.lane.b32.xlu2 %v18707_v4, %s18002_s21 }
 0x6dc   : > { %v5641_v28 = vsel %vm18713_vm14, %v5640_v54, %v14894_v41  ;;  %vm18719_vm14 = vcmask 982016  }
 0x6de   : > { %6558 = vrot.lane.b32.xlu0 %v18708_v22, %s18002_s21  ;;  %v15497_v7 = vpop.permute.xlu2 %6372  ;;  %s18982_s21 = smov 96  }
 0x6df   : > { %6564 = vrot.lane.b32.xlu1 %v18705_v53, %s18004_s22 }
 0x6e0   : > { %v6357_v38 = vpop.permute.xlu0 %6356 }
 0x6e1   : > { %v6341_v17 = vpop.permute.xlu1 %6340 }
 0x6e2   : > { %v6454_v11 = vsel %vm3379_vm3, %v6450_v5, %v6341_v17  ;;  %v18711_v17 = vld [vmem:[#allocation80_spill] sm:$0xff] }
 0x6e3   : > { %6566 = vrot.lane.b32.xlu2 %v18706_v18, %s18004_s22  ;;  %v6458_v44 = vsel %vm3384_vm4, %v6454_v11, %v6349_v35  ;;  %v5529_v26 = vsel %vm18712_vm12, %v5528_v25, %v18711_v17  ;;  %v10001_v25 = vld [vmem:[#allocation8] sm:$0xff]  ;;  %vm18718_vm12 = vcmask 916480  }
 0x6e4   : > { %v6462_v39 = vsel %vm731_vm0, %v6458_v44, %v6357_v38  ;;  %v6448_v35 = vsel %vm2046_vm2, %v5529_v26, %v15337_v23  ;;  %v6449_v44 = vsel %vm2046_vm2, %v5641_v28, %v15422_v48  ;;  %v5864_v23 = vrot.slane %v15294_v61, 4  ;;  %9214 = vmatpush.bf16.msrb.mxu0 %v10001_v25 }
 0x6e5   : > { %v6452_v29 = vsel %vm3379_vm3, %v6448_v35, %v15271_v40  ;;  %v6453_v41 = vsel %vm3379_vm3, %v6449_v44, %v15443_v21  ;;  %v10489_v44 = vmov 0.0  }
 0x6e6   : > { %6568 = vrot.lane.b32.xlu0 %v18707_v4, %s18004_s22  ;;  %v15505_v43 = vpop.permute.xlu2 %6396  ;;  %v5865_v21 = vsel %vm18714_vm11, %v5864_v23, %v15281_v50 }
 0x6e7   : > { %6570 = vrot.lane.b32.xlu1 %v18708_v22, %s18004_s22  ;;  %s18999_s22 = smov 112  }
 0x6e8   : > { %v15509_v14 = vpop.permute.xlu0 %6380 }
 0x6e9   : > { %v6365_v3 = vpop.permute.xlu1 %6364 }
 0x6ea   : > { %v6466_v11 = vsel %vm3393_vm5, %v6462_v39, %v6365_v3  ;;  %v6456_v3 = vsel %vm3384_vm4, %v6452_v29, %v15364_v52  ;;  %v6457_v52 = vsel %vm3384_vm4, %v6453_v41, %v15446_v31 }
 0x6eb   : > { %6588 = vrot.lane.b32.xlu2 %v18705_v53, %s18008_s30  ;;  %v6470_v38 = vsel %vm3398_vm6, %v6466_v11, %v15497_v7  ;;  %v6460_v61 = vsel %vm731_vm0, %v6456_v3, %v15370_v10  ;;  %v6461_v26 = vsel %vm731_vm0, %v6457_v52, %v15438_v62 }
 0x6ec   : > { %v6474_v40 = vsel %vm3403_vm7, %v6470_v38, %v15509_v14  ;;  %v6464_v14 = vsel %vm3393_vm5, %v6460_v61, %v15324_v57  ;;  %v6465_v31 = vsel %vm3393_vm5, %v6461_v26, %v15457_v30 }
 0x6ed   : > { %v6468_v50 = vsel %vm3398_vm6, %v6464_v14, %v15392_v20  ;;  %v6469_v20 = vsel %vm3398_vm6, %v6465_v31, %v15459_v42 }
 0x6ee   : > { %6590 = vrot.lane.b32.xlu0 %v18706_v18, %s18008_s30  ;;  %v15515_v63 = vpop.permute.xlu2 %6420 }
 0x6ef   : > { %6576 = vrot.lane.b32.xlu1 %v18705_v53, %s18006_s17 }
 0x6f0   : > { %v15519_v33 = vpop.permute.xlu0 %6404 }
 0x6f1   : > { %v6389_v55 = vpop.permute.xlu1 %6388 }
 0x6f2   : > { %v6478_v48 = vsel %vm18000_vm8, %v6474_v40, %v6389_v55 }
 0x6f3   : > { %6578 = vrot.lane.b32.xlu2 %v18706_v18, %s18006_s17  ;;  %v6482_v10 = vsel %vm17999_vm9, %v6478_v48, %v15505_v43 }
 0x6f4   : > { %v6486_v62 = vsel %vm17998_vm10, %v6482_v10, %v15519_v33 }
 0x6f6   : > { %6600 = vrot.lane.b32.xlu0 %v18705_v53, %s10480_s0  ;;  %v15525_v60 = vpop.permute.xlu2 %6342 }
 0x6f7   : > { %6602 = vrot.lane.b32.xlu1 %v18706_v18, %s10480_s0 }
 0x6f8   : > { %v15529_v8 = vpop.permute.xlu0 %6428 }
 0x6f9   : > { %v15531_v24 = vpop.permute.xlu1 %6412 }
 0x6fa   : > { %v6490_v30 = vsel %vm18715_vm1, %v6486_v62, %v15531_v24 }
 0x6fb   : > { %6612 = vrot.lane.b32.xlu2 %v18705_v53, %s10475_s1  ;;  %v6494_v42 = vsel %vm18716_vm13, %v6490_v30, %v15515_v63 }
 0x6fe   : > { %6614 = vrot.lane.b32.xlu0 %v18706_v18, %s10475_s1  ;;  %v15538_v9 = vpop.permute.xlu2 %6366 }
 0x6ff   : > { %6636 = vrot.lane.b32.xlu1 %v18705_v53, %s10483_s9 }
 0x700   : > { %v6335_v32 = vpop.permute.xlu0 %6334 }
 0x701   : > { %v15545_v2 = vpop.permute.xlu1 %6436  ;;  %v6451_v54 = vsel %vm2046_vm2, %v5865_v21, %v6335_v32  ;;  %v6472_v32 = vsel %vm3403_vm7, %v6468_v50, %v15394_v45  ;;  %v6473_v45 = vsel %vm3403_vm7, %v6469_v20, %v15453_v56  ;;  %v6498_v56 = vsel %vm18717_vm15, %v6494_v42, %v15529_v8  ;;  %vm18721_vm15 = vmmov %vm18715_vm1 }
 0x702   : > { %v6455_v55 = vsel %vm3379_vm3, %v6451_v54, %v15525_v60  ;;  %v6477_v35 = vsel %vm18000_vm8, %v6473_v45, %v15469_v19  ;;  %v6502_v19 = vsel %vm18718_vm12, %v6498_v56, %v15545_v2  ;;  %vm18722_vm12 = vcmask 850944  }
 0x703   : > { %6638 = vrot.lane.b32.xlu2 %v18706_v18, %s10483_s9 }
 0x706   : > { %6624 = vrot.lane.b32.xlu0 %v18705_v53, %s10482_s29  ;;  %v15554_v13 = vpop.permute.xlu2 %6390 }
 0x707   : > { %6626 = vrot.lane.b32.xlu1 %v18706_v18, %s10482_s29 }
 0x708   : > { %v6351_v5 = vpop.permute.xlu0 %6350 }
 0x709   : > { %v6359_v15 = vpop.permute.xlu1 %6358  ;;  %v6459_v57 = vsel %vm3384_vm4, %v6455_v55, %v6351_v5  ;;  %v6476_v5 = vsel %vm18000_vm8, %v6472_v32, %v15357_v16 }
 0x70a   : > { %v6463_v60 = vsel %vm731_vm0, %v6459_v57, %v6359_v15  ;;  %v6480_v24 = vsel %vm17999_vm9, %v6476_v5, %v15411_v27  ;;  %v6481_v27 = vsel %vm17999_vm9, %v6477_v35, %v15471_v47 }
 0x70b   : > { %6660 = vrot.lane.b32.xlu2 %v18705_v53, %s10484_s19  ;;  %v6467_v11 = vsel %vm3393_vm5, %v6463_v60, %v15538_v9  ;;  %v6484_v63 = vsel %vm17998_vm10, %v6480_v24, %v15414_v59  ;;  %v18720_v59 = vld [vmem:[#allocation32_spill] sm:$0xff]  ;;  %v6485_v2 = vsel %vm17998_vm10, %v6481_v27, %v15465_v36 }
 0x70c   : > { %v6488_v47 = vsel %vm18715_vm1, %v6484_v63, %v15383_v46  ;;  %v6489_v3 = vsel %vm18721_vm15, %v6485_v2, %v15481_v6  ;;  %vm18724_vm1 = vmmov %vm18722_vm12 }
 0x70d   : > { %v6492_v23 = vsel %vm18716_vm13, %v6488_v47, %v15426_v1 }
 0x70e   : > { %6662 = vrot.lane.b32.xlu0 %v18706_v18, %s10484_s19  ;;  %v15582_v0 = vpop.permute.xlu2 %6414  ;;  %v6496_v36 = vsel %vm18722_vm12, %v6492_v23, %v15429_v58  ;;  %vm18727_vm12 = vcmask 719872  }
 0x70f   : > { %6648 = vrot.lane.b32.xlu1 %v18705_v53, %s10478_s23 }
 0x710   : > { %v6375_v7 = vpop.permute.xlu0 %6374 }
 0x711   : > { %v6383_v17 = vpop.permute.xlu1 %6382  ;;  %v6471_v16 = vsel %vm3398_vm6, %v6467_v11, %v6375_v7 }
 0x712   : > { %v6475_v15 = vsel %vm3403_vm7, %v6471_v16, %v6383_v17 }
 0x713   : > { %6650 = vrot.lane.b32.xlu2 %v18706_v18, %s10478_s23  ;;  %v6479_v41 = vsel %vm18000_vm8, %v6475_v15, %v15554_v13 }
 0x716   : > { %6684 = vrot.lane.b32.xlu0 %v18705_v53, %s10481_s20  ;;  %v15615_v43 = vpop.permute.xlu2 %6438 }
 0x717   : > { %6686 = vrot.lane.b32.xlu1 %v18706_v18, %s10481_s20 }
 0x718   : > { %v6399_v33 = vpop.permute.xlu0 %6398 }
 0x719   : > { %v6407_v39 = vpop.permute.xlu1 %6406  ;;  %v6483_v46 = vsel %vm17999_vm9, %v6479_v41, %v6399_v33 }
 0x71a   : > { %v6487_v6 = vsel %vm17998_vm10, %v6483_v46, %v6407_v39  ;;  %vm18729_vm10 = vcmask 785408  }
 0x71b   : > { %6672 = vrot.lane.b32.xlu2 %v18705_v53, %s10485_s27  ;;  %v6491_v61 = vsel %vm18727_vm12, %v6487_v6, %v15582_v0  ;;  %v10490_v0 = vmov 1.0|1.0  }
 0x71e   : > { %6674 = vrot.lane.b32.xlu0 %v18706_v18, %s10485_s27  ;;  %v6445_v9 = vpop.permute.xlu2 %6444 }
 0x71f   : > { %v6506_v28 = vsel %vm18719_vm14, %v6502_v19, %v6445_v9  ;;  %6696 = vrot.lane.b32.xlu1 %v18705_v53, %s18010_s5  ;;  %vm18723_vm14 = vmmov %vm18716_vm13  ;;  %vm18725_vm13 = vcmask 916480  }
 0x720   : > { %v6423_v8 = vpop.permute.xlu0 %6422  ;;  %vm6510_vm11 = vcmp.eq.s32.totalorder %v18720_v59, %v6506_v28  ;;  %v6493_v1 = vsel %vm18723_vm14, %v6489_v3, %v15483_v49  ;;  %v6500_v58 = vsel %vm18725_vm13, %v6496_v36, %v15406_v34  ;;  %vm18726_vm15 = vmmov %vm18725_vm13  ;;  %vm18728_vm14 = vcmask 982016  }
 0x721   : > { %v6431_v29 = vpop.permute.xlu1 %6430  ;;  %v9827_v38 = vsel %vm6510_vm11, 1.0, %v10489_v44  ;;  %v6497_v25 = vsel %vm18724_vm1, %v6493_v1, %v15477_v51  ;;  %v6495_v21 = vsel %vm18729_vm10, %v6491_v61, %v6423_v8  ;;  %vm18730_vm8 = vmmov %vm18728_vm14 }
 0x722   : > { %6522 = vst [vmem:[%s15674_s24 + $0x10] sm:$0xff] %v9827_v38  ;;  %v6501_v49 = vsel %vm18726_vm15, %v6497_v25, %v15491_v12  ;;  %vm18731_vm15 = vcmask 850944   ;;  %vm18733_vm10 = vmmov %vm18728_vm14  ;;  %v6710_v38 = vrot.slane %v18705_v53, 4 }
 0x723   : > { %6698 = vrot.lane.b32.xlu2 %v18706_v18, %s18010_s5  ;;  %v6499_v12 = vsel %vm18731_vm15, %v6495_v21, %v6431_v29 }
 0x726   : > { %6592 = vrot.lane.b32.xlu0 %v18707_v4, %s18008_s30  ;;  %v15687_v13 = vpop.permute.xlu2 %6530 }
 0x727   : > { %6594 = vrot.lane.b32.xlu1 %v18708_v22, %s18008_s30 }
 0x728   : > { %v6441_v40 = vpop.permute.xlu0 %6440 }
 0x729   : > { %v6504_v52 = vsel %vm18728_vm14, %v6500_v58, %v6441_v40  ;;  %v6443_v48 = vpop.permute.xlu1 %6442 }
 0x72a   : > { %vm6508_vm9 = vcmp.eq.s32.totalorder %v18720_v59, %v6504_v52  ;;  %v6505_v51 = vsel %vm18730_vm8, %v6501_v49, %v6443_v48  ;;  %vm18732_vm8 = vcmask 916480   ;;  %v6934_v52 = vrot.slane %v18706_v18, 4 }
 0x72b   : > { %v9825_v7 = vsel %vm6508_vm9, 1.0, %v10489_v44  ;;  %vm6509_vm1 = vcmp.eq.s32.totalorder %v18720_v59, %v6505_v51  ;;  %6580 = vrot.lane.b32.xlu2 %v18707_v4, %s18006_s17  ;;  %v6503_v14 = vsel %vm18732_vm8, %v6499_v12, %v15615_v43 }
 0x72c   : > { %6520 = vst [vmem:[%s15674_s24] sm:$0xff] %v9825_v7  ;;  %v9826_v34 = vsel %vm6509_vm1, 1.0, %v10489_v44  ;;  %vm9893_vm13 = vmpackc.low %vm6509_vm1, %vm6508_vm9 }
 0x72d   : > { %6521 = vst [vmem:[%s15674_s24 + $0x8] sm:$0xff] %v9826_v34  ;;  %9894 = vmatmul.msk.bf16.vlgmr.msrb.gmra.mxu0 %vm9893_vm13, %v10490_v0 }
 0x72e   : > { %6582 = vrot.lane.b32.xlu0 %v18708_v22, %s18006_s17  ;;  %v15711_v54 = vpop.permute.xlu2 %6540  ;;  %s18994_s17 = smov 104  }
 0x72f   : > { %6604 = vrot.lane.b32.xlu1 %v18707_v4, %s10480_s0  ;;  %v6708_v16 = vrot.slane %v15711_v54, 4 }
 0x730   : > { %v6447_v17 = vpop.permute.xlu0 %6446 }
 0x731   : > { %v6507_v26 = vsel %vm18733_vm10, %v6503_v14, %v6447_v17  ;;  %v15718_v10 = vpop.permute.xlu1 %6528 }
 0x732   : > { %vm6511_vm9 = vcmp.eq.s32.totalorder %v18720_v59, %v6507_v26 }
 0x733   : > { %6606 = vrot.lane.b32.xlu2 %v18708_v22, %s10480_s0  ;;  %v9828_v50 = vsel %vm6511_vm9, 1.0, %v10489_v44  ;;  %vm9895_vm12 = vmpackc.low %vm6511_vm9, %vm6510_vm11  ;;  %vm18734_vm11 = vcmask 1047556  }
 0x734   : > { %6523 = vst [vmem:[%s15674_s24 + $0x18] sm:$0xff] %v9828_v50  ;;  %v6709_v28 = vsel %vm18734_vm11, %v6708_v16, %v18705_v53  ;;  %vm18735_vm14 = vmmov %vm18734_vm11 }
 0x735   : > { %vm18736_vm1 = vmmov %vm18734_vm11  ;;  %v15793_v23 = vperm.slane %v6709_v28, %v18495_v37 }
 0x736   : > { %6616 = vrot.lane.b32.xlu0 %v18707_v4, %s10475_s1  ;;  %v15726_v31 = vpop.permute.xlu2 %6546  ;;  %vm18737_vm13 = vmmov %vm18736_vm1 }
 0x737   : > { %6618 = vrot.lane.b32.xlu1 %v18708_v22, %s10475_s1  ;;  %vm18738_vm15 = vmmov %vm18736_vm1  ;;  %v6758_v34 = vrot.slane %v15793_v23, 4 }
 0x738   : > { %v15730_v55 = vpop.permute.xlu0 %6532  ;;  %vm18739_vm8 = vmmov %vm18736_vm1 }
 0x739   : > { %v15732_v57 = vpop.permute.xlu1 %6534  ;;  %vm18740_vm10 = vmmov %vm18736_vm1 }
 0x73a   : > { %vm18741_vm9 = vmmov %vm18736_vm1 }
 0x73b   : > { %6640 = vrot.lane.b32.xlu2 %v18707_v4, %s10483_s9  ;;  %vm18743_vm11 = vmmov %vm18736_vm1 }
 0x73d   : > { %9896 = vmatmul.msk.bf16.gmra.mxu0 %vm9895_vm12, %v10490_v0  ;;  %vm18742_vm12 = vmmov %vm18736_vm1 }
 0x73e   : > { %6642 = vrot.lane.b32.xlu0 %v18708_v22, %s10483_s9  ;;  %v15744_v43 = vpop.permute.xlu2 %6556 }
 0x73f   : > { %6628 = vrot.lane.b32.xlu1 %v18707_v4, %s10482_s29 }
 0x740   : > { %v15742_v62 = vpop.permute.xlu0 %6542 }
 0x741   : > { %v15746_v32 = vpop.permute.xlu1 %6544  ;;  %v6932_v15 = vrot.slane %v15742_v62, 4 }
 0x743   : > { %6630 = vrot.lane.b32.xlu2 %v18708_v22, %s10482_s29  ;;  %v6933_v3 = vsel %vm18737_vm13, %v6932_v15, %v18706_v18  ;;  %vm18745_vm13 = vmmov %vm18736_vm1 }
 0x744   : > { %v15812_v48 = vperm.slane %v6933_v3, %v18495_v37 }
 0x746   : > { %6664 = vrot.lane.b32.xlu0 %v18707_v4, %s10484_s19  ;;  %v6567_v60 = vpop.permute.xlu2 %6566 }
 0x747   : > { %6666 = vrot.lane.b32.xlu1 %v18708_v22, %s10484_s19  ;;  %v6958_v46 = vrot.slane %v6567_v60, 4 }
 0x748   : > { %v15754_v20 = vpop.permute.xlu0 %6552 }
 0x749   : > { %v15756_v30 = vpop.permute.xlu1 %6554  ;;  %v6720_v56 = vrot.slane %v15754_v20, 4 }
 0x74a   : > { %v6944_v8 = vrot.slane %v15756_v30, 4 }
 0x74b   : > { %6652 = vrot.lane.b32.xlu2 %v18707_v4, %s10478_s23  ;;  %v6721_v47 = vsel %vm18735_vm14, %v6720_v56, %v15718_v10  ;;  %vm18744_vm14 = vmmov %vm18736_vm1  ;;  %v6982_v56 = vrot.slane %v15812_v48, 4 }
 0x74c   : > { %v15798_v36 = vperm.slane %v6721_v47, %v18495_v37  ;;  %v6945_v1 = vsel %vm18738_vm15, %v6944_v8, %v15687_v13  ;;  %vm18746_vm15 = vmmov %vm18736_vm1 }
 0x74d   : > { %v15822_v14 = vperm.slane %v6945_v1, %v18495_v37  ;;  %v6711_v16 = vsel %vm18746_vm15, %v15711_v54, %v6710_v38  ;;  %vm18755_vm15 = vmmov %vm18736_vm1 }
 0x74e   : > { %6654 = vrot.lane.b32.xlu0 %v18708_v22, %s10478_s23  ;;  %v6589_v5 = vpop.permute.xlu2 %6588 }
 0x74f   : > { %6688 = vrot.lane.b32.xlu1 %v18707_v4, %s10481_s20  ;;  %v6732_v27 = vrot.slane %v6589_v5, 4 }
 0x750   : > { %v15764_v33 = vpop.permute.xlu0 %6558 }
 0x751   : > { %v6565_v39 = vpop.permute.xlu1 %6564 }
 0x752   : > { %v6734_v2 = vrot.slane %v6565_v39, 4  ;;  %v6733_v44 = vsel %vm18736_vm1, %v6732_v27, %v6565_v39 }
 0x753   : > { %6690 = vrot.lane.b32.xlu2 %v18708_v22, %s10481_s20  ;;  %v15805_v40 = vperm.slane %v6733_v44, %v18495_v37 }
 0x754   : > { %v6735_v25 = vsel %vm18740_vm10, %v6589_v5, %v6734_v2  ;;  %v6946_v5 = vrot.slane %v15687_v13, 4  ;;  %v6722_v13 = vrot.slane %v15718_v10, 4  ;;  %vm18748_vm10 = vmmov %vm18736_vm1  ;;  %v15864_v10 = vperm.slane %v6711_v16, %v18495_v37 }
 0x755   : > { %v15825_v26 = vperm.slane %v6735_v25, %v18495_v37 }
 0x756   : > { %6676 = vrot.lane.b32.xlu0 %v18707_v4, %s10485_s27  ;;  %v6579_v24 = vpop.permute.xlu2 %6578 }
 0x757   : > { %6678 = vrot.lane.b32.xlu1 %v18708_v22, %s10485_s27  ;;  %v6970_v21 = vrot.slane %v6579_v24, 4  ;;  %v6794_v54 = vrot.slane %v15825_v26, 4 }
 0x758   : > { %v15772_v45 = vpop.permute.xlu0 %6568 }
 0x759   : > { %v15774_v42 = vpop.permute.xlu1 %6570 }
 0x75b   : > { %6700 = vrot.lane.b32.xlu2 %v18707_v4, %s18010_s5 }
 0x75e   : > { %6702 = vrot.lane.b32.xlu0 %v18708_v22, %s18010_s5  ;;  %v15782_v19 = vpop.permute.xlu2 %6612 }
 0x760   : > { %v6591_v35 = vpop.permute.xlu0 %6590 }
 0x761   : > { %v6577_v11 = vpop.permute.xlu1 %6576  ;;  %v6956_v29 = vrot.slane %v6591_v35, 4  ;;  %v6959_v51 = vsel %vm18742_vm12, %v6591_v35, %v6958_v46  ;;  %v6782_v35 = vrot.slane %v15805_v40, 4  ;;  %vm18751_vm12 = vmmov %vm18736_vm1 }
 0x762   : > { %v6746_v49 = vrot.slane %v6577_v11, 4 }
 0x763   : > { %v6957_v58 = vsel %vm18741_vm9, %v6956_v29, %v6567_v60  ;;  %vm18750_vm9 = vmmov %vm18736_vm1 }
 0x764   : > { %v15828_v50 = vperm.slane %v6957_v58, %v18495_v37  ;;  %v6983_v2 = vsel %vm18750_vm9, %v15822_v14, %v6982_v56  ;;  %v6756_v58 = vrot.slane %v15798_v36, 4  ;;  %v10016_v56 = vld [vmem:[#allocation10 + $0x38] sm:$0xff]  ;;  %vm18758_vm9 = vmmov %vm18736_vm1 }
 0x765   : > { %9300 = vmatpush.bf16.msrb.mxu1 %v10016_v56 }
 0x766   : > { %v15830_v60 = vpop.permute.xlu2 %6638  ;;  %v7006_v8 = vrot.slane %v15828_v50, 4 }
 0x768   : > { %v6601_v63 = vpop.permute.xlu0 %6600 }
 0x769   : > { %v6603_v9 = vpop.permute.xlu1 %6602  ;;  %v6744_v59 = vrot.slane %v6601_v63, 4  ;;  %v6747_v12 = vsel %vm18743_vm11, %v6601_v63, %v6746_v49  ;;  %vm18752_vm11 = vmmov %vm18736_vm1 }
 0x76a   : > { %v6968_v41 = vrot.slane %v6603_v9, 4  ;;  %v6971_v39 = vsel %vm18736_vm1, %v6603_v9, %v6970_v21  ;;  %v15844_v63 = vperm.slane %v6747_v12, %v18495_v37  ;;  %v6947_v44 = vsel %vm18752_vm11, %v15756_v30, %v6946_v5  ;;  %vm18760_vm11 = vmmov %vm18736_vm1 }
 0x76b   : > { %v6745_v6 = vsel %vm18739_vm8, %v6744_v59, %v6577_v11  ;;  %v15836_v11 = vperm.slane %v6959_v51, %v18495_v37  ;;  %vm18747_vm8 = vmmov %vm18736_vm1  ;;  %v15853_v15 = vperm.slane %v6971_v39, %v18495_v37  ;;  %v18749_v59 = vld [vmem:[#allocation31_spill] sm:$0xff] }
 0x76c   : > { %v6751_v0 = vperm.slane %v6745_v6, %v18495_v37  ;;  %v6969_v17 = vsel %vm18744_vm14, %v6968_v41, %v6579_v24  ;;  %v6759_v24 = vsel %vm18745_vm13, %v15798_v36, %v6758_v34  ;;  %v6935_v9 = vsel %vm18747_vm8, %v15742_v62, %v6934_v52  ;;  %vm18753_vm14 = vmmov %vm18736_vm1 }
 0x76d   : > { %v15847_v27 = vperm.slane %v6969_v17, %v18495_v37  ;;  %v15859_v47 = vperm.slane %v6759_v24, %v18749_v59  ;;  %v6723_v62 = vsel %vm18751_vm12, %v15754_v20, %v6722_v13  ;;  %v7018_v29 = vrot.slane %v15836_v11, 4  ;;  %vm18754_vm13 = vmmov %vm18736_vm1 }
 0x76e   : > { %v6783_v28 = vsel %vm18748_vm10, %v6751_v0, %v6782_v35  ;;  %v6795_v38 = vsel %vm18753_vm14, %v15844_v63, %v6794_v54  ;;  %v15883_v20 = vperm.slane %v6935_v9, %v18495_v37  ;;  %v15888_v30 = vperm.slane %v6983_v2, %v18749_v59  ;;  %v15903_v17 = vpop.permute.xlu2 %6660  ;;  %vm18756_vm8 = vmmov %vm18736_vm1  ;;  %v10015_v2 = vld [vmem:[#allocation10 + $0x30] sm:$0xff] }
 0x76f   : > { %v15878_v46 = vperm.slane %v6783_v28, %v18749_v59  ;;  %v7007_v1 = vsel %vm18736_vm1, %v15847_v27, %v7006_v8  ;;  %v7019_v6 = vsel %vm18754_vm13, %v15853_v15, %v7018_v29  ;;  %v15891_v25 = vperm.slane %v6723_v62, %v18495_v37  ;;  %vm18757_vm10 = vmmov %vm18736_vm1  ;;  %9301 = vmatpush.bf16.msrb.mxu1 %v10015_v2 }
 0x770   : > { %v15808_v61 = vpop.permute.xlu0 %6614  ;;  %v6810_v49 = vrot.slane %v15859_v47, 4  ;;  %v15896_v52 = vperm.slane %v6947_v44, %v18495_v37  ;;  %v15899_v21 = vperm.slane %v7007_v1, %v18749_v59  ;;  %v6803_v51 = vperm.slane %v6795_v38, %v18749_v59  ;;  %vm18759_vm12 = vmmov %vm18736_vm1 }
 0x771   : > { %v15815_v7 = vpop.permute.xlu1 %6636  ;;  %v6770_v34 = vrot.slane %v15864_v10, 4  ;;  %v6780_v12 = vrot.slane %v6751_v0, 4  ;;  %v15908_v36 = vperm.slane %v7019_v6, %v18749_v59  ;;  %v6994_v5 = vrot.slane %v15883_v20, 4  ;;  %vm18761_vm14 = vmmov %vm18736_vm1 }
 0x772   : > { %v6811_v39 = vsel %vm18755_vm15, %v15878_v46, %v6810_v49  ;;  %v7034_v35 = vrot.slane %v15888_v30, 4  ;;  %v6757_v16 = vsel %vm18757_vm10, %v6756_v58, %v15793_v23  ;;  %v6816_v9 = vrot.slane %v6803_v51, 4  ;;  %vm18762_vm13 = vmmov %vm18736_vm1 }
 0x773   : > { %v6771_v24 = vsel %vm18756_vm8, %v15891_v25, %v6770_v34  ;;  %v7622_v0 = vsel %vm2046_vm2, %v6811_v39, -inf  ;;  %v6995_v28 = vsel %vm18759_vm12, %v15896_v52, %v6994_v5  ;;  %v7040_v54 = vrot.slane %v15908_v36, 4  ;;  %vm18763_vm15 = vmmov %vm18736_vm1 }
 0x774   : > { %v7035_v13 = vsel %vm18758_vm9, %v15899_v21, %v7034_v35  ;;  %v6781_v8 = vsel %vm18760_vm11, %v6780_v12, %v15805_v40  ;;  %v6779_v23 = vperm.slane %v6771_v24, %v18749_v59  ;;  %v15926_v62 = vperm.slane %v6757_v16, %v18749_v59  ;;  %v10014_v35 = vld [vmem:[#allocation10 + $0x28] sm:$0xff]  ;;  %vm18764_vm8 = vmmov %vm18736_vm1 }
 0x775   : > { %v6980_v29 = vrot.slane %v15822_v14, 4  ;;  %v7670_v1 = vsel %vm2046_vm2, %v7035_v13, -inf  ;;  %v15935_v6 = vperm.slane %v6995_v28, %v18749_v59  ;;  %v15939_v58 = vperm.slane %v6781_v8, %v18749_v59  ;;  %9302 = vmatpush.bf16.msrb.mxu1 %v10014_v35  ;;  %v10013_v13 = vld [vmem:[#allocation10 + $0x20] sm:$0xff]  ;;  %vm18765_vm10 = vmmov %vm18736_vm1 }
 0x776   : > { %v6817_v40 = vsel %vm18761_vm14, %v6816_v9, %v6779_v23  ;;  %v7004_v49 = vrot.slane %v15847_v27, 4  ;;  %v6806_v34 = vrot.slane %v15926_v62, 4  ;;  %v15945_v12 = vpop.permute.xlu2 %6650  ;;  %v6808_v16 = vrot.slane %v15878_v46, 4  ;;  %vm18766_vm9 = vmmov %vm18736_vm1 }
 0x777   : > { %v7041_v14 = vsel %vm18736_vm1, %v7040_v54, %v15935_v6  ;;  %v7640_v39 = vsel %vm2046_vm2, %v6817_v40, -inf  ;;  %v6981_v5 = vsel %vm18762_vm13, %v6980_v29, %v15812_v48  ;;  %v6792_v56 = vrot.slane %v15844_v63, 4  ;;  %vm18767_vm12 = vmmov %vm18736_vm1 }
 0x778   : > { %v15873_v3 = vpop.permute.xlu0 %6624  ;;  %v7688_v24 = vsel %vm2046_vm2, %v7041_v14, -inf  ;;  %v6807_v27 = vsel %vm18763_vm15, %v15939_v58, %v6806_v34  ;;  %v7044_v9 = vrot.slane %v15830_v60, 4  ;;  %v15959_v48 = vperm.slane %v6981_v5, %v18749_v59  ;;  %vm18768_vm11 = vmmov %vm18736_vm1 }
 0x779   : > { %v15875_v41 = vpop.permute.xlu1 %6626  ;;  %v7046_v28 = vrot.slane %v15808_v61, 4  ;;  %v7610_v54 = vsel %vm2046_vm2, %v6807_v27, -inf  ;;  %v6818_v8 = vrot.slane %v6779_v23, 4  ;;  %v6822_v46 = vrot.slane %v15782_v19, 4  ;;  %9303 = vmatpush.bf16.msrb.mxu1 %v10013_v13  ;;  %vm18769_vm14 = vmmov %vm18736_vm1 }
 0x77a   : > { %v7045_v63 = vsel %vm18765_vm10, %v7044_v9, %v15808_v61  ;;  %v6820_v29 = vrot.slane %v15815_v7, 4  ;;  %v6768_v61 = vrot.slane %v15891_v25, 4  ;;  %v7016_v14 = vrot.slane %v15853_v15, 4  ;;  %vm18770_vm13 = vmmov %vm18736_vm1 }
 0x77b   : > { %v6819_v23 = vsel %vm18767_vm12, %v6803_v51, %v6818_v8  ;;  %v7030_v34 = vrot.slane %v15959_v48, 4  ;;  %v7047_v5 = vsel %vm18736_vm1, %v15830_v60, %v7046_v28  ;;  %v15987_v35 = vperm.slane %v7045_v63, %v18495_v37  ;;  %vm18771_vm15 = vmmov %vm18736_vm1 }
 0x77c   : > { %v7032_v25 = vrot.slane %v15899_v21, 4  ;;  %v6846_v27 = vrot.slane %v15903_v17, 4  ;;  %v6821_v60 = vsel %vm18771_vm15, %v6820_v29, %v15782_v19  ;;  %v16005_v13 = vperm.slane %v7047_v5, %v18495_v37  ;;  %vm18773_vm10 = vmmov %vm18736_vm1 }
 0x77d   : > { %v7056_v21 = vrot.slane %v15945_v12, 4  ;;  %v7017_v9 = vsel %vm18773_vm10, %v7016_v14, %v15836_v11  ;;  %v7094_v19 = vrot.slane %v15987_v35, 4  ;;  %v7058_v28 = vrot.slane %v15875_v41, 4  ;;  %vm18775_vm12 = vmmov %vm18736_vm1 }
 0x77e   : > { %v7042_v8 = vrot.slane %v15935_v6, 4  ;;  %v6834_v11 = vrot.slane %v15873_v3, 4  ;;  %v7106_v6 = vrot.slane %v16005_v13, 4  ;;  %vm18779_vm15 = vmmov %vm18736_vm1 }
 0x77f   : > { %vm18781_vm10 = vmmov %vm18736_vm1 }
 0x780   : > { %v15929_v44 = vpop.permute.xlu0 %6662  ;;  %v7043_v29 = vsel %vm18775_vm12, %v15908_v36, %v7042_v8  ;;  %vm18783_vm12 = vmmov %vm18736_vm1 }
 0x781   : > { %7623 = vmax.xlane.f32.xlu1 %v7622_v0  ;;  %v15931_v38 = vpop.permute.xlu1 %6648  ;;  %v7005_v0 = vsel %vm18764_vm8, %v7004_v49, %v15828_v50  ;;  %v6809_v50 = vsel %vm18766_vm9, %v6808_v16, %v15859_v47  ;;  %v6793_v49 = vsel %vm18768_vm11, %v6792_v56, %v15825_v26  ;;  %v6823_v47 = vsel %vm18769_vm14, %v15815_v7, %v6822_v46  ;;  %v16002_v56 = vpop.permute.xlu2 %6672  ;;  %vm18772_vm8 = vmmov %vm18736_vm1 }
 0x782   : > { %v15969_v2 = vperm.slane %v7005_v0, %v18749_v59  ;;  %v7616_v51 = vsel %vm2046_vm2, %v6809_v50, -inf  ;;  %v7646_v26 = vsel %vm2046_vm2, %v6819_v23, -inf  ;;  %v6799_v7 = vperm.slane %v6793_v49, %v18749_v59  ;;  %v10011_v0 = vld [vmem:[#allocation10 + $0x10] sm:$0xff]  ;;  %vm18774_vm9 = vmmov %vm18736_vm1 }
 0x783   : > { %v16000_v16 = vperm.slane %v6823_v47, %v18495_v37  ;;  %v16017_v46 = vperm.slane %v6821_v60, %v18495_v37  ;;  %v6832_v63 = vrot.slane %v15931_v38, 4  ;;  %v7023_v49 = vperm.slane %v7017_v9, %v18749_v59  ;;  %vm18776_vm11 = vmmov %vm18736_vm1 }
 0x784   : > { %7671 = vmax.xlane.f32.xlu2 %v7670_v1  ;;  %v7031_v15 = vsel %vm18770_vm13, %v15969_v2, %v7030_v34  ;;  %v6812_v50 = vrot.slane %v6799_v7, 4  ;;  %v7057_v14 = vsel %vm18776_vm11, %v7056_v21, %v15875_v41  ;;  %vm18777_vm14 = vmmov %vm18736_vm1  ;;  %v7059_v47 = vsel %vm18736_vm1, %v15945_v12, %v7058_v28 }
 0x785   : > { %v6858_v36 = vrot.slane %v16002_v56, 4  ;;  %vm18778_vm13 = vmmov %vm18736_vm1  ;;  %v7036_v60 = vrot.slane %v7023_v49, 4  ;;  %v7070_v21 = vrot.slane %v15929_v44, 4 }
 0x786   : > { %v6835_v34 = vsel %vm18778_vm13, %v15931_v38, %v6834_v11  ;;  %vm18784_vm11 = vmmov %vm18736_vm1 }
 0x787   : > { %vm18786_vm13 = vmmov %vm18736_vm1 }
 0x788   : > { %7641 = vmax.xlane.f32.xlu0 %v7640_v39  ;;  %v15972_v1 = vpop.permute.xlu0 %6684  ;;  %v10012_v39 = vld [vmem:[#allocation10 + $0x18] sm:$0xff] }
 0x789   : > { %7689 = vmax.xlane.f32.xlu1 %v7688_v24  ;;  %v15974_v40 = vpop.permute.xlu1 %6686  ;;  %v6992_v24 = vrot.slane %v15896_v52, 4  ;;  %9304 = vmatpush.bf16.msrb.mxu1 %v10012_v39  ;;  %v6769_v52 = vsel %vm18772_vm8, %v6768_v61, %v15864_v10  ;;  %v7033_v10 = vsel %vm18774_vm9, %v7032_v25, %v15888_v30  ;;  %v6882_v61 = vrot.slane %v16000_v16, 4  ;;  %vm18780_vm8 = vmmov %vm18736_vm1  ;;  %v6699_v9 = vpop.permute.xlu2 %6698 }
 0x78a   : > { %v6775_v23 = vperm.slane %v6769_v52, %v18749_v59  ;;  %v6847_v41 = vsel %vm18780_vm8, %v15972_v1, %v6846_v27  ;;  %v6844_v25 = vrot.slane %v15972_v1, 4  ;;  %vm18782_vm9 = vmmov %vm18736_vm1  ;;  %v7071_v11 = vsel %vm18784_vm11, %v15974_v40, %v7070_v21 }
 0x78b   : > { %v6993_v30 = vsel %vm18777_vm14, %v6992_v24, %v15883_v20  ;;  %v7694_v20 = vsel %vm2046_vm2, %v7043_v29, -inf  ;;  %v16053_v28 = vperm.slane %v6847_v41, %v18495_v37  ;;  %vm18785_vm14 = vmmov %vm18736_vm1 }
 0x78c   : > { %7611 = vmax.xlane.f32.xlu2 %v7610_v54  ;;  %v7658_v54 = vsel %vm2046_vm2, %v7031_v15, -inf  ;;  %v6833_v15 = vsel %vm18779_vm15, %v6832_v63, %v15873_v3  ;;  %v6813_v12 = vsel %vm18781_vm10, %v6812_v50, %v6775_v23  ;;  %v6814_v38 = vrot.slane %v6775_v23, 4  ;;  %vm18787_vm15 = vmmov %vm18736_vm1 }
 0x78d   : > { %9305 = vmatpush.bf16.msrb.mxu1 %v10011_v0  ;;  %v6999_v24 = vperm.slane %v6993_v30, %v18749_v59  ;;  %v10009_v0 = vld [vmem:[#allocation10] sm:$0xff]  ;;  %v16049_v3 = vperm.slane %v6835_v34, %v18495_v37  ;;  %v16058_v63 = vperm.slane %v7059_v47, %v18495_v37  ;;  %v7068_v50 = vrot.slane %v15974_v40, 4  ;;  %vm18788_vm8 = vmmov %vm18736_vm1 }
 0x78e   : > { %v6815_v8 = vsel %vm18783_vm12, %v6799_v7, %v6814_v38  ;;  %v6845_v29 = vsel %vm18785_vm14, %v6844_v25, %v15903_v17  ;;  %v6906_v40 = vrot.slane %v16053_v28, 4  ;;  %vm18789_vm10 = vmmov %vm18736_vm1  ;;  %v16098_v38 = vperm.slane %v7057_v14, %v18495_v37 }
 0x78f   : > { %v7037_v7 = vsel %vm18736_vm1, %v7036_v60, %v6999_v24  ;;  %v7038_v30 = vrot.slane %v6999_v24, 4  ;;  %v6883_v47 = vsel %vm18786_vm13, %v16049_v3, %v6882_v61  ;;  %vm18791_vm12 = vmmov %vm18736_vm1 }
 0x790   : > { %7617 = vmax.xlane.f32.xlu0 %v7616_v51  ;;  %v6675_v39 = vpop.permute.xlu0 %6674  ;;  %v7664_v51 = vsel %vm2046_vm2, %v7033_v10, -inf  ;;  %v16061_v10 = vperm.slane %v6833_v15, %v18495_v37  ;;  %v16084_v15 = vperm.slane %v6845_v29, %v18495_v37  ;;  %v7676_v41 = vsel %vm2046_vm2, %v7037_v7, -inf  ;;  %vm18792_vm11 = vmmov %vm18736_vm1 }
 0x791   : > { %7647 = vmax.xlane.f32.xlu1 %v7646_v26  ;;  %v6697_v5 = vpop.permute.xlu1 %6696  ;;  %v10010_v26 = vld [vmem:[#allocation10 + $0x8] sm:$0xff]  ;;  %v7082_v27 = vrot.slane %v6675_v39, 4  ;;  %vm18793_vm14 = vmmov %vm18736_vm1 }
 0x792   : > { %9306 = vmatpush.bf16.msrb.mxu1 %v10010_v26  ;;  %v6859_v52 = vsel %vm18782_vm9, %v6697_v5, %v6858_v36  ;;  %v6856_v1 = vrot.slane %v6697_v5, 4  ;;  %v7080_v36 = vrot.slane %v6699_v9, 4  ;;  %v7634_v5 = vsel %vm2046_vm2, %v6815_v8, -inf  ;;  %vm18790_vm9 = vmmov %vm18736_vm1 }
 0x793   : > { %v16069_v23 = vperm.slane %v6859_v52, %v18495_v37  ;;  %v7083_v34 = vsel %vm18787_vm15, %v6699_v9, %v7082_v27  ;;  %v7039_v26 = vsel %vm18789_vm10, %v7023_v49, %v7038_v30  ;;  %v7069_v61 = vsel %vm18790_vm9, %v7068_v50, %v15929_v44  ;;  %vm18794_vm13 = vmmov %vm18736_vm1 }
 0x794   : > { %7659 = vmax.xlane.f32.xlu2 %v7658_v54  ;;  %v7628_v54 = vsel %vm2046_vm2, %v6813_v12, -inf  ;;  %v6857_v17 = vsel %vm18788_vm8, %v6856_v1, %v16002_v56  ;;  %v6870_v12 = vrot.slane %v16017_v46, 4  ;;  %v16092_v25 = vperm.slane %v7083_v34, %v18495_v37  ;;  %vm18795_vm15 = vmmov %vm18736_vm1 }
 0x795   : > { %v7028_v56 = vrot.slane %v15969_v2, 4  ;;  %v6907_v49 = vsel %vm18791_vm12, %v16069_v23, %v6906_v40  ;;  %v7081_v44 = vsel %vm18792_vm11, %v7080_v36, %v6675_v39  ;;  %v16102_v24 = vperm.slane %v6857_v17, %v18495_v37  ;;  %vm18796_vm8 = vmmov %vm18736_vm1 }
 0x796   : > { %9307 = vmatpush.bf16.msrb.mxu1 %v10009_v0  ;;  %v16108_v60 = vperm.slane %v7069_v61, %v18495_v37  ;;  %v7682_v2 = vsel %vm2046_vm2, %v7039_v26, -inf  ;;  %v7107_v14 = vsel %vm18793_vm14, %v16058_v63, %v7106_v6  ;;  %v6894_v39 = vrot.slane %v16084_v15, 4  ;;  %vm18797_vm10 = vmmov %vm18736_vm1 }
 0x797   : > { %v16120_v27 = vperm.slane %v6907_v49, %v18749_v59  ;;  %v6871_v52 = vsel %vm18794_vm13, %v16061_v10, %v6870_v12  ;;  %v16125_v9 = vperm.slane %v7081_v44, %v18495_v37  ;;  %v7029_v1 = vsel %vm18795_vm15, %v7028_v56, %v15959_v48  ;;  %vm18798_vm9 = vmmov %vm18736_vm1 }
 0x798   : > { %7665 = vmax.xlane.f32.xlu0 %v7664_v51  ;;  %v16078_v51 = vperm.slane %v7071_v11, %v18495_v37  ;;  %v16137_v8 = vperm.slane %v7107_v14, %v18749_v59  ;;  %v6895_v50 = vsel %vm18798_vm9, %v16102_v24, %v6894_v39  ;;  %v6880_v11 = vrot.slane %v16049_v3, 4  ;;  %vm18799_vm12 = vmmov %vm18736_vm1  ;;  %v16154_v34 = vpop.permute.xlu0 %6592 }
 0x799   : > { %7695 = vmax.xlane.f32.xlu1 %v7694_v20  ;;  %v6804_v20 = vrot.slane %v15939_v58, 4  ;;  %v16105_v58 = vperm.slane %v6883_v47, %v18749_v59  ;;  %v7118_v48 = vrot.slane %v16108_v60, 4  ;;  %v16145_v7 = vperm.slane %v6871_v52, %v18749_v59  ;;  %vm18800_vm11 = vmmov %vm18736_vm1 }
 0x79a   : > { %v7130_v0 = vrot.slane %v16078_v51, 4  ;;  %v6904_v36 = vrot.slane %v16069_v23, 4  ;;  %v16157_v3 = vperm.slane %v6895_v50, %v18749_v59  ;;  %v7154_v17 = vrot.slane %v16137_v8, 4  ;;  %vm18801_vm14 = vmmov %vm18736_vm1 }
 0x79b   : > { %v6805_v21 = vsel %vm18736_vm1, %v6804_v20, %v15926_v62  ;;  %v7095_v62 = vsel %vm18797_vm10, %v16098_v38, %v7094_v19  ;;  %v7652_v19 = vsel %vm2046_vm2, %v7029_v1, -inf  ;;  %v7104_v61 = vrot.slane %v16058_v63, 4  ;;  %v16179_v63 = vld [vmem:[%s17829_s10] ss:$0 sm:$0xff]  ;;  %vm18802_vm13 = vmmov %vm18736_vm1 }
 0x79c   : > { %7629 = vmax.xlane.f32.xlu2 %v7628_v54  ;;  %v7131_v6 = vsel %vm18796_vm8, %v16092_v25, %v7130_v0  ;;  %v6930_v54 = vrot.slane %v16105_v58, 4  ;;  %v7604_v29 = vsel %vm2046_vm2, %v6805_v21, -inf  ;;  %v16163_v26 = vperm.slane %v7095_v62, %v18749_v59  ;;  %vm18803_vm15 = vmmov %vm18736_vm1  ;;  %v16193_v21 = vpop.permute.xlu1 %6594 }
 0x79d   : > { %v16151_v47 = vperm.slane %v7131_v6, %v18749_v59  ;;  %v6922_v23 = vrot.slane %v16145_v7, 4  ;;  %v6881_v20 = vsel %vm18801_vm14, %v6880_v11, %v16000_v16  ;;  %v7128_v49 = vrot.slane %v16092_v25, 4  ;;  %vm18804_vm8 = vmmov %vm18736_vm1 }
 0x79e   : > { %v6931_v30 = vsel %vm18799_vm12, %v16120_v27, %v6930_v54  ;;  %v6905_v16 = vsel %vm18803_vm15, %v6904_v36, %v16053_v28  ;;  %v7146_v0 = vrot.slane %v16163_v26, 4  ;;  %v7105_v25 = vsel %vm18804_vm8, %v7104_v61, %v16005_v13  ;;  %vm18805_vm10 = vmmov %vm18736_vm1  ;;  %v16206_v54 = vpop.permute.xlu2 %6580 }
 0x79f   : > { %v7155_v12 = vsel %vm18736_vm1, %v16151_v47, %v7154_v17  ;;  %v6923_v44 = vsel %vm18802_vm13, %v16157_v3, %v6922_v23  ;;  %v6868_v39 = vrot.slane %v16061_v10, 4  ;;  %v16199_v1 = vperm.slane %v6905_v16, %v18749_v59  ;;  %vm18806_vm9 = vmmov %vm18736_vm1 }
 0x7a0   : > { %7635 = vmax.xlane.f32.xlu0 %v7634_v5  ;;  %v7119_v5 = vsel %vm18800_vm11, %v16125_v9, %v7118_v48  ;;  %v7697_v14 = vsel %vm2046_vm2, %v7155_v12, -inf  ;;  %v7625_v52 = vsel %vm2046_vm2, %v6923_v44, -inf  ;;  %v6928_v62 = vrot.slane %v16120_v27, 4  ;;  %vm18807_vm12 = vmmov %vm18736_vm1 }
 0x7a1   : > { %7677 = vmax.xlane.f32.xlu1 %v7676_v41  ;;  %v7649_v41 = vsel %vm2046_vm2, %v6931_v30, -inf  ;;  %v16173_v56 = vperm.slane %v7119_v5, %v18749_v59  ;;  %v7129_v13 = vsel %vm18806_vm9, %v7128_v49, %v16078_v51  ;;  %v7380_v10 = vrot.slane %v15726_v31, 4  ;;  %vm18808_vm11 = vmmov %vm18736_vm1 }
 0x7a2   : > { %v6892_v50 = vrot.slane %v16102_v24, 4  ;;  %v16220_v36 = vperm.slane %v7129_v13, %v18749_v59  ;;  %v6869_v24 = vsel %vm18808_vm11, %v6868_v39, %v16017_v46  ;;  %vm18809_vm14 = vmmov %vm18736_vm1  ;;  %v7092_v12 = vrot.slane %v16098_v38, 4 }
 0x7a3   : > { %v7147_v28 = vsel %vm18805_vm10, %v16173_v56, %v7146_v0  ;;  %v6929_v17 = vsel %vm18809_vm14, %v6928_v62, %v16105_v58  ;;  %v7381_v61 = vsel %vm18736_vm1, %v7380_v10, %v18708_v22  ;;  %vm18810_vm13 = vmmov %vm18736_vm1  ;;  %v16235_v44 = vperm.slane %v6869_v24, %v18749_v59 }
 0x7a4   : > { %7683 = vmax.xlane.f32.xlu2 %v7682_v2  ;;  %v16187_v2 = vperm.slane %v6881_v20, %v18749_v59  ;;  %v7673_v27 = vsel %vm2046_vm2, %v7147_v28, -inf  ;;  %v6893_v20 = vsel %vm18810_vm13, %v6892_v50, %v16084_v15  ;;  %v7643_v58 = vsel %vm2046_vm2, %v6929_v17, -inf  ;;  %vm18811_vm15 = vmmov %vm18736_vm1 }
 0x7a5   : > { %v7152_v0 = vrot.slane %v16151_v47, 4  ;;  %v7158_v15 = vrot.slane %v18707_v4, 4  ;;  %v7116_v38 = vrot.slane %v16125_v9, 4  ;;  %v16248_v39 = vperm.slane %v7381_v61, %v18495_v37  ;;  %vm18812_vm8 = vmmov %vm18736_vm1 }
 0x7a6   : > { %v6926_v48 = vrot.slane %v16187_v2, 4  ;;  %v7392_v47 = vrot.slane %v15764_v33, 4  ;;  %v6918_v10 = vrot.slane %v16235_v44, 4  ;;  %vm18813_vm10 = vmmov %vm18736_vm1  ;;  %v7394_v24 = vrot.slane %v15732_v57, 4 }
 0x7a7   : > { %v7093_v50 = vsel %vm18813_vm10, %v7092_v12, %v15987_v35  ;;  %vm18814_vm9 = vmmov %vm18736_vm1  ;;  %v7430_v17 = vrot.slane %v16248_v39, 4  ;;  %v7180_v12 = vrot.slane %v16154_v34, 4 }
 0x7a8   : > { %7605 = vmax.xlane.f32.xlu0 %v7604_v29  ;;  %v16211_v29 = vperm.slane %v7105_v25, %v18749_v59  ;;  %v6927_v51 = vsel %vm18807_vm12, %v16199_v1, %v6926_v48  ;;  %v16245_v25 = vperm.slane %v6893_v20, %v18749_v59  ;;  %v7170_v48 = vrot.slane %v15730_v55, 4  ;;  %vm18815_vm12 = vmmov %vm18736_vm1 }
 0x7a9   : > { %7653 = vmax.xlane.f32.xlu1 %v7652_v19  ;;  %v16213_v19 = vpop.permute.xlu0 %6582  ;;  %v7637_v46 = vsel %vm2046_vm2, %v6927_v51, -inf  ;;  %v6920_v51 = vrot.slane %v16157_v3, 4  ;;  %vm18816_vm11 = vmmov %vm18736_vm1  ;;  %v16287_v61 = vperm.slane %v7093_v50, %v18749_v59  ;;  %v6924_v50 = vrot.slane %v16199_v1, 4 }
 0x7aa   : > { %v9216_v40 = vpop.f32.mrf.mxu0  ;;  %v7150_v23 = vrot.slane %v16211_v29, 4  ;;  %vm18817_vm14 = vmmov %vm18736_vm1 }
 0x7ab   : > { %v9217_v6 = vadd.f32 %v16179_v63, %v9216_v40  ;;  %vm18818_vm13 = vmmov %vm18736_vm1 }
 0x7ac   : > { %7650 = vmax.xlane.f32.xlu2 %v7649_v41  ;;  %v7156_v41 = vrot.slane %v15746_v32, 4  ;;  %v7151_v16 = vsel %vm18811_vm15, %v16220_v36, %v7150_v23  ;;  %v16284_v3 = vsel %vm18818_vm13, %v15744_v43, %v7170_v48  ;;  %vm18819_vm15 = vmmov %vm18736_vm1 }
 0x7ad   : > { %v9226_v5 = vmax.f32 %v9217_v6, 0.0  ;;  %v6605_v6 = vpop.permute.xlu1 %6604  ;;  %v7685_v9 = vsel %vm2046_vm2, %v7151_v16, -inf  ;;  %vm18821_vm10 = vmmov %vm18736_vm1  ;;  %v7144_v16 = vrot.slane %v16173_v56, 4 }
 0x7ae   : > { %v7157_v28 = vsel %vm18812_vm8, %v7156_v41, %v18707_v4  ;;  %v7159_v41 = vsel %vm18819_vm15, %v15746_v32, %v7158_v15  ;;  %vm18820_vm8 = vmmov %vm18736_vm1  ;;  %v7192_v15 = vrot.slane %v6605_v6, 4 }
 0x7af   : > { %v7393_v23 = vsel %vm18820_vm8, %v7392_v47, %v15732_v57  ;;  %vm18826_vm13 = vmmov %vm18736_vm1 }
 0x7b0   : > { %7698 = vmax.xlane.f32.xlu0 %v7697_v14  ;;  %v7382_v14 = vrot.slane %v18708_v22, 4  ;;  %vm18827_vm15 = vmmov %vm18736_vm1 }
 0x7b1   : > { %7626 = vmax.xlane.f32.xlu1 %v7625_v52  ;;  %v7168_v52 = vrot.slane %v15744_v43, 4  ;;  %v16273_v35 = vpop.permute.xlu0 %6616  ;;  %v6921_v43 = vsel %vm18821_vm10, %v6920_v51, %v16145_v7  ;;  %v7145_v51 = vsel %vm18736_vm1, %v7144_v16, %v16163_v26  ;;  %vm18828_vm8 = vmmov %vm18736_vm1 }
 0x7b2   : > { %v9218_v11 = vpop.f32.mrf.mxu0  ;;  %v7619_v47 = vsel %vm2046_vm2, %v6921_v43, -inf  ;;  %vm18829_vm10 = vmmov %vm18736_vm1 }
 0x7b3   : > { %v9219_v30 = vadd.f32 %v16179_v63, %v9218_v11  ;;  %v16261_v11 = vsel %vm18814_vm9, %v15726_v31, %v7382_v14  ;;  %v6919_v31 = vsel %vm18816_vm11, %v16245_v25, %v6918_v10  ;;  %vm18822_vm9 = vmmov %vm18736_vm1  ;;  %v7406_v14 = vrot.slane %v15774_v42, 4 }
 0x7b4   : > { %7674 = vmax.xlane.f32.xlu2 %v7673_v27  ;;  %v7153_v27 = vsel %vm18815_vm12, %v7152_v0, %v16137_v8  ;;  %v7169_v8 = vsel %vm18736_vm1, %v7168_v52, %v15730_v55  ;;  %v7613_v55 = vsel %vm2046_vm2, %v6919_v31, -inf  ;;  %v16308_v0 = vperm.slane %v7393_v23, %v18495_v37  ;;  %vm18823_vm12 = vmmov %vm18736_vm1 }
 0x7b5   : > { %v9227_v40 = vmax.f32 %v9219_v30, 0.0  ;;  %v16264_v30 = vpop.permute.xlu2 %6606  ;;  %v7691_v20 = vsel %vm2046_vm2, %v7153_v27, -inf  ;;  %v7194_v52 = vrot.slane %v16206_v54, 4  ;;  %v7181_v56 = vsel %vm18823_vm12, %v7180_v12, %v15772_v45  ;;  %vm18824_vm11 = vmmov %vm18736_vm1 }
 0x7b6   : > { %v7193_v23 = vsel %vm18827_vm15, %v7192_v15, %v16206_v54  ;;  %v7667_v54 = vsel %vm2046_vm2, %v7145_v51, -inf  ;;  %v7148_v12 = vrot.slane %v16220_v36, 4  ;;  %vm18831_vm12 = vmmov %vm18736_vm1 }
 0x7b7   : > { %v9230_v49 = vpack.c.bf16 %v9227_v40, %v9226_v5  ;;  %v16271_v5 = vperm.slane %v7157_v28, %v18495_v37  ;;  %v7117_v40 = vsel %vm18817_vm14, %v7116_v38, %v16108_v60  ;;  %v7182_v60 = vrot.slane %v15772_v45, 4  ;;  %vm18825_vm14 = vmmov %vm18736_vm1 }
 0x7b8   : > { %7638 = vmax.xlane.f32.xlu0 %v7637_v46  ;;  %v7142_v38 = vrot.slane %v16287_v61, 4  ;;  %v7416_v28 = vrot.slane %v16264_v30, 4  ;;  %v7407_v45 = vsel %vm18826_vm13, %v16193_v21, %v7406_v14  ;;  %v7195_v1 = vsel %vm18828_vm8, %v6605_v6, %v7194_v52  ;;  %vm18834_vm13 = vmmov %vm18736_vm1 }
 0x7b9   : > { %9308 = vmatmul.bf16.vlgmr.msrb.gmra.mxu1 %v9230_v49  ;;  %7644 = vmax.xlane.f32.xlu1 %v7643_v58  ;;  %v16300_v49 = vperm.slane %v7117_v40, %v18749_v59  ;;  %v7206_v32 = vrot.slane %v16271_v5, 4  ;;  %v7183_v46 = vsel %vm18822_vm9, %v16154_v34, %v7182_v60  ;;  %v7404_v58 = vrot.slane %v16193_v21, 4  ;;  %vm18830_vm9 = vmmov %vm18736_vm1 }
 0x7ba   : > { %v9221_v62 = vpop.f32.mrf.mxu0  ;;  %v7418_v40 = vrot.slane %v16213_v19, 4  ;;  %v16339_v60 = vperm.slane %v7181_v56, %v18495_v37  ;;  %v6925_v6 = vsel %vm18830_vm9, %v6924_v50, %v16187_v2  ;;  %v16358_v43 = vperm.slane %v7195_v1, %v18495_v37  ;;  %vm18835_vm15 = vmmov %vm18736_vm1 }
 0x7bb   : > { %v9222_v13 = vadd.f32 %v16179_v63, %v9221_v62  ;;  %v16319_v62 = vperm.slane %v7183_v46, %v18495_v37  ;;  %v7143_v10 = vsel %vm18824_vm11, %v16300_v49, %v7142_v38  ;;  %v7405_v48 = vsel %vm18825_vm14, %v7404_v58, %v15774_v42  ;;  %vm18832_vm11 = vmmov %vm18736_vm1 }
 0x7bc   : > { %7686 = vmax.xlane.f32.xlu2 %v7685_v9  ;;  %v16321_v9 = vpop.permute.xlu1 %6618  ;;  %v7417_v42 = vsel %vm18829_vm10, %v7416_v28, %v16213_v19  ;;  %v7661_v21 = vsel %vm2046_vm2, %v7143_v10, -inf  ;;  %v7199_v19 = vperm.slane %v7193_v23, %v18495_v37  ;;  %v6916_v46 = vrot.slane %v16245_v25, 4  ;;  %vm18833_vm14 = vmmov %vm18736_vm1 }
 0x7bd   : > { %v16332_v31 = vpop.permute.xlu2 %6640  ;;  %v16362_v58 = vperm.slane %v7159_v41, %v18495_v37  ;;  %v16365_v16 = vperm.slane %v7407_v45, %v18495_v37  ;;  %v7419_v2 = vsel %vm18831_vm12, %v16264_v30, %v7418_v40  ;;  %v16370_v36 = vperm.slane %v7417_v42, %v18495_v37  ;;  %vm18836_vm8 = vmmov %vm18736_vm1 }
 0x7be   : > { %v7242_v14 = vrot.slane %v16319_v62, 4  ;;  %v7631_v15 = vsel %vm2046_vm2, %v6925_v6, -inf  ;;  %v7140_v38 = vrot.slane %v16300_v49, 4  ;;  %v7431_v30 = vsel %vm18736_vm1, %v16308_v0, %v7430_v17  ;;  %vm18837_vm10 = vmmov %vm18736_vm1 }
 0x7bf   : > { %v16385_v52 = vperm.slane %v7419_v2, %v18495_v37  ;;  %vm18838_vm9 = vmmov %vm18736_vm1  ;;  %v16424_v45 = vperm.slane %v16284_v3, %v18495_v37 }
 0x7c0   : > { %7692 = vmax.xlane.f32.xlu0 %v7691_v20  ;;  %v16349_v20 = vperm.slane %v7405_v48, %v18495_v37  ;;  %v7243_v28 = vsel %vm18834_vm13, %v16358_v43, %v7242_v14  ;;  %v7395_v10 = vsel %vm18838_vm9, %v15764_v33, %v7394_v24  ;;  %v16407_v48 = vperm.slane %v7431_v30, %v18749_v59  ;;  %vm18839_vm12 = vmmov %vm18736_vm1 }
 0x7c1   : > { %7614 = vmax.xlane.f32.xlu1 %v7613_v55  ;;  %v7175_v55 = vperm.slane %v7169_v8, %v18495_v37  ;;  %v7230_v8 = vrot.slane %v16339_v60, 4  ;;  %v7141_v57 = vsel %vm18839_vm12, %v7140_v38, %v16287_v61  ;;  %v16420_v24 = vperm.slane %v16261_v11, %v18495_v37  ;;  %vm18842_vm13 = vmmov %vm18736_vm1 }
 0x7c2   : > { %v9223_v7 = vpop.f32.mrf.mxu0  ;;  %v7454_v41 = vrot.slane %v16349_v20, 4  ;;  %v7228_v61 = vrot.slane %v7199_v19, 4  ;;  %v7655_v11 = vsel %vm2046_vm2, %v7141_v57, -inf  ;;  %v7482_v3 = vrot.slane %v16407_v48, 4  ;;  %vm18846_vm9 = vmmov %vm18736_vm1 }
 0x7c3   : > { %v9224_v34 = vadd.f32 %v16179_v63, %v9223_v7  ;;  %v9228_v63 = vmax.f32 %v9222_v13, 0.0  ;;  %v16343_v13 = vpop.permute.xlu0 %6642  ;;  %v7207_v25 = vsel %vm18832_vm11, %v7175_v55, %v7206_v32  ;;  %v7149_v7 = vsel %vm18833_vm14, %v7148_v12, %v16211_v29  ;;  %vm18840_vm11 = vmmov %vm18736_vm1 }
 0x7c4   : > { %7620 = vmax.xlane.f32.xlu2 %v7619_v47  ;;  %v6917_v32 = vsel %vm18835_vm15, %v6916_v46, %v16235_v44  ;;  %v7204_v47 = vrot.slane %v7175_v55, 4  ;;  %v7218_v29 = vrot.slane %v16362_v58, 4  ;;  %v7455_v49 = vsel %vm18837_vm10, %v16370_v36, %v7454_v41  ;;  %v16395_v56 = vpop.permute.xlu1 %6628  ;;  %vm18841_vm14 = vmmov %vm18736_vm1 }
 0x7c5   : > { %v9229_v27 = vmax.f32 %v9224_v34, 0.0  ;;  %v7231_v34 = vsel %vm18836_vm8, %v7199_v19, %v7230_v8  ;;  %v16398_v17 = vperm.slane %v7207_v25, %v18749_v59  ;;  %v7466_v44 = vrot.slane %v16365_v16, 4  ;;  %vm18843_vm15 = vmmov %vm18736_vm1 }
 0x7c6   : > { %v7679_v50 = vsel %vm2046_vm2, %v7149_v7, -inf  ;;  %v7607_v51 = vsel %vm2046_vm2, %v6917_v32, -inf  ;;  %v7239_v33 = vperm.slane %v7231_v34, %v18749_v59  ;;  %v16429_v23 = vperm.slane %v7455_v49, %v18749_v59  ;;  %vm18844_vm8 = vmmov %vm18736_vm1 }
 0x7c7   : > { %v16345_v26 = vpack.c.bf16 %v9229_v27, %v9228_v63  ;;  %v16410_v63 = vperm.slane %v7243_v28, %v18749_v59  ;;  %v16412_v27 = vpop.permute.xlu2 %6630  ;;  %v7467_v1 = vsel %vm18840_vm11, %v16385_v52, %v7466_v44  ;;  %v7258_v42 = vrot.slane %v16398_v17, 4  ;;  %vm18845_vm10 = vmmov %vm18736_vm1 }
 0x7c8   : > { %7662 = vmax.xlane.f32.xlu0 %v7661_v21  ;;  %v16435_v21 = vperm.slane %v7395_v10, %v18495_v37  ;;  %v16444_v55 = vperm.slane %v7467_v1, %v18749_v59  ;;  %v7205_v19 = vsel %vm18842_vm13, %v7204_v47, %v16271_v5  ;;  %v7442_v46 = vrot.slane %v16420_v24, 4  ;;  %vm18847_vm12 = vmmov %vm18736_vm1 }
 0x7c9   : > { %7668 = vmax.xlane.f32.xlu1 %v7667_v54  ;;  %v7219_v54 = vsel %vm18841_vm14, %v16424_v45, %v7218_v29  ;;  %v7259_v6 = vsel %vm18736_vm1, %v7239_v33, %v7258_v42  ;;  %v7264_v12 = vrot.slane %v16410_v63, 4  ;;  %v7483_v2 = vsel %vm18843_vm15, %v16429_v23, %v7482_v3  ;;  %vm18848_vm11 = vmmov %vm18736_vm1 }
 0x7ca   : > { %v7227_v8 = vperm.slane %v7219_v54, %v18749_v59  ;;  %v7229_v14 = vsel %vm18844_vm8, %v7228_v61, %v16339_v60  ;;  %v7443_v25 = vsel %vm18845_vm10, %v16435_v21, %v7442_v46  ;;  %v16458_v41 = vperm.slane %v7205_v19, %v18749_v59  ;;  %vm18849_vm14 = vmmov %vm18736_vm1 }
 0x7cb   : > { %v16426_v40 = vpop.permute.xlu0 %6664  ;;  %v7428_v5 = vrot.slane %v16308_v0, 4  ;;  %v7766_v38 = vsel %vm2046_vm2, %v7483_v2, -inf  ;;  %v7488_v28 = vrot.slane %v16444_v55, 4  ;;  %v16467_v60 = vperm.slane %v7229_v14, %v18749_v59  ;;  %vm18850_vm13 = vmmov %vm18736_vm1 }
 0x7cc   : > { %7632 = vmax.xlane.f32.xlu2 %v7631_v15  ;;  %v7718_v15 = vsel %vm2046_vm2, %v7259_v6, -inf  ;;  %v16461_v7 = vpop.permute.xlu1 %6666  ;;  %v7265_v30 = vsel %vm18846_vm9, %v7264_v12, %v7227_v8  ;;  %v7452_v32 = vrot.slane %v16370_v36, 4  ;;  %v16471_v47 = vperm.slane %v7443_v25, %v18749_v59  ;;  %vm18851_vm15 = vmmov %vm18736_vm1 }
 0x7cd   : > { %v7736_v29 = vsel %vm2046_vm2, %v7265_v30, -inf  ;;  %v7254_v49 = vrot.slane %v16458_v41, 4  ;;  %v7270_v10 = vrot.slane %v16273_v35, 4  ;;  %v7429_v36 = vsel %vm18848_vm11, %v7428_v5, %v16248_v39  ;;  %vm18852_vm8 = vmmov %vm18736_vm1 }
 0x7ce   : > { %v7489_v44 = vsel %vm18847_vm12, %v7488_v28, %v16471_v47  ;;  %v7268_v57 = vrot.slane %v16332_v31, 4  ;;  %v7240_v1 = vrot.slane %v16358_v43, 4  ;;  %v7453_v61 = vsel %vm18736_vm1, %v7452_v32, %v16349_v20  ;;  %vm18853_vm10 = vmmov %vm18736_vm1 }
 0x7cf   : > { %v6653_v34 = vpop.permute.xlu2 %6652  ;;  %v7784_v42 = vsel %vm2046_vm2, %v7489_v44, -inf  ;;  %v7271_v39 = vsel %vm18851_vm15, %v16332_v31, %v7270_v10  ;;  %v16500_v20 = vperm.slane %v7453_v61, %v18749_v59  ;;  %v7216_v54 = vrot.slane %v16424_v45, 4  ;;  %vm18854_vm9 = vmmov %vm18736_vm1 }
 0x7d0   : > { %7680 = vmax.xlane.f32.xlu0 %v7679_v50  ;;  %v7256_v50 = vrot.slane %v7239_v33, 4  ;;  %v7269_v33 = vsel %vm18850_vm13, %v7268_v57, %v16273_v35  ;;  %v7241_v6 = vsel %vm18853_vm10, %v7240_v1, %v16319_v62  ;;  %v7266_v35 = vrot.slane %v7227_v8, 4  ;;  %vm18855_vm12 = vmmov %vm18736_vm1 }
 0x7d1   : > { %7608 = vmax.xlane.f32.xlu1 %v7607_v51  ;;  %v7255_v51 = vsel %vm18849_vm14, %v16467_v60, %v7254_v49  ;;  %v16508_v31 = vperm.slane %v7269_v33, %v18495_v37  ;;  %v16511_v19 = vperm.slane %v7271_v39, %v18495_v37  ;;  %v7464_v2 = vrot.slane %v16385_v52, 4  ;;  %vm18856_vm11 = vmmov %vm18736_vm1 }
 0x7d2   : > { %v7706_v3 = vsel %vm2046_vm2, %v7255_v51, -inf  ;;  %v7257_v43 = vsel %vm18852_vm8, %v7256_v50, %v16398_v17  ;;  %v7280_v14 = vrot.slane %v6653_v34, 4  ;;  %v7267_v62 = vsel %vm18854_vm9, %v16410_v63, %v7266_v35  ;;  %vm18857_vm14 = vmmov %vm18736_vm1 }
 0x7d3   : > { %v16473_v0 = vpop.permute.xlu0 %6654  ;;  %v7712_v17 = vsel %vm2046_vm2, %v7257_v43, -inf  ;;  %v7480_v8 = vrot.slane %v16429_v23, 4  ;;  %v7282_v25 = vrot.slane %v16395_v56, 4  ;;  %v7247_v30 = vperm.slane %v7241_v6, %v18749_v59  ;;  %vm18858_vm13 = vmmov %vm18736_vm1 }
 0x7d4   : > { %7656 = vmax.xlane.f32.xlu2 %v7655_v11  ;;  %v16490_v11 = vperm.slane %v7429_v36, %v18749_v59  ;;  %v16505_v12 = vpop.permute.xlu1 %6688  ;;  %v7440_v52 = vrot.slane %v16435_v21, 4  ;;  %v7506_v28 = vrot.slane %v16412_v27, 4  ;;  %v7494_v32 = vrot.slane %v16321_v9, 4  ;;  %vm18859_vm15 = vmmov %vm18736_vm1 }
 0x7d5   : > { %v7318_v63 = vrot.slane %v16508_v31, 4  ;;  %v7330_v23 = vrot.slane %v16511_v19, 4  ;;  %v7217_v49 = vsel %vm18856_vm11, %v7216_v54, %v16362_v58  ;;  %v7281_v44 = vsel %vm18736_vm1, %v7280_v14, %v16395_v56  ;;  %vm18860_vm8 = vmmov %vm18736_vm1 }
 0x7d6   : > { %v7478_v46 = vrot.slane %v16490_v11, 4  ;;  %v7495_v10 = vsel %vm18857_vm14, %v16343_v13, %v7494_v32  ;;  %v7481_v50 = vsel %vm18858_vm13, %v7480_v8, %v16407_v48  ;;  %v7283_v51 = vsel %vm18860_vm8, %v6653_v34, %v7282_v25  ;;  %vm18861_vm10 = vmmov %vm18736_vm1 }
 0x7d7   : > { %v6691_v45 = vpop.permute.xlu2 %6690  ;;  %v7260_v57 = vrot.slane %v7247_v30, 4  ;;  %v7465_v58 = vsel %vm18861_vm10, %v7464_v2, %v16365_v16  ;;  %v7518_v56 = vrot.slane %v16461_v7, 4  ;;  %v7490_v1 = vrot.slane %v16471_v47, 4  ;;  %vm18862_vm9 = vmmov %vm18736_vm1 }
 0x7d8   : > { %7719 = vmax.xlane.f32.xlu0 %v7718_v15  ;;  %v7492_v15 = vrot.slane %v16343_v13, 4  ;;  %v7294_v13 = vrot.slane %v16426_v40, 4  ;;  %v7223_v61 = vperm.slane %v7217_v49, %v18749_v59  ;;  %v16551_v48 = vperm.slane %v7495_v10, %v18495_v37  ;;  %vm18864_vm11 = vmmov %vm18736_vm1 }
 0x7d9   : > { %7767 = vmax.xlane.f32.xlu1 %v7766_v38  ;;  %v7479_v38 = vsel %vm18855_vm12, %v16500_v20, %v7478_v46  ;;  %vm18863_vm12 = vmmov %vm18736_vm1  ;;  %v7441_v39 = vsel %vm18864_vm11, %v7440_v52, %v16420_v24  ;;  %v16569_v54 = vperm.slane %v7283_v51, %v18495_v37  ;;  %v7516_v6 = vrot.slane %v6691_v45, 4 }
 0x7da   : > { %v7754_v21 = vsel %vm2046_vm2, %v7479_v38, -inf  ;;  %v7493_v36 = vsel %vm18859_vm15, %v7492_v15, %v16321_v9  ;;  %v16554_v9 = vperm.slane %v7281_v44, %v18495_v37  ;;  %v7295_v16 = vsel %vm18862_vm9, %v16505_v12, %v7294_v13  ;;  %vm18865_vm14 = vmmov %vm18736_vm1 }
 0x7db   : > { %v16521_v5 = vpop.permute.xlu0 %6676  ;;  %v7491_v47 = vsel %vm18863_vm12, %v16444_v55, %v7490_v1  ;;  %v16566_v43 = vperm.slane %v7493_v36, %v18495_v37  ;;  %v7261_v35 = vsel %vm18865_vm14, %v7260_v57, %v7223_v61  ;;  %vm18866_vm13 = vmmov %vm18736_vm1  ;;  %v7292_v2 = vrot.slane %v16505_v12, 4 }
 0x7dc   : > { %7737 = vmax.xlane.f32.xlu2 %v7736_v29  ;;  %v7742_v29 = vsel %vm2046_vm2, %v7267_v62, -inf  ;;  %v7306_v34 = vrot.slane %v16521_v5, 4  ;;  %v6679_v33 = vpop.permute.xlu1 %6678  ;;  %v7507_v55 = vsel %vm18866_vm13, %v16473_v0, %v7506_v28  ;;  %v7262_v24 = vrot.slane %v7223_v61, 4  ;;  %vm18867_vm15 = vmmov %vm18736_vm1 }
 0x7dd   : > { %v16577_v14 = vperm.slane %v7295_v16, %v18495_v37  ;;  %v7790_v15 = vsel %vm2046_vm2, %v7491_v47, -inf  ;;  %v7447_v25 = vperm.slane %v7441_v39, %v18749_v59  ;;  %v7530_v38 = vrot.slane %v6679_v33, 4  ;;  %vm18868_vm8 = vmmov %vm18736_vm1 }
 0x7de   : > { %v7263_v52 = vsel %vm18868_vm8, %v7247_v30, %v7262_v24  ;;  %v7554_v12 = vrot.slane %v16551_v48, 4  ;;  %vm18869_vm10 = vmmov %vm18736_vm1  ;;  %v7504_v49 = vrot.slane %v16473_v0, 4  ;;  %v16592_v44 = vperm.slane %v7507_v55, %v18495_v37 }
 0x7df   : > { %v6701_v46 = vpop.permute.xlu2 %6700  ;;  %v7517_v32 = vsel %vm18869_vm10, %v7516_v6, %v16461_v7  ;;  %vm18870_vm9 = vmmov %vm18736_vm1  ;;  %v7730_v7 = vsel %vm2046_vm2, %v7263_v52, -inf  ;;  %v7486_v51 = vrot.slane %v7447_v25, 4  ;;  %v7354_v57 = vrot.slane %v16577_v14, 4 }
 0x7e0   : > { %7785 = vmax.xlane.f32.xlu0 %v7784_v42  ;;  %v7760_v42 = vsel %vm2046_vm2, %v7481_v50, -inf  ;;  %v7307_v62 = vsel %vm18867_vm15, %v6701_v46, %v7306_v34  ;;  %v7304_v10 = vrot.slane %v6701_v46, 4  ;;  %vm18871_vm12 = vmmov %vm18736_vm1  ;;  %v7252_v13 = vrot.slane %v16467_v60, 4 }
 0x7e1   : > { %7707 = vmax.xlane.f32.xlu1 %v7706_v3  ;;  %v7471_v3 = vperm.slane %v7465_v58, %v18749_v59  ;;  %v7293_v50 = vsel %vm18871_vm12, %v7292_v2, %v16426_v40  ;;  %vm18872_vm11 = vmmov %vm18736_vm1  ;;  %v16611_v40 = vperm.slane %v7517_v32, %v18495_v37  ;;  %v7505_v1 = vsel %vm18736_vm1, %v7504_v49, %v16412_v27 }
 0x7e2   : > { %vm18873_vm14 = vmmov %vm18736_vm1  ;;  %v16627_v47 = vperm.slane %v7293_v50, %v18495_v37  ;;  %v7476_v46 = vrot.slane %v16500_v20, 4  ;;  %v7542_v24 = vrot.slane %v16566_v43, 4 }
 0x7e3   : > { %v6703_v8 = vpop.permute.xlu0 %6702  ;;  %v7484_v28 = vrot.slane %v7471_v3, 4  ;;  %vm18874_vm13 = vmmov %vm18736_vm1  ;;  %v7566_v52 = vrot.slane %v16611_v40, 4 }
 0x7e4   : > { %7713 = vmax.xlane.f32.xlu2 %v7712_v17  ;;  %v7519_v17 = vsel %vm18736_vm1, %v6691_v45, %v7518_v56  ;;  %v7724_v45 = vsel %vm2046_vm2, %v7261_v35, -inf  ;;  %v7531_v30 = vsel %vm18870_vm9, %v6703_v8, %v7530_v38  ;;  %v7528_v36 = vrot.slane %v6703_v8, 4  ;;  %vm18875_vm15 = vmmov %vm18736_vm1 }
 0x7e5   : > { %v7485_v58 = vsel %vm18872_vm11, %v7484_v28, %v7447_v25  ;;  %v7331_v56 = vsel %vm18873_vm14, %v16569_v54, %v7330_v23  ;;  %v16616_v61 = vperm.slane %v7531_v30, %v18495_v37  ;;  %v7487_v34 = vsel %vm18874_vm13, %v7471_v3, %v7486_v51  ;;  %vm18876_vm8 = vmmov %vm18736_vm1 }
 0x7e6   : > { %v7555_v60 = vsel %vm18875_vm15, %v16592_v44, %v7554_v12  ;;  %v7305_v16 = vsel %vm18876_vm8, %v7304_v10, %v16521_v5  ;;  %vm18877_vm10 = vmmov %vm18736_vm1  ;;  %v7772_v3 = vsel %vm2046_vm2, %v7485_v58, -inf  ;;  %v16634_v6 = vperm.slane %v7331_v56, %v18749_v59 }
 0x7e7   : > { %vm18878_vm9 = vmmov %vm18736_vm1  ;;  %v16637_v35 = vperm.slane %v7505_v1, %v18495_v37  ;;  %v7778_v5 = vsel %vm2046_vm2, %v7487_v34, -inf  ;;  %v7328_v8 = vrot.slane %v16569_v54, 4  ;;  %v7477_v28 = vsel %vm18736_vm1, %v7476_v46, %v16490_v11 }
 0x7e8   : > { %7743 = vmax.xlane.f32.xlu0 %v7742_v29  ;;  %v16588_v29 = vperm.slane %v7519_v17, %v18495_v37  ;;  %v7529_v27 = vsel %vm18878_vm9, %v7528_v36, %v6679_v33  ;;  %vm18879_vm12 = vmmov %vm18736_vm1  ;;  %v16644_v33 = vperm.slane %v7305_v16, %v18495_v37 }
 0x7e9   : > { %7755 = vmax.xlane.f32.xlu1 %v7754_v21  ;;  %v16595_v21 = vperm.slane %v7307_v62, %v18495_v37  ;;  %v7253_v17 = vsel %vm18879_vm12, %v7252_v13, %v16458_v41  ;;  %vm18880_vm11 = vmmov %vm18736_vm1  ;;  %v16657_v41 = vperm.slane %v7555_v60, %v18749_v59  ;;  %v16660_v20 = vperm.slane %v7529_v27, %v18495_v37 }
 0x7ea   : > { %vm18881_vm14 = vmmov %vm18736_vm1  ;;  %v7700_v38 = vsel %vm2046_vm2, %v7253_v17, -inf  ;;  %v10024_v17 = vld [vmem:[%s17832_s13 + $0x38] sm:$0xff] }
 0x7eb   : > { %v7355_v23 = vsel %vm18877_vm10, %v16595_v21, %v7354_v57  ;;  %v7319_v62 = vsel %vm18881_vm14, %v16554_v9, %v7318_v63  ;;  %vm18882_vm13 = vmmov %vm18736_vm1  ;;  %v7352_v49 = vrot.slane %v16595_v21, 4  ;;  %v7602_v50 = vrot.slane %v16657_v41, 4  ;;  %9393 = vmatpush.bf16.msra.mxu0 %v10024_v17  ;;  %10035 = vmatpush.bf16.msrb.mxu2 %v10024_v17 }
 0x7ec   : > { %7761 = vmax.xlane.f32.xlu2 %v7760_v42  ;;  %v7578_v42 = vrot.slane %v16588_v29, 4  ;;  %v16649_v2 = vperm.slane %v7355_v23, %v18749_v59  ;;  %v7543_v54 = vsel %vm18882_vm13, %v16637_v35, %v7542_v24  ;;  %vm18883_vm15 = vmmov %vm18736_vm1  ;;  %v16684_v30 = vperm.slane %v7319_v62, %v18749_v59 }
 0x7ed   : > { %vm18884_vm8 = vmmov %vm18736_vm1  ;;  %v16693_v51 = vperm.slane %v7543_v54, %v18749_v59  ;;  %v7552_v57 = vrot.slane %v16592_v44, 4  ;;  %v7540_v54 = vrot.slane %v16637_v35, 4 }
 0x7ee   : > { %v7579_v55 = vsel %vm18880_vm11, %v16616_v61, %v7578_v42  ;;  %vm18885_vm10 = vmmov %vm18736_vm1  ;;  %v7370_v44 = vrot.slane %v16684_v30, 4 }
 0x7ef   : > { %v16674_v12 = vperm.slane %v7579_v55, %v18749_v59  ;;  %v7567_v11 = vsel %vm18885_vm10, %v16660_v20, %v7566_v52  ;;  %vm18886_vm9 = vmmov %vm18736_vm1  ;;  %v7594_v23 = vrot.slane %v16693_v51, 4  ;;  %v7316_v55 = vrot.slane %v16554_v9, 4  ;;  %v10023_v52 = vld [vmem:[%s17832_s13 + $0x30] sm:$0xff] }
 0x7f0   : > { %7791 = vmax.xlane.f32.xlu0 %v7790_v15  ;;  %v7342_v15 = vrot.slane %v16627_v47, 4  ;;  %v7329_v21 = vsel %vm18886_vm9, %v7328_v8, %v16511_v19  ;;  %vm18887_vm12 = vmmov %vm18736_vm1  ;;  %v16705_v1 = vperm.slane %v7567_v11, %v18749_v59  ;;  %v7576_v19 = vrot.slane %v16616_v61, 4  ;;  %9394 = vmatpush.bf16.msra.mxu0 %v10023_v52 }
 0x7f1   : > { %7725 = vmax.xlane.f32.xlu1 %v7724_v45  ;;  %v7378_v45 = vrot.slane %v16634_v6, 4  ;;  %v7603_v13 = vsel %vm18887_vm12, %v16674_v12, %v7602_v50  ;;  %vm18888_vm11 = vmmov %vm18736_vm1  ;;  %v16712_v42 = vperm.slane %v7329_v21, %v18749_v59  ;;  %10036 = vmatpush.bf16.msrb.mxu2 %v10023_v52  ;;  %v7600_v50 = vrot.slane %v16674_v12, 4 }
 0x7f2   : > { %v7343_v32 = vsel %vm18883_vm15, %v16644_v33, %v7342_v15  ;;  %v7353_v34 = vsel %vm18888_vm11, %v7352_v49, %v16577_v14  ;;  %v7793_v16 = vsel %vm2046_vm2, %v7603_v13, -inf  ;;  %vm18889_vm14 = vmmov %vm18736_vm1 }
 0x7f3   : > { %v7379_v10 = vsel %vm18884_vm8, %v16649_v2, %v7378_v45  ;;  %v16702_v56 = vperm.slane %v7343_v32, %v18749_v59  ;;  %v7553_v27 = vsel %vm18889_vm14, %v7552_v57, %v16551_v48  ;;  %v16725_v61 = vperm.slane %v7353_v34, %v18749_v59  ;;  %vm18890_vm13 = vmmov %vm18736_vm1  ;;  %v10022_v34 = vld [vmem:[%s17832_s13 + $0x28] sm:$0xff] }
 0x7f4   : > { %7731 = vmax.xlane.f32.xlu2 %v7730_v7  ;;  %v16602_v0 = vpop.xlane.xlu1 %7623  ;;  %v7748_v7 = vsel %vm2046_vm2, %v7477_v28, -inf  ;;  %v7745_v58 = vsel %vm2046_vm2, %v7379_v10, -inf  ;;  %v7374_v46 = vrot.slane %v16712_v42, 4  ;;  %vm18891_vm15 = vmmov %vm18736_vm1  ;;  %v16740_v8 = vperm.slane %v7553_v27, %v18749_v59  ;;  %9395 = vmatpush.bf16.msra.mxu0 %v10022_v34  ;;  %v10021_v27 = vld [vmem:[%s17832_s13 + $0x20] sm:$0xff] }
 0x7f5   : > { %v7371_v14 = vsel %vm18736_vm1, %v16702_v56, %v7370_v44  ;;  %v7577_v48 = vsel %vm18891_vm15, %v7576_v19, %v16588_v29  ;;  %vm18892_vm8 = vmmov %vm18736_vm1  ;;  %v7376_v45 = vrot.slane %v16649_v2, 4  ;;  %v7340_v29 = vrot.slane %v16644_v33, 4  ;;  %10037 = vmatpush.bf16.msrb.mxu2 %v10022_v34 }
 0x7f6   : > { %v7721_v62 = vsel %vm2046_vm2, %v7371_v14, -inf  ;;  %v16748_v9 = vperm.slane %v7577_v48, %v18749_v59  ;;  %vm18893_vm10 = vmmov %vm18736_vm1  ;;  %v7598_v2 = vrot.slane %v16740_v8, 4 }
 0x7f7   : > { %v16630_v39 = vpop.xlane.xlu2 %7671  ;;  %v7317_v28 = vsel %vm18893_vm10, %v7316_v55, %v16508_v31  ;;  %vm18894_vm9 = vmmov %vm18736_vm1  ;;  %v7564_v31 = vrot.slane %v16660_v20, 4  ;;  %v7601_v20 = vsel %vm18736_vm1, %v7600_v50, %v16657_v41  ;;  %v7592_v55 = vrot.slane %v16705_v1, 4  ;;  %v10018_v50 = vld [vmem:[%s17832_s13 + $0x8] sm:$0xff] }
 0x7f8   : > { %7773 = vmax.xlane.f32.xlu0 %v7772_v3  ;;  %v7377_v10 = vsel %vm18894_vm9, %v7376_v45, %v16634_v6  ;;  %vm18895_vm12 = vmmov %vm18736_vm1  ;;  %v7787_v41 = vsel %vm2046_vm2, %v7601_v20, -inf  ;;  %9396 = vmatpush.bf16.msra.mxu0 %v10021_v27  ;;  %v7596_v52 = vrot.slane %v16748_v9, 4 }
 0x7f9   : > { %7779 = vmax.xlane.f32.xlu1 %v7778_v5  ;;  %v7595_v5 = vsel %vm18890_vm13, %v16705_v1, %v7594_v23  ;;  %v7599_v35 = vsel %vm18895_vm12, %v16748_v9, %v7598_v2  ;;  %vm18896_vm11 = vmmov %vm18736_vm1  ;;  %v7739_v57 = vsel %vm2046_vm2, %v7377_v10, -inf  ;;  %10038 = vmatpush.bf16.msrb.mxu2 %v10021_v27  ;;  %v10019_v1 = vld [vmem:[%s17832_s13 + $0x10] sm:$0xff] }
 0x7fa   : > { %v7769_v15 = vsel %vm2046_vm2, %v7595_v5, -inf  ;;  %v7341_v11 = vsel %vm18896_vm11, %v7340_v29, %v16627_v47  ;;  %vm18897_vm14 = vmmov %vm18736_vm1  ;;  %v7781_v12 = vsel %vm2046_vm2, %v7599_v35, -inf  ;;  %v7368_v47 = vrot.slane %v16702_v56, 4 }
 0x7fb   : > { %v16664_v25 = vpop.xlane.xlu0 %7641  ;;  %v7541_v6 = vsel %vm18897_vm14, %v7540_v54, %v16566_v43  ;;  %vm18898_vm13 = vmmov %vm18736_vm1 }
 0x7fc   : > { %7701 = vmax.xlane.f32.xlu2 %v7700_v38  ;;  %v16669_v63 = vpop.xlane.xlu1 %7689  ;;  %v7375_v38 = vsel %vm18892_vm8, %v16725_v61, %v7374_v46  ;;  %v7565_v13 = vsel %vm18898_vm13, %v7564_v31, %v16611_v40  ;;  %v7547_v19 = vperm.slane %v7541_v6, %v18749_v59  ;;  %vm18899_vm15 = vmmov %vm18736_vm1  ;;  %v7808_v31 = vrot.slane %v16602_v0, 4  ;;  %v10017_v6 = vld [vmem:[%s17832_s13] sm:$0xff] }
 0x7fd   : > { %v7733_v49 = vsel %vm2046_vm2, %v7375_v38, -inf  ;;  %v7571_v40 = vperm.slane %v7565_v13, %v18749_v59  ;;  %vm18900_vm8 = vmmov %vm18736_vm1  ;;  %v7820_v27 = vrot.slane %v16664_v25, 4 }
 0x7fe   : > { %v7369_v23 = vsel %vm18900_vm8, %v7368_v47, %v16684_v30  ;;  %v7590_v14 = vrot.slane %v7547_v19, 4  ;;  %vm18901_vm10 = vmmov %vm18736_vm1  ;;  %v7372_v30 = vrot.slane %v16725_v61, 4 }
 0x7ff   : > { %v16689_v36 = vpop.xlane.xlu2 %7611  ;;  %v7715_v46 = vsel %vm2046_vm2, %v7369_v23, -inf  ;;  %vm18902_vm9 = vmmov %vm18736_vm1  ;;  %v7588_v2 = vrot.slane %v7571_v40, 4 }
 0x800   : > { %7749 = vmax.xlane.f32.xlu0 %v7748_v7  ;;  %v16771_v7 = vperm.slane %v7317_v28, %v18749_v59  ;;  %v7591_v48 = vsel %vm18901_vm10, %v7571_v40, %v7590_v14  ;;  %v7593_v29 = vsel %vm18902_vm9, %v7592_v55, %v16693_v51  ;;  %vm18903_vm12 = vmmov %vm18736_vm1 }
 0x801   : > { %7746 = vmax.xlane.f32.xlu1 %v7745_v58  ;;  %v7347_v58 = vperm.slane %v7341_v11, %v18749_v59  ;;  %v7757_v38 = vsel %vm2046_vm2, %v7591_v48, -inf  ;;  %v7373_v61 = vsel %vm18903_vm12, %v7372_v30, %v16712_v42  ;;  %v7763_v54 = vsel %vm2046_vm2, %v7593_v29, -inf  ;;  %vm18904_vm11 = vmmov %vm18736_vm1 }
 0x802   : > { %v7366_v43 = vrot.slane %v16771_v7, 4  ;;  %v7597_v51 = vsel %vm18904_vm11, %v7596_v52, %v16740_v8  ;;  %vm18905_vm14 = vmmov %vm18736_vm1  ;;  %v7920_v11 = vrot.slane %v16630_v39, 4 }
 0x803   : > { %v16714_v60 = vpop.xlane.xlu0 %7617  ;;  %v7364_v9 = vrot.slane %v7347_v58, 4  ;;  %v7775_v42 = vsel %vm2046_vm2, %v7597_v51, -inf  ;;  %vm18906_vm13 = vmmov %vm18736_vm1 }
 0x804   : > { %7794 = vmax.xlane.f32.xlu2 %v7793_v16  ;;  %v16720_v3 = vpop.xlane.xlu1 %7647  ;;  %v7367_v56 = vsel %vm18899_vm15, %v7347_v58, %v7366_v43  ;;  %v7796_v20 = vrot.slane %v16714_v60, 4  ;;  %vm18907_vm15 = vmmov %vm18736_vm1 }
 0x805   : > { %v7709_v17 = vsel %vm2046_vm2, %v7367_v56, -inf  ;;  %v7365_v8 = vsel %vm18905_vm14, %v7364_v9, %v16771_v7  ;;  %v7832_v43 = vrot.slane %v16720_v3, 4  ;;  %vm18908_vm8 = vmmov %vm18736_vm1 }
 0x806   : > { %v7703_v13 = vsel %vm2046_vm2, %v7365_v8, -inf  ;;  %vm18909_vm10 = vmmov %vm18736_vm1 }
 0x807   : > { %v16736_v24 = vpop.xlane.xlu2 %7659  ;;  %vm18910_vm9 = vmmov %vm18736_vm1 }
 0x808   : > { %7722 = vmax.xlane.f32.xlu0 %v7721_v62  ;;  %v10020_v62 = vld [vmem:[%s17832_s13 + $0x18] sm:$0xff]  ;;  %v7921_v58 = vsel %vm18907_vm15, %v7920_v11, %v16736_v24  ;;  %vm18911_vm12 = vmmov %vm18736_vm1 }
 0x809   : > { %7770 = vmax.xlane.f32.xlu1 %v7769_v15  ;;  %9397 = vmatpush.bf16.msra.mxu0 %v10020_v62  ;;  %v16865_v23 = vperm.slane %v7921_v58, %v18495_v37  ;;  %vm18912_vm11 = vmmov %vm18736_vm1 }
 0x80a   : > { %10039 = vmatpush.bf16.msrb.mxu2 %v10020_v62  ;;  %v7932_v62 = vrot.slane %v16669_v63, 4  ;;  %vm18913_vm14 = vmmov %vm18736_vm1 }
 0x80b   : > { %v16756_v32 = vpop.xlane.xlu0 %7665  ;;  %v7956_v52 = vrot.slane %v16865_v23, 4  ;;  %vm18915_vm15 = vmmov %vm18736_vm1 }
 0x80c   : > { %7734 = vmax.xlane.f32.xlu2 %v7733_v49  ;;  %v16760_v33 = vpop.xlane.xlu1 %7695  ;;  %v7727_v49 = vsel %vm2046_vm2, %v7373_v61, -inf  ;;  %v7908_v7 = vrot.slane %v16756_v32, 4 }
 0x80d   : > { %9398 = vmatpush.bf16.msra.mxu0 %v10019_v1 }
 0x80e   : > { %10040 = vmatpush.bf16.msrb.mxu2 %v10019_v1 }
 0x80f   : > { %v16773_v21 = vpop.xlane.xlu2 %7629 }
 0x810   : > { %7740 = vmax.xlane.f32.xlu0 %v7739_v57  ;;  %v7589_v57 = vsel %vm18736_vm1, %v7588_v2, %v7547_v19  ;;  %v7944_v19 = vrot.slane %v16760_v33, 4 }
 0x811   : > { %7782 = vmax.xlane.f32.xlu1 %v7781_v12  ;;  %9399 = vmatpush.bf16.msra.mxu0 %v10018_v50  ;;  %v7809_v12 = vsel %vm18906_vm13, %v7808_v31, %v16689_v36  ;;  %v7751_v34 = vsel %vm2046_vm2, %v7589_v57, -inf  ;;  %vm18914_vm13 = vmmov %vm18736_vm1 }
 0x812   : > { %10041 = vmatpush.bf16.msrb.mxu2 %v10018_v50  ;;  %v7815_v40 = vperm.slane %v7809_v12, %v18495_v37 }
 0x813   : > { %v16790_v44 = vpop.xlane.xlu0 %7635 }
 0x814   : > { %7788 = vmax.xlane.f32.xlu2 %v7787_v41  ;;  %v16793_v16 = vpop.xlane.xlu1 %7677  ;;  %v7833_v14 = vsel %vm18910_vm9, %v7832_v43, %v16790_v44  ;;  %v7844_v29 = vrot.slane %v7815_v40, 4  ;;  %v7834_v57 = vrot.slane %v16790_v44, 4  ;;  %vm18918_vm9 = vmmov %vm18736_vm1 }
 0x815   : > { %9400 = vmatpush.bf16.msra.mxu0 %v10017_v6  ;;  %v7839_v1 = vperm.slane %v7833_v14, %v18495_v37 }
 0x816   : > { %10042 = vmatpush.bf16.msrb.mxu2 %v10017_v6 }
 0x817   : > { %v16802_v5 = vpop.xlane.xlu2 %7683  ;;  %v7868_v31 = vrot.slane %v7839_v1, 4 }
 0x818   : > { %7710 = vmax.xlane.f32.xlu0 %v7709_v17  ;;  %v7945_v17 = vsel %vm18911_vm12, %v7944_v19, %v16802_v5  ;;  %v7946_v50 = vrot.slane %v16802_v5, 4  ;;  %v7922_v5 = vrot.slane %v16736_v24, 4  ;;  %vm18919_vm12 = vmmov %vm18736_vm1 }
 0x819   : > { %7716 = vmax.xlane.f32.xlu1 %v7715_v46  ;;  %v7951_v61 = vperm.slane %v7945_v17, %v18495_v37  ;;  %v7835_v14 = vsel %vm18919_vm12, %v16720_v3, %v7834_v57  ;;  %v10164_v3 = vld [vmem:[%s17831_s12] ss:$0 sm:$0xff]  ;;  %vm18927_vm12 = vmmov %vm18736_vm1 }
 0x81b   : > { %v16812_v15 = vpop.xlane.xlu0 %7605  ;;  %v7980_v11 = vrot.slane %v7951_v61, 4 }
 0x81c   : > { %7758 = vmax.xlane.f32.xlu2 %v7757_v38  ;;  %v16815_v45 = vpop.xlane.xlu1 %7653  ;;  %v7797_v41 = vsel %vm18908_vm8, %v7796_v20, %v16812_v15  ;;  %v7821_v38 = vsel %vm18912_vm11, %v7820_v27, %v16773_v21  ;;  %vm18916_vm8 = vmmov %vm18736_vm1  ;;  %v7822_v27 = vrot.slane %v16773_v21, 4  ;;  %v7798_v21 = vrot.slane %v16812_v15, 4 }
 0x81d   : > { %v7909_v56 = vsel %vm18909_vm10, %v7908_v7, %v16815_v45  ;;  %v7803_v48 = vperm.slane %v7797_v41, %v18495_v37  ;;  %v7827_v51 = vperm.slane %v7821_v38, %v18495_v37  ;;  %v7947_v44 = vsel %vm18916_vm8, %v16760_v33, %v7946_v50  ;;  %vm18917_vm10 = vmmov %vm18736_vm1 }
 0x81e   : > { %v16876_v55 = vperm.slane %v7909_v56, %v18495_v37  ;;  %vm18920_vm11 = vmmov %vm18736_vm1  ;;  %v7910_v38 = vrot.slane %v16815_v45, 4 }
 0x81f   : > { %v16825_v28 = vpop.xlane.xlu2 %7650  ;;  %v7845_v9 = vsel %vm18736_vm1, %v7844_v29, %v7803_v48  ;;  %v7870_v58 = vrot.slane %v7827_v51, 4  ;;  %v7846_v7 = vrot.slane %v7803_v48, 4  ;;  %v7869_v56 = vsel %vm18918_vm9, %v7868_v31, %v7827_v51  ;;  %vm18924_vm8 = vmmov %vm18736_vm1 }
 0x820   : > { %7764 = vmax.xlane.f32.xlu0 %v7763_v54  ;;  %v7933_v54 = vsel %vm18913_vm14, %v7932_v62, %v16793_v16  ;;  %v7957_v2 = vsel %vm18914_vm13, %v7956_v52, %v16876_v55  ;;  %v16899_v6 = vperm.slane %v7845_v9, %v18749_v59  ;;  %v7958_v48 = vrot.slane %v16876_v55, 4  ;;  %vm18921_vm14 = vmmov %vm18736_vm1 }
 0x821   : > { %7728 = vmax.xlane.f32.xlu1 %v7727_v49  ;;  %v7939_v8 = vperm.slane %v7933_v54, %v18495_v37  ;;  %v16902_v12 = vperm.slane %v7957_v2, %v18749_v59  ;;  %v7871_v33 = vsel %vm18920_vm11, %v7839_v1, %v7870_v58  ;;  %v7847_v62 = vsel %vm18921_vm14, %v7815_v40, %v7846_v7  ;;  %vm18922_vm13 = vmmov %vm18736_vm1 }
 0x822   : > { %v7894_v24 = vrot.slane %v16899_v6, 4  ;;  %v16938_v52 = vperm.slane %v7869_v56, %v18749_v59  ;;  %v7923_v1 = vsel %vm18736_vm1, %v16630_v39, %v7922_v5  ;;  %v16943_v55 = vperm.slane %v7835_v14, %v18495_v37  ;;  %vm18926_vm9 = vmmov %vm18736_vm1 }
 0x823   : > { %v16831_v10 = vpop.xlane.xlu0 %7698  ;;  %v7982_v43 = vrot.slane %v7939_v8, 4  ;;  %v7981_v41 = vsel %vm18917_vm10, %v7980_v11, %v7939_v8  ;;  %v7879_v40 = vperm.slane %v7871_v33, %v18749_v59  ;;  %vm18925_vm10 = vmmov %vm18736_vm1  ;;  %v7855_v39 = vperm.slane %v7847_v62, %v18749_v59 }
 0x824   : > { %7776 = vmax.xlane.f32.xlu2 %v7775_v42  ;;  %v16838_v35 = vpop.xlane.xlu1 %7626  ;;  %v7810_v42 = vrot.slane %v16689_v36, 4  ;;  %v16935_v29 = vperm.slane %v7981_v41, %v18749_v59  ;;  %v7895_v9 = vsel %vm18925_vm10, %v16938_v52, %v7894_v24  ;;  %v7823_v2 = vsel %vm18926_vm9, %v16664_v25, %v7822_v27  ;;  %vm18928_vm11 = vmmov %vm18736_vm1 }
 0x825   : > { %v7799_v31 = vsel %vm18928_vm11, %v16714_v60, %v7798_v21  ;;  %vm18929_vm14 = vmmov %vm18736_vm1  ;;  %v16972_v57 = vperm.slane %v7923_v1, %v18495_v37  ;;  %v7880_v58 = vrot.slane %v16943_v55, 4 }
 0x826   : > { %v7811_v36 = vsel %vm18915_vm15, %v16602_v0, %v7810_v42  ;;  %v8006_v0 = vrot.slane %v16902_v12, 4  ;;  %vm18923_vm15 = vmmov %vm18736_vm1  ;;  %v7911_v8 = vsel %vm18929_vm14, %v16756_v32, %v7910_v38  ;;  %v7831_v32 = vperm.slane %v7823_v2, %v18495_v37 }
 0x827   : > { %v16853_v47 = vpop.xlane.xlu2 %7674  ;;  %v7983_v45 = vsel %vm18923_vm15, %v7951_v61, %v7982_v43  ;;  %v7959_v61 = vsel %vm18927_vm12, %v16865_v23, %v7958_v48  ;;  %v7819_v11 = vperm.slane %v7811_v36, %v18495_v37  ;;  %v7898_v43 = vrot.slane %v7855_v39, 4  ;;  %vm18931_vm15 = vmmov %vm18736_vm1 }
 0x828   : > { %7704 = vmax.xlane.f32.xlu0 %v7703_v13  ;;  %v8007_v51 = vsel %vm18924_vm8, %v16935_v29, %v8006_v0  ;;  %v7991_v50 = vperm.slane %v7983_v45, %v18749_v59  ;;  %v7967_v60 = vperm.slane %v7959_v61, %v18749_v59  ;;  %v7807_v36 = vperm.slane %v7799_v31, %v18495_v37  ;;  %vm18932_vm8 = vmmov %vm18736_vm1 }
 0x829   : > { %7752 = vmax.xlane.f32.xlu1 %v7751_v34  ;;  %v7934_v34 = vrot.slane %v16793_v16, 4  ;;  %v16925_v16 = vperm.slane %v7947_v44, %v18495_v37  ;;  %v7856_v24 = vrot.slane %v7819_v11, 4  ;;  %v7968_v33 = vrot.slane %v16972_v57, 4  ;;  %vm18933_vm10 = vmmov %vm18736_vm1 }
 0x82a   : > { %v8008_v0 = vrot.slane %v7991_v50, 4  ;;  %v7881_v48 = vsel %vm18931_vm15, %v7880_v58, %v7831_v32  ;;  %vm18934_vm9 = vmmov %vm18736_vm1  ;;  %v7882_v2 = vrot.slane %v7831_v32, 4 }
 0x82b   : > { %v16872_v46 = vpop.xlane.xlu0 %7638  ;;  %v7935_v15 = vsel %vm18922_vm13, %v16669_v63, %v7934_v34  ;;  %v7992_v42 = vrot.slane %v16925_v16, 4  ;;  %v7896_v34 = vrot.slane %v7879_v40, 4  ;;  %vm18930_vm13 = vmmov %vm18736_vm1  ;;  %v7857_v45 = vsel %vm18934_vm9, %v7856_v24, %v7807_v36 }
 0x82c   : > { %v16878_v30 = vpop.xlane.xlu1 %7644  ;;  %v16976_v7 = vperm.slane %v7935_v15, %v18495_v37  ;;  %v8009_v38 = vsel %vm18932_vm8, %v8008_v0, %v7967_v60  ;;  %vm18935_vm12 = vmmov %vm18736_vm1  ;;  %v8392_v0 = vrot.slane %v16831_v10, 4  ;;  %v8368_v24 = vrot.slane %v16853_v47, 4 }
 0x82d   : > { %v7897_v14 = vsel %vm18930_vm13, %v7896_v34, %v7855_v39  ;;  %v7887_v39 = vperm.slane %v7881_v48, %v18749_v59  ;;  %vm18936_vm11 = vmmov %vm18736_vm1 }
 0x82e   : > { %v7993_v41 = vsel %vm18736_vm1, %v7992_v42, %v16976_v7  ;;  %vm18937_vm14 = vmmov %vm18736_vm1 }
 0x82f   : > { %v16888_v49 = vpop.xlane.xlu2 %7686  ;;  %v7999_v1 = vperm.slane %v7993_v41, %v18749_v59  ;;  %vm18938_vm13 = vmmov %vm18736_vm1 }
 0x830   : > { %vm18939_vm15 = vmmov %vm18736_vm1 }
 0x831   : > { %v8012_v31 = vrot.slane %v7999_v1, 4  ;;  %vm18940_vm8 = vmmov %vm18736_vm1 }
 0x832   : > { %vm18942_vm9 = vmmov %vm18736_vm1 }
 0x833   : > { %v16904_v20 = vpop.xlane.xlu0 %7692 }
 0x834   : > { %v16906_v13 = vpop.xlane.xlu1 %7614 }
 0x836   : > { %v9309_v19 = vpop.f32.mrf.mxu1 }
 0x837   : > { %v16919_v17 = vpop.xlane.xlu2 %7620  ;;  %v9310_v25 = vadd.f32 %v10164_v3, %v9309_v19  ;;  %v7919_v19 = vperm.slane %v7911_v8, %v18495_v37  ;;  %v7858_v8 = vrot.slane %v7807_v36, 4  ;;  %v7994_v36 = vrot.slane %v16976_v7, 4 }
 0x839   : > { %v9319_v56 = vmax.f32 %v9310_v25, 0.0  ;;  %v8280_v25 = vrot.slane %v16825_v28, 4  ;;  %v7970_v41 = vrot.slane %v7919_v19, 4 }
 0x83b   : > { %v16949_v54 = vpop.xlane.xlu0 %7662  ;;  %v8281_v34 = vsel %vm18736_vm1, %v8280_v25, %v16872_v46 }
 0x83c   : > { %8698 = vrot.lane.b32.xlu0 %v8007_v51, %s18010_s5  ;;  %8696 = vrot.lane.b32.xlu2 %v7895_v9, %s18010_s5  ;;  %v16961_v63 = vpop.xlane.xlu1 %7668  ;;  %v7969_v51 = vsel %vm18935_vm12, %v7968_v33, %v7919_v19  ;;  %v8010_v9 = vrot.slane %v7967_v60, 4  ;;  %v17028_v7 = vperm.slane %v8281_v34, %v18495_v37  ;;  %v8268_v33 = vrot.slane %v16878_v30, 4  ;;  %vm18943_vm12 = vmmov %vm18736_vm1 }
 0x83d   : > { %v7975_v61 = vperm.slane %v7969_v51, %v18749_v59  ;;  %v7971_v51 = vsel %vm18943_vm12, %v16972_v57, %v7970_v41  ;;  %v8356_v57 = vrot.slane %v16961_v63, 4  ;;  %vm18951_vm12 = vmmov %vm18736_vm1 }
 0x83e   : > { %v9311_v23 = vpop.f32.mrf.mxu1  ;;  %v8011_v58 = vsel %vm18936_vm11, %v7991_v50, %v8010_v9  ;;  %vm18944_vm11 = vmmov %vm18736_vm1 }
 0x83f   : > { %v9312_v5 = vadd.f32 %v10164_v3, %v9311_v23  ;;  %v16978_v44 = vpop.xlane.xlu2 %7632  ;;  %v7899_v3 = vsel %vm18933_vm10, %v7879_v40, %v7898_v43  ;;  %v7863_v40 = vperm.slane %v7857_v45, %v18749_v59  ;;  %v7900_v23 = vrot.slane %v7887_v39, 4  ;;  %vm18941_vm10 = vmmov %vm18736_vm1 }
 0x840   : > { %v8013_v32 = vsel %vm18939_vm15, %v8012_v31, %v7975_v61  ;;  %v8014_v19 = vrot.slane %v7975_v61, 4  ;;  %v8380_v45 = vrot.slane %v16904_v20, 4  ;;  %v7995_v9 = vsel %vm18944_vm11, %v16925_v16, %v7994_v36  ;;  %vm18947_vm15 = vmmov %vm18736_vm1 }
 0x841   : > { %v9320_v27 = vmax.f32 %v9312_v5, 0.0  ;;  %v7883_v5 = vsel %vm18937_vm14, %v16943_v55, %v7882_v2  ;;  %v7901_v43 = vsel %vm18938_vm13, %v7900_v23, %v7863_v40  ;;  %v7859_v55 = vsel %vm18940_vm8, %v7819_v11, %v7858_v8  ;;  %vm18945_vm14 = vmmov %vm18736_vm1 }
 0x842   : > { %8712 = vrot.lane.b32.xlu1 %v7897_v14, %s10481_s20  ;;  %v7891_v14 = vperm.slane %v7883_v5, %v18749_v59  ;;  %v8244_v11 = vrot.slane %v16919_v17, 4  ;;  %v8269_v2 = vsel %vm18945_vm14, %v8268_v33, %v16978_v44  ;;  %vm18946_vm13 = vmmov %vm18736_vm1  ;;  %v8369_v25 = vsel %vm18947_vm15, %v8368_v24, %v16949_v54 }
 0x843   : > { %v9323_v62 = vpack.c.bf16 %v9320_v27, %v9319_v56  ;;  %v16990_v21 = vpop.xlane.xlu0 %7680  ;;  %v8256_v56 = vrot.slane %v16838_v35, 4  ;;  %v7902_v27 = vrot.slane %v7863_v40, 4  ;;  %vm18948_vm8 = vmmov %vm18736_vm1  ;;  %v7979_v5 = vperm.slane %v7971_v51, %v18749_v59 }
 0x844   : > { %8714 = vrot.lane.b32.xlu0 %v8009_v38, %s10481_s20  ;;  %8728 = vrot.lane.b32.xlu2 %v7899_v3, %s10485_s27  ;;  %v16997_v15 = vpop.xlane.xlu1 %7608  ;;  %v7867_v38 = vperm.slane %v7859_v55, %v18749_v59  ;;  %v8393_v3 = vsel %vm18942_vm9, %v8392_v0, %v16888_v49  ;;  %v7904_v31 = vrot.slane %v7891_v14, 4  ;;  %v8015_v16 = vsel %vm18948_vm8, %v7999_v1, %v8014_v19  ;;  %vm18950_vm9 = vmmov %vm18736_vm1 }
 0x845   : > { %9401 = vmatmul.bf16.vlgmr.msra.gmra.mxu0 %v9323_v62  ;;  %v8257_v48 = vsel %vm18941_vm10, %v8256_v56, %v16906_v13  ;;  %v8245_v40 = vsel %vm18736_vm1, %v8244_v11, %v16997_v15  ;;  %v7903_v61 = vsel %vm18946_vm13, %v7887_v39, %v7902_v27  ;;  %vm18949_vm10 = vmmov %vm18736_vm1  ;;  %v8003_v34 = vperm.slane %v7995_v9, %v18749_v59 }
 0x846   : > { %v17050_v8 = vperm.slane %v8257_v48, %v18495_v37  ;;  %v7905_v39 = vsel %vm18950_vm9, %v7904_v31, %v7867_v38  ;;  %v17067_v36 = vperm.slane %v8245_v40, %v18495_v37  ;;  %v8316_v55 = vrot.slane %v17028_v7, 4  ;;  %vm18952_vm11 = vmmov %vm18736_vm1 }
 0x847   : > { %v17002_v42 = vpop.xlane.xlu2 %7656  ;;  %v8375_v27 = vperm.slane %v8369_v25, %v18495_v37  ;;  %v8016_v19 = vrot.slane %v8003_v34, 4  ;;  %v7906_v33 = vrot.slane %v7867_v38, 4  ;;  %v8018_v48 = vrot.slane %v7979_v5, 4  ;;  %vm18953_vm14 = vmmov %vm18736_vm1 }
 0x848   : > { %v8357_v41 = vsel %vm18951_vm12, %v8356_v57, %v17002_v42  ;;  %v8292_v56 = vrot.slane %v17050_v8, 4  ;;  %v8282_v9 = vrot.slane %v16872_v46, 4  ;;  %vm18954_vm13 = vmmov %vm18736_vm1 }
 0x849   : > { %v8363_v51 = vperm.slane %v8357_v41, %v18495_v37  ;;  %v8404_v40 = vrot.slane %v8375_v27, 4  ;;  %vm18955_vm15 = vmmov %vm18736_vm1  ;;  %v8258_v41 = vrot.slane %v16906_v13, 4  ;;  %v8246_v13 = vrot.slane %v16997_v15, 4 }
 0x84a   : > { %8730 = vrot.lane.b32.xlu1 %v8011_v58, %s10485_s27  ;;  %v8381_v58 = vsel %vm18949_vm10, %v8380_v45, %v16990_v21  ;;  %v8293_v45 = vsel %vm18953_vm14, %v8292_v56, %v17067_v36  ;;  %v7907_v25 = vsel %vm18955_vm15, %v7891_v14, %v7906_v33  ;;  %vm18956_vm8 = vmmov %vm18736_vm1  ;;  %v8370_v14 = vrot.slane %v16949_v54, 4 }
 0x84b   : > { %v17013_v60 = vpop.xlane.xlu0 %7719  ;;  %v8387_v0 = vperm.slane %v8381_v58, %v18495_v37  ;;  %v8019_v57 = vsel %vm18956_vm8, %v8003_v34, %v8018_v48  ;;  %vm18957_vm10 = vmmov %vm18736_vm1  ;;  %v8270_v56 = vrot.slane %v16978_v44, 4 }
 0x84c   : > { %8744 = vrot.lane.b32.xlu0 %v7901_v43, %s10484_s19  ;;  %8746 = vrot.lane.b32.xlu2 %v8013_v32, %s10484_s19  ;;  %v17020_v50 = vpop.xlane.xlu1 %7767  ;;  %v8399_v43 = vperm.slane %v8393_v3, %v18495_v37  ;;  %v8275_v32 = vperm.slane %v8269_v2, %v18495_v37  ;;  %v8017_v2 = vsel %vm18736_vm1, %v8016_v19, %v7979_v5  ;;  %vm18958_vm9 = vmmov %vm18736_vm1 }
 0x84d   : > { %v8405_v58 = vsel %vm18957_vm10, %v8404_v40, %v8363_v51  ;;  %vm18959_vm12 = vmmov %vm18736_vm1 }
 0x84e   : > { %v8428_v11 = vrot.slane %v8399_v43, 4  ;;  %v8317_v3 = vsel %vm18952_vm11, %v8316_v55, %v8275_v32  ;;  %v8318_v34 = vrot.slane %v8275_v32, 4  ;;  %v8430_v55 = vrot.slane %v8387_v0, 4  ;;  %vm18960_vm11 = vmmov %vm18736_vm1 }
 0x84f   : > { %v17034_v62 = vpop.xlane.xlu2 %7737  ;;  %v8323_v38 = vperm.slane %v8317_v3, %v18749_v59  ;;  %v8411_v48 = vperm.slane %v8405_v58, %v18749_v59  ;;  %v8294_v3 = vrot.slane %v17067_v36, 4  ;;  %v8259_v44 = vsel %vm18960_vm11, %v16838_v35, %v8258_v41  ;;  %vm18961_vm14 = vmmov %vm18736_vm1 }
 0x850   : > { %vm18963_vm15 = vmmov %vm18736_vm1  ;;  %v8382_v35 = vrot.slane %v16990_v21, 4 }
 0x851   : > { %v8340_v33 = vrot.slane %v8323_v38, 4  ;;  %v8271_v15 = vsel %vm18963_vm15, %v16878_v30, %v8270_v56  ;;  %vm18964_vm8 = vmmov %vm18736_vm1 }
 0x852   : > { %8760 = vrot.lane.b32.xlu1 %v7903_v61, %s10478_s23  ;;  %v8429_v61 = vsel %vm18954_vm13, %v8428_v11, %v8387_v0  ;;  %v8394_v0 = vrot.slane %v16888_v49, 4  ;;  %vm18962_vm13 = vmmov %vm18736_vm1 }
 0x853   : > { %v17059_v23 = vpop.xlane.xlu0 %7785  ;;  %v8435_v5 = vperm.slane %v8429_v61, %v18749_v59  ;;  %v8371_v36 = vsel %vm18962_vm13, %v16853_v47, %v8370_v14  ;;  %vm18965_vm10 = vmmov %vm18736_vm1 }
 0x854   : > { %8762 = vrot.lane.b32.xlu0 %v8015_v16, %s10478_s23  ;;  %8776 = vrot.lane.b32.xlu2 %v7905_v39, %s10483_s9  ;;  %v17071_v1 = vpop.xlane.xlu1 %7707  ;;  %v8299_v16 = vperm.slane %v8293_v45, %v18749_v59  ;;  %v8283_v39 = vsel %vm18958_vm9, %v16825_v28, %v8282_v9  ;;  %v8406_v45 = vrot.slane %v8363_v51, 4  ;;  %v8319_v9 = vsel %vm18961_vm14, %v17028_v7, %v8318_v34  ;;  %vm18966_vm9 = vmmov %vm18736_vm1 }
 0x855   : > { %v17111_v28 = vperm.slane %v8283_v39, %v18495_v37  ;;  %v8452_v32 = vrot.slane %v8435_v5, 4  ;;  %v8358_v7 = vrot.slane %v17002_v42, 4  ;;  %v8295_v47 = vsel %vm18966_vm9, %v17050_v8, %v8294_v3  ;;  %vm18968_vm11 = vmmov %vm18736_vm1 }
 0x856   : > { %v8342_v11 = vrot.slane %v8299_v16, 4  ;;  %v8341_v54 = vsel %vm18959_vm12, %v8340_v33, %v8299_v16  ;;  %vm18967_vm12 = vmmov %vm18736_vm1  ;;  %v8247_v61 = vsel %vm18968_vm11, %v16919_v17, %v8246_v13  ;;  %v17144_v42 = vperm.slane %v8259_v44, %v18495_v37 }
 0x857   : > { %v17079_v24 = vpop.xlane.xlu2 %7713  ;;  %v8453_v49 = vsel %vm18964_vm8, %v8452_v32, %v8411_v48  ;;  %v8407_v30 = vsel %vm18967_vm12, %v8375_v27, %v8406_v45  ;;  %vm18969_vm14 = vmmov %vm18736_vm1  ;;  %v8303_v27 = vperm.slane %v8295_v47, %v18749_v59  ;;  %v8328_v58 = vrot.slane %v17111_v28, 4 }
 0x858   : > { %v8343_v40 = vsel %vm18965_vm10, %v8323_v38, %v8342_v11  ;;  %v8327_v38 = vperm.slane %v8319_v9, %v18749_v59  ;;  %v8395_v16 = vsel %vm18969_vm14, %v16831_v10, %v8394_v0  ;;  %v8415_v17 = vperm.slane %v8407_v30, %v18749_v59  ;;  %vm18970_vm13 = vmmov %vm18736_vm1 }
 0x859   : > { %v17157_v39 = vperm.slane %v8371_v36, %v18495_v37  ;;  %v8255_v41 = vperm.slane %v8247_v61, %v18495_v37  ;;  %v8359_v14 = vsel %vm18736_vm1, %v16961_v63, %v8358_v7  ;;  %v8383_v34 = vsel %vm18970_vm13, %v16904_v20, %v8382_v35  ;;  %vm18971_vm15 = vmmov %vm18736_vm1 }
 0x85a   : > { %8778 = vrot.lane.b32.xlu1 %v8017_v2, %s10483_s9  ;;  %v8431_v2 = vsel %vm18736_vm1, %v8399_v43, %v8430_v55  ;;  %v8344_v55 = vrot.slane %v8327_v38, 4  ;;  %v8403_v33 = vperm.slane %v8395_v16, %v18495_v37  ;;  %vm18972_vm8 = vmmov %vm18736_vm1  ;;  %v17171_v3 = vperm.slane %v8359_v14, %v18495_v37 }
 0x85b   : > { %v17090_v31 = vpop.xlane.xlu0 %7743  ;;  %v8439_v21 = vperm.slane %v8431_v2, %v18749_v59  ;;  %vm18973_vm10 = vmmov %vm18736_vm1  ;;  %v8391_v45 = vperm.slane %v8383_v34, %v18495_v37  ;;  %v8416_v32 = vrot.slane %v17157_v39, 4  ;;  %v8346_v0 = vrot.slane %v8303_v27, 4 }
 0x85c   : > { %8792 = vrot.lane.b32.xlu0 %v7907_v25, %s10482_s29  ;;  %8794 = vrot.lane.b32.xlu2 %v8019_v57, %s10482_s29  ;;  %v17098_v46 = vpop.xlane.xlu1 %7755  ;;  %v8454_v25 = vrot.slane %v8411_v48, 4  ;;  %v17147_v57 = vperm.slane %v8271_v15, %v18495_v37  ;;  %v8304_v48 = vrot.slane %v17144_v42, 4  ;;  %v8345_v20 = vsel %vm18973_vm10, %v8344_v55, %v8303_v27  ;;  %vm18974_vm9 = vmmov %vm18736_vm1 }
 0x85d   : > { %v8456_v56 = vrot.slane %v8439_v21, 4  ;;  %vm18975_vm12 = vmmov %vm18736_vm1  ;;  %v8440_v9 = vrot.slane %v8403_v33, 4  ;;  %v8458_v36 = vrot.slane %v8415_v17, 4  ;;  %v8347_v35 = vsel %vm18736_vm1, %v8327_v38, %v8346_v0 }
 0x85e   : > { %v8455_v10 = vsel %vm18971_vm15, %v8435_v5, %v8454_v25  ;;  %v8329_v11 = vsel %vm18972_vm8, %v8328_v58, %v17147_v57  ;;  %vm18976_vm11 = vmmov %vm18736_vm1  ;;  %v8032_v47 = vrot.slane %v17013_v60, 4  ;;  %v8144_v61 = vrot.slane %v17020_v50, 4 }
 0x85f   : > { %v17106_v19 = vpop.xlane.xlu2 %7761  ;;  %v8457_v5 = vsel %vm18974_vm9, %v8456_v56, %v8415_v17  ;;  %v8335_v44 = vperm.slane %v8329_v11, %v18749_v59  ;;  %vm18977_vm14 = vmmov %vm18736_vm1  ;;  %v8330_v58 = vrot.slane %v17147_v57, 4  ;;  %v8306_v38 = vrot.slane %v8255_v41, 4 }
 0x860   : > { %vm18979_vm13 = vmmov %vm18736_vm1  ;;  %v8418_v55 = vrot.slane %v17171_v3, 4  ;;  %v8044_v56 = vrot.slane %v17034_v62, 4  ;;  %v8020_v11 = vrot.slane %v17079_v24, 4 }
 0x861   : > { %v8348_v7 = vrot.slane %v8335_v44, 4  ;;  %v8459_v16 = vsel %vm18979_vm13, %v8439_v21, %v8458_v36  ;;  %vm18980_vm15 = vmmov %vm18736_vm1 }
 0x862   : > { %8808 = vrot.lane.b32.xlu1 %v8341_v54, %s10475_s1  ;;  %v8305_v54 = vsel %vm18975_vm12, %v8304_v48, %v8255_v41  ;;  %vm18981_vm8 = vmmov %vm18736_vm1 }
 0x863   : > { %v17126_v51 = vpop.xlane.xlu0 %7791  ;;  %v8311_v15 = vperm.slane %v8305_v54, %v18749_v59  ;;  %v8033_v14 = vsel %vm18981_vm8, %v8032_v47, %v17071_v1  ;;  %vm18983_vm10 = vmmov %vm18736_vm1 }
 0x864   : > { %8810 = vrot.lane.b32.xlu0 %v8453_v49, %s10475_s1  ;;  %8824 = vrot.lane.b32.xlu2 %v8343_v40, %s10480_s0  ;;  %v17134_v43 = vpop.xlane.xlu1 %7725  ;;  %v8417_v49 = vsel %vm18976_vm11, %v8416_v32, %v17171_v3  ;;  %v8441_v40 = vsel %vm18977_vm14, %v8440_v9, %v8391_v45  ;;  %v8145_v21 = vsel %vm18983_vm10, %v8144_v61, %v17098_v46  ;;  %vm18984_vm9 = vmmov %vm18736_vm1  ;;  %v8168_v9 = vrot.slane %v17126_v51, 4 }
 0x865   : > { %v8423_v30 = vperm.slane %v8417_v49, %v18749_v59  ;;  %v8349_v27 = vsel %vm18980_vm15, %v8348_v7, %v8311_v15  ;;  %v8447_v17 = vperm.slane %v8441_v40, %v18749_v59  ;;  %v8350_v48 = vrot.slane %v8311_v15, 4  ;;  %vm18985_vm12 = vmmov %vm18736_vm1 }
 0x866   : > { %v17213_v41 = vperm.slane %v8033_v14, %v18495_v37  ;;  %v17221_v32 = vperm.slane %v8145_v21, %v18495_v37  ;;  %v8307_v3 = vsel %vm18984_vm9, %v17144_v42, %v8306_v38  ;;  %v8331_v0 = vsel %vm18985_vm12, %v17111_v28, %v8330_v58  ;;  %vm18986_vm11 = vmmov %vm18736_vm1 }
 0x867   : > { %v17151_v8 = vpop.xlane.xlu2 %7731  ;;  %v8462_v57 = vrot.slane %v8423_v30, 4  ;;  %v8460_v54 = vrot.slane %v8447_v17, 4  ;;  %vm18987_vm14 = vmmov %vm18736_vm1  ;;  %v8156_v58 = vrot.slane %v17059_v23, 4 }
 0x868   : > { %vm18988_vm13 = vmmov %vm18736_vm1  ;;  %v8180_v21 = vrot.slane %v17221_v32, 4 }
 0x869   : > { %v8461_v49 = vsel %vm18736_vm1, %v8460_v54, %v8423_v30  ;;  %v8045_v40 = vsel %vm18988_vm13, %v8044_v56, %v17134_v43  ;;  %vm18989_vm15 = vmmov %vm18736_vm1  ;;  %v8315_v30 = vperm.slane %v8307_v3, %v18749_v59  ;;  %v8034_v54 = vrot.slane %v17071_v1, 4 }
 0x86a   : > { %8826 = vrot.lane.b32.xlu1 %v8455_v10, %s10480_s0  ;;  %v8442_v10 = vrot.slane %v8391_v45, 4  ;;  %v8056_v45 = vrot.slane %v17090_v31, 4  ;;  %v8351_v42 = vsel %vm18989_vm15, %v8335_v44, %v8350_v48  ;;  %vm18990_vm8 = vmmov %vm18736_vm1  ;;  %v8051_v38 = vperm.slane %v8045_v40, %v18495_v37 }
 0x86b   : > { %v17173_v63 = vpop.xlane.xlu0 %7773  ;;  %vm18991_vm10 = vmmov %vm18736_vm1 }
 0x86c   : > { %8840 = vrot.lane.b32.xlu0 %v8345_v20, %s18008_s30  ;;  %8842 = vrot.lane.b32.xlu2 %v8457_v5, %s18008_s30  ;;  %v17180_v13 = vpop.xlane.xlu1 %7779  ;;  %v8132_v20 = vrot.slane %v17106_v19, 4  ;;  %v8443_v28 = vsel %vm18991_vm10, %v8403_v33, %v8442_v10  ;;  %vm18992_vm9 = vmmov %vm18736_vm1  ;;  %v8068_v10 = vrot.slane %v17213_v41, 4  ;;  %s19002_s30 = smov 120  }
 0x86d   : > { %v8057_v7 = vsel %vm18992_vm9, %v8056_v45, %v17151_v8  ;;  %vm18993_vm12 = vmmov %vm18736_vm1  ;;  %v8451_v14 = vperm.slane %v8443_v28, %v18749_v59 }
 0x86e   : > { %v8169_v47 = vsel %vm18993_vm12, %v8168_v9, %v17180_v13  ;;  %v8063_v56 = vperm.slane %v8057_v7, %v18495_v37  ;;  %vm18997_vm13 = vmmov %vm18736_vm1  ;;  %v8058_v9 = vrot.slane %v17151_v8, 4 }
 0x86f   : > { %v17185_v2 = vpop.xlane.xlu2 %7701  ;;  %v8175_v48 = vperm.slane %v8169_v47, %v18495_v37  ;;  %vm18998_vm15 = vmmov %vm18736_vm1 }
 0x870   : > { %v8021_v36 = vsel %vm18986_vm11, %v8020_v11, %v17185_v2  ;;  %vm18995_vm11 = vmmov %vm18736_vm1 }
 0x871   : > { %vm19001_vm10 = vmmov %vm18736_vm1 }
 0x872   : > { %8856 = vrot.lane.b32.xlu1 %v8347_v35, %s18978_s26  ;;  %v8463_v35 = vsel %vm18990_vm8, %v8447_v17, %v8462_v57  ;;  %v8419_v17 = vsel %vm18995_vm11, %v17157_v39, %v8418_v55  ;;  %vm19000_vm8 = vmmov %vm18736_vm1 }
 0x873   : > { %v17196_v25 = vpop.xlane.xlu0 %7749  ;;  %v8427_v55 = vperm.slane %v8419_v17, %v18749_v59  ;;  %vm19003_vm9 = vmmov %vm18736_vm1 }
 0x874   : > { %8858 = vrot.lane.b32.xlu0 %v8459_v16, %s18978_s26  ;;  %8872 = vrot.lane.b32.xlu2 %v8349_v27, %s18982_s21  ;;  %v17206_v34 = vpop.xlane.xlu1 %7746  ;;  %v8133_v15 = vsel %vm18987_vm14, %v8132_v20, %v17196_v25  ;;  %v8339_v16 = vperm.slane %v8331_v0, %v18749_v59  ;;  %v8027_v27 = vperm.slane %v8021_v36, %v18495_v37  ;;  %vm18996_vm14 = vmmov %vm18736_vm1  ;;  %v8354_v20 = vrot.slane %v8315_v30, 4 }
 0x875   : > { %v17249_v44 = vperm.slane %v8133_v15, %v18495_v37  ;;  %v8157_v57 = vsel %vm18996_vm14, %v8156_v58, %v17173_v63  ;;  %v8094_v0 = vrot.slane %v8051_v38, 4  ;;  %v8464_v15 = vrot.slane %v8451_v14, 4  ;;  %vm19004_vm12 = vmmov %vm18736_vm1 }
 0x876   : > { %v8352_v39 = vrot.slane %v8339_v16, 4  ;;  %v8069_v45 = vsel %vm18736_vm1, %v8068_v10, %v8027_v27  ;;  %v8163_v40 = vperm.slane %v8157_v57, %v18495_v37  ;;  %v8355_v47 = vsel %vm19001_vm10, %v8339_v16, %v8354_v20  ;;  %vm19005_vm11 = vmmov %vm18736_vm1 }
 0x877   : > { %v17217_v5 = vpop.xlane.xlu2 %7794  ;;  %v8181_v3 = vsel %vm18997_vm13, %v8180_v21, %v17249_v44  ;;  %v17279_v1 = vperm.slane %v8069_v45, %v18749_v59  ;;  %v8465_v8 = vsel %vm19000_vm8, %v8464_v15, %v8427_v55  ;;  %v8035_v17 = vsel %vm19003_vm9, %v17013_v60, %v8034_v54  ;;  %vm19006_vm14 = vmmov %vm18736_vm1 }
 0x878   : > { %v8353_v36 = vsel %vm18998_vm15, %v8352_v39, %v8315_v30  ;;  %v17282_v28 = vperm.slane %v8181_v3, %v18749_v59  ;;  %v8070_v30 = vrot.slane %v8027_v27, 4  ;;  %v8146_v58 = vrot.slane %v17098_v46, 4  ;;  %vm19007_vm13 = vmmov %vm18736_vm1 }
 0x879   : > { %v8046_v10 = vrot.slane %v17134_v43, 4  ;;  %v8466_v21 = vrot.slane %v8427_v55, 4  ;;  %v8059_v57 = vsel %vm19004_vm12, %v17090_v31, %v8058_v9  ;;  %v8206_v39 = vrot.slane %v8163_v40, 4  ;;  %vm19008_vm15 = vmmov %vm18736_vm1 }
 0x87a   : > { %8874 = vrot.lane.b32.xlu1 %v8461_v49, %s18982_s21  ;;  %v8092_v49 = vrot.slane %v8063_v56, 4  ;;  %v8095_v20 = vsel %vm18736_vm1, %v8063_v56, %v8094_v0  ;;  %v8118_v60 = vrot.slane %v17279_v1, 4  ;;  %v8230_v46 = vrot.slane %v17282_v28, 4  ;;  %vm19009_vm8 = vmmov %vm18736_vm1 }
 0x87b   : > { %v17243_v61 = vpop.xlane.xlu0 %7722  ;;  %v8158_v43 = vrot.slane %v17173_v63, 4  ;;  %v8022_v31 = vrot.slane %v17185_v2, 4  ;;  %v8182_v55 = vrot.slane %v17249_v44, 4  ;;  %v8134_v56 = vrot.slane %v17196_v25, 4  ;;  %vm19010_vm10 = vmmov %vm18736_vm1 }
 0x87c   : > { %8888 = vrot.lane.b32.xlu0 %v8351_v42, %s18994_s17  ;;  %8890 = vrot.lane.b32.xlu2 %v8463_v35, %s18994_s17  ;;  %v17253_v33 = vpop.xlane.xlu1 %7770  ;;  %v8170_v42 = vrot.slane %v17180_v13, 4  ;;  %v8204_v35 = vrot.slane %v8175_v48, 4  ;;  %v8093_v16 = vsel %vm19005_vm11, %v8092_v49, %v8051_v38  ;;  %v8071_v38 = vsel %vm19008_vm15, %v17213_v41, %v8070_v30  ;;  %vm19011_vm9 = vmmov %vm18736_vm1 }
 0x87d   : > { %v8467_v54 = vsel %vm19009_vm8, %v8451_v14, %v8466_v21  ;;  %v8147_v63 = vsel %vm19010_vm10, %v17020_v50, %v8146_v58  ;;  %v8067_v2 = vperm.slane %v8059_v57, %v18495_v37  ;;  %v8207_v41 = vsel %vm19011_vm9, %v8175_v48, %v8206_v39  ;;  %vm19012_vm12 = vmmov %vm18736_vm1 }
 0x87e   : > { %v8205_v27 = vsel %vm19006_vm14, %v8204_v35, %v8163_v40  ;;  %v8171_v45 = vsel %vm19007_vm13, %v17126_v51, %v8170_v42  ;;  %v17315_v51 = vperm.slane %v8093_v16, %v18749_v59  ;;  %v8103_v25 = vperm.slane %v8095_v20, %v18749_v59  ;;  %vm19013_vm11 = vmmov %vm18736_vm1 }
 0x87f   : > { %v17266_v11 = vpop.xlane.xlu2 %7734  ;;  %v17318_v0 = vperm.slane %v8205_v27, %v18749_v59  ;;  %v17324_v44 = vperm.slane %v8171_v45, %v18495_v37  ;;  %v8079_v50 = vperm.slane %v8071_v38, %v18749_v59  ;;  %vm19014_vm14 = vmmov %vm18736_vm1  ;;  %v8183_v48 = vsel %vm18736_vm1, %v17221_v32, %v8182_v55 }
 0x880   : > { %v8119_v9 = vsel %vm19012_vm12, %v17315_v51, %v8118_v60  ;;  %v8047_v15 = vsel %vm19014_vm14, %v17034_v62, %v8046_v10  ;;  %vm19015_vm13 = vmmov %vm18736_vm1  ;;  %v8215_v40 = vperm.slane %v8207_v41, %v18749_v59  ;;  %v8043_v62 = vperm.slane %v8035_v17, %v18495_v37 }
 0x881   : > { %v8159_v49 = vsel %vm19015_vm13, %v17059_v23, %v8158_v43  ;;  %vm19016_vm15 = vmmov %vm18736_vm1  ;;  %v8216_v30 = vrot.slane %v17324_v44, 4  ;;  %v8120_v23 = vrot.slane %v8103_v25, 4  ;;  %v8191_v10 = vperm.slane %v8183_v48, %v18749_v59 }
 0x882   : > { %8904 = vrot.lane.b32.xlu1 %v8353_v36, %s18999_s22  ;;  %v8231_v36 = vsel %vm19013_vm11, %v17318_v0, %v8230_v46  ;;  %v8023_v42 = vsel %vm19016_vm15, %v17079_v24, %v8022_v31  ;;  %vm19017_vm8 = vmmov %vm18736_vm1  ;;  %v8122_v21 = vrot.slane %v8079_v50, 4  ;;  %v8055_v24 = vperm.slane %v8047_v15, %v18495_v37 }
 0x883   : > { %v17284_v7 = vpop.xlane.xlu0 %7740  ;;  %v8135_v35 = vsel %vm19017_vm8, %v17106_v19, %v8134_v56  ;;  %v8167_v57 = vperm.slane %v8159_v49, %v18495_v37  ;;  %v8031_v19 = vperm.slane %v8023_v42, %v18495_v37  ;;  %vm19018_vm10 = vmmov %vm18736_vm1  ;;  %v8232_v16 = vrot.slane %v8215_v40, 4 }
 0x884   : > { %8906 = vrot.lane.b32.xlu0 %v8465_v8, %s18999_s22  ;;  %8920 = vrot.lane.b32.xlu2 %v8355_v47, %s19002_s30  ;;  %v17290_v13 = vpop.xlane.xlu1 %7782  ;;  %v8155_v8 = vperm.slane %v8147_v63, %v18495_v37  ;;  %v8104_v47 = vrot.slane %v8067_v2, 4  ;;  %v8143_v17 = vperm.slane %v8135_v35, %v18495_v37  ;;  %v8121_v39 = vsel %vm19018_vm10, %v8120_v23, %v8079_v50  ;;  %vm19019_vm9 = vmmov %vm18736_vm1 }
 0x885   : > { %v8080_v27 = vrot.slane %v8043_v62, 4  ;;  %vm19020_vm12 = vmmov %vm18736_vm1  ;;  %v8234_v56 = vrot.slane %v8191_v10, 4  ;;  %v8106_v41 = vrot.slane %v8055_v24, 4  ;;  %v8218_v35 = vrot.slane %v8167_v57, 4 }
 0x886   : > { %v8192_v20 = vrot.slane %v8155_v8, 4  ;;  %v8105_v45 = vsel %vm19019_vm9, %v8104_v47, %v8055_v24  ;;  %v8217_v60 = vsel %vm19020_vm12, %v8216_v30, %v8167_v57  ;;  %vm19021_vm11 = vmmov %vm18736_vm1  ;;  %v8504_v47 = vrot.slane %v17206_v34, 4 }
 0x887   : > { %v17303_v3 = vpop.xlane.xlu2 %7788  ;;  %v8233_v46 = vsel %vm19021_vm11, %v8232_v16, %v8191_v10  ;;  %vm19022_vm14 = vmmov %vm18736_vm1  ;;  %v8081_v55 = vsel %vm18736_vm1, %v8080_v27, %v8031_v19  ;;  %v8223_v63 = vperm.slane %v8217_v60, %v18749_v59  ;;  %v8194_v23 = vrot.slane %v8143_v17, 4 }
 0x888   : > { %v8123_v43 = vsel %vm19022_vm14, %v8103_v25, %v8122_v21  ;;  %vm19023_vm13 = vmmov %vm18736_vm1  ;;  %v8087_v25 = vperm.slane %v8081_v55, %v18749_v59  ;;  %v8592_v55 = vrot.slane %v17253_v33, 4 }
 0x889   : > { %v8193_v38 = vsel %vm19023_vm13, %v8192_v20, %v8143_v17  ;;  %vm19024_vm15 = vmmov %vm18736_vm1  ;;  %v8236_v42 = vrot.slane %v8223_v63, 4  ;;  %v8492_v17 = vrot.slane %v17284_v7, 4 }
 0x88a   : > { %8922 = vrot.lane.b32.xlu1 %v8467_v54, %s19002_s30  ;;  %v8111_v54 = vperm.slane %v8105_v45, %v18749_v59  ;;  %v8199_v50 = vperm.slane %v8193_v38, %v18749_v59  ;;  %v8235_v48 = vsel %vm19024_vm15, %v8215_v40, %v8234_v56  ;;  %vm19025_vm8 = vmmov %vm18736_vm1  ;;  %v8480_v40 = vrot.slane %v17243_v61, 4 }
 0x88b   : > { %v17329_v14 = vpop.xlane.xlu0 %7710  ;;  %v8107_v30 = vsel %vm19025_vm8, %v8067_v2, %v8106_v41  ;;  %vm19026_vm10 = vmmov %vm18736_vm1  ;;  %v8616_v2 = vrot.slane %v17217_v5, 4  ;;  %v8604_v41 = vrot.slane %v17303_v3, 4 }
 0x88c   : > { %8700 = vrot.lane.b32.xlu0 %v8119_v9, %s18010_s5  ;;  %8702 = vrot.lane.b32.xlu2 %v8231_v36, %s18010_s5  ;;  %v17352_v58 = vpop.xlane.xlu1 %7716  ;;  %v8082_v9 = vrot.slane %v8031_v19, 4  ;;  %v8124_v49 = vrot.slane %v8111_v54, 4  ;;  %vm19027_vm9 = vmmov %vm18736_vm1  ;;  %v8126_v19 = vrot.slane %v8087_v25, 4  ;;  %v8238_v27 = vrot.slane %v8199_v50, 4 }
 0x88d   : > { %v8237_v21 = vsel %vm19027_vm9, %v8236_v42, %v8199_v50  ;;  %vm19028_vm12 = vmmov %vm18736_vm1  ;;  %v8468_v45 = vrot.slane %v17352_v58, 4 }
 0x88e   : > { %v8125_v10 = vsel %vm19026_vm10, %v8124_v49, %v8087_v25  ;;  %v8083_v24 = vsel %vm19028_vm12, %v8043_v62, %v8082_v9  ;;  %vm19029_vm11 = vmmov %vm18736_vm1 }
 0x88f   : > { %v17354_v32 = vpop.xlane.xlu2 %7758  ;;  %v8505_v57 = vsel %vm19029_vm11, %v8504_v47, %v17266_v11  ;;  %v8091_v62 = vperm.slane %v8083_v24, %v18749_v59  ;;  %vm19030_vm14 = vmmov %vm18736_vm1 }
 0x890   : > { %v8481_v20 = vsel %vm19030_vm14, %v8480_v40, %v17329_v14  ;;  %vm19031_vm13 = vmmov %vm18736_vm1  ;;  %v8511_v38 = vperm.slane %v8505_v57, %v18495_v37 }
 0x891   : > { %vm19032_vm15 = vmmov %vm18736_vm1 }
 0x892   : > { %8716 = vrot.lane.b32.xlu1 %v8121_v39, %s10481_s20  ;;  %v8115_v39 = vperm.slane %v8107_v30, %v18749_v59  ;;  %v8617_v56 = vsel %vm19032_vm15, %v8616_v2, %v17290_v13  ;;  %vm19033_vm8 = vmmov %vm18736_vm1  ;;  %v8540_v40 = vrot.slane %v8511_v38, 4 }
 0x893   : > { %v17367_v31 = vpop.xlane.xlu0 %7764  ;;  %vm19034_vm10 = vmmov %vm18736_vm1 }
 0x894   : > { %8718 = vrot.lane.b32.xlu0 %v8233_v46, %s10481_s20  ;;  %8732 = vrot.lane.b32.xlu2 %v8123_v43, %s10485_s27  ;;  %v17379_v15 = vpop.xlane.xlu1 %7728  ;;  %v8195_v46 = vsel %vm18736_vm1, %v8155_v8, %v8194_v23  ;;  %v8219_v43 = vsel %vm19031_vm13, %v17324_v44, %v8218_v35  ;;  %vm19035_vm9 = vmmov %vm18736_vm1  ;;  %v8128_v50 = vrot.slane %v8115_v39, 4  ;;  %v8487_v44 = vperm.slane %v8481_v20, %v18495_v37  ;;  %s9536_s20 = sshll.u32 %s15674_s24, 4  ;;  %s17758_s20 = int_to_ptr.vmem [resolvable:$true] %s9536_s20 }
 0x895   : > { %v8493_v9 = vsel %vm19033_vm8, %v8492_v17, %v17379_v15  ;;  %v8127_v8 = vsel %vm19035_vm9, %v8111_v54, %v8126_v19  ;;  %vm19036_vm12 = vmmov %vm18736_vm1  ;;  %v8203_v42 = vperm.slane %v8195_v46, %v18749_v59  ;;  %v8227_v35 = vperm.slane %v8219_v43, %v18749_v59 }
 0x896   : > { %v8239_v49 = vsel %vm19036_vm12, %v8223_v63, %v8238_v27  ;;  %vm19037_vm11 = vmmov %vm18736_vm1  ;;  %v8580_v30 = vrot.slane %v17367_v31, 4  ;;  %v8129_v23 = vsel %vm18736_vm1, %v8128_v50, %v8091_v62  ;;  %v8516_v57 = vrot.slane %v8487_v44, 4 }
 0x897   : > { %v17375_v36 = vpop.xlane.xlu2 %7776  ;;  %v8593_v47 = vsel %vm19037_vm11, %v8592_v55, %v17354_v32  ;;  %vm19038_vm14 = vmmov %vm18736_vm1  ;;  %v8240_v27 = vrot.slane %v8227_v35, 4  ;;  %v8130_v20 = vrot.slane %v8091_v62, 4 }
 0x898   : > { %v8605_v54 = vsel %vm19038_vm14, %v8604_v41, %v17375_v36  ;;  %vm19039_vm13 = vmmov %vm18736_vm1  ;;  %v8599_v19 = vperm.slane %v8593_v47, %v18495_v37 }
 0x899   : > { %v8611_v2 = vperm.slane %v8605_v54, %v18495_v37  ;;  %vm19040_vm15 = vmmov %vm18736_vm1 }
 0x89a   : > { %8734 = vrot.lane.b32.xlu1 %v8235_v48, %s10485_s27  ;;  %vm19041_vm8 = vmmov %vm18736_vm1 }
 0x89b   : > { %v17396_v16 = vpop.xlane.xlu0 %7704  ;;  %vm19043_vm9 = vmmov %vm18736_vm1  ;;  %v8654_v54 = vrot.slane %v8611_v2, 4 }
 0x89c   : > { %8748 = vrot.lane.b32.xlu0 %v8125_v10, %s10484_s19  ;;  %8750 = vrot.lane.b32.xlu2 %v8237_v21, %s10484_s19  ;;  %v8469_v25 = vsel %vm19034_vm10, %v8468_v45, %v17396_v16  ;;  %v17418_v48 = vpop.xlane.xlu1 %7752  ;;  %v8623_v10 = vperm.slane %v8617_v56, %v18495_v37  ;;  %v8499_v21 = vperm.slane %v8493_v9, %v18495_v37  ;;  %v8242_v45 = vrot.slane %v8203_v42, 4  ;;  %vm19042_vm10 = vmmov %vm18736_vm1  ;;  %s19117_s19 = sld [smem:[#allocation150_spill]] }
 0x89d   : > { %v8475_v63 = vperm.slane %v8469_v25, %v18495_v37  ;;  %v8581_v24 = vsel %vm19039_vm13, %v8580_v30, %v17418_v48  ;;  %v8241_v41 = vsel %vm19042_vm10, %v8240_v27, %v8203_v42  ;;  %v8628_v9 = vrot.slane %v8599_v19, 4  ;;  %vm19044_vm12 = vmmov %vm18736_vm1 }
 0x89e   : > { %v8652_v46 = vrot.slane %v8623_v10, 4  ;;  %v8541_v43 = vsel %vm19040_vm15, %v8540_v40, %v8499_v21  ;;  %v8587_v56 = vperm.slane %v8581_v24, %v18495_v37  ;;  %v8131_v50 = vsel %vm19044_vm12, %v8115_v39, %v8130_v20  ;;  %vm19045_vm11 = vmmov %vm18736_vm1 }
 0x89f   : > { %v17402_v60 = vpop.permute.xlu2 %8696  ;;  %v8517_v55 = vsel %vm19041_vm8, %v8516_v57, %v8475_v63  ;;  %v8243_v62 = vsel %vm19045_vm11, %v8227_v35, %v8242_v45  ;;  %vm19046_vm14 = vmmov %vm18736_vm1  ;;  %v8542_v30 = vrot.slane %v8499_v21, 4  ;;  %v8518_v57 = vrot.slane %v8475_v63, 4 }
 0x8a0   : > { %v8653_v25 = vsel %vm19043_vm9, %v8652_v46, %v8611_v2  ;;  %v8629_v47 = vsel %vm19046_vm14, %v8628_v9, %v8587_v56  ;;  %v8630_v27 = vrot.slane %v8587_v56, 4  ;;  %vm19047_vm13 = vmmov %vm18736_vm1  ;;  %v8506_v21 = vrot.slane %v17266_v11, 4 }
 0x8a1   : > { %v8659_v42 = vperm.slane %v8653_v25, %v18749_v59  ;;  %v8635_v39 = vperm.slane %v8629_v47, %v18749_v59  ;;  %v8543_v46 = vsel %vm19047_vm13, %v8511_v38, %v8542_v30  ;;  %vm19048_vm15 = vmmov %vm18736_vm1  ;;  %v8494_v25 = vrot.slane %v17379_v15, 4 }
 0x8a2   : > { %8764 = vrot.lane.b32.xlu1 %v8127_v8, %s10478_s23  ;;  %v8547_v8 = vperm.slane %v8541_v43, %v18749_v59  ;;  %v8655_v43 = vsel %vm19048_vm15, %v8623_v10, %v8654_v54  ;;  %vm19049_vm8 = vmmov %vm18736_vm1  ;;  %v8551_v9 = vperm.slane %v8543_v46, %v18749_v59 }
 0x8a3   : > { %v8676_v45 = vrot.slane %v8659_v42, 4  ;;  %vm19050_vm10 = vmmov %vm18736_vm1  ;;  %v8678_v56 = vrot.slane %v8635_v39, 4  ;;  %v8663_v11 = vperm.slane %v8655_v43, %v18749_v59 }
 0x8a4   : > { %8766 = vrot.lane.b32.xlu0 %v8239_v49, %s10478_s23  ;;  %8780 = vrot.lane.b32.xlu2 %v8129_v23, %s10483_s9  ;;  %v8523_v49 = vperm.slane %v8517_v55, %v18749_v59  ;;  %v8564_v40 = vrot.slane %v8547_v8, 4  ;;  %vm19051_vm9 = vmmov %vm18736_vm1  ;;  %v8568_v30 = vrot.slane %v8551_v9, 4 }
 0x8a5   : > { %v8677_v2 = vsel %vm19049_vm8, %v8676_v45, %v8635_v39  ;;  %v8519_v38 = vsel %vm19051_vm9, %v8487_v44, %v8518_v57  ;;  %vm19052_vm12 = vmmov %vm18736_vm1  ;;  %v8679_v47 = vsel %vm18736_vm1, %v8659_v42, %v8678_v56  ;;  %v8680_v15 = vrot.slane %v8663_v11, 4 }
 0x8a6   : > { %v8566_v35 = vrot.slane %v8523_v49, 4  ;;  %v8565_v20 = vsel %vm18736_vm1, %v8564_v40, %v8523_v49  ;;  %v8631_v10 = vsel %vm19052_vm12, %v8599_v19, %v8630_v27  ;;  %vm19053_vm11 = vmmov %vm18736_vm1  ;;  %v8527_v44 = vperm.slane %v8519_v38, %v18749_v59 }
 0x8a7   : > { %v17439_v17 = vpop.permute.xlu2 %8728  ;;  %v8639_v19 = vperm.slane %v8631_v10, %v18749_v59  ;;  %vm19054_vm14 = vmmov %vm18736_vm1  ;;  %v8618_v40 = vrot.slane %v17290_v13, 4  ;;  %v8606_v57 = vrot.slane %v17375_v36, 4  ;;  %v8582_v27 = vrot.slane %v17418_v48, 4  ;;  %v17520_v48 = vld [vmem:[%s17833_s14] ss:$0 sm:$0xff] }
 0x8a8   : > { %v8567_v55 = vsel %vm19050_vm10, %v8547_v8, %v8566_v35  ;;  %v8470_v8 = vrot.slane %v17396_v16, 4  ;;  %vm19055_vm13 = vmmov %vm18736_vm1  ;;  %v8594_v35 = vrot.slane %v17354_v32, 4 }
 0x8a9   : > { %v8495_v54 = vsel %vm19055_vm13, %v17284_v7, %v8494_v25  ;;  %vm19056_vm15 = vmmov %vm18736_vm1 }
 0x8aa   : > { %8782 = vrot.lane.b32.xlu1 %v8241_v41, %s10483_s9  ;;  %v8482_v41 = vrot.slane %v17329_v14, 4  ;;  %vm19057_vm8 = vmmov %vm18736_vm1  ;;  %v8503_v13 = vperm.slane %v8495_v54, %v18495_v37  ;;  %s10377_s9 = scalar_lea.hbm %s19117_s19, 64 }
 0x8ab   : > { %vm19058_vm10 = vmmov %vm18736_vm1 }
 0x8ac   : > { %8796 = vrot.lane.b32.xlu0 %v8131_v50, %s10482_s29  ;;  %8798 = vrot.lane.b32.xlu2 %v8243_v62, %s10482_s29  ;;  %v8507_v50 = vsel %vm19053_vm11, %v17206_v34, %v8506_v21  ;;  %v8483_v49 = vsel %vm19054_vm14, %v17243_v61, %v8482_v41  ;;  %v8471_v34 = vsel %vm19056_vm15, %v17352_v58, %v8470_v8  ;;  %vm19060_vm9 = vmmov %vm18736_vm1  ;;  %v8682_v41 = vrot.slane %v8639_v19, 4 }
 0x8ad   : > { %v17490_v16 = vperm.slane %v8507_v50, %v18495_v37  ;;  %v8491_v39 = vperm.slane %v8483_v49, %v18495_v37  ;;  %v8569_v61 = vsel %vm19057_vm8, %v8568_v30, %v8527_v44  ;;  %v8681_v42 = vsel %vm19058_vm10, %v8680_v15, %v8639_v19  ;;  %vm19061_vm12 = vmmov %vm18736_vm1 }
 0x8ae   : > { %v17455_v23 = vpop.permute.xlu0 %8698  ;;  %v8479_v58 = vperm.slane %v8471_v34, %v18495_v37  ;;  %v8619_v32 = vsel %vm19060_vm9, %v17217_v5, %v8618_v40  ;;  %v8595_v43 = vsel %vm19061_vm12, %v17253_v33, %v8594_v35  ;;  %vm19062_vm11 = vmmov %vm18736_vm1 }
 0x8af   : > { %v17457_v24 = vpop.permute.xlu2 %8746  ;;  %v8552_v45 = vrot.slane %v17490_v16, 4  ;;  %v8528_v36 = vrot.slane %v8491_v39, 4  ;;  %v8607_v21 = vsel %vm19062_vm11, %v17303_v3, %v8606_v57  ;;  %vm19063_vm14 = vmmov %vm18736_vm1  ;;  %v8627_v10 = vperm.slane %v8619_v32, %v18495_v37 }
 0x8b0   : > { %vm19064_vm13 = vmmov %vm18736_vm1  ;;  %v8603_v33 = vperm.slane %v8595_v43, %v18495_v37  ;;  %v8530_v15 = vrot.slane %v8479_v58, 4 }
 0x8b1   : > { %v8529_v5 = vsel %vm18736_vm1, %v8528_v36, %v8479_v58  ;;  %v8553_v38 = vsel %vm19064_vm13, %v8552_v45, %v8503_v13  ;;  %vm19065_vm15 = vmmov %vm18736_vm1 }
 0x8b2   : > { %8812 = vrot.lane.b32.xlu1 %v8565_v20, %s10475_s1  ;;  %v8535_v25 = vperm.slane %v8529_v5, %v18749_v59  ;;  %v8559_v8 = vperm.slane %v8553_v38, %v18749_v59  ;;  %vm19066_vm8 = vmmov %vm18736_vm1  ;;  %v8640_v40 = vrot.slane %v8603_v33, 4 }
 0x8b3   : > { %vm19067_vm10 = vmmov %vm18736_vm1 }
 0x8b4   : > { %8814 = vrot.lane.b32.xlu0 %v8677_v2, %s10475_s1  ;;  %8828 = vrot.lane.b32.xlu2 %v8567_v55, %s10480_s0  ;;  %v17470_v63 = vpop.permute.xlu1 %8712  ;;  %s19059_s1 = smov 80   ;;  %v8583_v2 = vsel %vm19063_vm14, %v17367_v31, %v8582_v27  ;;  %v8570_v55 = vrot.slane %v8527_v44, 4  ;;  %v8683_v31 = vsel %vm19066_vm8, %v8663_v11, %v8682_v41  ;;  %v8615_v44 = vperm.slane %v8607_v21, %v18495_v37  ;;  %vm19068_vm9 = vmmov %vm18736_vm1 }
 0x8b5   : > { %v8591_v19 = vperm.slane %v8583_v2, %v18495_v37  ;;  %v8572_v49 = vrot.slane %v8559_v8, 4  ;;  %vm19069_vm12 = vmmov %vm18736_vm1  ;;  %v8574_v27 = vrot.slane %v8535_v25, 4 }
 0x8b6   : > { %v17478_v14 = vpop.permute.xlu0 %8714  ;;  %v8571_v50 = vsel %vm19065_vm15, %v8551_v9, %v8570_v55  ;;  %v8664_v9 = vrot.slane %v8627_v10, 4  ;;  %v8666_v37 = vrot.slane %v8615_v44, 4  ;;  %vm19070_vm11 = vmmov %vm18736_vm1 }
 0x8b7   : > { %v17482_v62 = vpop.permute.xlu2 %8776  ;;  %v8573_v54 = vsel %vm19067_vm10, %v8572_v49, %v8535_v25  ;;  %v8641_v35 = vsel %vm19068_vm9, %v8640_v40, %v8591_v19  ;;  %v8531_v36 = vsel %vm19070_vm11, %v8491_v39, %v8530_v15  ;;  %vm19071_vm14 = vmmov %vm18736_vm1  ;;  %v9979_v49 = vld [vmem:[%s19074_s2 + $0x30] sm:$0xff] }
 0x8b8   : > { %v8665_v57 = vsel %vm19069_vm12, %v8664_v9, %v8615_v44  ;;  %v8647_v45 = vperm.slane %v8641_v35, %v18749_v59  ;;  %v8575_v21 = vsel %vm19071_vm14, %v8559_v8, %v8574_v27  ;;  %vm19072_vm13 = vmmov %vm18736_vm1  ;;  %v8539_v25 = vperm.slane %v8531_v36, %v18749_v59  ;;  %v9980_v8 = vld [vmem:[%s19074_s2 + $0x38] sm:$0xff] }
 0x8b9   : > { %v8671_v32 = vperm.slane %v8665_v57, %v18749_v59  ;;  %v8667_v5 = vsel %vm19072_vm13, %v8627_v10, %v8666_v37  ;;  %vm19073_vm15 = vmmov %vm18736_vm1  ;;  %9054 = vmatpush.bf16.msra.mxu3 %v9980_v8 }
 0x8ba   : > { %8830 = vrot.lane.b32.xlu1 %v8679_v47, %s10480_s0  ;;  %vm19075_vm8 = vmmov %vm18736_vm1  ;;  %v8675_v10 = vperm.slane %v8667_v5, %v18749_v59  ;;  %v8578_v15 = vrot.slane %v8539_v25, 4 }
 0x8bb   : > { %v8684_v2 = vrot.slane %v8671_v32, 4  ;;  %vm19076_vm10 = vmmov %vm18736_vm1 }
 0x8bc   : > { %8844 = vrot.lane.b32.xlu0 %v8569_v61, %s19059_s1  ;;  %8846 = vrot.lane.b32.xlu2 %v8681_v42, %s19059_s1  ;;  %v17506_v7 = vpop.permute.xlu1 %8730  ;;  %v8642_v61 = vrot.slane %v8591_v19, 4  ;;  %v8554_v42 = vrot.slane %v8503_v13, 4  ;;  %v8686_v13 = vrot.slane %v8647_v45, 4  ;;  %vm19077_vm9 = vmmov %vm18736_vm1 }
 0x8bd   : > { %9055 = vmatpush.bf16.msra.mxu3 %v9979_v49  ;;  %vm19078_vm12 = vmmov %vm18736_vm1 }
 0x8be   : > { %v17510_v20 = vpop.permute.xlu0 %8744  ;;  %v8643_v41 = vsel %vm18736_vm1, %v8603_v33, %v8642_v61  ;;  %v8555_v39 = vsel %vm19073_vm15, %v17490_v16, %v8554_v42  ;;  %vm19079_vm11 = vmmov %vm18736_vm1 }
 0x8bf   : > { %v17515_v46 = vpop.permute.xlu2 %8794  ;;  %v8651_v16 = vperm.slane %v8643_v41, %v18749_v59  ;;  %v8563_v19 = vperm.slane %v8555_v39, %v18749_v59  ;;  %v7892_v41 = vrot.slane %v16938_v52, 4  ;;  %vm19081_vm15 = vmmov %vm19075_vm8 }
 0x8c1   : > { %v8576_v9 = vrot.slane %v8563_v19, 4  ;;  %v8579_v35 = vsel %vm19079_vm11, %v8563_v19, %v8578_v15  ;;  %v8690_v36 = vrot.slane %v8651_v16, 4  ;;  %v7893_v8 = vsel %vm19075_vm8, %v7892_v41, %v16899_v6  ;;  %v9976_v15 = vld [vmem:[%s19074_s2 + $0x18] sm:$0xff]  ;;  %vm19082_vm11 = vmmov %vm19075_vm8 }
 0x8c2   : > { %v9402_v56 = vpop.f32.mrf.mxu0  ;;  %8860 = vrot.lane.b32.xlu1 %v8571_v50, %s18978_s26  ;;  %v8685_v50 = vsel %vm19075_vm8, %v8684_v2, %v8647_v45  ;;  %v9978_v2 = vld [vmem:[%s19074_s2 + $0x28] sm:$0xff]  ;;  %v8004_v6 = vrot.slane %v16935_v29, 4  ;;  %v9975_v29 = vld [vmem:[%s19074_s2 + $0x10] sm:$0xff]  ;;  %vm19085_vm8 = vcmask 654336  }
 0x8c3   : > { %v9403_v3 = vadd.f32 %v17520_v48, %v9402_v56  ;;  %v8577_v59 = vsel %vm19078_vm12, %v8576_v9, %v8539_v25  ;;  %9056 = vmatpush.bf16.msra.mxu3 %v9978_v2  ;;  %v8691_v39 = vsel %vm19081_vm15, %v8675_v10, %v8690_v36  ;;  %vm19084_vm15 = vcmask 588800  }
 0x8c4   : > { %8862 = vrot.lane.b32.xlu0 %v8683_v31, %s18978_s26  ;;  %v17541_v47 = vpop.permute.xlu1 %8760  ;;  %8876 = vrot.lane.b32.xlu2 %v8573_v54, %s18982_s21  ;;  %v8687_v31 = vsel %vm19076_vm10, %v8671_v32, %v8686_v13 }
 0x8c5   : > { %v9961_v30 = vmul.f32 -1.442695, %v9403_v3 }
 0x8c6   : > { %v17544_v34 = vpop.permute.xlu0 %8762 }
 0x8c7   : > { %10166 = vpow2.f32 %v9961_v30  ;;  %v17547_v11 = vpop.permute.xlu2 %8824  ;;  %v8688_v30 = vrot.slane %v8675_v10, 4 }
 0x8c9   : > { %v8689_v54 = vsel %vm19077_vm9, %v8688_v30, %v8651_v16  ;;  %v8932_v16 = vsel %vm2046_vm2, %v7893_v8, %v17402_v60 }
 0x8ca   : > { %v9404_v58 = vpop.f32.mrf.mxu0  ;;  %8878 = vrot.lane.b32.xlu1 %v8685_v50, %s18982_s21  ;;  %v8936_v49 = vsel %vm3379_vm3, %v8932_v16, %v17470_v63  ;;  %s19115_s21 = sshll.u32 %s15627_s18, 5 }
 0x8cb   : > { %v9405_v43 = vadd.f32 %v17520_v48, %v9404_v58  ;;  %v8940_v60 = vsel %vm3384_vm4, %v8936_v49, %v17439_v17  ;;  %v10200_v49 = vld [vmem:[#allocation10 + $0x28] sm:$0xff] }
 0x8cc   : > { %8892 = vrot.lane.b32.xlu0 %v8575_v21, %s18994_s17  ;;  %v17557_v55 = vpop.permute.xlu1 %8778  ;;  %8894 = vrot.lane.b32.xlu2 %v8687_v31, %s18994_s17  ;;  %v8944_v63 = vsel %vm731_vm0, %v8940_v60, %v17510_v20  ;;  %v10201_v60 = vld [vmem:[#allocation10 + $0x20] sm:$0xff]  ;;  %s17744_s17 = scalar_lea.vmem [#allocation11], %s19115_s21 }
 0x8cd   : > { %v10167_v38 = vpop.eup %10166  ;;  %v9962_v56 = vmul.f32 -1.442695, %v9405_v43  ;;  %s9519_s23 = sshll.u32 %s17744_s17, 4  ;;  %s9520_s23 = int_to_ptr.vmem [resolvable:$true] %s9519_s23 }
 0x8ce   : > { %v9424_v3 = vadd.f32 1.0, %v10167_v38  ;;  %v17569_v44 = vpop.permute.xlu0 %8792  ;;  %v9977_v38 = vld [vmem:[%s19074_s2 + $0x20] sm:$0xff] }
 0x8cf   : > { %10168 = vpow2.f32 %v9962_v56  ;;  %v17574_v33 = vpop.permute.xlu2 %8842  ;;  %9057 = vmatpush.bf16.msra.mxu3 %v9977_v38 }
 0x8d0   : > { %10170 = vrcp.f32 %v9424_v3  ;;  %v9439_v32 = vand.u32 2147483648, %v9424_v3  ;;  %v9437_v21 = vand.u32 2147483647, %v9424_v3  ;;  %vm9433_vm1 = vweird.f32 %v9424_v3 }
 0x8d2   : > { %8908 = vrot.lane.b32.xlu1 %v8577_v59, %s18999_s22  ;;  %v9440_v25 = vor.u32 1.1754944e-38, %v9439_v32  ;;  %vm9438_vm10 = vcmp.eq.f32.partialorder %v9437_v21, 8.507059e+37  ;;  %v8005_v59 = vsel %vm19082_vm11, %v8004_v6, %v16902_v12  ;;  %vm19089_vm11 = vcmask 785408  }
 0x8d3   : > { %9058 = vmatpush.bf16.msra.mxu3 %v9976_v15  ;;  %v8933_v20 = vsel %vm2046_vm2, %v8005_v59, %v17455_v23  ;;  %v9974_v23 = vld [vmem:[%s19074_s2 + $0x8] sm:$0xff] }
 0x8d4   : > { %8910 = vrot.lane.b32.xlu0 %v8689_v54, %s18999_s22  ;;  %v17583_v40 = vpop.permute.xlu1 %8808  ;;  %8924 = vrot.lane.b32.xlu2 %v8579_v35, %s19002_s30  ;;  %s19080_s22 = sshll.u32 %s19129_s16, 3  ;;  %v8948_v35 = vsel %vm3393_vm5, %v8944_v63, %v17541_v47  ;;  %v8937_v32 = vsel %vm3379_vm3, %v8933_v20, %v17478_v14 }
 0x8d5   : > { %v10169_v37 = vpop.eup %10168  ;;  %s17607_s0 = scalar_lea.vmem %s17834_s15, %s19080_s22  ;;  %v8952_v12 = vsel %vm3398_vm6, %v8948_v35, %v17482_v62  ;;  %v9973_v62 = vld [vmem:[%s19074_s2] sm:$0xff]  ;;  %s19118_s22 = sld [smem:[#allocation151_spill]] }
 0x8d6   : > { %v10171_v61 = vpop.eup %10170  ;;  %v9425_v42 = vadd.f32 1.0, %v10169_v37  ;;  %v17587_v57 = vpop.permute.xlu0 %8810  ;;  %v8956_v47 = vsel %vm3403_vm7, %v8952_v12, %v17569_v44 }
 0x8d7   : > { %v9429_v27 = vmul.f32 %v10171_v61, %v9424_v3  ;;  %v17591_v58 = vpop.permute.xlu2 %8872  ;;  %vm9434_vm14 = vweird.f32 %v10171_v61  ;;  %9059 = vmatpush.bf16.msra.mxu3 %v9975_v29 }
 0x8d8   : > { %10172 = vrcp.f32 %v9425_v42  ;;  %vm9435_vm13 = vmor %vm9433_vm1, %vm9434_vm14  ;;  %v9454_v30 = vand.u32 2147483648, %v9425_v42  ;;  %v9452_v9 = vand.u32 2147483647, %v9425_v42  ;;  %vm9448_vm12 = vweird.f32 %v9425_v42 }
 0x8d9   : > { %v9430_v45 = vsub.f32 1.0, %v9429_v27 }
 0x8da   : > { %8926 = vrot.lane.b32.xlu1 %v8691_v39, %s19002_s30  ;;  %v9455_v17 = vor.u32 1.1754944e-38, %v9454_v30  ;;  %vm9453_vm1 = vcmp.eq.f32.partialorder %v9452_v9, 8.507059e+37  ;;  %s10025_s30 = sshll.u32 %s10603_s28, 5 }
 0x8db   : > { %v9431_v43 = vmul.f32 %v10171_v61, %v9430_v45  ;;  %9060 = vmatpush.bf16.msra.mxu3 %v9974_v23  ;;  %s9518_s27 = scalar_lea.hbm %s19117_s19, %s10025_s30  ;;  %s9535_s1 = scalar_lea.hbm %s19118_s22, %s10025_s30 }
 0x8dc   : > { %v17596_v13 = vpop.permute.xlu1 %8826  ;;  %s9521_s5 = sshll.u32 %s9518_s27, 4  ;;  %s9538_s2 = sshll.u32 %s9535_s1, 4  ;;  %s9522_s5 = int_to_ptr.hbm [resolvable:$true] %s9521_s5  ;;  %s17767_s2 = int_to_ptr.hbm [resolvable:$true] %s9538_s2 }
 0x8dd   : > { %v9432_v5 = vadd.f32 %v10171_v61, %v9431_v43  ;;  %v8941_v43 = vsel %vm3384_vm4, %v8937_v32, %v17506_v7  ;;  %s10371_s3 = sshra.s32 %s9522_s5, 4  ;;  %s10372_s3 = int_to_ptr.hbm [resolvable:$true] %s10371_s3 }
 0x8de   : > { %v10173_v56 = vpop.eup %10172  ;;  %v8841_v52 = vpop.permute.xlu0 %8840  ;;  %v8945_v21 = vsel %vm731_vm0, %v8941_v43, %v17457_v24  ;;  %s10373_s24 = scalar_lea.hbm %s10372_s3, 32  ;;  %p10378_p3 = scmp.lt.s32.totalorder %s10372_s3, %s19117_s19 }
 0x8df   : > { %v9436_v3 = vsel %vm9435_vm13, %v10171_v61, %v9432_v5  ;;  %v9444_v50 = vmul.f32 %v10173_v56, %v9425_v42  ;;  %v17613_v31 = vpop.permute.xlu2 %8890  ;;  %vm9449_vm9 = vweird.f32 %v10173_v56  ;;  %vm19083_vm13 = vcmask 523264   ;;  %9061 = vmatpush.bf16.msra.mxu3 %v9973_v62  ;;  %p10374_p0 = scmp.ne.s32.totalorder %s10372_s3, %s10373_s24  ;;  %p10379_p4 = scmp.lt.s32.totalorder %s10377_s9, %s10373_s24 }
 0x8e0   : > { %v9441_v19 = vsel %vm9438_vm10, %v9440_v25, %v9436_v3  ;;  %vm9450_vm14 = vmor %vm9448_vm12, %vm9449_vm9  ;;  %v8960_v14 = vsel %vm19083_vm13, %v8956_v47, %v17583_v40  ;;  %v8949_v2 = vsel %vm3393_vm5, %v8945_v21, %v17544_v34  ;;  %vm19086_vm10 = vcmask 719872   ;;  %v10198_v25 = vld [vmem:[#allocation10 + $0x38] sm:$0xff] }
 0x8e1   : > { %9488 = vst.msk [vmem:[%s17607_s0] sm:$0xff] %vm731_vm0, %v9441_v19  ;;  %v9445_v10 = vsub.f32 1.0, %v9444_v50  ;;  %v8953_v41 = vsel %vm3398_vm6, %v8949_v2, %v17557_v55  ;;  %v8964_v44 = vsel %vm19084_vm15, %v8960_v14, %v17547_v11  ;;  %vm19087_vm9 = vmmov %vm19083_vm13  ;;  %p10375_p1 = pnand %p10374_p0, %p10620_p5  ;;  %p10380_p7 = por %p10379_p4, %p10378_p3 }
 0x8e2   : > { %v8968_v40 = vsel %vm19085_vm8, %v8964_v44, %v8841_v52  ;;  %v8957_v34 = vsel %vm3403_vm7, %v8953_v41, %v17515_v46  ;;  %vm19088_vm12 = vmmov %vm19084_vm15  ;;  %vm19093_vm15 = vcmask 982016   ;;  %v8116_v41 = vrot.slane %v17315_v51, 4 }
 0x8e3   : > { %v9446_v54 = vmul.f32 %v10173_v56, %v9445_v10  ;;  %10027 = vmatpush.bf16.msrb.mxu3 %v10198_v25  ;;  %vm19092_vm13 = vmmov %vm19085_vm8  ;;  %p10376_p2 = pneg %p10375_p1 }
 0x8e4   : > { %v8857_v37 = vpop.permute.xlu1 %8856  ;;  %vm19094_vm8 = vmmov %vm19086_vm10 }
 0x8e5   : > { %v9447_v61 = vadd.f32 %v10173_v56, %v9446_v54  ;;  %v8972_v24 = vsel %vm19086_vm10, %v8968_v40, %v8857_v37  ;;  %vm19095_vm10 = vmmov %vm19089_vm11  ;;  %p10381_p8 = pnand %p10380_p7, %p10376_p2 }
 0x8e6   : > { %v8859_v27 = vpop.permute.xlu0 %8858  ;;  %v8976_v11 = vsel %vm19089_vm11, %v8972_v24, %v17591_v58  ;;  %vm19098_vm11 = vmmov %vm19093_vm15 }
 0x8e7   : > { %v9451_v45 = vsel %vm9450_vm14, %v10173_v56, %v9447_v61  ;;  %v8921_v42 = vpop.permute.xlu2 %8920  ;;  %v8961_v56 = vsel %vm19087_vm9, %v8957_v34, %v17587_v57  ;;  %vm19090_vm14 = vcmask 850944   ;;  %v10199_v57 = vld [vmem:[#allocation10 + $0x30] sm:$0xff] }
 0x8e8   : > { %v9456_v36 = vsel %vm9453_vm1, %v9455_v17, %v9451_v45  ;;  %v8965_v55 = vsel %vm19088_vm12, %v8961_v56, %v17596_v13  ;;  %vm19091_vm1 = vcmask 916480   ;;  %10028 = vmatpush.bf16.msrb.mxu3 %v10199_v57  ;;  %vm19096_vm9 = vmmov %vm19090_vm14  ;;  %v10204_v17 = vld [vmem:[#allocation10 + $0x8] sm:$0xff]  ;;  %v8228_v56 = vrot.slane %v17318_v0, 4 }
 0x8e9   : > { %9489 = vst.msk [vmem:[%s17607_s0 + $0x8] sm:$0xff] %vm731_vm0, %v9456_v36  ;;  %v8969_v46 = vsel %vm19092_vm13, %v8965_v55, %v17574_v33  ;;  %vm19097_vm12 = vmmov %vm19091_vm1  ;;  %vm19101_vm13 = vcmask 523264  }
 0x8ea   : > { %v8973_v16 = vsel %vm19094_vm8, %v8969_v46, %v8859_v27 }
 0x8ec   : > { %v8875_v7 = vpop.permute.xlu1 %8874  ;;  %10029 = vmatpush.bf16.msrb.mxu3 %v10200_v49 }
 0x8ed   : > { %v8977_v13 = vsel %vm19095_vm10, %v8973_v16, %v8875_v7 }
 0x8ee   : > { %v8889_v5 = vpop.permute.xlu0 %8888  ;;  %v8981_v10 = vsel %vm19096_vm9, %v8977_v13, %v17613_v31  ;;  %v10203_v31 = vld [vmem:[#allocation10 + $0x10] sm:$0xff] }
 0x8ef   : > { %v17666_v38 = vpop.permute.xlu2 %8702  ;;  %v8980_v39 = vsel %vm19090_vm14, %v8976_v11, %v8889_v5  ;;  %vm19099_vm14 = vcmask 1047556  }
 0x8f0   : > { %10030 = vmatpush.bf16.msrb.mxu3 %v10201_v60  ;;  %v8117_v44 = vsel %vm19099_vm14, %v8116_v41, %v17279_v1 }
 0x8f4   : > { %v8905_v52 = vpop.permute.xlu1 %8904 }
 0x8f5   : > { %v8984_v8 = vsel %vm19091_vm1, %v8980_v39, %v8905_v52  ;;  %vm19100_vm1 = vmmov %vm19099_vm14 }
 0x8f6   : > { %v8988_v3 = vsel %vm19093_vm15, %v8984_v8, %v8921_v42  ;;  %v8907_v50 = vpop.permute.xlu0 %8906  ;;  %v10205_v42 = vld [vmem:[#allocation10] sm:$0xff]  ;;  %v8229_v39 = vsel %vm19100_vm1, %v8228_v56, %v17282_v28  ;;  %vm19102_vm15 = vcmask 588800   ;;  %vm19111_vm14 = vmmov %vm19095_vm10 }
 0x8f7   : > { %v8992_v19 = vsub.f32 %v18705_v53, %v8988_v3  ;;  %v8733_v58 = vpop.permute.xlu2 %8732  ;;  %v8985_v6 = vsel %vm19097_vm12, %v8981_v10, %v8907_v50  ;;  %v10202_v53 = vld [vmem:[#allocation10 + $0x18] sm:$0xff]  ;;  %v8935_v1 = vsel %vm2046_vm2, %v8229_v39, %v17666_v38 }
 0x8f8   : > { %10031 = vmatpush.bf16.msrb.mxu3 %v10202_v53 }
 0x8f9   : > { %v8996_v30 = vmul.f32 1.442695, %v8992_v19 }
 0x8fb   : > { %10174 = vpow2.f32 %v8996_v30 }
 0x8fc   : > { %v8923_v33 = vpop.permute.xlu1 %8922  ;;  %10032 = vmatpush.bf16.msrb.mxu3 %v10203_v31 }
 0x8fd   : > { %v8989_v15 = vsel %vm19098_vm11, %v8985_v6, %v8923_v33 }
 0x8fe   : > { %v8993_v54 = vsub.f32 %v18706_v18, %v8989_v15  ;;  %v8701_v9 = vpop.permute.xlu0 %8700 }
 0x8ff   : > { %v8751_v63 = vpop.permute.xlu2 %8750  ;;  %v8934_v5 = vsel %vm2046_vm2, %v8117_v44, %v8701_v9  ;;  %vm19103_vm2 = vcmask 654336  }
 0x900   : > { %v8998_v37 = vmul.f32 1.442695, %v8993_v54  ;;  %10033 = vmatpush.bf16.msrb.mxu3 %v10204_v17 }
 0x901   : > { %v17689_v59 = vpop.eup %10174 }
 0x902   : > { %10176 = vpow2.f32 %v8998_v37 }
 0x904   : > { %v8717_v61 = vpop.permute.xlu1 %8716  ;;  %10034 = vmatpush.bf16.msrb.mxu3 %v10205_v42 }
 0x905   : > { %v8938_v40 = vsel %vm3379_vm3, %v8934_v5, %v8717_v61 }
 0x906   : > { %v8719_v29 = vpop.permute.xlu0 %8718  ;;  %v8942_v25 = vsel %vm3384_vm4, %v8938_v40, %v8733_v58 }
 0x907   : > { %v8781_v20 = vpop.permute.xlu2 %8780  ;;  %v8939_v52 = vsel %vm3379_vm3, %v8935_v1, %v8719_v29  ;;  %vm19104_vm3 = vmmov %vm19094_vm8 }
 0x908   : > { %v17691_v35 = vpop.eup %10176  ;;  %vm19106_vm8 = vmmov %vm19102_vm15 }
 0x909   : > { %v9004_v18 = vpack.c.bf16 %v17691_v35, %v17689_v59 }
 0x90b   : > { %9062 = vmatmul.bf16.vlgmr.msra.gmra.mxu3 %v9004_v18 }
 0x90c   : > { %v8735_v27 = vpop.permute.xlu1 %8734 }
 0x90d   : > { %v8943_v8 = vsel %vm3384_vm4, %v8939_v52, %v8735_v27  ;;  %vm19105_vm4 = vmmov %vm19101_vm13 }
 0x90e   : > { %v8749_v45 = vpop.permute.xlu0 %8748  ;;  %v8947_v57 = vsel %vm731_vm0, %v8943_v8, %v8751_v63 }
 0x90f   : > { %v8799_v43 = vpop.permute.xlu2 %8798  ;;  %v8946_v55 = vsel %vm731_vm0, %v8942_v25, %v8749_v45 }
 0x914   : > { %v8765_v32 = vpop.permute.xlu1 %8764 }
 0x915   : > { %v8950_v51 = vsel %vm3393_vm5, %v8946_v55, %v8765_v32 }
 0x916   : > { %v8767_v36 = vpop.permute.xlu0 %8766  ;;  %v8954_v46 = vsel %vm3398_vm6, %v8950_v51, %v8781_v20 }
 0x917   : > { %v8829_v47 = vpop.permute.xlu2 %8828  ;;  %v8951_v28 = vsel %vm3393_vm5, %v8947_v57, %v8767_v36  ;;  %vm19107_vm5 = vmmov %vm19097_vm12 }
 0x918   : > { %vm19109_vm12 = vmmov %vm19098_vm11 }
 0x919   : > { %vm19110_vm11 = vmmov %vm19104_vm3 }
 0x91a   : > { %vm19113_vm1 = vmmov %vm19107_vm5 }
 0x91c   : > { %v8783_v12 = vpop.permute.xlu1 %8782 }
 0x91d   : > { %v8955_v13 = vsel %vm3398_vm6, %v8951_v28, %v8783_v12  ;;  %vm19108_vm6 = vmmov %vm19103_vm2 }
 0x91e   : > { %v8797_v23 = vpop.permute.xlu0 %8796  ;;  %v8959_v10 = vsel %vm3403_vm7, %v8955_v13, %v8799_v43 }
 0x91f   : > { %v8847_v7 = vpop.permute.xlu2 %8846  ;;  %v8958_v0 = vsel %vm3403_vm7, %v8954_v46, %v8797_v23  ;;  %vm19112_vm7 = vmmov %vm19096_vm9 }
 0x924   : > { %v8813_v14 = vpop.permute.xlu1 %8812 }
 0x925   : > { %v8962_v3 = vsel %vm19101_vm13, %v8958_v0, %v8813_v14  ;;  %vm19114_vm13 = vmmov %vm19109_vm12 }
 0x926   : > { %v8815_v21 = vpop.permute.xlu0 %8814  ;;  %v8966_v38 = vsel %vm19102_vm15, %v8962_v3, %v8829_v47 }
 0x927   : > { %v8877_v24 = vpop.permute.xlu2 %8876  ;;  %v8963_v6 = vsel %vm19105_vm4, %v8959_v10, %v8815_v21 }
 0x92c   : > { %v8831_v2 = vpop.permute.xlu1 %8830 }
 0x92d   : > { %v8967_v33 = vsel %vm19106_vm8, %v8963_v6, %v8831_v2 }
 0x92e   : > { %v8845_v62 = vpop.permute.xlu0 %8844  ;;  %v8971_v37 = vsel %vm19108_vm6, %v8967_v33, %v8847_v7 }
 0x92f   : > { %v8895_v50 = vpop.permute.xlu2 %8894  ;;  %v8970_v19 = vsel %vm19103_vm2, %v8966_v38, %v8845_v62 }
 0x934   : > { %v8861_v34 = vpop.permute.xlu1 %8860 }
 0x935   : > { %v8974_v49 = vsel %vm19104_vm3, %v8970_v19, %v8861_v34 }
 0x936   : > { %v8863_v11 = vpop.permute.xlu0 %8862  ;;  %v8978_v30 = vsel %vm19095_vm10, %v8974_v49, %v8877_v24 }
 0x937   : > { %v8925_v9 = vpop.permute.xlu2 %8924  ;;  %v8975_v63 = vsel %vm19110_vm11, %v8971_v37, %v8863_v11 }
 0x93c   : > { %v8879_v16 = vpop.permute.xlu1 %8878 }
 0x93d   : > { %v8979_v61 = vsel %vm19111_vm14, %v8975_v63, %v8879_v16 }
 0x93e   : > { %v8893_v58 = vpop.permute.xlu0 %8892  ;;  %v8983_v18 = vsel %vm19112_vm7, %v8979_v61, %v8895_v50 }
 0x93f   : > { %v8982_v15 = vsel %vm19096_vm9, %v8978_v30, %v8893_v58 }
 0x944   : > { %v8909_v54 = vpop.permute.xlu1 %8908 }
 0x945   : > { %v8986_v60 = vsel %vm19107_vm5, %v8982_v15, %v8909_v54 }
 0x946   : > { %v8990_v53 = vsel %vm19109_vm12, %v8986_v60, %v8925_v9  ;;  %v8911_v31 = vpop.permute.xlu0 %8910  ;;  %v10206_v60 = vld [vmem:[%s17831_s12] ss:$0 sm:$0xff] }
 0x947   : > { %v8994_v29 = vsub.f32 %v18707_v4, %v8990_v53  ;;  %v8987_v17 = vsel %vm19113_vm1, %v8983_v18, %v8911_v31 }
 0x949   : > { %v9000_v20 = vmul.f32 1.442695, %v8994_v29 }
 0x94b   : > { %10178 = vpow2.f32 %v9000_v20 }
 0x94c   : > { %v8927_v27 = vpop.permute.xlu1 %8926 }
 0x94d   : > { %v8991_v45 = vsel %vm19114_vm13, %v8987_v17, %v8927_v27 }
 0x94e   : > { %v8995_v42 = vsub.f32 %v18708_v22, %v8991_v45 }
 0x950   : > { %v9002_v32 = vmul.f32 1.442695, %v8995_v42 }
 0x951   : > { %v17734_v36 = vpop.eup %10178 }
 0x952   : > { %10180 = vpow2.f32 %v9002_v32 }
 0x958   : > { %v17736_v43 = vpop.eup %10180 }
 0x959   : > { %v9005_v4 = vpack.c.bf16 %v17736_v43, %v17734_v36 }
 0x95b   : > { %9067 = vmatmul.bf16.gmra.mxu3 %v9005_v4 }
 0x96b   : > { %9313 = vmatmul.bf16.vlgmr.msrb.gmra.mxu3 %v16345_v26 }
 0x98e   : > { %v9063_v12 = vpop.f32.mrf.mxu3 }
 0x98f   : > { %10182 = vrcp.f32 %v9063_v12  ;;  %v9084_v21 = vand.u32 2147483648, %v9063_v12  ;;  %v9082_v2 = vand.u32 2147483647, %v9063_v12  ;;  %vm9078_vm2 = vweird.f32 %v9063_v12 }
 0x991   : > { %v9085_v44 = vor.u32 1.1754944e-38, %v9084_v21  ;;  %vm9083_vm4 = vcmp.eq.f32.partialorder %v9082_v2, 8.507059e+37 }
 0x995   : > { %v10183_v23 = vpop.eup %10182 }
 0x996   : > { %v9074_v47 = vmul.f32 %v10183_v23, %v9063_v12  ;;  %v9065_v14 = vpop.f32.mrf.mxu3  ;;  %vm9079_vm15 = vweird.f32 %v10183_v23 }
 0x997   : > { %10184 = vrcp.f32 %v9065_v14  ;;  %vm9080_vm3 = vmor %vm9078_vm2, %vm9079_vm15  ;;  %v9099_v56 = vand.u32 2147483648, %v9065_v14  ;;  %v9097_v55 = vand.u32 2147483647, %v9065_v14  ;;  %vm9093_vm10 = vweird.f32 %v9065_v14 }
 0x998   : > { %v9075_v22 = vsub.f32 1.0, %v9074_v47 }
 0x999   : > { %v9100_v39 = vor.u32 1.1754944e-38, %v9099_v56  ;;  %vm9098_vm5 = vcmp.eq.f32.partialorder %v9097_v55, 8.507059e+37 }
 0x99a   : > { %v9076_v7 = vmul.f32 %v10183_v23, %v9075_v22 }
 0x99c   : > { %v9077_v62 = vadd.f32 %v10183_v23, %v9076_v7 }
 0x99d   : > { %v10185_v41 = vpop.eup %10184 }
 0x99e   : > { %v9081_v5 = vsel %vm9080_vm3, %v10183_v23, %v9077_v62  ;;  %v9089_v26 = vmul.f32 %v10185_v41, %v9065_v14  ;;  %vm9094_vm8 = vweird.f32 %v10185_v41 }
 0x99f   : > { %v9086_v40 = vsel %vm9083_vm4, %v9085_v44, %v9081_v5  ;;  %vm9095_vm9 = vmor %vm9093_vm10, %vm9094_vm8 }
 0x9a0   : > { %v9087_v24 = vmul.f32 %v17689_v59, %v9086_v40  ;;  %v9090_v34 = vsub.f32 1.0, %v9089_v26 }
 0x9a2   : > { %9133 = vst [vmem:[%s17744_s17] sm:$0xff] %v9087_v24  ;;  %v9091_v25 = vmul.f32 %v10185_v41, %v9090_v34 }
 0x9a4   : > { %v9092_v11 = vadd.f32 %v10185_v41, %v9091_v25 }
 0x9a6   : > { %v9096_v51 = vsel %vm9095_vm9, %v10185_v41, %v9092_v11 }
 0x9a7   : > { %v9101_v1 = vsel %vm9098_vm5, %v9100_v39, %v9096_v51 }
 0x9a8   : > { %v9102_v59 = vmul.f32 %v17691_v35, %v9101_v1 }
 0x9aa   : > { %9134 = vst [vmem:[%s17744_s17 + $0x8] sm:$0xff] %v9102_v59 }
 0x9de   : > { %v9068_v52 = vpop.f32.mrf.mxu3 }
 0x9df   : > { %10186 = vrcp.f32 %v9068_v52  ;;  %v9114_v50 = vand.u32 2147483648, %v9068_v52  ;;  %v9112_v16 = vand.u32 2147483647, %v9068_v52  ;;  %vm9108_vm12 = vweird.f32 %v9068_v52 }
 0x9e1   : > { %v9115_v38 = vor.u32 1.1754944e-38, %v9114_v50  ;;  %vm9113_vm14 = vcmp.eq.f32.partialorder %v9112_v16, 8.507059e+37 }
 0x9e5   : > { %v10187_v8 = vpop.eup %10186 }
 0x9e6   : > { %v9104_v46 = vmul.f32 %v10187_v8, %v9068_v52  ;;  %v9070_v0 = vpop.f32.mrf.mxu3  ;;  %vm9109_vm6 = vweird.f32 %v10187_v8 }
 0x9e7   : > { %10188 = vrcp.f32 %v9070_v0  ;;  %vm9110_vm11 = vmor %vm9108_vm12, %vm9109_vm6  ;;  %v9129_v33 = vand.u32 2147483648, %v9070_v0  ;;  %v9127_v15 = vand.u32 2147483647, %v9070_v0  ;;  %vm9123_vm1 = vweird.f32 %v9070_v0 }
 0x9e8   : > { %v9105_v3 = vsub.f32 1.0, %v9104_v46 }
 0x9e9   : > { %v9130_v9 = vor.u32 1.1754944e-38, %v9129_v33  ;;  %vm9128_vm15 = vcmp.eq.f32.partialorder %v9127_v15, 8.507059e+37 }
 0x9ea   : > { %v9106_v57 = vmul.f32 %v10187_v8, %v9105_v3 }
 0x9ec   : > { %v9107_v28 = vadd.f32 %v10187_v8, %v9106_v57 }
 0x9ed   : > { %v10189_v13 = vpop.eup %10188 }
 0x9ee   : > { %v9111_v19 = vsel %vm9110_vm11, %v10187_v8, %v9107_v28  ;;  %v9119_v35 = vmul.f32 %v10189_v13, %v9070_v0  ;;  %v9314_v58 = vpop.f32.mrf.mxu3  ;;  %vm9124_vm7 = vweird.f32 %v10189_v13 }
 0x9ef   : > { %v9116_v49 = vsel %vm9113_vm14, %v9115_v38, %v9111_v19  ;;  %vm9125_vm13 = vmor %vm9123_vm1, %vm9124_vm7  ;;  %v9315_v37 = vadd.f32 %v10206_v60, %v9314_v58 }
 0x9f0   : > { %v9117_v10 = vmul.f32 %v17734_v36, %v9116_v49  ;;  %v9120_v6 = vsub.f32 1.0, %v9119_v35 }
 0x9f1   : > { %v9321_v18 = vmax.f32 %v9315_v37, 0.0 }
 0x9f2   : > { %9135 = vst [vmem:[%s17744_s17 + $0x10] sm:$0xff] %v9117_v10  ;;  %v9121_v30 = vmul.f32 %v10189_v13, %v9120_v6 }
 0x9f4   : > { %v9122_v54 = vadd.f32 %v10189_v13, %v9121_v30 }
 0x9f6   : > { %v9126_v53 = vsel %vm9125_vm13, %v10189_v13, %v9122_v54  ;;  %v9316_v63 = vpop.f32.mrf.mxu3 }
 0x9f7   : > { %v9131_v61 = vsel %vm9128_vm15, %v9130_v9, %v9126_v53  ;;  %v9317_v29 = vadd.f32 %v10206_v60, %v9316_v63 }
 0x9f8   : > { %v9132_v31 = vmul.f32 %v17736_v43, %v9131_v61 }
 0x9f9   : > { %v9322_v17 = vmax.f32 %v9317_v29, 0.0 }
 0x9fa   : > { %9136 = vst [vmem:[%s17744_s17 + $0x18] sm:$0xff] %v9132_v31  ;;  %s9498_s17 = scalar_lea.sflag [#allocation4], %s15627_s18 }
 0x9fb   : > { %v9324_v27 = vpack.c.bf16 %v9322_v17, %v9321_v18 }
 0x9fd   : > { %9406 = vmatmul.bf16.vlgmr.msrb.gmra.mxu2 %v9324_v27 }
 0x9fe   : > { %10384 = shalt.err (!%p10381_p8)
}
 0x9ff   : > { %s10491_s30 = smov 128   ;;  %s19119_s27 = smov 8  }
 0xa00   : > { %10063 = dma.vmem_to_hbm [thread:$0]  (%p10620_p5), %s9520_s23, 512, %s9522_s5, %s9498_s17, %s10491_s30, %s10491_s30, %s19119_s27  }
 0xa01   : > { %s9503_s21 = scalar_lea.sflag [#allocation13], %s15627_s18  ;;  %s10399_s1 = sshra.s32 %s17767_s2, 4  ;;  %s10400_s1 = int_to_ptr.hbm [resolvable:$true] %s10399_s1 }
 0xa02   : > { %s10401_s28 = scalar_lea.hbm %s10400_s1, 32  ;;  %s10405_s24 = scalar_lea.hbm %s19118_s22, 64 }
 0xa03   : > { %p10402_p9 = scmp.ne.s32.totalorder %s10400_s1, %s10401_s28  ;;  %p10406_p12 = scmp.lt.s32.totalorder %s10400_s1, %s19118_s22 }
 0xa04   : > { %p10407_p13 = scmp.lt.s32.totalorder %s10405_s24, %s10401_s28 }
 0xa05   : > { %p10403_p10 = pnand %p10402_p9, %p10620_p5 }
 0xa06   : > { %p10408_p0 = por %p10407_p13, %p10406_p12 }
 0xa07   : > { %p10404_p11 = pneg %p10403_p10 }
 0xa09   : > { %p10409_p1 = pnand %p10408_p0, %p10404_p11 }
 0xa0b   : > { %10412 = shalt.err (!%p10409_p1)
}
 0xa0c   : > { %10064 = dma.vmem_to_hbm [thread:$0]  (%p10620_p5), %s17758_s20, 512, %s17767_s2, %s9503_s21, %s10491_s30, %s10491_s30, %s19119_s27  }
 0xa80   : > { %v9407_v20 = vpop.f32.mrf.mxu2 }
 0xa81   : > { %v9408_v45 = vadd.f32 %v17520_v48, %v9407_v20 }
 0xa83   : > { %v9963_v42 = vmul.f32 -1.442695, %v9408_v45 }
 0xa85   : > { %10190 = vpow2.f32 %v9963_v42 }
 0xa88   : > { %v9409_v32 = vpop.f32.mrf.mxu2 }
 0xa89   : > { %v9410_v36 = vadd.f32 %v17520_v48, %v9409_v32 }
 0xa8b   : > { %v10191_v43 = vpop.eup %10190  ;;  %v9964_v4 = vmul.f32 -1.442695, %v9410_v36 }
 0xa8c   : > { %v9426_v12 = vadd.f32 1.0, %v10191_v43 }
 0xa8d   : > { %10192 = vpow2.f32 %v9964_v4 }
 0xa8e   : > { %10194 = vrcp.f32 %v9426_v12  ;;  %v9469_v7 = vand.u32 2147483648, %v9426_v12  ;;  %v9467_v62 = vand.u32 2147483647, %v9426_v12  ;;  %vm9463_vm3 = vweird.f32 %v9426_v12 }
 0xa90   : > { %v9470_v48 = vor.u32 1.1754944e-38, %v9469_v7  ;;  %vm9468_vm8 = vcmp.eq.f32.partialorder %v9467_v62, 8.507059e+37 }
 0xa93   : > { %v10193_v23 = vpop.eup %10192 }
 0xa94   : > { %v10195_v47 = vpop.eup %10194  ;;  %v9427_v14 = vadd.f32 1.0, %v10193_v23 }
 0xa95   : > { %v9459_v22 = vmul.f32 %v10195_v47, %v9426_v12  ;;  %vm9464_vm2 = vweird.f32 %v10195_v47 }
 0xa96   : > { %10196 = vrcp.f32 %v9427_v14  ;;  %vm9465_vm4 = vmor %vm9463_vm3, %vm9464_vm2  ;;  %v9484_v34 = vand.u32 2147483648, %v9427_v14  ;;  %v9482_v25 = vand.u32 2147483647, %v9427_v14  ;;  %vm9478_vm9 = vweird.f32 %v9427_v14 }
 0xa97   : > { %v9460_v21 = vsub.f32 1.0, %v9459_v22 }
 0xa98   : > { %v9485_v11 = vor.u32 1.1754944e-38, %v9484_v34  ;;  %vm9483_vm6 = vcmp.eq.f32.partialorder %v9482_v25, 8.507059e+37 }
 0xa99   : > { %v9461_v2 = vmul.f32 %v10195_v47, %v9460_v21 }
 0xa9b   : > { %v9462_v41 = vadd.f32 %v10195_v47, %v9461_v2 }
 0xa9c   : > { %v10197_v44 = vpop.eup %10196 }
 0xa9d   : > { %v9466_v5 = vsel %vm9465_vm4, %v10195_v47, %v9462_v41  ;;  %v9474_v26 = vmul.f32 %v10197_v44, %v9427_v14  ;;  %vm9479_vm10 = vweird.f32 %v10197_v44 }
 0xa9e   : > { %v9471_v40 = vsel %vm9468_vm8, %v9470_v48, %v9466_v5  ;;  %vm9480_vm5 = vmor %vm9478_vm9, %vm9479_vm10 }
 0xa9f   : > { %9490 = vst.msk [vmem:[%s17607_s0 + $0x10] sm:$0xff] %vm731_vm0, %v9471_v40  ;;  %v9475_v24 = vsub.f32 1.0, %v9474_v26 }
 0xaa1   : > { %v9476_v56 = vmul.f32 %v10197_v44, %v9475_v24 }
 0xaa3   : > { %v9477_v55 = vadd.f32 %v10197_v44, %v9476_v56 }
 0xaa5   : > { %v9481_v39 = vsel %vm9480_vm5, %v10197_v44, %v9477_v55 }
 0xaa6   : > { %v9486_v51 = vsel %vm9483_vm6, %v9485_v11, %v9481_v39 }
 0xaa7   : > { %9491 = vst.msk [vmem:[%s17607_s0 + $0x18] sm:$0xff] %vm731_vm0, %v9486_v51 }
 0xaa8 PF: > { %s19120_s2 = sld [smem:[#allocation21_spill]] }
 0xaa9   : > { %s19121_s5 = sld [smem:[#allocation19_spill]] }
 0xaae   : > { %p10100_p5 = scmp.ge.s32.totalorder %s19120_s2, 2 }
 0xaaf   : > { %s9561_s23 = sand.u32 1, %s19121_s5  }
 0xab0   : > { %p10084_p2 = pnand %p10100_p5, %p10624_p6  ;;  %s9562_s16 = scalar_lea.sflag [#allocation4], %s9561_s23 }
 0xab2   : > { %p10085_p3 = pneg %p10084_p2 }
 0xab4   : > { %10442 = dma.done.wait (%p10085_p3), %s9562_s16, 512  }
 0xab5   : > { %10444 = vsyncadd (%p10085_p3), %s9562_s16, 4294966784  ;;  %s9572_s20 = scalar_lea.sflag [#allocation13], %s9561_s23 }
 0xab6   : > { %10446 = dma.done.wait (%p10085_p3), %s9572_s20, 512  }
 0xab7   : > { %10448 = vsyncadd (%p10085_p3), %s9572_s20, 4294966784  ;;  %s19123_s27 = sld [smem:[#allocation22_spill]]  ;;  %s19126_s24 = smov %s10455_s25 }
 0xab8   : > { %s19124_s17 = sld [smem:[#allocation20_spill]] }
 0xab9   : > { %s19125_s26 = sld [smem:[#allocation23_spill]] }
 0xabd   : > { %p34_p4 = scmp.ge.s32.totalorder %s19123_s27, 4  }
 0xabe   : > { %s19127_s25 = smov %s19124_s17 }
 0xabf   :  { %36 = sbr.rel (!%p34_p4) target bundleno = 18 (0x12), region = 168 }
 0xac4   :  { %9578 = vsyncpa [#allocation3], 1 }
 0xac5   :  { %9580 = vsyncpa [#allocation3 + $0x1], 1 }
 0xac6   :  { %9581 = vsyncpa [#allocation6], 1 }
 0xac7   :  { %9582 = vsyncpa [#allocation9], 1 }
 0xac8   :  { %9583 = vsyncpa [#allocation4], 1 }
 0xac9   :  { %9585 = vsyncpa [#allocation4 + $0x1], 1 }
 0xaca   :  { %9586 = vsyncpa [#allocation13], 1 }
 0xacb   :  { %9588 = vsyncpa [#allocation13 + $0x1], 1 }

</bundles_post_ra>
